<compile_context>
chip_gen: v5e
topology: v5e:2x2
jax: 0.10.0
libtpu: 0.0.40
codegen_flags: <defaults>
</compile_context>

<pallas_src>
import jax
import jax.numpy as jnp
from jax import lax
from jax.experimental import pallas as pl
from jax.experimental.pallas import tpu as pltpu

_BN_EPS = 1e-5
_LANE = 128
_MIB = 1024 * 1024


def _residual_block_kernel(x_ref, w1_ref, b1_ref, w2_ref, b2_ref, out_ref, ypad_ref):
    """Grid = (batch, H-tiles). One TH-row output tile per step.

    x_ref   : (1, H+4, W+2, Cp) bf16  spatially padded input (2-row / 1-col halo)
    w{1,2}  : (9*Cp, Cp)        bf16  3x3 weights, tap-major, BN scale folded in
    b{1,2}  : (1, Cp)           f32   folded BN shift
    out_ref : (1, TH, W, Cp)    bf16
    ypad_ref: (TH+2, W+2, Cp)   bf16  conv2 input scratch (1-pixel zero border)
    """
    _, TH, W, Cp = out_ref.shape
    h = pl.program_id(1)
    n_h = pl.num_programs(1)
    h0 = pl.multiple_of(h * TH, TH)       # first output row of this tile (image coords)

    def conv3x3(load_tap, rows, w_ref):
        # Fused-K im2col: 9 ref-sliced taps concatenated on the lane dim -> one
        # MXU matmul with f32 accumulation (no zero-init accumulator at all).
        # TODO(synk): on v7x, if the bundle dump shows the vst/XLU slots binding,
        # split this into 3 accumulating K=3*Cp dots (one per kx, MRB in-place
        # accumulate) and/or replace the sublane-misaligned pl.ds(kx, W) slices
        # with full-width loads + pltpu.roll; keep the fused-K dot on v5e/v6e.
        taps = [load_tap(ky, kx).reshape(rows * W, Cp)
                for ky in range(3) for kx in range(3)]
        patch = jnp.concatenate(taps, axis=-1)                 # (rows*W, 9*Cp) bf16
        return jnp.dot(patch, w_ref[...],                      # f32 accumulation
                       preferred_element_type=jnp.float32)

    # ---- conv1 + BN1 + ReLU over TH+2 rows (tile + 1-row halo each side) ----
    # x_ref row = image row + 2, x_ref col = image col + 1.
    y1 = conv3x3(lambda ky, kx: x_ref[0, pl.ds(h0 + ky, TH + 2), pl.ds(kx, W), :],
                 TH + 2, w1_ref)
    y1 = jnp.maximum(y1 + b1_ref[...], 0.0)

    # Stage conv2's padded input. The interior is fully overwritten every step,
    # so only the 1-pixel border needs zeroing: the two W-border columns every
    # step (safe under "parallel"/core-split grid axes) and the H-halo rows only
    # where this tile touches the true top/bottom image edge.
    ypad_ref[:, pl.ds(1, W), :] = y1.reshape(TH + 2, W, Cp).astype(ypad_ref.dtype)
    ypad_ref[:, pl.ds(0, 1), :] = jnp.zeros((TH + 2, 1, Cp), ypad_ref.dtype)
    ypad_ref[:, pl.ds(W + 1, 1), :] = jnp.zeros((TH + 2, 1, Cp), ypad_ref.dtype)

    @pl.when(h == 0)
    def _():                                  # top halo row is conv2's zero padding
        ypad_ref[pl.ds(0, 1), :, :] = jnp.zeros((1, W + 2, Cp), ypad_ref.dtype)

    @pl.when(h == n_h - 1)
    def _():                                  # bottom halo row is conv2's zero padding
        ypad_ref[pl.ds(TH + 1, 1), :, :] = jnp.zeros((1, W + 2, Cp), ypad_ref.dtype)

    # ---- conv2 + BN2 ----
    y2 = conv3x3(lambda ky, kx: ypad_ref[pl.ds(ky, TH), pl.ds(kx, W), :],
                 TH, w2_ref)
    y2 = y2 + b2_ref[...]

    # ---- + residual -> ReLU ----
    res = x_ref[0, pl.ds(h0 + 2, TH), pl.ds(1, W), :].reshape(TH * W, Cp)
    out = jnp.maximum(y2 + res.astype(jnp.float32), 0.0)
    out_ref[...] = out.reshape(1, TH, W, Cp).astype(out_ref.dtype)


# ----------------------------- host-side helpers ----------------------------

def _round_up(x, m):
    return (x + m - 1) // m * m


def _fold_bn(gamma, beta, mean, var, eps=_BN_EPS):
    scale = gamma / jnp.sqrt(var + eps)
    shift = beta - mean * scale
    return scale, shift


def _prep_weight(w_oihw, scale, c_pad):
    # torch (Cout, Cin, 3, 3) -> tap-major (9, Cin, Cout), fold BN scale into Cout,
    # zero-pad channels to the lane width, flatten to (9*Cp, Cp), cast to bf16.
    c_out, c_in, kh, kw = w_oihw.shape
    w = jnp.transpose(w_oihw, (2, 3, 1, 0)).reshape(kh * kw, c_in, c_out)
    w = w * scale[None, None, :]
    w = jnp.pad(w, ((0, 0), (0, c_pad - c_in), (0, c_pad - c_out)))
    return w.reshape(kh * kw * c_pad, c_pad).astype(jnp.bfloat16)


_VMEM_CAP_CACHE = None


def _vmem_capacity_bytes():
    """Per-core VMEM capacity; falls back to the smallest generation (v7x, 64 MiB)."""
    global _VMEM_CAP_CACHE
    if _VMEM_CAP_CACHE is None:
        cap = None
        try:
            cap = getattr(pltpu.get_tpu_info(), "vmem_capacity_bytes", None)
        except Exception:
            cap = None
        _VMEM_CAP_CACHE = int(cap) if cap else 64 * _MIB
    return _VMEM_CAP_CACHE


def _vmem_limit_bytes():
    cap = _vmem_capacity_bytes()
    # Leave headroom for Mosaic internal scratch + its own pipeline buffers:
    # ~16 MiB on 64 MiB parts (v7x), ~28 MiB on 128 MiB parts (v5e/v6e).
    headroom = 16 * _MIB if cap <= 64 * _MIB else 28 * _MIB
    return max(32 * _MIB, cap - headroom)


def _plan_tiles(N, H, W, Cp, vmem_limit):
    """Pick the H-tile height TH and the residency (buffer count) of the padded
    image so the per-step VMEM footprint stays inside ~70% of the limit."""
    budget = int(0.70 * vmem_limit)

    x_img = (H + 4) * (W + 2) * Cp * 2                 # one resident padded image (bf16)
    x_buffers = 2 if 2 * x_img <= budget // 2 else 1
    # TODO(synk): for images where even one resident copy dominates the budget,
    # move x to memory_space=pl.ANY and manually double-buffer a (TH+4)-row window.

    w_bytes = 2 * (9 * Cp * Cp * 2) + 2 * (Cp * 4)     # Buffered(1) weights + shifts

    def step_bytes(th):
        b_out = 2 * th * W * Cp * 2                    # double-buffered output tile
        b_pad = (th + 2) * (W + 2) * Cp * 2            # ypad scratch
        b_im = (th + 2) * W * 9 * Cp * 2 + (th + 2) * W * Cp * 4   # im2col + f32 acc
        return x_buffers * x_img + w_bytes + b_out + b_pad + b_im

    # Candidate tile heights: divisors of H (no ragged tiles), capped at 32 rows.
    # TODO(synk): masked/short last tile for H values without a useful divisor.
    cands = [d for d in range(min(H, 32), 0, -1) if H % d == 0]
    if N == 1:  # keep both megacore TensorCores busy: need >= 2 grid steps
        multi = [d for d in cands if H // d >= 2]
        if multi:
            cands = multi

    # Prefer M = TH*W a multiple of 256 (no ragged final MXU pass), then largest TH.
    for want_aligned in (True, False):
        for d in cands:
            if want_aligned and (d * W) % 256 != 0:
                continue
            if step_bytes(d) <= budget:
                return d, x_buffers
    return cands[-1], x_buffers                        # smallest divisor; compiler arbitrates


def _spec(block_shape, index_map, buffers=2):
    """BlockSpec with an explicit pipeline buffer count (Buffered(1) for operands
    that are fetched once / rarely); falls back gracefully on older jax."""
    if buffers == 2:
        return pl.BlockSpec(block_shape, index_map)
    try:
        return pl.BlockSpec(block_shape, index_map, pipeline_mode=pl.Buffered(buffers))
    except (TypeError, AttributeError):
        return pl.BlockSpec(block_shape, index_map)


# ------------------------------- entry points --------------------------------

def residual_block_nhwc(x_nhwc, w1, g1, be1, m1, v1, w2, g2, be2, m2, v2):
    """NHWC in / NHWC(bf16) out — use this to keep the model NHWC end-to-end."""
    N, H, W, C = x_nhwc.shape
    Cp = _round_up(C, _LANE)

    vmem_limit = _vmem_limit_bytes()
    TH, x_buffers = _plan_tiles(N, H, W, Cp, vmem_limit)
    n_h = H // TH

    # One fused pad+cast: 2-row / 1-col zero halo + channel padding to lane width.
    # TODO(synk): fold this pad into the kernel (pl.ANY input + in-kernel staging)
    # to avoid materializing a second padded activation copy in HBM.
    xp = jnp.pad(x_nhwc.astype(jnp.bfloat16),
                 ((0, 0), (2, 2), (1, 1), (0, Cp - C)))

    s1, sh1 = _fold_bn(g1, be1, m1, v1)
    s2, sh2 = _fold_bn(g2, be2, m2, v2)
    w1k = _prep_weight(w1, s1, Cp)
    w2k = _prep_weight(w2, s2, Cp)
    b1 = jnp.pad(sh1, (0, Cp - C)).reshape(1, Cp).astype(jnp.float32)
    b2 = jnp.pad(sh2, (0, Cp - C)).reshape(1, Cp).astype(jnp.float32)

    flops = 2 * (2 * N * H * W * (9 * Cp) * Cp)        # two 3x3 convs on the MXU
    bytes_accessed = (xp.size * 2 + w1k.size * 2 + w2k.size * 2
                      + b1.size * 4 + b2.size * 4 + N * H * W * Cp * 2)

    out = pl.pallas_call(
        _residual_block_kernel,
        out_shape=jax.ShapeDtypeStruct((N, H, W, Cp), jnp.bfloat16),
        grid_spec=pltpu.PrefetchScalarGridSpec(
            num_scalar_prefetch=0,
            grid=(N, n_h),
            in_specs=[
                # Whole padded image: block index depends only on n, so it stays
                # VMEM-resident (no re-DMA) while its H-tiles execute; drops to a
                # single pipeline buffer when double-buffering it would blow the
                # VMEM budget.
                _spec((1, H + 4, W + 2, Cp), lambda n, h: (n, 0, 0, 0), x_buffers),
                # Invariant operands: constant index_map + single pipeline buffer
                # (fetched once, the second buffer was pure VMEM waste).
                _spec((9 * Cp, Cp), lambda n, h: (0, 0), 1),
                _spec((1, Cp), lambda n, h: (0, 0), 1),
                _spec((9 * Cp, Cp), lambda n, h: (0, 0), 1),
                _spec((1, Cp), lambda n, h: (0, 0), 1),
            ],
            out_specs=pl.BlockSpec((1, TH, W, Cp), lambda n, h: (n, h, 0, 0)),
            scratch_shapes=[pltpu.VMEM((TH + 2, W + 2, Cp), jnp.bfloat16)],
        ),
        compiler_params=pltpu.CompilerParams(
            dimension_semantics=("parallel", "parallel"),
            vmem_limit_bytes=vmem_limit,
        ),
        cost_estimate=pl.CostEstimate(
            flops=flops, transcendentals=0, bytes_accessed=bytes_accessed),
    )(xp, w1k, b1, w2k, b2)

    return out[:, :, :, :C]


@jax.jit
def residual_block_forward(x_nchw, w1, g1, be1, m1, v1, w2, g2, be2, m2, v2):
    """NCHW in / NCHW out — mirrors ResidualBlock.forward (BN in eval mode)."""
    x = jnp.transpose(x_nchw, (0, 2, 3, 1))          # NHWC: channels on the lane dim
    y = residual_block_nhwc(x, w1, g1, be1, m1, v1, w2, g2, be2, m2, v2)
    return jnp.transpose(y, (0, 3, 1, 2)).astype(x_nchw.dtype)


# ----------------------------- references ----------------------------------

def _conv3x3_same(x_nhwc, w_hwio):
    return lax.conv_general_dilated(
        x_nhwc, w_hwio, window_strides=(1, 1), padding="SAME",
        dimension_numbers=("NHWC", "HWIO", "NHWC"))


def _reference_f32(x_nchw, w1, g1, be1, m1, v1, w2, g2, be2, m2, v2):
    """Pure-f32 reference with the exact module semantics (eval-mode BN)."""
    x = jnp.transpose(x_nchw, (0, 2, 3, 1)).astype(jnp.float32)

    def bn(y, g, b, m, v):
        return (y - m) / jnp.sqrt(v + _BN_EPS) * g + b

    y = jax.nn.relu(bn(_conv3x3_same(x, jnp.transpose(w1, (2, 3, 1, 0))), g1, be1, m1, v1))
    y = bn(_conv3x3_same(y, jnp.transpose(w2, (2, 3, 1, 0))), g2, be2, m2, v2)
    y = jax.nn.relu(y + x)
    return jnp.transpose(y, (0, 3, 1, 2))


def _reference_bf16_matched(x_nchw, w1, g1, be1, m1, v1, w2, g2, be2, m2, v2):
    """Reference with the kernel's dtype policy (bf16 storage / folded bf16
    weights, f32 accumulation) — should match the Pallas kernel closely."""
    x = jnp.transpose(x_nchw, (0, 2, 3, 1)).astype(jnp.bfloat16).astype(jnp.float32)
    s1, b1 = _fold_bn(g1, be1, m1, v1)
    s2, b2 = _fold_bn(g2, be2, m2, v2)
    w1q = (jnp.transpose(w1, (2, 3, 1, 0)) * s1).astype(jnp.bfloat16).astype(jnp.float32)
    w2q = (jnp.transpose(w2, (2, 3, 1, 0)) * s2).astype(jnp.bfloat16).astype(jnp.float32)
    y1 = jax.nn.relu(_conv3x3_same(x, w1q) + b1)
    y1 = y1.astype(jnp.bfloat16).astype(jnp.float32)
    y2 = _conv3x3_same(y1, w2q) + b2
    out = jax.nn.relu(y2 + x).astype(jnp.bfloat16).astype(jnp.float32)
    return jnp.transpose(out, (0, 3, 1, 2))


if __name__ == "__main__":
    N, C, H, W = 2, 4, 16, 16
    key = jax.random.PRNGKey(0)
    keys = jax.random.split(key, 11)

    x = jax.random.normal(keys[0], (N, C, H, W), jnp.float32)
    # Conv weights: PyTorch layout (Cout, Cin, 3, 3), no bias.
    w1 = jax.random.normal(keys[1], (C, C, 3, 3), jnp.float32) * 0.2
    w2 = jax.random.normal(keys[2], (C, C, 3, 3), jnp.float32) * 0.2
    # BatchNorm params (per channel): gamma, beta, running_mean, running_var.
    g1 = 1.0 + 0.1 * jax.random.normal(keys[3], (C,), jnp.float32)
    be1 = 0.1 * jax.random.normal(keys[4], (C,), jnp.float32)
    m1 = 0.1 * jax.random.normal(keys[5], (C,), jnp.float32)
    v1 = 1.0 + 0.1 * jnp.abs(jax.random.normal(keys[6], (C,), jnp.float32))
    g2 = 1.0 + 0.1 * jax.random.normal(keys[7], (C,), jnp.float32)
    be2 = 0.1 * jax.random.normal(keys[8], (C,), jnp.float32)
    m2 = 0.1 * jax.random.normal(keys[9], (C,), jnp.float32)
    v2 = 1.0 + 0.1 * jnp.abs(jax.random.normal(keys[10], (C,), jnp.float32))

    args = (x, w1, g1, be1, m1, v1, w2, g2, be2, m2, v2)
    out = jax.block_until_ready(residual_block_forward(*args))
    assert out.shape == (N, C, H, W)

    # Structural check: reference using the same bf16-storage / f32-accum policy.
    ref_q = _reference_bf16_matched(*args)
    err_q = jnp.max(jnp.abs(out - ref_q))
    assert jnp.allclose(out, ref_q, rtol=1e-2, atol=1e-2), f"matched-ref max abs err {err_q}"

    # Semantic check vs. the pure-f32 module math (slack for bf16 rounding).
    ref = _reference_f32(*args)
    err = jnp.max(jnp.abs(out - ref))
    assert jnp.allclose(out, ref, rtol=1e-1, atol=2e-1), f"f32-ref max abs err {err}"

    print("KERNEL_OK")
</pallas_src>

<mosaic_0001>
module attributes {stable_mosaic.version = 11 : i64} {
  func.func @_residual_block_kernel(%arg0: i32, %arg1: i32, %arg2: memref<1x20x18x128xbf16, #tpu.memory_space<vmem>>, %arg3: memref<1152x128xbf16, #tpu.memory_space<vmem>>, %arg4: memref<1x128xf32, #tpu.memory_space<vmem>>, %arg5: memref<1152x128xbf16, #tpu.memory_space<vmem>>, %arg6: memref<1x128xf32, #tpu.memory_space<vmem>>, %arg7: memref<1x16x16x128xbf16, #tpu.memory_space<vmem>>, %arg8: memref<18x18x128xbf16, #tpu.memory_space<vmem>>) attributes {dimension_semantics = [#tpu.dimension_semantics<parallel>, #tpu.dimension_semantics<parallel>], iteration_bounds = array<i64: 2, 1>, scalar_prefetch = 0 : i64, scratch_operands = 1 : i64, tpu.core_type = #tpu.core_type<tc>, window_params = [{transform_indices = @transform_0, window_bounds = array<i64: 1, 20, 18, 128>}, {pipeline_mode = #tpu.pipeline_mode<synchronous>, transform_indices = @transform_1, window_bounds = array<i64: 1152, 128>}, {pipeline_mode = #tpu.pipeline_mode<synchronous>, transform_indices = @transform_2, window_bounds = array<i64: 1, 128>}, {pipeline_mode = #tpu.pipeline_mode<synchronous>, transform_indices = @transform_3, window_bounds = array<i64: 1152, 128>}, {pipeline_mode = #tpu.pipeline_mode<synchronous>, transform_indices = @transform_4, window_bounds = array<i64: 1, 128>}, {transform_indices = @transform_5, window_bounds = array<i64: 1, 16, 16, 128>}]} {
    %c16_i32 = arith.constant 16 : i32
    %0 = arith.muli %arg1, %c16_i32 : i32
    %1 = tpu.assume_multiple %0, 16 : i32
    %c0_i32 = arith.constant 0 : i32
    %2 = arith.addi %1, %c0_i32 : i32
    %c0 = arith.constant 0 : index
    %3 = arith.index_cast %2 : i32 to index
    %c0_0 = arith.constant 0 : index
    %c0_1 = arith.constant 0 : index
    %4 = vector.load %arg2[%c0, %3, %c0_0, %c0_1] : memref<1x20x18x128xbf16, #tpu.memory_space<vmem>>, vector<1x18x16x128xbf16>
    %5 = vector.shape_cast %4 : vector<1x18x16x128xbf16> to vector<18x16x128xbf16>
    %6 = vector.shape_cast %5 : vector<18x16x128xbf16> to vector<288x128xbf16>
    %c0_i32_2 = arith.constant 0 : i32
    %7 = arith.addi %1, %c0_i32_2 : i32
    %c0_3 = arith.constant 0 : index
    %8 = arith.index_cast %7 : i32 to index
    %c1 = arith.constant 1 : index
    %c0_4 = arith.constant 0 : index
    %9 = vector.load %arg2[%c0_3, %8, %c1, %c0_4] : memref<1x20x18x128xbf16, #tpu.memory_space<vmem>>, vector<1x18x16x128xbf16>
    %10 = vector.shape_cast %9 : vector<1x18x16x128xbf16> to vector<18x16x128xbf16>
    %11 = vector.shape_cast %10 : vector<18x16x128xbf16> to vector<288x128xbf16>
    %c0_i32_5 = arith.constant 0 : i32
    %12 = arith.addi %1, %c0_i32_5 : i32
    %c0_6 = arith.constant 0 : index
    %13 = arith.index_cast %12 : i32 to index
    %c2 = arith.constant 2 : index
    %c0_7 = arith.constant 0 : index
    %14 = vector.load %arg2[%c0_6, %13, %c2, %c0_7] : memref<1x20x18x128xbf16, #tpu.memory_space<vmem>>, vector<1x18x16x128xbf16>
    %15 = vector.shape_cast %14 : vector<1x18x16x128xbf16> to vector<18x16x128xbf16>
    %16 = vector.shape_cast %15 : vector<18x16x128xbf16> to vector<288x128xbf16>
    %c1_i32 = arith.constant 1 : i32
    %17 = arith.addi %1, %c1_i32 : i32
    %c0_8 = arith.constant 0 : index
    %18 = arith.index_cast %17 : i32 to index
    %c0_9 = arith.constant 0 : index
    %c0_10 = arith.constant 0 : index
    %19 = vector.load %arg2[%c0_8, %18, %c0_9, %c0_10] : memref<1x20x18x128xbf16, #tpu.memory_space<vmem>>, vector<1x18x16x128xbf16>
    %20 = vector.shape_cast %19 : vector<1x18x16x128xbf16> to vector<18x16x128xbf16>
    %21 = vector.shape_cast %20 : vector<18x16x128xbf16> to vector<288x128xbf16>
    %c1_i32_11 = arith.constant 1 : i32
    %22 = arith.addi %1, %c1_i32_11 : i32
    %c0_12 = arith.constant 0 : index
    %23 = arith.index_cast %22 : i32 to index
    %c1_13 = arith.constant 1 : index
    %c0_14 = arith.constant 0 : index
    %24 = vector.load %arg2[%c0_12, %23, %c1_13, %c0_14] : memref<1x20x18x128xbf16, #tpu.memory_space<vmem>>, vector<1x18x16x128xbf16>
    %25 = vector.shape_cast %24 : vector<1x18x16x128xbf16> to vector<18x16x128xbf16>
    %26 = vector.shape_cast %25 : vector<18x16x128xbf16> to vector<288x128xbf16>
    %c1_i32_15 = arith.constant 1 : i32
    %27 = arith.addi %1, %c1_i32_15 : i32
    %c0_16 = arith.constant 0 : index
    %28 = arith.index_cast %27 : i32 to index
    %c2_17 = arith.constant 2 : index
    %c0_18 = arith.constant 0 : index
    %29 = vector.load %arg2[%c0_16, %28, %c2_17, %c0_18] : memref<1x20x18x128xbf16, #tpu.memory_space<vmem>>, vector<1x18x16x128xbf16>
    %30 = vector.shape_cast %29 : vector<1x18x16x128xbf16> to vector<18x16x128xbf16>
    %31 = vector.shape_cast %30 : vector<18x16x128xbf16> to vector<288x128xbf16>
    %c2_i32 = arith.constant 2 : i32
    %32 = arith.addi %1, %c2_i32 : i32
    %c0_19 = arith.constant 0 : index
    %33 = arith.index_cast %32 : i32 to index
    %c0_20 = arith.constant 0 : index
    %c0_21 = arith.constant 0 : index
    %34 = vector.load %arg2[%c0_19, %33, %c0_20, %c0_21] : memref<1x20x18x128xbf16, #tpu.memory_space<vmem>>, vector<1x18x16x128xbf16>
    %35 = vector.shape_cast %34 : vector<1x18x16x128xbf16> to vector<18x16x128xbf16>
    %36 = vector.shape_cast %35 : vector<18x16x128xbf16> to vector<288x128xbf16>
    %c2_i32_22 = arith.constant 2 : i32
    %37 = arith.addi %1, %c2_i32_22 : i32
    %c0_23 = arith.constant 0 : index
    %38 = arith.index_cast %37 : i32 to index
    %c1_24 = arith.constant 1 : index
    %c0_25 = arith.constant 0 : index
    %39 = vector.load %arg2[%c0_23, %38, %c1_24, %c0_25] : memref<1x20x18x128xbf16, #tpu.memory_space<vmem>>, vector<1x18x16x128xbf16>
    %40 = vector.shape_cast %39 : vector<1x18x16x128xbf16> to vector<18x16x128xbf16>
    %41 = vector.shape_cast %40 : vector<18x16x128xbf16> to vector<288x128xbf16>
    %c2_i32_26 = arith.constant 2 : i32
    %42 = arith.addi %1, %c2_i32_26 : i32
    %c0_27 = arith.constant 0 : index
    %43 = arith.index_cast %42 : i32 to index
    %c2_28 = arith.constant 2 : index
    %c0_29 = arith.constant 0 : index
    %44 = vector.load %arg2[%c0_27, %43, %c2_28, %c0_29] : memref<1x20x18x128xbf16, #tpu.memory_space<vmem>>, vector<1x18x16x128xbf16>
    %45 = vector.shape_cast %44 : vector<1x18x16x128xbf16> to vector<18x16x128xbf16>
    %46 = vector.shape_cast %45 : vector<18x16x128xbf16> to vector<288x128xbf16>
    %47 = tpu.concatenate %6, %11, %16, %21, %26, %31, %36, %41, %46 in 1 : vector<288x128xbf16>, vector<288x128xbf16>, vector<288x128xbf16>, vector<288x128xbf16>, vector<288x128xbf16>, vector<288x128xbf16>, vector<288x128xbf16>, vector<288x128xbf16>, vector<288x128xbf16> -> vector<288x1152xbf16>
    %c0_30 = arith.constant 0 : index
    %c0_31 = arith.constant 0 : index
    %48 = vector.load %arg3[%c0_30, %c0_31] : memref<1152x128xbf16, #tpu.memory_space<vmem>>, vector<1152x128xbf16>
    %cst = arith.constant dense<0.000000e+00> : vector<288x128xf32>
    %49 = tpu.matmul %47, %48, %cst {dimension_numbers = #tpu.dot_dimension_numbers<[1], [0], [0], [1], [0, 0, 1, 1], [], []>} : vector<288x1152xbf16>, vector<1152x128xbf16>, vector<288x128xf32> -> vector<288x128xf32>
    %c0_32 = arith.constant 0 : index
    %c0_33 = arith.constant 0 : index
    %50 = vector.load %arg4[%c0_32, %c0_33] : memref<1x128xf32, #tpu.memory_space<vmem>>, vector<1x128xf32>
    %51 = vector.broadcast %50 : vector<1x128xf32> to vector<288x128xf32>
    %52 = arith.addf %49, %51 : vector<288x128xf32>
    %cst_34 = arith.constant 0.000000e+00 : f32
    %53 = vector.broadcast %cst_34 : f32 to vector<288x128xf32>
    %54 = arith.maximumf %52, %53 : vector<288x128xf32>
    %55 = vector.shape_cast %54 : vector<288x128xf32> to vector<18x16x128xf32>
    %56 = arith.truncf %55 : vector<18x16x128xf32> to vector<18x16x128xbf16>
    %c0_35 = arith.constant 0 : index
    %c1_36 = arith.constant 1 : index
    %c0_37 = arith.constant 0 : index
    %57 = vector.load %arg8[%c0_35, %c1_36, %c0_37] : memref<18x18x128xbf16, #tpu.memory_space<vmem>>, vector<18x16x128xbf16>
    tpu.vector_store %arg8[%c0_35, %c1_36, %c0_37], %56 {strides = array<i32>} : memref<18x18x128xbf16, #tpu.memory_space<vmem>>, vector<18x16x128xbf16>,
    %cst_38 = arith.constant 0.000000e+00 : bf16
    %58 = vector.broadcast %cst_38 : bf16 to vector<18x1x128xbf16>
    %c0_39 = arith.constant 0 : index
    %c0_40 = arith.constant 0 : index
    %c0_41 = arith.constant 0 : index
    %59 = vector.load %arg8[%c0_39, %c0_40, %c0_41] : memref<18x18x128xbf16, #tpu.memory_space<vmem>>, vector<18x1x128xbf16>
    tpu.vector_store %arg8[%c0_39, %c0_40, %c0_41], %58 {strides = array<i32>} : memref<18x18x128xbf16, #tpu.memory_space<vmem>>, vector<18x1x128xbf16>,
    %cst_42 = arith.constant 0.000000e+00 : bf16
    %60 = vector.broadcast %cst_42 : bf16 to vector<18x1x128xbf16>
    %c0_43 = arith.constant 0 : index
    %c17 = arith.constant 17 : index
    %c0_44 = arith.constant 0 : index
    %61 = vector.load %arg8[%c0_43, %c17, %c0_44] : memref<18x18x128xbf16, #tpu.memory_space<vmem>>, vector<18x1x128xbf16>
    tpu.vector_store %arg8[%c0_43, %c17, %c0_44], %60 {strides = array<i32>} : memref<18x18x128xbf16, #tpu.memory_space<vmem>>, vector<18x1x128xbf16>,
    %c0_i32_45 = arith.constant 0 : i32
    %62 = arith.cmpi eq, %arg1, %c0_i32_45 : i32
    %63 = arith.extui %62 : i1 to i32
    %c0_i32_46 = arith.constant 0 : i32
    %64 = arith.cmpi ne, %63, %c0_i32_46 : i32
    scf.if %64 {
      %cst_90 = arith.constant 0.000000e+00 : bf16
      %104 = vector.broadcast %cst_90 : bf16 to vector<1x18x128xbf16>
      %c0_91 = arith.constant 0 : index
      %c0_92 = arith.constant 0 : index
      %c0_93 = arith.constant 0 : index
      %105 = vector.load %arg8[%c0_91, %c0_92, %c0_93] : memref<18x18x128xbf16, #tpu.memory_space<vmem>>, vector<1x18x128xbf16>
      tpu.vector_store %arg8[%c0_91, %c0_92, %c0_93], %104 {strides = array<i32>} : memref<18x18x128xbf16, #tpu.memory_space<vmem>>, vector<1x18x128xbf16>,
    } else {
    }
    %c0_i32_47 = arith.constant 0 : i32
    %65 = arith.cmpi eq, %arg1, %c0_i32_47 : i32
    %66 = arith.extui %65 : i1 to i32
    %c0_i32_48 = arith.constant 0 : i32
    %67 = arith.cmpi ne, %66, %c0_i32_48 : i32
    scf.if %67 {
      %cst_90 = arith.constant 0.000000e+00 : bf16
      %104 = vector.broadcast %cst_90 : bf16 to vector<1x18x128xbf16>
      %c17_91 = arith.constant 17 : index
      %c0_92 = arith.constant 0 : index
      %c0_93 = arith.constant 0 : index
      %105 = vector.load %arg8[%c17_91, %c0_92, %c0_93] : memref<18x18x128xbf16, #tpu.memory_space<vmem>>, vector<1x18x128xbf16>
      tpu.vector_store %arg8[%c17_91, %c0_92, %c0_93], %104 {strides = array<i32>} : memref<18x18x128xbf16, #tpu.memory_space<vmem>>, vector<1x18x128xbf16>,
    } else {
    }
    %c0_49 = arith.constant 0 : index
    %c0_50 = arith.constant 0 : index
    %c0_51 = arith.constant 0 : index
    %68 = vector.load %arg8[%c0_49, %c0_50, %c0_51] : memref<18x18x128xbf16, #tpu.memory_space<vmem>>, vector<16x16x128xbf16>
    %69 = vector.shape_cast %68 : vector<16x16x128xbf16> to vector<256x128xbf16>
    %c0_52 = arith.constant 0 : index
    %c1_53 = arith.constant 1 : index
    %c0_54 = arith.constant 0 : index
    %70 = vector.load %arg8[%c0_52, %c1_53, %c0_54] : memref<18x18x128xbf16, #tpu.memory_space<vmem>>, vector<16x16x128xbf16>
    %71 = vector.shape_cast %70 : vector<16x16x128xbf16> to vector<256x128xbf16>
    %c0_55 = arith.constant 0 : index
    %c2_56 = arith.constant 2 : index
    %c0_57 = arith.constant 0 : index
    %72 = vector.load %arg8[%c0_55, %c2_56, %c0_57] : memref<18x18x128xbf16, #tpu.memory_space<vmem>>, vector<16x16x128xbf16>
    %73 = vector.shape_cast %72 : vector<16x16x128xbf16> to vector<256x128xbf16>
    %c1_58 = arith.constant 1 : index
    %c0_59 = arith.constant 0 : index
    %c0_60 = arith.constant 0 : index
    %74 = vector.load %arg8[%c1_58, %c0_59, %c0_60] : memref<18x18x128xbf16, #tpu.memory_space<vmem>>, vector<16x16x128xbf16>
    %75 = vector.shape_cast %74 : vector<16x16x128xbf16> to vector<256x128xbf16>
    %c1_61 = arith.constant 1 : index
    %c1_62 = arith.constant 1 : index
    %c0_63 = arith.constant 0 : index
    %76 = vector.load %arg8[%c1_61, %c1_62, %c0_63] : memref<18x18x128xbf16, #tpu.memory_space<vmem>>, vector<16x16x128xbf16>
    %77 = vector.shape_cast %76 : vector<16x16x128xbf16> to vector<256x128xbf16>
    %c1_64 = arith.constant 1 : index
    %c2_65 = arith.constant 2 : index
    %c0_66 = arith.constant 0 : index
    %78 = vector.load %arg8[%c1_64, %c2_65, %c0_66] : memref<18x18x128xbf16, #tpu.memory_space<vmem>>, vector<16x16x128xbf16>
    %79 = vector.shape_cast %78 : vector<16x16x128xbf16> to vector<256x128xbf16>
    %c2_67 = arith.constant 2 : index
    %c0_68 = arith.constant 0 : index
    %c0_69 = arith.constant 0 : index
    %80 = vector.load %arg8[%c2_67, %c0_68, %c0_69] : memref<18x18x128xbf16, #tpu.memory_space<vmem>>, vector<16x16x128xbf16>
    %81 = vector.shape_cast %80 : vector<16x16x128xbf16> to vector<256x128xbf16>
    %c2_70 = arith.constant 2 : index
    %c1_71 = arith.constant 1 : index
    %c0_72 = arith.constant 0 : index
    %82 = vector.load %arg8[%c2_70, %c1_71, %c0_72] : memref<18x18x128xbf16, #tpu.memory_space<vmem>>, vector<16x16x128xbf16>
    %83 = vector.shape_cast %82 : vector<16x16x128xbf16> to vector<256x128xbf16>
    %c2_73 = arith.constant 2 : index
    %c2_74 = arith.constant 2 : index
    %c0_75 = arith.constant 0 : index
    %84 = vector.load %arg8[%c2_73, %c2_74, %c0_75] : memref<18x18x128xbf16, #tpu.memory_space<vmem>>, vector<16x16x128xbf16>
    %85 = vector.shape_cast %84 : vector<16x16x128xbf16> to vector<256x128xbf16>
    %86 = tpu.concatenate %69, %71, %73, %75, %77, %79, %81, %83, %85 in 1 : vector<256x128xbf16>, vector<256x128xbf16>, vector<256x128xbf16>, vector<256x128xbf16>, vector<256x128xbf16>, vector<256x128xbf16>, vector<256x128xbf16>, vector<256x128xbf16>, vector<256x128xbf16> -> vector<256x1152xbf16>
    %c0_76 = arith.constant 0 : index
    %c0_77 = arith.constant 0 : index
    %87 = vector.load %arg5[%c0_76, %c0_77] : memref<1152x128xbf16, #tpu.memory_space<vmem>>, vector<1152x128xbf16>
    %cst_78 = arith.constant dense<0.000000e+00> : vector<256x128xf32>
    %88 = tpu.matmul %86, %87, %cst_78 {dimension_numbers = #tpu.dot_dimension_numbers<[1], [0], [0], [1], [0, 0, 1, 1], [], []>} : vector<256x1152xbf16>, vector<1152x128xbf16>, vector<256x128xf32> -> vector<256x128xf32>
    %c0_79 = arith.constant 0 : index
    %c0_80 = arith.constant 0 : index
    %89 = vector.load %arg6[%c0_79, %c0_80] : memref<1x128xf32, #tpu.memory_space<vmem>>, vector<1x128xf32>
    %90 = vector.broadcast %89 : vector<1x128xf32> to vector<256x128xf32>
    %91 = arith.addf %88, %90 : vector<256x128xf32>
    %c2_i32_81 = arith.constant 2 : i32
    %92 = arith.addi %1, %c2_i32_81 : i32
    %c0_82 = arith.constant 0 : index
    %93 = arith.index_cast %92 : i32 to index
    %c1_83 = arith.constant 1 : index
    %c0_84 = arith.constant 0 : index
    %94 = vector.load %arg2[%c0_82, %93, %c1_83, %c0_84] : memref<1x20x18x128xbf16, #tpu.memory_space<vmem>>, vector<1x16x16x128xbf16>
    %95 = vector.shape_cast %94 : vector<1x16x16x128xbf16> to vector<16x16x128xbf16>
    %96 = vector.shape_cast %95 : vector<16x16x128xbf16> to vector<256x128xbf16>
    %97 = arith.extf %96 : vector<256x128xbf16> to vector<256x128xf32>
    %98 = arith.addf %91, %97 : vector<256x128xf32>
    %cst_85 = arith.constant 0.000000e+00 : f32
    %99 = vector.broadcast %cst_85 : f32 to vector<256x128xf32>
    %100 = arith.maximumf %98, %99 : vector<256x128xf32>
    %101 = vector.shape_cast %100 : vector<256x128xf32> to vector<1x16x16x128xf32>
    %102 = arith.truncf %101 : vector<1x16x16x128xf32> to vector<1x16x16x128xbf16>
    %c0_86 = arith.constant 0 : index
    %c0_87 = arith.constant 0 : index
    %c0_88 = arith.constant 0 : index
    %c0_89 = arith.constant 0 : index
    %103 = vector.load %arg7[%c0_86, %c0_87, %c0_88, %c0_89] : memref<1x16x16x128xbf16, #tpu.memory_space<vmem>>, vector<1x16x16x128xbf16>
    tpu.vector_store %arg7[%c0_86, %c0_87, %c0_88, %c0_89], %102 {strides = array<i32>} : memref<1x16x16x128xbf16, #tpu.memory_space<vmem>>, vector<1x16x16x128xbf16>,
    return
  }
  func.func @transform_0(%arg0: i32, %arg1: i32) -> (i32, i32, i32, i32) {
    %c0_i32 = arith.constant 0 : i32
    %c0_i32_0 = arith.constant 0 : i32
    %c0_i32_1 = arith.constant 0 : i32
    %c0_i32_2 = arith.constant 0 : i32
    return %arg0, %c0_i32, %c0_i32_0, %c0_i32_1 : i32, i32, i32, i32
  }
  func.func @transform_1(%arg0: i32, %arg1: i32) -> (i32, i32) {
    %c0_i32 = arith.constant 0 : i32
    %c0_i32_0 = arith.constant 0 : i32
    %c0_i32_1 = arith.constant 0 : i32
    return %c0_i32, %c0_i32_0 : i32, i32
  }
  func.func @transform_2(%arg0: i32, %arg1: i32) -> (i32, i32) {
    %c0_i32 = arith.constant 0 : i32
    %c0_i32_0 = arith.constant 0 : i32
    %c0_i32_1 = arith.constant 0 : i32
    return %c0_i32, %c0_i32_0 : i32, i32
  }
  func.func @transform_3(%arg0: i32, %arg1: i32) -> (i32, i32) {
    %c0_i32 = arith.constant 0 : i32
    %c0_i32_0 = arith.constant 0 : i32
    %c0_i32_1 = arith.constant 0 : i32
    return %c0_i32, %c0_i32_0 : i32, i32
  }
  func.func @transform_4(%arg0: i32, %arg1: i32) -> (i32, i32) {
    %c0_i32 = arith.constant 0 : i32
    %c0_i32_0 = arith.constant 0 : i32
    %c0_i32_1 = arith.constant 0 : i32
    return %c0_i32, %c0_i32_0 : i32, i32
  }
  func.func @transform_5(%arg0: i32, %arg1: i32) -> (i32, i32, i32, i32) {
    %c0_i32 = arith.constant 0 : i32
    %c0_i32_0 = arith.constant 0 : i32
    %c0_i32_1 = arith.constant 0 : i32
    return %arg0, %arg1, %c0_i32, %c0_i32_0 : i32, i32, i32, i32
  }
}

</mosaic_0001>

<bundles_post_ra>
// kernel: residual_block_forward.1
= control target key start
LH: loop header
LB: loop body
LE: loop exit
PB: predicated region body
PF: predicated region fallthrough
CT: control target
= control target key end

     0   :  { %s11518_s18 = smov 0   ;;  %s11520_s19 = smov 0   ;;  %s15547_s0 = inlined_call_operand.vmem [shape: bf16[2,20,18,128], index: 0, kind: input, shape index: {}]   ;;  %s15548_s1 = inlined_call_operand.vmem [shape: bf16[1152,128], index: 1, kind: input, shape index: {}]   ;;  %s15549_s2 = inlined_call_operand.vmem [shape: f32[1,128], index: 2, kind: input, shape index: {}]   ;;  %s15550_s3 = inlined_call_operand.vmem [shape: bf16[1152,128], index: 3, kind: input, shape index: {}]   ;;  %s15551_s4 = inlined_call_operand.vmem [shape: f32[1,128], index: 4, kind: input, shape index: {}]   ;;  %s15552_s5 = inlined_call_operand.vmem [shape: bf16[2,16,16,128], index: 5, kind: output, shape index: {}]  }
   0x1   :  { %s11522_s20 = smov 0  }
   0x2 LB: > { %s27_s21 = sadd.s32 1, %s11481_s19  ;;  %p9736_p0 = scmp.ge.s32.totalorder %s11485_s20, 1  ;;  %s11485_s20 = sphi %s11522_s20, %s15_s20   ;;  %s11481_s19 = sphi %s11520_s19, %s15842_s19   ;;  %s11477_s18 = sphi %s11518_s18, %s15841_s18  }
   0x3   : > { %p29_p1 = scmp.ge.s32.totalorder %s27_s21, 2  ;;  %p201_p2 = scmp.lt.s32.totalorder %s11485_s20, 3 }
   0x5   : > { %s15844_s21 = smov (%p29_p1, %s27_s21), 0  ;;  %p202_p3 = pnand %p9736_p0, %p201_p2 }
   0x7   : > { %205 = sbr.rel (%p202_p3) target bundleno = 1810 (0x712), region = 40 }
   0xc   : > { %v11082_v0 = vld [vmem:[%s15548_s1 + $0x38] sm:$0xff]  ;;  %p234_p4 = scmp.lt.s32.totalorder %s11477_s18, 1  ;;  %v11081_v2 = vld [vmem:[%s15548_s1 + $0x30] sm:$0xff]  ;;  %v11080_v4 = vld [vmem:[%s15548_s1 + $0x28] sm:$0xff]  ;;  %vm309_vm0 = vsmask.f32 3328 }
   0xd   : > { %v11090_v1 = vld [vmem:[%s15548_s1 + $0x78] sm:$0xff]  ;;  %3603 = vmatpush.bf16.msra.mxu0 %v11082_v0  ;;  %v11089_v3 = vld [vmem:[%s15548_s1 + $0x70] sm:$0xff]  ;;  %v11088_v6 = vld [vmem:[%s15548_s1 + $0x68] sm:$0xff]  ;;  %vm310_vm1 = vsmask.f32 7440  ;;  %vm816_vm3 = vcmask 1042432  }
   0xe   : > { %11362 = vmatpush.bf16.msra.mxu3 %v11090_v1  ;;  %s15846_s18 = smov (!%p234_p4, %s11477_s18), 1  ;;  %3702 = vmatpush.bf16.msra.mxu1 %v11090_v1  ;;  %v11557_v5 = vld [vmem:[%s15548_s1 + $0xb8] sm:$0xff]  ;;  %v11079_v16 = vld [vmem:[%s15548_s1 + $0x20] sm:$0xff]  ;;  %v11077_v39 = vld [vmem:[%s15548_s1 + $0x10] sm:$0xff]  ;;  %vm817_vm4 = vcmask 1046532   ;;  %vm4929_vm6 = vcmask 1043456  }
   0xf   : > { %s11378_s30 = smul.u32 240, %s15846_s18  ;;  %11370 = vmatpush.bf16.msra.mxu2 %v11557_v5  ;;  %v11087_v17 = vld [vmem:[%s15548_s1 + $0x60] sm:$0xff]  ;;  %v11078_v33 = vld [vmem:[%s15548_s1 + $0x18] sm:$0xff]  ;;  %v11085_v43 = vld [vmem:[%s15548_s1 + $0x50] sm:$0xff]  ;;  %vm4930_vm7 = vsmask.f32 7938 }
  0x10   : > { %v11086_v34 = vld [vmem:[%s15548_s1 + $0x58] sm:$0xff]  ;;  %vm11592_vm2 = vmor %vm309_vm0, %vm310_vm1  ;;  %v11076_v56 = vld [vmem:[%s15548_s1 + $0x8] sm:$0xff]  ;;  %vm4566_vm9 = vsmask.f32 256  ;;  %vm4567_vm10 = vsmask.f32 4368 }
  0x11   : > { %3604 = vmatpush.bf16.msra.mxu0 %v11081_v2  ;;  %s11565_s14 = scalar_lea.vmem %s15547_s0, %s11378_s30  ;;  %v11084_v57 = vld [vmem:[%s15548_s1 + $0x48] sm:$0xff]  ;;  %vm11777_vm5 = vmor %vm816_vm3, %vm817_vm4  ;;  %vm4936_vm11 = vcmask 1040384   ;;  %s11020_s25 = sshll.u32 %s15846_s18, 7 }
  0x12   : > { %11363 = vmatpush.bf16.msra.mxu3 %v11089_v3  ;;  %3703 = vmatpush.bf16.msra.mxu1 %v11089_v3  ;;  %v277_v7 = vld [vmem:[%s11565_s14 + $0x84] sm:$0xf]  ;;  %v278_v8 = vld [vmem:[%s11565_s14 + $0x88] sm:$0xf]  ;;  %v302_v13 = vld [vmem:[%s11565_s14 + $0x8c] sm:$0x1]  ;;  %s15152_s27 = scalar_lea.vmem %s15552_s5, %s11020_s25 }
  0x13   : > { %v577_v9 = vshrl.u32 %v277_v7, 16  ;;  %v580_v10 = vshll.u32 %v277_v7, 16  ;;  %v586_v11 = vshll.u32 %v278_v8, 16  ;;  %v590_v12 = vshrl.u32 %v278_v8, 16  ;;  %v255_v14 = vld [vmem:[%s11565_s14] sm:$0xf]  ;;  %vm13501_vm8 = vmand %vm4929_vm6, %vm4930_vm7 }
  0x14   : > { %v256_v15 = vld [vmem:[%s11565_s14 + $0x4] sm:$0xf]  ;;  %v313_v22 = vshrl.u32 %v255_v14, 16  ;;  %v316_v23 = vshll.u32 %v255_v14, 16  ;;  %v596_v26 = vshll.u32 %v302_v13, 16  ;;  %vm13516_vm12 = vmor %vm4566_vm9, %vm4567_vm10 }
  0x15   : > { %3605 = vmatpush.bf16.msra.mxu0 %v11080_v4  ;;  %v579_v18 = vrot.slane %v577_v9, 4  ;;  %v582_v19 = vrot.slane %v580_v10, 5  ;;  %v588_v20 = vrot.slane %v586_v11, 5  ;;  %v592_v21 = vrot.slane %v590_v12, 4  ;;  %v291_v27 = vld [vmem:[%s11565_s14 + $0x8] sm:$0x1]  ;;  %vm13523_vm13 = vmand %vm4936_vm11, %vm4566_vm9 }
  0x16   : > { %11364 = vmatpush.bf16.msra.mxu3 %v11088_v6  ;;  %3704 = vmatpush.bf16.msra.mxu1 %v11088_v6  ;;  %v322_v24 = vshll.u32 %v256_v15, 16  ;;  %v326_v28 = vshrl.u32 %v256_v15, 16  ;;  %v315_v30 = vrot.slane %v313_v22, 4  ;;  %v318_v31 = vrot.slane %v316_v23, 5  ;;  %v279_v46 = vld [vmem:[%s11565_s14 + $0x90] sm:$0xf]  ;;  %vm13548_vm14 = vmand %vm4936_vm11, %vm4930_vm7 }
  0x17   : > { %v583_v25 = vor.u32 %v582_v19, %v579_v18  ;;  %v593_v29 = vor.u32 %v592_v21, %v588_v20  ;;  %v332_v37 = vshll.u32 %v291_v27, 16  ;;  %v598_v42 = vrot.slane %v596_v26, 5  ;;  %v280_v49 = vld [vmem:[%s11565_s14 + $0x94] sm:$0xf]  ;;  %v257_v50 = vld [vmem:[%s11565_s14 + $0xc] sm:$0xf] }
  0x18   : > { %v324_v32 = vrot.slane %v322_v24, 5  ;;  %v328_v35 = vrot.slane %v326_v28, 4  ;;  %v319_v36 = vor.u32 %v318_v31, %v315_v30  ;;  %v258_v51 = vld [vmem:[%s11565_s14 + $0x10] sm:$0xf]  ;;  %v601_v54 = vshrl.u32 %v279_v46, 16  ;;  %v11075_v7 = vld [vmem:[%s15548_s1] sm:$0xff] }
  0x19   : > { %3606 = vmatpush.bf16.msra.mxu0 %v11079_v16  ;;  %v584_v40 = vrot.slane %v583_v25, 4  ;;  %v594_v41 = vrot.slane %v593_v29, 4  ;;  %v334_v48 = vrot.slane %v332_v37, 5  ;;  %v604_v55 = vshll.u32 %v279_v46, 16  ;;  %v11083_v8 = vld [vmem:[%s15548_s1 + $0x40] sm:$0xff] }
  0x1a   : > { %11365 = vmatpush.bf16.msra.mxu3 %v11087_v17  ;;  %3705 = vmatpush.bf16.msra.mxu1 %v11087_v17  ;;  %v329_v38 = vor.u32 %v328_v35, %v324_v32  ;;  %v320_v45 = vrot.slane %v319_v36, 4  ;;  %v610_v59 = vshll.u32 %v280_v49, 16  ;;  %v614_v60 = vshrl.u32 %v280_v49, 16  ;;  %v11621_v13 = vld [vmem:[%s11565_s14 + $0x98] sm:$0x1]  ;;  %v11021_v19 = vld [vmem:[%s11565_s14] sm:$0xff] }
  0x1b   : > { %v589_v52 = vsel %vm11592_vm2, %v584_v40, %v588_v20  ;;  %v599_v53 = vsel %vm11592_vm2, %v594_v41, %v598_v42  ;;  %v337_v61 = vshrl.u32 %v257_v50, 16  ;;  %v340_v63 = vshll.u32 %v257_v50, 16  ;;  %v292_v18 = vld [vmem:[%s11565_s14 + $0x14] sm:$0x1]  ;;  %v281_v28 = vld [vmem:[%s11565_s14 + $0x9c] sm:$0xf] }
  0x1c   : > { %v330_v47 = vrot.slane %v329_v38, 4  ;;  %v325_v58 = vsel %vm11592_vm2, %v320_v45, %v324_v32  ;;  %v346_v0 = vshll.u32 %v258_v51, 16  ;;  %v350_v1 = vshrl.u32 %v258_v51, 16  ;;  %v11629_v29 = vld [vmem:[%s11565_s14 + $0xa0] sm:$0xf] }
  0x1d   : > { %3607 = vmatpush.bf16.msra.mxu0 %v11078_v33  ;;  %v2433_v2 = vunpack.c.l.b16 %v589_v52  ;;  %v2434_v3 = vunpack.c.l.b16 %v599_v53  ;;  %v603_v4 = vrot.slane %v601_v54, 4  ;;  %v606_v6 = vrot.slane %v604_v55, 5  ;;  %v259_v33 = vld [vmem:[%s11565_s14 + $0x18] sm:$0xf]  ;;  %v260_v37 = vld [vmem:[%s11565_s14 + $0x1c] sm:$0xf] }
  0x1e   : > { %11366 = vmatpush.bf16.msra.mxu3 %v11086_v34  ;;  %3706 = vmatpush.bf16.msra.mxu1 %v11086_v34  ;;  %v335_v62 = vsel %vm11592_vm2, %v330_v47, %v334_v48  ;;  %v2411_v9 = vunpack.c.l.b16 %v325_v58  ;;  %v612_v11 = vrot.slane %v610_v59, 5  ;;  %v616_v12 = vrot.slane %v614_v60, 4  ;;  %v11097_v34 = vld [vmem:[%s15548_s1 + $0xb0] sm:$0xff] }
  0x1f   : > { %v2412_v10 = vunpack.c.l.b16 %v335_v62  ;;  %v339_v14 = vrot.slane %v337_v61, 4  ;;  %v342_v15 = vrot.slane %v340_v63, 5  ;;  %v348_v16 = vrot.slane %v346_v0, 5  ;;  %11371 = vmatpush.bf16.msra.mxu2 %v11097_v34  ;;  %v293_v0 = vld [vmem:[%s11565_s14 + $0x20] sm:$0x1] }
  0x20   : > { %v352_v17 = vrot.slane %v350_v1, 4  ;;  %v2458_v20 = vpack.c.b16 %v2434_v3, %v2433_v2  ;;  %v607_v22 = vor.u32 %v606_v6, %v603_v4  ;;  %v617_v23 = vor.u32 %v616_v12, %v612_v11  ;;  %v11022_v4 = vld [vmem:[%s11565_s14 + $0xc] sm:$0xff] }
  0x21   : > { %3608 = vmatpush.bf16.msra.mxu0 %v11077_v39  ;;  %v2447_v21 = vpack.c.b16 %v2412_v10, %v2411_v9  ;;  %v620_v24 = vshll.u32 %v11621_v13, 16  ;;  %v343_v25 = vor.u32 %v342_v15, %v339_v14  ;;  %v356_v27 = vshll.u32 %v292_v18, 16 }
  0x22   : > { %11367 = vmatpush.bf16.msra.mxu3 %v11085_v43  ;;  %3707 = vmatpush.bf16.msra.mxu1 %v11085_v43  ;;  %v353_v26 = vor.u32 %v352_v17, %v348_v16  ;;  %v608_v30 = vrot.slane %v607_v22, 4  ;;  %v618_v31 = vrot.slane %v617_v23, 4  ;;  %v625_v38 = vshrl.u32 %v281_v28, 16 }
  0x23   : > { %v622_v32 = vrot.slane %v620_v24, 5  ;;  %v344_v35 = vrot.slane %v343_v25, 4  ;;  %v358_v36 = vrot.slane %v356_v27, 5  ;;  %v628_v39 = vshll.u32 %v281_v28, 16 }
  0x24   : > { %v634_v40 = vshll.u32 %v11629_v29, 16  ;;  %v638_v41 = vshrl.u32 %v11629_v29, 16  ;;  %v361_v42 = vshrl.u32 %v259_v33, 16  ;;  %v364_v43 = vshll.u32 %v259_v33, 16 }
  0x25   : > { %3609 = vmatpush.bf16.msra.mxu0 %v11076_v56  ;;  %v613_v45 = vsel %vm11592_vm2, %v608_v30, %v612_v11  ;;  %v623_v46 = vsel %vm11592_vm2, %v618_v31, %v622_v32  ;;  %v370_v47 = vshll.u32 %v260_v37, 16  ;;  %v374_v48 = vshrl.u32 %v260_v37, 16 }
  0x26   : > { %11368 = vmatpush.bf16.msra.mxu3 %v11084_v57  ;;  %3708 = vmatpush.bf16.msra.mxu1 %v11084_v57  ;;  %v349_v49 = vsel %vm11592_vm2, %v344_v35, %v348_v16  ;;  %v627_v51 = vrot.slane %v625_v38, 4  ;;  %v630_v52 = vrot.slane %v628_v39, 5  ;;  %v636_v53 = vrot.slane %v634_v40, 5  ;;  %v11647_v57 = vld [vmem:[%s11565_s14 + $0xa4] sm:$0x1] }
  0x27   : > { %v640_v54 = vrot.slane %v638_v41, 4  ;;  %v2435_v55 = vunpack.c.l.b16 %v613_v45  ;;  %v2436_v56 = vunpack.c.l.b16 %v623_v46  ;;  %v363_v58 = vrot.slane %v361_v42, 4  ;;  %v283_v16 = vld [vmem:[%s11565_s14 + $0xa8] sm:$0xf]  ;;  %v11669_v42 = vld [vmem:[%s11565_s14 + $0xb0] sm:$0x1] }
  0x28   : > { %v366_v59 = vrot.slane %v364_v43, 5  ;;  %v2413_v60 = vunpack.c.l.b16 %v349_v49  ;;  %v372_v62 = vrot.slane %v370_v47, 5  ;;  %v376_v63 = vrot.slane %v374_v48, 4  ;;  %v294_v48 = vld [vmem:[%s11565_s14 + $0x2c] sm:$0x1]  ;;  %v11023_v49 = vld [vmem:[%s11565_s14 + $0x18] sm:$0xff] }
  0x29   : > { %3610 = vmatpush.bf16.msra.mxu0 %v11075_v7  ;;  %v631_v1 = vor.u32 %v630_v52, %v627_v51  ;;  %v641_v2 = vor.u32 %v640_v54, %v636_v53  ;;  %v644_v3 = vshll.u32 %v11647_v57, 16  ;;  %v2459_v6 = vpack.c.b16 %v2436_v56, %v2435_v55 }
  0x2a   : > { %11369 = vmatpush.bf16.msra.mxu3 %v11083_v8  ;;  %3709 = vmatpush.bf16.msra.mxu1 %v11083_v8  ;;  %v367_v7 = vor.u32 %v366_v59, %v363_v58  ;;  %v377_v9 = vor.u32 %v376_v63, %v372_v62  ;;  %v380_v10 = vshll.u32 %v293_v0, 16  ;;  %v649_v24 = vshrl.u32 %v283_v16, 16 }
  0x2b   : > { %v632_v11 = vrot.slane %v631_v1, 4  ;;  %v642_v12 = vrot.slane %v641_v2, 4  ;;  %v646_v14 = vrot.slane %v644_v3, 5  ;;  %v652_v25 = vshll.u32 %v283_v16, 16  ;;  %v11676_v2 = vld [vmem:[%s11565_s14 + $0xb8] sm:$0xf] }
  0x2c   : > { %3611 = vmatmul.bf16.vlgmr.msra.gmra.mxu0 %v11021_v19  ;;  %v368_v15 = vrot.slane %v367_v7, 4  ;;  %v378_v17 = vrot.slane %v377_v9, 4  ;;  %v382_v18 = vrot.slane %v380_v10, 5  ;;  %v11654_v19 = vld [vmem:[%s11565_s14 + $0xac] sm:$0xf]  ;;  %v404_v58 = vshll.u32 %v294_v48, 16 }
  0x2d   : > { %3801 = vmatpush.bf16.msrb.mxu0 %v11557_v5  ;;  %3765 = vmatmul.bf16.vlgmr.msra.gmra.mxu3 %v2458_v20  ;;  %v354_v5 = vrot.slane %v353_v26, 4  ;;  %v261_v20 = vld [vmem:[%s11565_s14 + $0x24] sm:$0xf]  ;;  %v637_v22 = vsel %vm11592_vm2, %v632_v11, %v636_v53  ;;  %v647_v23 = vsel %vm11592_vm2, %v642_v12, %v646_v14  ;;  %v658_v27 = vshll.u32 %v11654_v19, 16  ;;  %v11096_v3 = vld [vmem:[%s15548_s1 + $0xa8] sm:$0xff] }
  0x2e   : > { %3710 = vmatmul.bf16.vlgmr.msra.gmra.mxu1 %v2447_v21  ;;  %v262_v21 = vld [vmem:[%s11565_s14 + $0x28] sm:$0xf]  ;;  %v373_v26 = vsel %vm11592_vm2, %v368_v15, %v372_v62  ;;  %v662_v28 = vshrl.u32 %v11654_v19, 16  ;;  %v385_v30 = vshrl.u32 %v261_v20, 16  ;;  %v383_v31 = vsel %vm11592_vm2, %v378_v17, %v382_v18  ;;  %v285_v62 = vld [vmem:[%s11565_s14 + $0xb4] sm:$0xf]  ;;  %11372 = vmatpush.bf16.msra.mxu2 %v11096_v3 }
  0x2f   : > { %v359_v50 = vsel %vm11592_vm2, %v354_v5, %v358_v36  ;;  %v388_v32 = vshll.u32 %v261_v20, 16  ;;  %v394_v33 = vshll.u32 %v262_v21, 16  ;;  %v2437_v35 = vunpack.c.l.b16 %v637_v22  ;;  %v263_v7 = vld [vmem:[%s11565_s14 + $0x30] sm:$0xf]  ;;  %v11701_v48 = vld [vmem:[%s11565_s14 + $0xc4] sm:$0xf] }
  0x30   : > { %v2414_v61 = vunpack.c.l.b16 %v359_v50  ;;  %v2438_v5 = vunpack.c.l.b16 %v647_v23  ;;  %v651_v36 = vrot.slane %v649_v24, 4  ;;  %v654_v37 = vrot.slane %v652_v25, 5 }
  0x31   : > { %3802 = vmatpush.bf16.msrb.mxu0 %v11097_v34  ;;  %v398_v34 = vshrl.u32 %v262_v21, 16  ;;  %v2415_v38 = vunpack.c.l.b16 %v373_v26  ;;  %v2416_v39 = vunpack.c.l.b16 %v383_v31  ;;  %v660_v40 = vrot.slane %v658_v27, 5  ;;  %v295_v31 = vld [vmem:[%s11565_s14 + $0x38] sm:$0x1] }
  0x32   : > { %v2448_v8 = vpack.c.b16 %v2414_v61, %v2413_v60  ;;  %v664_v41 = vrot.slane %v662_v28, 4  ;;  %v387_v43 = vrot.slane %v385_v30, 4  ;;  %v390_v45 = vrot.slane %v388_v32, 5  ;;  %v11694_v30 = vld [vmem:[%s11565_s14 + $0xbc] sm:$0x1] }
  0x33   : > { %v396_v46 = vrot.slane %v394_v33, 5  ;;  %v400_v47 = vrot.slane %v398_v34, 4  ;;  %v2460_v50 = vpack.c.b16 %v2438_v5, %v2437_v35  ;;  %v655_v51 = vor.u32 %v654_v37, %v651_v36  ;;  %v11024_v36 = vld [vmem:[%s11565_s14 + $0x24] sm:$0xff] }
  0x34   : > { %v665_v52 = vor.u32 %v664_v41, %v660_v40  ;;  %v668_v53 = vshll.u32 %v11669_v42, 16  ;;  %v2449_v54 = vpack.c.b16 %v2416_v39, %v2415_v38  ;;  %v391_v55 = vor.u32 %v390_v45, %v387_v43  ;;  %v287_v43 = vld [vmem:[%s11565_s14 + $0xc0] sm:$0xf] }
  0x35   : > { %v401_v56 = vor.u32 %v400_v47, %v396_v46  ;;  %v656_v59 = vrot.slane %v655_v51, 4  ;;  %v406_v1 = vrot.slane %v404_v58, 5  ;;  %3803 = vmatpush.bf16.msrb.mxu0 %v11096_v3  ;;  %v682_v9 = vshll.u32 %v11676_v2, 16  ;;  %v11105_v58 = vld [vmem:[%s15548_s1 + $0xf0] sm:$0xff] }
  0x36   : > { %v666_v60 = vrot.slane %v665_v52, 4  ;;  %v670_v61 = vrot.slane %v668_v53, 5  ;;  %v392_v63 = vrot.slane %v391_v55, 4  ;;  %v686_v10 = vshrl.u32 %v11676_v2, 16  ;;  %v265_v53 = vld [vmem:[%s11565_s14 + $0x3c] sm:$0xf] }
  0x37   : > { %v402_v0 = vrot.slane %v401_v56, 4  ;;  %v661_v11 = vsel %vm11592_vm2, %v656_v59, %v660_v40  ;;  %v409_v16 = vshrl.u32 %v263_v7, 16  ;;  %v412_v17 = vshll.u32 %v263_v7, 16  ;;  %v266_v56 = vld [vmem:[%s11565_s14 + $0x40] sm:$0xf] }
  0x38   : > { %v671_v12 = vsel %vm11592_vm2, %v666_v60, %v670_v61  ;;  %v397_v14 = vsel %vm11592_vm2, %v392_v63, %v396_v46  ;;  %v2439_v23 = vunpack.c.l.b16 %v661_v11  ;;  %v684_v25 = vrot.slane %v682_v9, 5  ;;  %v11095_v59 = vld [vmem:[%s15548_s1 + $0xa0] sm:$0xff]  ;;  %v11104_v11 = vld [vmem:[%s15548_s1 + $0xe8] sm:$0xff] }
  0x39   : > { %v407_v15 = vsel %vm11592_vm2, %v402_v0, %v406_v1  ;;  %v2440_v24 = vunpack.c.l.b16 %v671_v12  ;;  %v688_v26 = vrot.slane %v686_v10, 4  ;;  %v2417_v27 = vunpack.c.l.b16 %v397_v14  ;;  %11373 = vmatpush.bf16.msra.mxu2 %v11095_v59  ;;  %3804 = vmatpush.bf16.msrb.mxu0 %v11095_v59 }
  0x3a   : > { %v2418_v28 = vunpack.c.l.b16 %v407_v15  ;;  %v411_v32 = vrot.slane %v409_v16, 4  ;;  %v414_v33 = vrot.slane %v412_v17, 5  ;;  %v692_v40 = vshll.u32 %v11694_v30, 16 }
  0x3b   : > { %v2461_v37 = vpack.c.b16 %v2440_v24, %v2439_v23  ;;  %v689_v38 = vor.u32 %v688_v26, %v684_v25  ;;  %v428_v41 = vshll.u32 %v295_v31, 16  ;;  %v697_v51 = vshrl.u32 %v287_v43, 16  ;;  %v11103_v31 = vld [vmem:[%s15548_s1 + $0xe0] sm:$0xff] }
  0x3c   : > { %3616 = vmatmul.bf16.gmra.mxu0 %v11022_v4  ;;  %v673_v4 = vshrl.u32 %v285_v62, 16  ;;  %v2450_v39 = vpack.c.b16 %v2418_v28, %v2417_v27  ;;  %v415_v45 = vor.u32 %v414_v33, %v411_v32  ;;  %v700_v52 = vshll.u32 %v287_v43, 16  ;;  %v296_v28 = vld [vmem:[%s11565_s14 + $0x44] sm:$0x1]  ;;  %v289_v43 = vld [vmem:[%s11565_s14 + $0xcc] sm:$0xf] }
  0x3d   : > { %3770 = vmatmul.bf16.gmra.mxu3 %v2459_v6  ;;  %v676_v6 = vshll.u32 %v285_v62, 16  ;;  %v430_v55 = vrot.slane %v428_v41, 5  ;;  %v706_v62 = vshll.u32 %v11701_v48, 16  ;;  %v710_v63 = vshrl.u32 %v11701_v48, 16 }
  0x3e   : > { %3715 = vmatmul.bf16.gmra.mxu1 %v2448_v8  ;;  %v264_v8 = vld [vmem:[%s11565_s14 + $0x34] sm:$0xf]  ;;  %v675_v21 = vrot.slane %v673_v4, 4  ;;  %v416_v60 = vrot.slane %v415_v45, 4  ;;  %v433_v1 = vshrl.u32 %v265_v53, 16  ;;  %v436_v3 = vshll.u32 %v265_v53, 16 }
  0x3f   : > { %v418_v18 = vshll.u32 %v264_v8, 16  ;;  %v422_v20 = vshrl.u32 %v264_v8, 16  ;;  %v678_v22 = vrot.slane %v676_v6, 5  ;;  %v11094_v4 = vld [vmem:[%s15548_s1 + $0x98] sm:$0xff]  ;;  %v699_v6 = vrot.slane %v697_v51, 4 }
  0x40   : > { %v702_v7 = vrot.slane %v700_v52, 5  ;;  %v442_v8 = vshll.u32 %v266_v56, 16  ;;  %v446_v9 = vshrl.u32 %v266_v56, 16  ;;  %v11730_v15 = vrot.slane %v706_v62, 5  ;;  %11374 = vmatpush.bf16.msra.mxu2 %v11094_v4  ;;  %3805 = vmatpush.bf16.msrb.mxu0 %v11094_v4  ;;  %v11101_v56 = vld [vmem:[%s15548_s1 + $0xd0] sm:$0xff] }
  0x41   : > { %v420_v34 = vrot.slane %v418_v18, 5  ;;  %v424_v35 = vrot.slane %v422_v20, 4  ;;  %v679_v5 = vor.u32 %v678_v22, %v675_v21  ;;  %v712_v16 = vrot.slane %v710_v63, 4  ;;  %v11733_v18 = vld [vmem:[%s11565_s14 + $0xc8] sm:$0x1] }
  0x42   : > { %v435_v20 = vrot.slane %v433_v1, 4  ;;  %v438_v21 = vrot.slane %v436_v3, 5  ;;  %v703_v23 = vor.u32 %v702_v7, %v699_v6  ;;  %v444_v24 = vrot.slane %v442_v8, 5  ;;  %v11092_v63 = vld [vmem:[%s15548_s1 + $0x88] sm:$0xff]  ;;  %v11770_v1 = vld [vmem:[%s11565_s14 + $0x58] sm:$0xf] }
  0x43   : > { %v425_v46 = vor.u32 %v424_v35, %v420_v34  ;;  %v680_v47 = vrot.slane %v679_v5, 4  ;;  %v421_v12 = vsel %vm11592_vm2, %v416_v60, %v420_v34  ;;  %v713_v32 = vor.u32 %v712_v16, %v11730_v15  ;;  %v11025_v35 = vld [vmem:[%s11565_s14 + $0x30] sm:$0xff]  ;;  %v11773_v3 = vld [vmem:[%s11565_s14 + $0x5c] sm:$0x1]  ;;  %v11100_v16 = vld [vmem:[%s15548_s1 + $0xc8] sm:$0xff] }
  0x44   : > { %v2419_v26 = vunpack.c.l.b16 %v421_v12  ;;  %v716_v33 = vshll.u32 %v11733_v18, 16  ;;  %v439_v34 = vor.u32 %v438_v21, %v435_v20  ;;  %v721_v53 = vshrl.u32 %v289_v43, 16  ;;  %v751_v4 = vld [vmem:[%s11565_s14 + $0x54] sm:$0xe] }
  0x45   : > { %v426_v61 = vrot.slane %v425_v46, 4  ;;  %v685_v0 = vsel %vm11592_vm2, %v680_v47, %v684_v25  ;;  %v448_v25 = vrot.slane %v446_v9, 4  ;;  %v11744_v46 = vld [vmem:[%s11565_s14 + $0xd0] sm:$0xf]  ;;  %v11102_v47 = vld [vmem:[%s15548_s1 + $0xd8] sm:$0xff]  ;;  %v9747_v8 = vrot.slane %v751_v4, 9 }
  0x46   : > { %v2441_v17 = vunpack.c.l.b16 %v685_v0  ;;  %v718_v41 = vrot.slane %v716_v33, 5  ;;  %v440_v45 = vrot.slane %v439_v34, 4  ;;  %v730_v59 = vshll.u32 %v11744_v46, 16 }
  0x47   : > { %v431_v14 = vsel %vm11592_vm2, %v426_v61, %v430_v55  ;;  %v11093_v55 = vld [vmem:[%s15548_s1 + $0x90] sm:$0xff]  ;;  %v734_v60 = vshrl.u32 %v11744_v46, 16  ;;  %v268_v61 = vld [vmem:[%s11565_s14 + $0x4c] sm:$0xf]  ;;  %v870_v9 = vrot.slane %v11770_v1, 5 }
  0x48   : > { %v2420_v27 = vunpack.c.l.b16 %v431_v14  ;;  %v445_v0 = vsel %vm11592_vm2, %v440_v45, %v444_v24  ;;  %11375 = vmatpush.bf16.msra.mxu2 %v11093_v55  ;;  %3806 = vmatpush.bf16.msrb.mxu0 %v11093_v55  ;;  %v466_v14 = vshll.u32 %v268_v61, 16 }
  0x49   : > { %v2421_v20 = vunpack.c.l.b16 %v445_v0  ;;  %v871_v21 = vsel %vm11777_vm5, %v9747_v8, %v870_v9  ;;  %v272_v8 = vld [vmem:[%s11565_s14 + $0x64] sm:$0xf] }
  0x4c   : > { %3621 = vmatmul.bf16.gmra.mxu0 %v11023_v49  ;;  %v11106_v49 = vld [vmem:[%s15548_s1 + $0xf8] sm:$0xff]  ;;  %11376 = vmatpush.bf16.msra.mxu2 %v11092_v63 }
  0x4d   : > { %3775 = vmatmul.bf16.gmra.mxu3 %v2460_v50  ;;  %v690_v50 = vrot.slane %v689_v38, 4  ;;  %v452_v38 = vshll.u32 %v296_v28, 16  ;;  %3807 = vmatpush.bf16.msrb.mxu0 %v11092_v63  ;;  %v736_v28 = vrot.slane %v734_v60, 4 }
  0x4e   : > { %3720 = vmatmul.bf16.gmra.mxu1 %v2449_v54  ;;  %v694_v54 = vrot.slane %v692_v40, 5  ;;  %3900 = vmatpush.bf16.msrb.mxu3 %v11106_v49  ;;  %v714_v40 = vrot.slane %v713_v32, 4  ;;  %v267_v49 = vld [vmem:[%s11565_s14 + $0x48] sm:$0xf] }
  0x4f   : > { %v454_v52 = vrot.slane %v452_v38, 5  ;;  %v457_v62 = vshrl.u32 %v267_v49, 16  ;;  %v460_v6 = vshll.u32 %v267_v49, 16 }
  0x50   : > { %v695_v10 = vsel %vm11592_vm2, %v690_v50, %v694_v54  ;;  %v724_v54 = vshll.u32 %v289_v43, 16  ;;  %v11026_v43 = vld [vmem:[%s11565_s14 + $0x3c] sm:$0xff] }
  0x51   : > { %v2442_v22 = vunpack.c.l.b16 %v695_v10  ;;  %v873_v10 = vrot.slane %v11773_v3, 5  ;;  %v462_v32 = vrot.slane %v460_v6, 5 }
  0x52   : > { %3901 = vmatpush.bf16.msrb.mxu3 %v11105_v58  ;;  %v719_v58 = vsel %vm11592_vm2, %v714_v40, %v718_v41 }
  0x53   : > { %v2462_v5 = vpack.c.b16 %v2442_v22, %v2441_v17  ;;  %v2444_v12 = vunpack.c.l.b16 %v719_v58  ;;  %v872_v22 = vrot.slane %v870_v9, 4 }
  0x55   : > { %v874_v33 = vsel %vm11777_vm5, %v872_v22, %v873_v10  ;;  %v490_v10 = vshll.u32 %v11770_v1, 16 }
  0x56   : > { %3902 = vmatpush.bf16.msrb.mxu3 %v11104_v11  ;;  %v2498_v38 = vunpack.c.l.b16 %v874_v33 }
  0x5a   : > { %3903 = vmatpush.bf16.msrb.mxu3 %v11103_v31  ;;  %v459_v31 = vrot.slane %v457_v62, 4 }
  0x5c   : > { %3626 = vmatmul.bf16.gmra.mxu0 %v11024_v36  ;;  %v704_v36 = vrot.slane %v703_v23, 4  ;;  %v723_v23 = vrot.slane %v721_v53, 4 }
  0x5d   : > { %3780 = vmatmul.bf16.gmra.mxu3 %v2461_v37  ;;  %v449_v37 = vor.u32 %v448_v25, %v444_v24  ;;  %v726_v24 = vrot.slane %v724_v54, 5  ;;  %v732_v25 = vrot.slane %v730_v59, 5 }
  0x5e   : > { %3725 = vmatmul.bf16.gmra.mxu1 %v2450_v39  ;;  %v2451_v39 = vpack.c.b16 %v2420_v27, %v2419_v26  ;;  %v709_v50 = vsel %vm11592_vm2, %v704_v36, %v11730_v15  ;;  %3904 = vmatpush.bf16.msrb.mxu3 %v11102_v47  ;;  %v470_v15 = vshrl.u32 %v268_v61, 16  ;;  %v11091_v26 = vld [vmem:[%s15548_s1 + $0x80] sm:$0xff]  ;;  %v2497_v27 = vunpack.c.l.b16 %v871_v21  ;;  %v269_v61 = vld [vmem:[%s11565_s14 + $0x54] sm:$0xf] }
  0x5f   : > { %v450_v51 = vrot.slane %v449_v37, 4  ;;  %v2443_v11 = vunpack.c.l.b16 %v709_v50  ;;  %v11099_v37 = vld [vmem:[%s15548_s1 + $0xc0] sm:$0xff]  ;;  %v727_v40 = vor.u32 %v726_v24, %v723_v23  ;;  %11377 = vmatpush.bf16.msra.mxu2 %v11091_v26  ;;  %3808 = vmatpush.bf16.msrb.mxu0 %v11091_v26  ;;  %v737_v47 = vor.u32 %v736_v28, %v732_v25 }
  0x60   : > { %v472_v36 = vrot.slane %v470_v15, 4  ;;  %v2526_v41 = vpack.c.b16 %v2498_v38, %v2497_v27  ;;  %v463_v50 = vor.u32 %v462_v32, %v459_v31  ;;  %v481_v4 = vshrl.u32 %v269_v61, 16  ;;  %v11817_v15 = vld [vmem:[%s11565_s14 + $0x68] sm:$0x1] }
  0x61   : > { %v455_v17 = vsel %vm11592_vm2, %v450_v51, %v454_v52  ;;  %v2463_v45 = vpack.c.b16 %v2444_v12, %v2443_v11  ;;  %v728_v54 = vrot.slane %v727_v40, 4  ;;  %v738_v55 = vrot.slane %v737_v47, 4  ;;  %v271_v47 = vld [vmem:[%s11565_s14 + $0x60] sm:$0xf] }
  0x62   : > { %3905 = vmatpush.bf16.msrb.mxu3 %v11101_v56  ;;  %v2422_v34 = vunpack.c.l.b16 %v455_v17  ;;  %3844 = vmatmul.bf16.vlgmr.msra.gmra.mxu2 %v2526_v41  ;;  %v464_v58 = vrot.slane %v463_v50, 4  ;;  %v484_v6 = vshll.u32 %v269_v61, 16  ;;  %v494_v11 = vshrl.u32 %v11770_v1, 16 }
  0x63   : > { %v733_v62 = vsel %vm11592_vm2, %v728_v54, %v732_v25  ;;  %v877_v12 = vrot.slane %v272_v8, 5  ;;  %v880_v22 = vrot.slane %v11817_v15, 5  ;;  %v483_v25 = vrot.slane %v481_v4, 4 }
  0x64   : > { %v2452_v51 = vpack.c.b16 %v2422_v34, %v2421_v20  ;;  %v486_v26 = vrot.slane %v484_v6, 5  ;;  %v492_v27 = vrot.slane %v490_v10, 5  ;;  %v496_v28 = vrot.slane %v494_v11, 4  ;;  %v11027_v34 = vld [vmem:[%s11565_s14 + $0x48] sm:$0xff] }
  0x65   : > { %v879_v21 = vrot.slane %v877_v12, 4  ;;  %v500_v40 = vshll.u32 %v11773_v3, 16  ;;  %v505_v50 = vshrl.u32 %v271_v47, 16  ;;  %v514_v3 = vshll.u32 %v272_v8, 16 }
  0x66   : > { %3906 = vmatpush.bf16.msrb.mxu3 %v11100_v16  ;;  %v752_v16 = vld [vmem:[%s11565_s14 + $0x60] sm:$0xe]  ;;  %v518_v54 = vshrl.u32 %v272_v8, 16 }
  0x67   : > { %v9748_v20 = vrot.slane %v752_v16, 9  ;;  %v881_v31 = vsel %vm11777_vm5, %v879_v21, %v880_v22  ;;  %v516_v6 = vrot.slane %v514_v3, 5  ;;  %v11039_v16 = vld [vmem:[%s11565_s14 + $0xc] sm:$0xff] }
  0x68   : > { %v2500_v33 = vunpack.c.l.b16 %v881_v31 }
  0x69   : > { %v878_v1 = vsel %vm11777_vm5, %v9748_v20, %v877_v12 }
  0x6a   : > { %3907 = vmatpush.bf16.msrb.mxu3 %v11099_v37  ;;  %v2499_v32 = vunpack.c.l.b16 %v878_v1 }
  0x6c   : > { %3631 = vmatmul.bf16.gmra.mxu0 %v11025_v35  ;;  %v11796_v35 = vld [vmem:[%s11565_s14 + $0xd4] sm:$0x1]  ;;  %v2527_v37 = vpack.c.b16 %v2500_v33, %v2499_v32  ;;  %v11849_v32 = vld [vmem:[%s11565_s14 + $0x7c] sm:$0xf] }
  0x6d   : > { %3785 = vmatmul.bf16.gmra.mxu3 %v2462_v5  ;;  %v468_v5 = vrot.slane %v466_v14, 5  ;;  %v740_v49 = vshll.u32 %v11796_v35, 16  ;;  %v2445_v14 = vunpack.c.l.b16 %v733_v62 }
  0x6e   : > { %3730 = vmatmul.bf16.gmra.mxu1 %v2451_v39  ;;  %v297_v39 = vld [vmem:[%s11565_s14 + $0x50] sm:$0x1] }
  0x6f   : > { %v473_v52 = vor.u32 %v472_v36, %v468_v5  ;;  %v476_v53 = vshll.u32 %v297_v39, 16  ;;  %v742_v56 = vrot.slane %v740_v49, 5  ;;  %v469_v0 = vsel %vm11592_vm2, %v464_v58, %v468_v5  ;;  %v753_v58 = vld [vmem:[%s11565_s14 + $0x6c] sm:$0xe] }
  0x70   : > { %v2423_v23 = vunpack.c.l.b16 %v469_v0  ;;  %v487_v36 = vor.u32 %v486_v26, %v483_v25  ;;  %v497_v39 = vor.u32 %v496_v28, %v492_v27  ;;  %v507_v0 = vrot.slane %v505_v50, 4 }
  0x71   : > { %v474_v59 = vrot.slane %v473_v52, 4  ;;  %v478_v60 = vrot.slane %v476_v53, 5  ;;  %v743_v63 = vsel %vm11592_vm2, %v738_v55, %v742_v56  ;;  %v274_v52 = vld [vmem:[%s11565_s14 + $0x70] sm:$0xf]  ;;  %v11834_v56 = vld [vmem:[%s11565_s14 + $0x74] sm:$0x1] }
  0x72   : > { %v2446_v17 = vunpack.c.l.b16 %v743_v63  ;;  %3849 = vmatmul.bf16.gmra.mxu2 %v2527_v37  ;;  %v488_v41 = vrot.slane %v487_v36, 4  ;;  %v884_v55 = vrot.slane %v274_v52, 5  ;;  %v887_v61 = vrot.slane %v11834_v56, 5  ;;  %v11855_v36 = vld [vmem:[%s11565_s14 + $0x80] sm:$0x1] }
  0x73   : > { %v479_v9 = vsel %vm11592_vm2, %v474_v59, %v478_v60  ;;  %v9749_v59 = vrot.slane %v753_v58, 9  ;;  %v538_v33 = vshll.u32 %v274_v52, 16  ;;  %v754_v37 = vld [vmem:[%s11565_s14 + $0x78] sm:$0xe] }
  0x74   : > { %v2424_v24 = vunpack.c.l.b16 %v479_v9  ;;  %v2464_v5 = vpack.c.b16 %v2446_v17, %v2445_v14  ;;  %v493_v49 = vsel %vm11592_vm2, %v488_v41, %v492_v27  ;;  %v886_v60 = vrot.slane %v884_v55, 4  ;;  %v11028_v14 = vld [vmem:[%s11565_s14 + $0x54] sm:$0xff]  ;;  %v273_v27 = vld [vmem:[%s11565_s14 + $0x6c] sm:$0xf] }
  0x75   : > { %v2425_v62 = vunpack.c.l.b16 %v493_v49  ;;  %v520_v9 = vrot.slane %v518_v54, 4  ;;  %v885_v10 = vsel %vm11777_vm5, %v9749_v59, %v884_v55  ;;  %v529_v1 = vshrl.u32 %v273_v27, 16  ;;  %v11029_v55 = vld [vmem:[%s11565_s14 + $0x60] sm:$0xff]  ;;  %v11040_v58 = vld [vmem:[%s11565_s14 + $0x18] sm:$0xff] }
  0x76   : > { %v2453_v38 = vpack.c.b16 %v2424_v24, %v2423_v23  ;;  %v888_v8 = vsel %vm11777_vm5, %v886_v60, %v887_v61  ;;  %v2501_v11 = vunpack.c.l.b16 %v885_v10  ;;  %v524_v23 = vshll.u32 %v11817_v15, 16 }
  0x77   : > { %v2502_v12 = vunpack.c.l.b16 %v888_v8  ;;  %v521_v22 = vor.u32 %v520_v9, %v516_v6  ;;  %v532_v31 = vshll.u32 %v273_v27, 16  ;;  %v540_v49 = vrot.slane %v538_v33, 5  ;;  %v755_v27 = vld [vmem:[%s11565_s14 + $0x84] sm:$0xe] }
  0x78   : > { %v526_v26 = vrot.slane %v524_v23, 5 }
  0x79   : > { %v2528_v20 = vpack.c.b16 %v2502_v12, %v2501_v11  ;;  %v522_v25 = vrot.slane %v521_v22, 4  ;;  %v275_v12 = vld [vmem:[%s11565_s14 + $0x78] sm:$0xf]  ;;  %v11406_v22 = vld [vmem:[%s11565_s14 + $0x88] sm:$0xf] }
  0x7a   : > { %v898_v23 = vrot.slane %v11406_v22, 5 }
  0x7b   : > { %v527_v15 = vsel %vm11592_vm2, %v522_v25, %v526_v26  ;;  %v562_v25 = vshll.u32 %v11849_v32, 16  ;;  %v566_v26 = vshrl.u32 %v11849_v32, 16 }
  0x7c   : > { %3636 = vmatmul.bf16.gmra.mxu0 %v11026_v43  ;;  %v498_v43 = vrot.slane %v497_v39, 4 }
  0x7d   : > { %3790 = vmatmul.bf16.gmra.mxu3 %v2463_v45  ;;  %v502_v45 = vrot.slane %v500_v40, 5  ;;  %v894_v40 = vrot.slane %v11855_v36, 5 }
  0x7e   : > { %3735 = vmatmul.bf16.gmra.mxu1 %v2452_v51  ;;  %v508_v51 = vshll.u32 %v271_v47, 16  ;;  %v534_v47 = vrot.slane %v532_v31, 5  ;;  %v11407_v31 = vld [vmem:[%s11565_s14 + $0x8c] sm:$0x1] }
  0x7f   : > { %v503_v53 = vsel %vm11592_vm2, %v498_v43, %v502_v45  ;;  %v2428_v43 = vunpack.c.l.b16 %v527_v15  ;;  %v531_v45 = vrot.slane %v529_v1, 4  ;;  %v900_v1 = vrot.slane %v898_v23, 4 }
  0x80   : > { %v2426_v63 = vunpack.c.l.b16 %v503_v53  ;;  %v510_v4 = vrot.slane %v508_v51, 5  ;;  %v11866_v53 = vld [vmem:[%s15549_s2] ss:$0 sm:$0xff]  ;;  %v901_v15 = vrot.slane %v11407_v31, 5  ;;  %v11042_v31 = vld [vmem:[%s11565_s14 + $0x30] sm:$0xff] }
  0x81   : > { %v535_v59 = vor.u32 %v534_v47, %v531_v45  ;;  %v11030_v47 = vld [vmem:[%s11565_s14 + $0x6c] sm:$0xff] }
  0x82   : > { %v511_v17 = vor.u32 %v510_v4, %v507_v0  ;;  %v2454_v21 = vpack.c.b16 %v2426_v63, %v2425_v62  ;;  %3854 = vmatmul.bf16.gmra.mxu2 %v2528_v20  ;;  %v548_v0 = vshll.u32 %v11834_v56, 16  ;;  %v553_v20 = vshrl.u32 %v275_v12, 16 }
  0x83   : > { %v536_v10 = vrot.slane %v535_v59, 4  ;;  %v572_v59 = vshll.u32 %v11855_v36, 16 }
  0x84   : > { %v512_v24 = vrot.slane %v511_v17, 4  ;;  %v550_v11 = vrot.slane %v548_v0, 5 }
  0x85   : > { %v541_v56 = vsel %vm11592_vm2, %v536_v10, %v540_v49 }
  0x86   : > { %v517_v28 = vsel %vm11592_vm2, %v512_v24, %v516_v6  ;;  %v2429_v33 = vunpack.c.l.b16 %v541_v56 }
  0x87   : > { %v2427_v41 = vunpack.c.l.b16 %v517_v28  ;;  %v9751_v28 = vrot.slane %v755_v27, 9 }
  0x89   : > { %v2455_v62 = vpack.c.b16 %v2428_v43, %v2427_v41  ;;  %v568_v41 = vrot.slane %v566_v26, 4 }
  0x8c   : > { %3641 = vmatmul.bf16.gmra.mxu0 %v11027_v34  ;;  %v542_v34 = vshrl.u32 %v274_v52, 16 }
  0x8d   : > { %3795 = vmatmul.bf16.gmra.mxu3 %v2464_v5  ;;  %v891_v5 = vrot.slane %v11849_v32, 5 }
  0x8e   : > { %3740 = vmatmul.bf16.gmra.mxu1 %v2453_v38  ;;  %v9750_v38 = vrot.slane %v754_v37, 9  ;;  %v544_v50 = vrot.slane %v542_v34, 4 }
  0x8f   : > { %v893_v39 = vrot.slane %v891_v5, 4 }
  0x90   : > { %v892_v51 = vsel %vm11777_vm5, %v9750_v38, %v891_v5  ;;  %v545_v63 = vor.u32 %v544_v50, %v540_v49  ;;  %v555_v5 = vrot.slane %v553_v20, 4  ;;  %v899_v38 = vsel %vm11777_vm5, %v9751_v28, %v898_v23  ;;  %v11041_v49 = vld [vmem:[%s11565_s14 + $0x24] sm:$0xff] }
  0x91   : > { %v895_v52 = vsel %vm11777_vm5, %v893_v39, %v894_v40  ;;  %v2503_v3 = vunpack.c.l.b16 %v892_v51  ;;  %v902_v39 = vsel %vm11777_vm5, %v900_v1, %v901_v15  ;;  %v564_v40 = vrot.slane %v562_v25, 5  ;;  %v11031_v1 = vld [vmem:[%s11565_s14 + $0x78] sm:$0xff] }
  0x92   : > { %v2504_v54 = vunpack.c.l.b16 %v895_v52  ;;  %v546_v8 = vrot.slane %v545_v63, 4  ;;  %v2505_v32 = vunpack.c.l.b16 %v899_v38  ;;  %v2506_v43 = vunpack.c.l.b16 %v902_v39 }
  0x93   : > { %v574_v63 = vrot.slane %v572_v59, 5  ;;  %v908_v20 = vrot.slane %v11621_v13, 5 }
  0x94   : > { %v2529_v60 = vpack.c.b16 %v2504_v54, %v2503_v3  ;;  %v551_v17 = vsel %vm11592_vm2, %v546_v8, %v550_v11  ;;  %v2530_v50 = vpack.c.b16 %v2506_v43, %v2505_v32  ;;  %v757_v32 = vld [vmem:[%s11565_s14 + $0x9c] sm:$0xe] }
  0x95   : > { %v2430_v34 = vunpack.c.l.b16 %v551_v17  ;;  %v9753_v43 = vrot.slane %v757_v32, 9 }
  0x96   : > { %3859 = vmatmul.bf16.gmra.mxu2 %v2529_v60 }
  0x97   : > { %v2456_v52 = vpack.c.b16 %v2430_v34, %v2429_v33 }
  0x9c   : > { %3646 = vmatmul.bf16.gmra.mxu0 %v11028_v14 }
  0x9d   : > { %3908 = vmatmul.bf16.vlgmr.msrb.gmra.mxu3 %v11039_v16 }
  0x9e   : > { %3745 = vmatmul.bf16.gmra.mxu1 %v2454_v21  ;;  %v556_v21 = vshll.u32 %v275_v12, 16  ;;  %v756_v12 = vld [vmem:[%s11565_s14 + $0x90] sm:$0xe] }
  0x9f   : > { %v9752_v56 = vrot.slane %v756_v12, 9 }
  0xa0   : > { %v558_v37 = vrot.slane %v556_v21, 5 }
  0xa6   : > { %3864 = vmatmul.bf16.gmra.mxu2 %v2530_v50 }
  0xa9   : > { %v3612_v61 = vpop.f32.mrf.mxu0 }
  0xaa   : > { %v3613_v4 = vadd.f32 %v11866_v53, %v3612_v61 }
  0xab   : > { %v3711_v6 = vpop.f32.mrf.mxu1 }
  0xac   : > { %v11872_v9 = vadd.f32 %v3711_v6, %v3613_v4  ;;  %3651 = vmatmul.bf16.gmra.mxu0 %v11029_v55  ;;  %v559_v55 = vor.u32 %v558_v37, %v555_v5  ;;  %v11408_v6 = vld [vmem:[%s11565_s14 + $0x94] sm:$0xf] }
  0xad   : > { %3913 = vmatmul.bf16.gmra.mxu3 %v11040_v58  ;;  %v569_v58 = vor.u32 %v568_v41, %v564_v40  ;;  %v905_v10 = vrot.slane %v11408_v6, 5 }
  0xae   : > { %3750 = vmatmul.bf16.gmra.mxu1 %v2455_v62  ;;  %v560_v61 = vrot.slane %v559_v55, 4  ;;  %v11032_v55 = vld [vmem:[%s11565_s14 + $0x84] sm:$0xff] }
  0xaf   : > { %v570_v62 = vrot.slane %v569_v58, 4  ;;  %v907_v17 = vrot.slane %v905_v10, 4  ;;  %v906_v23 = vsel %vm11777_vm5, %v9752_v56, %v905_v10  ;;  %v919_v10 = vrot.slane %v11654_v19, 5  ;;  %v11044_v19 = vld [vmem:[%s11565_s14 + $0x48] sm:$0xff] }
  0xb0   : > { %v11875_v14 = vpop.f32.mrf.mxu3  ;;  %v565_v36 = vsel %vm11592_vm2, %v560_v61, %v564_v40  ;;  %v2507_v26 = vunpack.c.l.b16 %v906_v23  ;;  %v912_v40 = vrot.slane %v11629_v29, 5  ;;  %v11043_v29 = vld [vmem:[%s11565_s14 + $0x3c] sm:$0xff] }
  0xb1   : > { %v11879_v16 = vpop.f32.mrf.mxu0  ;;  %v575_v11 = vsel %vm11592_vm2, %v570_v62, %v574_v63  ;;  %v2431_v21 = vunpack.c.l.b16 %v565_v36  ;;  %v909_v25 = vsel %vm11777_vm5, %v907_v17, %v908_v20  ;;  %v921_v56 = vrot.slane %v919_v10, 4 }
  0xb2   : > { %v2432_v22 = vunpack.c.l.b16 %v575_v11  ;;  %v2508_v27 = vunpack.c.l.b16 %v909_v25  ;;  %v913_v50 = vsel %vm11777_vm5, %v9753_v43, %v912_v40  ;;  %v758_v11 = vld [vmem:[%s11565_s14 + $0xa8] sm:$0xe]  ;;  %v922_v17 = vrot.slane %v11669_v42, 5 }
  0xb3   : > { %v11884_v24 = vpop.f32.mrf.mxu1  ;;  %v9754_v12 = vrot.slane %v758_v11, 9 }
  0xb4   : > { %v2531_v15 = vpack.c.b16 %v2508_v27, %v2507_v26  ;;  %v2457_v34 = vpack.c.b16 %v2432_v22, %v2431_v21  ;;  %v923_v21 = vsel %vm11777_vm5, %v921_v56, %v922_v17  ;;  %v11033_v26 = vld [vmem:[%s11565_s14 + $0x90] sm:$0xff]  ;;  %v760_v17 = vld [vmem:[%s11565_s14 + $0xc0] sm:$0xe] }
  0xb5   : > { %v920_v20 = vsel %vm11777_vm5, %v9754_v12, %v919_v10  ;;  %v2512_v23 = vunpack.c.l.b16 %v923_v21  ;;  %v933_v12 = vrot.slane %v11701_v48, 5  ;;  %v11035_v48 = vld [vmem:[%s11565_s14 + $0xa8] sm:$0xff] }
  0xb6   : > { %3869 = vmatmul.bf16.gmra.mxu2 %v2531_v15  ;;  %v2511_v22 = vunpack.c.l.b16 %v920_v20  ;;  %v9756_v20 = vrot.slane %v760_v17, 9 }
  0xb7   : > { %v935_v21 = vrot.slane %v933_v12, 4 }
  0xb8   : > { %v11894_v45 = vpop.f32.mrf.mxu3  ;;  %v2533_v27 = vpack.c.b16 %v2512_v23, %v2511_v22  ;;  %v936_v22 = vrot.slane %v11733_v18, 5 }
  0xb9   : > { %v3617_v51 = vpop.f32.mrf.mxu0 }
  0xba   : > { %v3618_v3 = vadd.f32 %v11866_v53, %v3617_v51 }
  0xbb   : > { %v3716_v54 = vpop.f32.mrf.mxu1 }
  0xbc   : > { %v11900_v60 = vadd.f32 %v3716_v54, %v3618_v3  ;;  %3656 = vmatmul.bf16.gmra.mxu0 %v11030_v47  ;;  %v914_v47 = vrot.slane %v912_v40, 4  ;;  %v759_v40 = vld [vmem:[%s11565_s14 + $0xb4] sm:$0xe] }
  0xbd   : > { %3918 = vmatmul.bf16.gmra.mxu3 %v11041_v49  ;;  %v915_v49 = vrot.slane %v11647_v57, 5  ;;  %v9755_v32 = vrot.slane %v759_v40, 9 }
  0xbe   : > { %3755 = vmatmul.bf16.gmra.mxu1 %v2456_v52  ;;  %v2509_v52 = vunpack.c.l.b16 %v913_v50 }
  0xbf   : > { %v916_v51 = vsel %vm11777_vm5, %v914_v47, %v915_v49  ;;  %v929_v47 = vrot.slane %v11694_v30, 5 }
  0xc0   : > { %v11902_v0 = vpop.f32.mrf.mxu3  ;;  %v2510_v3 = vunpack.c.l.b16 %v916_v51 }
  0xc1   : > { %v11904_v4 = vpop.f32.mrf.mxu0 }
  0xc2   : > { %v2532_v58 = vpack.c.b16 %v2510_v3, %v2509_v52 }
  0xc3   : > { %v11907_v8 = vpop.f32.mrf.mxu1 }
  0xc6   : > { %3874 = vmatmul.bf16.gmra.mxu2 %v2532_v58 }
  0xc8   : > { %v11919_v28 = vpop.f32.mrf.mxu3 }
  0xc9   : > { %v3622_v33 = vpop.f32.mrf.mxu0 }
  0xca   : > { %v3623_v13 = vadd.f32 %v11866_v53, %v3622_v33 }
  0xcb   : > { %v3721_v5 = vpop.f32.mrf.mxu1 }
  0xcc   : > { %v11924_v37 = vadd.f32 %v3721_v5, %v3623_v13  ;;  %3661 = vmatmul.bf16.gmra.mxu0 %v11031_v1  ;;  %v926_v13 = vrot.slane %v11676_v2, 5  ;;  %v11045_v2 = vld [vmem:[%s11565_s14 + $0x54] sm:$0xff] }
  0xcd   : > { %3923 = vmatmul.bf16.gmra.mxu3 %v11042_v31 }
  0xce   : > { %3760 = vmatmul.bf16.gmra.mxu1 %v2457_v34  ;;  %v928_v43 = vrot.slane %v926_v13, 4  ;;  %v927_v49 = vsel %vm11777_vm5, %v9755_v32, %v926_v13 }
  0xcf   : > { %v2513_v51 = vunpack.c.l.b16 %v927_v49 }
  0xd0   : > { %v11926_v38 = vpop.f32.mrf.mxu3  ;;  %v930_v50 = vsel %vm11777_vm5, %v928_v43, %v929_v47 }
  0xd1   : > { %v11928_v39 = vpop.f32.mrf.mxu0  ;;  %v2514_v52 = vunpack.c.l.b16 %v930_v50 }
  0xd3   : > { %v11931_v41 = vpop.f32.mrf.mxu1 }
  0xd6   : > { %3879 = vmatmul.bf16.gmra.mxu2 %v2533_v27 }
  0xd8   : > { %v11939_v54 = vpop.f32.mrf.mxu3 }
  0xd9   : > { %15560 = vst [vmem:[#allocation3_spill] sm:$0xff] %v11939_v54  ;;  %v3627_v59 = vpop.f32.mrf.mxu0 }
  0xda   : > { %v3628_v61 = vadd.f32 %v11866_v53, %v3627_v59 }
  0xdb   : > { %v3726_v62 = vpop.f32.mrf.mxu1 }
  0xdc   : > { %v11944_v57 = vadd.f32 %v3726_v62, %v3628_v61  ;;  %3666 = vmatmul.bf16.gmra.mxu0 %v11032_v55  ;;  %v11034_v55 = vld [vmem:[%s11565_s14 + $0x9c] sm:$0xff] }
  0xdd   : > { %3928 = vmatmul.bf16.gmra.mxu3 %v11043_v29  ;;  %v2534_v29 = vpack.c.b16 %v2514_v52, %v2513_v51  ;;  %v940_v51 = vrot.slane %v11744_v46, 5  ;;  %v11036_v46 = vld [vmem:[%s11565_s14 + $0xb4] sm:$0xff] }
  0xde   : > { %15561 = vst [vmem:[#allocation4_spill] sm:$0xff] %v11944_v57 }
  0xe0   : > { %v11946_v63 = vpop.f32.mrf.mxu3 }
  0xe1   : > { %v11948_v6 = vpop.f32.mrf.mxu0 }
  0xe2   : > { %15562 = vst [vmem:[#allocation5_spill] sm:$0xff] %v11948_v6 }
  0xe3   : > { %v11951_v36 = vpop.f32.mrf.mxu1 }
  0xe4   : > { %15563 = vst [vmem:[#allocation6_spill] sm:$0xff] %v11951_v36 }
  0xe5   : > { %v3845_v62 = vpop.f32.mrf.mxu2 }
  0xe6   : > { %3884 = vmatmul.bf16.gmra.mxu2 %v2534_v29  ;;  %v942_v29 = vrot.slane %v940_v51, 4 }
  0xe8   : > { %v11959_v25 = vpop.f32.mrf.mxu3 }
  0xe9   : > { %15564 = vst [vmem:[#allocation7_spill] sm:$0xff] %v11959_v25  ;;  %v3632_v1 = vpop.f32.mrf.mxu0 }
  0xea   : > { %v3633_v31 = vadd.f32 %v11866_v53, %v3632_v1 }
  0xeb   : > { %v3731_v15 = vpop.f32.mrf.mxu1 }
  0xec   : > { %v11964_v42 = vadd.f32 %v3731_v15, %v3633_v31  ;;  %3671 = vmatmul.bf16.gmra.mxu0 %v11033_v26  ;;  %v934_v26 = vsel %vm11777_vm5, %v9756_v20, %v933_v12  ;;  %v11046_v15 = vld [vmem:[%s11565_s14 + $0x60] sm:$0xff] }
  0xed   : > { %3933 = vmatmul.bf16.gmra.mxu3 %v11044_v19  ;;  %v11995_v23 = vpop.f32.mrf.mxu2  ;;  %v937_v19 = vsel %vm11777_vm5, %v935_v21, %v936_v22  ;;  %v2515_v27 = vunpack.c.l.b16 %v934_v26  ;;  %v11047_v22 = vld [vmem:[%s11565_s14 + $0x6c] sm:$0xff] }
  0xee   : > { %15565 = vst [vmem:[#allocation8_spill] sm:$0xff] %v11964_v42  ;;  %v2516_v1 = vunpack.c.l.b16 %v937_v19  ;;  %v11055_v42 = vld [vmem:[%s11565_s14 + $0xcc] sm:$0xff] }
  0xf0   : > { %v11966_v33 = vpop.f32.mrf.mxu3  ;;  %v2535_v13 = vpack.c.b16 %v2516_v1, %v2515_v27 }
  0xf1   : > { %v11968_v34 = vpop.f32.mrf.mxu0 }
  0xf2   : > { %15566 = vst [vmem:[#allocation9_spill] sm:$0xff] %v11968_v34 }
  0xf3   : > { %v11971_v5 = vpop.f32.mrf.mxu1 }
  0xf4   : > { %15567 = vst [vmem:[#allocation10_spill] sm:$0xff] %v11971_v5 }
  0xf5   : > { %v3850_v47 = vpop.f32.mrf.mxu2 }
  0xf6   : > { %3889 = vmatmul.bf16.gmra.mxu2 %v2535_v13 }
  0xf8   : > { %v11979_v3 = vpop.f32.mrf.mxu3 }
  0xf9   : > { %15568 = vst [vmem:[#allocation11_spill] sm:$0xff] %v11979_v3  ;;  %v3637_v58 = vpop.f32.mrf.mxu0 }
  0xfa   : > { %v3638_v59 = vadd.f32 %v11866_v53, %v3637_v58  ;;  %v943_v58 = vrot.slane %v11796_v35, 5 }
  0xfb   : > { %v3736_v61 = vpop.f32.mrf.mxu1 }
  0xfc   : > { %v11984_v30 = vadd.f32 %v3736_v61, %v3638_v59  ;;  %3676 = vmatmul.bf16.gmra.mxu0 %v11034_v55  ;;  %v761_v55 = vld [vmem:[%s11565_s14 + $0xcc] sm:$0xe]  ;;  %v944_v12 = vsel %vm11777_vm5, %v942_v29, %v943_v58  ;;  %v744_v29 = vld [vmem:[%s11565_s14] sm:$0xe] }
  0xfd   : > { %3938 = vmatmul.bf16.gmra.mxu3 %v11045_v2  ;;  %v9757_v2 = vrot.slane %v761_v55, 9  ;;  %v12017_v59 = vpop.f32.mrf.mxu2  ;;  %v2518_v20 = vunpack.c.l.b16 %v944_v12  ;;  %v11410_v55 = vld [vmem:[%s11565_s14 + $0x8] sm:$0x1] }
  0xfe   : > { %15569 = vst [vmem:[#allocation12_spill] sm:$0xff] %v11984_v30 }
  0xff   : > { %v941_v61 = vsel %vm11777_vm5, %v9757_v2, %v940_v51  ;;  %v824_v2 = vrot.slane %v11410_v55, 5 }
 0x100   : > { %v11986_v10 = vpop.f32.mrf.mxu3  ;;  %v2517_v17 = vunpack.c.l.b16 %v941_v61  ;;  %v9740_v61 = vrot.slane %v744_v29, 9 }
 0x101   : > { %v11988_v11 = vpop.f32.mrf.mxu0 }
 0x102   : > { %15570 = vst [vmem:[#allocation13_spill] sm:$0xff] %v11988_v11  ;;  %v2536_v26 = vpack.c.b16 %v2518_v20, %v2517_v17 }
 0x103   : > { %v11991_v56 = vpop.f32.mrf.mxu1 }
 0x104   : > { %15571 = vst [vmem:[#allocation14_spill] sm:$0xff] %v11991_v56 }
 0x106   : > { %3894 = vmatmul.bf16.gmra.mxu2 %v2536_v26 }
 0x108   : > { %v12001_v31 = vpop.f32.mrf.mxu3 }
 0x109   : > { %15572 = vst [vmem:[#allocation15_spill] sm:$0xff] %v12001_v31  ;;  %v3642_v40 = vpop.f32.mrf.mxu0 }
 0x10a   : > { %v3643_v32 = vadd.f32 %v11866_v53, %v3642_v40  ;;  %v11409_v40 = vld [vmem:[%s11565_s14 + $0x4] sm:$0xf] }
 0x10b   : > { %v3741_v18 = vpop.f32.mrf.mxu1 }
 0x10c   : > { %v12006_v43 = vadd.f32 %v3741_v18, %v3643_v32  ;;  %3681 = vmatmul.bf16.gmra.mxu0 %v11035_v48  ;;  %v3855_v48 = vpop.f32.mrf.mxu2  ;;  %v821_v32 = vrot.slane %v11409_v40, 5 }
 0x10d   : > { %3943 = vmatmul.bf16.gmra.mxu3 %v11046_v15 }
 0x10e   : > { %15573 = vst [vmem:[#allocation16_spill] sm:$0xff] %v12006_v43  ;;  %v823_v12 = vrot.slane %v821_v32, 4 }
 0x110   : > { %v12008_v49 = vpop.f32.mrf.mxu3  ;;  %v825_v20 = vsel %vm11777_vm5, %v823_v12, %v824_v2 }
 0x111   : > { %v12010_v50 = vpop.f32.mrf.mxu0 }
 0x112   : > { %15574 = vst [vmem:[#allocation17_spill] sm:$0xff] %v12010_v50 }
 0x113   : > { %v12013_v52 = vpop.f32.mrf.mxu1 }
 0x114   : > { %15575 = vst [vmem:[#allocation18_spill] sm:$0xff] %v12013_v52  ;;  %v12039_v58 = vpop.f32.mrf.mxu2 }
 0x118   : > { %v12023_v21 = vpop.f32.mrf.mxu3 }
 0x119   : > { %15576 = vst [vmem:[#allocation19_spill] sm:$0xff] %v12023_v21  ;;  %v3647_v19 = vpop.f32.mrf.mxu0 }
 0x11a   : > { %v3648_v35 = vadd.f32 %v11866_v53, %v3647_v19  ;;  %v2484_v19 = vunpack.c.l.b16 %v825_v20 }
 0x11b   : > { %v3746_v27 = vpop.f32.mrf.mxu1 }
 0x11c   : > { %v3747_v1 = vadd.f32 %v3746_v27, %v3648_v35  ;;  %3686 = vmatmul.bf16.gmra.mxu0 %v11036_v46  ;;  %v11037_v46 = vld [vmem:[%s11565_s14 + $0xc0] sm:$0xff] }
 0x11d   : > { %3948 = vmatmul.bf16.gmra.mxu3 %v11047_v22  ;;  %v11048_v22 = vld [vmem:[%s11565_s14 + $0x78] sm:$0xff] }
 0x11e   : > { %v12028_v15 = vadd.f32 %v3845_v62, %v3747_v1  ;;  %v822_v62 = vsel %vm11777_vm5, %v9740_v61, %v821_v32  ;;  %v11114_v32 = vld [vmem:[%s15548_s1 + $0x138] sm:$0xff]  ;;  %v3860_v61 = vpop.f32.mrf.mxu2 }
 0x11f   : > { %v2483_v26 = vunpack.c.l.b16 %v822_v62  ;;  %3999 = vmatpush.bf16.msra.mxu0 %v11114_v32 }
 0x120   : > { %v12030_v13 = vpop.f32.mrf.mxu3 }
 0x121   : > { %15577 = vst [vmem:[#allocation20_spill] sm:$0xff] %v12030_v13  ;;  %v12033_v18 = vpop.f32.mrf.mxu0  ;;  %v2519_v40 = vpack.c.b16 %v2484_v19, %v2483_v26  ;;  %v11038_v26 = vld [vmem:[%s11565_s14 + $0xcc] sm:$0xff]  ;;  %v11049_v19 = vld [vmem:[%s11565_s14 + $0x84] sm:$0xff] }
 0x123   : > { %v12035_v51 = vpop.f32.mrf.mxu1 }
 0x128   : > { %v12041_v17 = vpop.f32.mrf.mxu3 }
 0x129   : > { %15578 = vst [vmem:[#allocation21_spill] sm:$0xff] %v12041_v17  ;;  %v3652_v35 = vpop.f32.mrf.mxu0 }
 0x12a   : > { %v3653_v27 = vadd.f32 %v11866_v53, %v3652_v35 }
 0x12b   : > { %v3751_v1 = vpop.f32.mrf.mxu1 }
 0x12c   : > { %v3752_v55 = vadd.f32 %v3751_v1, %v3653_v27  ;;  %3691 = vmatmul.bf16.gmra.mxu0 %v11037_v46  ;;  %v11113_v27 = vld [vmem:[%s15548_s1 + $0x130] sm:$0xff] }
 0x12d   : > { %3953 = vmatmul.bf16.gmra.mxu3 %v11048_v22  ;;  %v12065_v22 = vpop.f32.mrf.mxu2  ;;  %4000 = vmatpush.bf16.msra.mxu0 %v11113_v27 }
 0x12e   : > { %v12053_v29 = vadd.f32 %v3850_v47, %v3752_v55 }
 0x130   : > { %v12055_v2 = vpop.f32.mrf.mxu3 }
 0x131   : > { %15579 = vst [vmem:[#allocation22_spill] sm:$0xff] %v12055_v2  ;;  %v12057_v12 = vpop.f32.mrf.mxu0 }
 0x133   : > { %v12059_v62 = vpop.f32.mrf.mxu1 }
 0x138   : > { %v12061_v20 = vpop.f32.mrf.mxu3 }
 0x139   : > { %15580 = vst [vmem:[#allocation23_spill] sm:$0xff] %v12061_v20  ;;  %v3657_v46 = vpop.f32.mrf.mxu0 }
 0x13a   : > { %v3658_v35 = vadd.f32 %v11866_v53, %v3657_v46  ;;  %v3865_v46 = vpop.f32.mrf.mxu2 }
 0x13b   : > { %v3756_v47 = vpop.f32.mrf.mxu1 }
 0x13c   : > { %v3757_v1 = vadd.f32 %v3756_v47, %v3658_v35  ;;  %3696 = vmatmul.bf16.gmra.mxu0 %v11038_v26  ;;  %v11112_v35 = vld [vmem:[%s15548_s1 + $0x128] sm:$0xff]  ;;  %v11050_v26 = vld [vmem:[%s11565_s14 + $0x90] sm:$0xff] }
 0x13d   : > { %3958 = vmatmul.bf16.gmra.mxu3 %v11049_v19  ;;  %v11411_v47 = vld [vmem:[%s11565_s14 + $0x10] sm:$0xf]  ;;  %4001 = vmatpush.bf16.msra.mxu0 %v11112_v35 }
 0x13e   : > { %v12071_v55 = vadd.f32 %v3855_v48, %v3757_v1  ;;  %v828_v27 = vrot.slane %v11411_v47, 5 }
 0x140   : > { %v12073_v32 = vpop.f32.mrf.mxu3  ;;  %v830_v43 = vrot.slane %v828_v27, 4 }
 0x141   : > { %15581 = vst [vmem:[#allocation24_spill] sm:$0xff] %v12073_v32  ;;  %v12075_v20 = vpop.f32.mrf.mxu0  ;;  %v745_v32 = vld [vmem:[%s11565_s14 + $0xc] sm:$0xe] }
 0x142   : > { %v9741_v21 = vrot.slane %v745_v32, 9  ;;  %v12089_v50 = vpop.f32.mrf.mxu2 }
 0x143   : > { %v12077_v2 = vpop.f32.mrf.mxu1 }
 0x148   : > { %v12079_v17 = vpop.f32.mrf.mxu3 }
 0x149   : > { %15582 = vst [vmem:[#allocation25_spill] sm:$0xff] %v12079_v17  ;;  %v3662_v19 = vpop.f32.mrf.mxu0  ;;  %v11412_v17 = vld [vmem:[%s11565_s14 + $0x14] sm:$0x1] }
 0x14a   : > { %v3663_v48 = vadd.f32 %v11866_v53, %v3662_v19  ;;  %v831_v52 = vrot.slane %v11412_v17, 5  ;;  %v829_v19 = vsel %vm11777_vm5, %v9741_v21, %v828_v27  ;;  %v11111_v17 = vld [vmem:[%s15548_s1 + $0x120] sm:$0xff]  ;;  %v746_v27 = vld [vmem:[%s11565_s14 + $0x18] sm:$0xe] }
 0x14b   : > { %v3761_v1 = vpop.f32.mrf.mxu1  ;;  %v2485_v32 = vunpack.c.l.b16 %v829_v19  ;;  %4002 = vmatpush.bf16.msra.mxu0 %v11111_v17 }
 0x14c   : > { %v3762_v13 = vadd.f32 %v3761_v1, %v3663_v48  ;;  %3809 = vmatmul.bf16.vlgmr.msrb.gmra.mxu0 %v2519_v40  ;;  %v832_v40 = vsel %vm11777_vm5, %v830_v43, %v831_v52  ;;  %v11051_v48 = vld [vmem:[%s11565_s14 + $0x9c] sm:$0xff]  ;;  %v9742_v52 = vrot.slane %v746_v27, 9  ;;  %v11052_v27 = vld [vmem:[%s11565_s14 + $0xa8] sm:$0xff] }
 0x14d   : > { %3963 = vmatmul.bf16.gmra.mxu3 %v11050_v26  ;;  %v2486_v26 = vunpack.c.l.b16 %v832_v40  ;;  %v11414_v40 = vld [vmem:[%s11565_s14 + $0x20] sm:$0x1] }
 0x14e   : > { %v12091_v31 = vadd.f32 %v3860_v61, %v3762_v13  ;;  %v3870_v61 = vpop.f32.mrf.mxu2 }
 0x14f   : > { %v2520_v47 = vpack.c.b16 %v2486_v26, %v2485_v32 }
 0x150   : > { %v12093_v56 = vpop.f32.mrf.mxu3 }
 0x151   : > { %15583 = vst [vmem:[#allocation26_spill] sm:$0xff] %v12093_v56  ;;  %v12095_v35 = vpop.f32.mrf.mxu0  ;;  %v11413_v56 = vld [vmem:[%s11565_s14 + $0x1c] sm:$0xf] }
 0x152   : > { %v835_v30 = vrot.slane %v11413_v56, 5 }
 0x154   : > { %v837_v19 = vrot.slane %v835_v30, 4  ;;  %v836_v56 = vsel %vm11777_vm5, %v9742_v52, %v835_v30 }
 0x158   : > { %v12104_v13 = vpop.f32.mrf.mxu3 }
 0x159   : > { %15584 = vst [vmem:[#allocation27_spill] sm:$0xff] %v12104_v13  ;;  %v3667_v1 = vpop.f32.mrf.mxu0  ;;  %v838_v13 = vrot.slane %v11414_v40, 5  ;;  %v11415_v40 = vld [vmem:[%s11565_s14 + $0x28] sm:$0xf] }
 0x15a   : > { %v3668_v21 = vadd.f32 %v11866_v53, %v3667_v1  ;;  %v842_v30 = vrot.slane %v11415_v40, 5 }
 0x15b   : > { %v839_v17 = vsel %vm11777_vm5, %v837_v19, %v838_v13  ;;  %v747_v13 = vld [vmem:[%s11565_s14 + $0x24] sm:$0xe] }
 0x15c   : > { %3814 = vmatmul.bf16.gmra.mxu0 %v2520_v47  ;;  %v3767_v43 = vadd.f32 %v11875_v14, %v3668_v21  ;;  %v12122_v14 = vpop.f32.mrf.mxu2  ;;  %v11110_v47 = vld [vmem:[%s15548_s1 + $0x118] sm:$0xff]  ;;  %v9743_v3 = vrot.slane %v747_v13, 9 }
 0x15d   : > { %3968 = vmatmul.bf16.gmra.mxu3 %v11051_v48  ;;  %v2487_v48 = vunpack.c.l.b16 %v836_v56  ;;  %4003 = vmatpush.bf16.msra.mxu0 %v11110_v47  ;;  %v844_v56 = vrot.slane %v842_v30, 4  ;;  %v11053_v13 = vld [vmem:[%s11565_s14 + $0xb4] sm:$0xff] }
 0x15e   : > { %v12112_v11 = vadd.f32 %v3865_v46, %v3767_v43  ;;  %v2488_v46 = vunpack.c.l.b16 %v839_v17  ;;  %v11416_v17 = vld [vmem:[%s11565_s14 + $0x2c] sm:$0x1] }
 0x15f   : > { %v845_v47 = vrot.slane %v11416_v17, 5 }
 0x160   : > { %v12114_v32 = vpop.f32.mrf.mxu3  ;;  %v2521_v21 = vpack.c.b16 %v2488_v46, %v2487_v48 }
 0x161   : > { %15585 = vst [vmem:[#allocation28_spill] sm:$0xff] %v12114_v32  ;;  %v12116_v26 = vpop.f32.mrf.mxu0 }
 0x164   : > { %v3875_v19 = vpop.f32.mrf.mxu2 }
 0x168   : > { %v12127_v1 = vpop.f32.mrf.mxu3 }
 0x169   : > { %15586 = vst [vmem:[#allocation29_spill] sm:$0xff] %v12127_v1  ;;  %v3672_v43 = vpop.f32.mrf.mxu0 }
 0x16a   : > { %v3673_v52 = vadd.f32 %v11866_v53, %v3672_v43  ;;  %v843_v43 = vsel %vm11777_vm5, %v9743_v3, %v842_v30  ;;  %v11130_v30 = vld [vmem:[%s15548_s1 + $0x1b8] sm:$0xff] }
 0x16b   : > { %4197 = vmatpush.bf16.msrb.mxu2 %v11130_v30 }
 0x16c   : > { %3819 = vmatmul.bf16.gmra.mxu0 %v2521_v21  ;;  %v3772_v32 = vadd.f32 %v11902_v0, %v3673_v52  ;;  %v846_v21 = vsel %vm11777_vm5, %v844_v56, %v845_v47  ;;  %v11109_v0 = vld [vmem:[%s15548_s1 + $0x110] sm:$0xff] }
 0x16d   : > { %3973 = vmatmul.bf16.gmra.mxu3 %v11052_v27  ;;  %v2489_v27 = vunpack.c.l.b16 %v843_v43  ;;  %v2490_v40 = vunpack.c.l.b16 %v846_v21  ;;  %4004 = vmatpush.bf16.msra.mxu0 %v11109_v0  ;;  %v748_v47 = vld [vmem:[%s11565_s14 + $0x30] sm:$0xe]  ;;  %v11138_v43 = vld [vmem:[%s15548_s1 + $0x1f8] sm:$0xff] }
 0x16e   : > { %v12135_v1 = vadd.f32 %v3870_v61, %v3772_v32  ;;  %v12148_v61 = vpop.f32.mrf.mxu2  ;;  %v9744_v0 = vrot.slane %v748_v47, 9  ;;  %4296 = vmatpush.bf16.msra.mxu3 %v11138_v43  ;;  %v11128_v43 = vld [vmem:[%s15548_s1 + $0x1a8] sm:$0xff] }
 0x16f   : > { %15588 = vst [vmem:[#allocation31_spill] sm:$0xff] %v12148_v61  ;;  %v2522_v52 = vpack.c.b16 %v2490_v40, %v2489_v27  ;;  %v11418_v40 = vld [vmem:[%s11565_s14 + $0x38] sm:$0x1] }
 0x170   : > { %v12137_v48 = vpop.f32.mrf.mxu3 }
 0x171   : > { %15587 = vst [vmem:[#allocation30_spill] sm:$0xff] %v12137_v48  ;;  %v12139_v46 = vpop.f32.mrf.mxu0  ;;  %v11417_v48 = vld [vmem:[%s11565_s14 + $0x34] sm:$0xf] }
 0x172   : > { %v849_v3 = vrot.slane %v11417_v48, 5  ;;  %v852_v48 = vrot.slane %v11418_v40, 5  ;;  %v11127_v40 = vld [vmem:[%s15548_s1 + $0x1a0] sm:$0xff] }
 0x174   : > { %v851_v27 = vrot.slane %v849_v3, 4  ;;  %v850_v47 = vsel %vm11777_vm5, %v9744_v0, %v849_v3  ;;  %v11136_v3 = vld [vmem:[%s15548_s1 + $0x1e8] sm:$0xff] }
 0x178   : > { %v12150_v32 = vpop.f32.mrf.mxu3 }
 0x179   : > { %15589 = vst [vmem:[#allocation32_spill] sm:$0xff] %v12150_v32  ;;  %v3677_v17 = vpop.f32.mrf.mxu0  ;;  %v11122_v32 = vld [vmem:[%s15548_s1 + $0x178] sm:$0xff] }
 0x17a   : > { %v3678_v56 = vadd.f32 %v11866_v53, %v3677_v17  ;;  %v11129_v17 = vld [vmem:[%s15548_s1 + $0x1b0] sm:$0xff]  ;;  %4098 = vmatpush.bf16.msrb.mxu1 %v11122_v32 }
 0x17b   : > { %4198 = vmatpush.bf16.msrb.mxu2 %v11129_v17  ;;  %v11121_v32 = vld [vmem:[%s15548_s1 + $0x170] sm:$0xff]  ;;  %v11135_v17 = vld [vmem:[%s15548_s1 + $0x1e0] sm:$0xff] }
 0x17c   : > { %3824 = vmatmul.bf16.gmra.mxu0 %v2522_v52  ;;  %v3777_v21 = vadd.f32 %v11926_v38, %v3678_v56  ;;  %v3880_v52 = vpop.f32.mrf.mxu2  ;;  %v11137_v38 = vld [vmem:[%s15548_s1 + $0x1f0] sm:$0xff] }
 0x17d   : > { %3978 = vmatmul.bf16.gmra.mxu3 %v11053_v13  ;;  %v11108_v13 = vld [vmem:[%s15548_s1 + $0x108] sm:$0xff] }
 0x17e   : > { %v12170_v30 = vadd.f32 %v3875_v19, %v3777_v21  ;;  %v853_v19 = vsel %vm11777_vm5, %v851_v27, %v852_v48  ;;  %4297 = vmatpush.bf16.msra.mxu3 %v11137_v38  ;;  %4005 = vmatpush.bf16.msra.mxu0 %v11108_v13  ;;  %v2491_v21 = vunpack.c.l.b16 %v850_v47  ;;  %v11120_v27 = vld [vmem:[%s15548_s1 + $0x168] sm:$0xff]  ;;  %v11054_v13 = vld [vmem:[%s11565_s14 + $0xc0] sm:$0xff] }
 0x17f   : > { %4099 = vmatpush.bf16.msrb.mxu1 %v11121_v32  ;;  %4199 = vmatpush.bf16.msrb.mxu2 %v11128_v43  ;;  %v2492_v0 = vunpack.c.l.b16 %v853_v19  ;;  %v11419_v32 = vld [vmem:[%s11565_s14 + $0x40] sm:$0xf] }
 0x180   : > { %15590 = vst [vmem:[#allocation33_spill] sm:$0xff] %v12170_v30  ;;  %v12172_v5 = vpop.f32.mrf.mxu3  ;;  %v856_v43 = vrot.slane %v11419_v32, 5 }
 0x181   : > { %15591 = vst [vmem:[#allocation34_spill] sm:$0xff] %v12172_v5  ;;  %v12180_v56 = vpop.f32.mrf.mxu0  ;;  %v2523_v38 = vpack.c.b16 %v2492_v0, %v2491_v21  ;;  %v11134_v21 = vld [vmem:[%s15548_s1 + $0x1d8] sm:$0xff]  ;;  %v11420_v5 = vld [vmem:[%s11565_s14 + $0x44] sm:$0x1] }
 0x182   : > { %4298 = vmatpush.bf16.msra.mxu3 %v11136_v3  ;;  %v11119_v3 = vld [vmem:[%s15548_s1 + $0x160] sm:$0xff]  ;;  %v858_v32 = vrot.slane %v856_v43, 4  ;;  %v859_v34 = vrot.slane %v11420_v5, 5  ;;  %v11133_v5 = vld [vmem:[%s15548_s1 + $0x1d0] sm:$0xff] }
 0x183   : > { %4100 = vmatpush.bf16.msrb.mxu1 %v11120_v27  ;;  %4200 = vmatpush.bf16.msrb.mxu2 %v11127_v40  ;;  %v11126_v27 = vld [vmem:[%s15548_s1 + $0x198] sm:$0xff] }
 0x184   : > { %v12207_v19 = vpop.f32.mrf.mxu2 }
 0x185   : > { %15593 = vst [vmem:[#allocation36_spill] sm:$0xff] %v12207_v19 }
 0x186   : > { %4299 = vmatpush.bf16.msra.mxu3 %v11135_v17 }
 0x187   : > { %4101 = vmatpush.bf16.msrb.mxu1 %v11119_v3  ;;  %4201 = vmatpush.bf16.msrb.mxu2 %v11126_v27  ;;  %v11125_v3 = vld [vmem:[%s15548_s1 + $0x190] sm:$0xff]  ;;  %v3650_v27 = vadd.f32 %v11866_v53, %v12033_v18 }
 0x188   : > { %v12201_v48 = vpop.f32.mrf.mxu3 }
 0x189   : > { %15592 = vst [vmem:[#allocation35_spill] sm:$0xff] %v12201_v48  ;;  %v3682_v47 = vpop.f32.mrf.mxu0  ;;  %v749_v48 = vld [vmem:[%s11565_s14 + $0x3c] sm:$0xe] }
 0x18a   : > { %v3683_v40 = vadd.f32 %v11866_v53, %v3682_v47  ;;  %v9745_v17 = vrot.slane %v749_v48, 9  ;;  %4300 = vmatpush.bf16.msra.mxu3 %v11134_v21  ;;  %v11118_v47 = vld [vmem:[%s15548_s1 + $0x158] sm:$0xff]  ;;  %v11117_v21 = vld [vmem:[%s15548_s1 + $0x150] sm:$0xff] }
 0x18b   : > { %4102 = vmatpush.bf16.msrb.mxu1 %v11118_v47  ;;  %4202 = vmatpush.bf16.msrb.mxu2 %v11125_v3 }
 0x18c   : > { %3829 = vmatmul.bf16.gmra.mxu0 %v2523_v38  ;;  %v3782_v0 = vadd.f32 %v11946_v63, %v3683_v40  ;;  %v11107_v63 = vld [vmem:[%s15548_s1 + $0x100] sm:$0xff]  ;;  %v857_v18 = vsel %vm11777_vm5, %v9745_v17, %v856_v43  ;;  %v3885_v47 = vpop.f32.mrf.mxu2 }
 0x18d   : > { %3983 = vmatmul.bf16.gmra.mxu3 %v11054_v13  ;;  %4006 = vmatpush.bf16.msra.mxu0 %v11107_v63  ;;  %v2493_v43 = vunpack.c.l.b16 %v857_v18  ;;  %v9812_v63 = vld [vmem:[%s11565_s14 + $0xc] sm:$0xe] }
 0x18e   : > { %v12231_v38 = vadd.f32 %v3880_v52, %v3782_v0  ;;  %v860_v52 = vsel %vm11777_vm5, %v858_v32, %v859_v34  ;;  %4301 = vmatpush.bf16.msra.mxu3 %v11133_v5  ;;  %v3749_v0 = vadd.f32 %v12035_v51, %v3650_v27  ;;  %v11132_v34 = vld [vmem:[%s15548_s1 + $0x1c8] sm:$0xff]  ;;  %v11123_v51 = vld [vmem:[%s15548_s1 + $0x180] sm:$0xff]  ;;  %v9759_v27 = vld [vmem:[%s11565_s14 + $0x10] sm:$0xf] }
 0x18f   : > { %4103 = vmatpush.bf16.msrb.mxu1 %v11117_v21  ;;  %v2494_v17 = vunpack.c.l.b16 %v860_v52  ;;  %v11116_v32 = vld [vmem:[%s15548_s1 + $0x148] sm:$0xff]  ;;  %v11131_v52 = vld [vmem:[%s15548_s1 + $0x1c0] sm:$0xff]  ;;  %v9830_v21 = vrot.slane %v9812_v63, 9 }
 0x190   : > { %15594 = vst [vmem:[#allocation37_spill] sm:$0xff] %v12231_v38  ;;  %v3944_v48 = vpop.f32.mrf.mxu3  ;;  %v3848_v3 = vadd.f32 %v11995_v23, %v3749_v0  ;;  %v11421_v5 = vld [vmem:[%s11565_s14 + $0x4c] sm:$0xf]  ;;  %v750_v23 = vld [vmem:[%s11565_s14 + $0x48] sm:$0xe]  ;;  %v11057_v0 = vld [vmem:[%s11565_s14 + $0x18] sm:$0xff] }
 0x191   : > { %v12240_v13 = vadd.f32 %v3944_v48, %v12028_v15  ;;  %v12242_v40 = vpop.f32.mrf.mxu0  ;;  %v11124_v15 = vld [vmem:[%s15548_s1 + $0x188] sm:$0xff]  ;;  %v863_v18 = vrot.slane %v11421_v5, 5  ;;  %v12281_v5 = vld [vmem:[%s11565_s14 + $0x14] sm:$0x1] }
 0x192   : > { %15596 = vst [vmem:[#allocation39_spill] sm:$0xff] %v12242_v40  ;;  %4203 = vmatpush.bf16.msrb.mxu2 %v11124_v15  ;;  %4302 = vmatpush.bf16.msra.mxu3 %v11132_v34  ;;  %v1509_v15 = vrot.slane %v9759_v27, 5  ;;  %v11422_v40 = vld [vmem:[%s11565_s14 + $0x50] sm:$0x1] }
 0x193   : > { %15595 = vst [vmem:[#allocation38_spill] sm:$0xff] %v12240_v13  ;;  %4104 = vmatpush.bf16.msrb.mxu1 %v11116_v32  ;;  %v2524_v13 = vpack.c.b16 %v2494_v17, %v2493_v43  ;;  %v11115_v32 = vld [vmem:[%s15548_s1 + $0x140] sm:$0xff]  ;;  %v1512_v17 = vrot.slane %v12281_v5, 5  ;;  %v866_v36 = vrot.slane %v11422_v40, 5 }
 0x194   : > { %v1510_v63 = vsel %vm11777_vm5, %v9830_v21, %v1509_v15  ;;  %v9849_v21 = vld [vmem:[%s11565_s14 + $0x1c] sm:$0xf] }
 0x195   : > { %v2717_v25 = vunpack.c.l.b16 %v1510_v63  ;;  %v1017_v63 = vshrl.u32 %v9759_v27, 16  ;;  %v1701_v61 = vshll.u32 %v9849_v21, 16  ;;  %v1705_v54 = vshrl.u32 %v9849_v21, 16 }
 0x196   : > { %4204 = vmatpush.bf16.msrb.mxu2 %v11123_v51  ;;  %4303 = vmatpush.bf16.msra.mxu3 %v11131_v52  ;;  %v9758_v51 = vld [vmem:[%s11565_s14 + $0xc] sm:$0xf]  ;;  %v865_v52 = vrot.slane %v863_v18, 4 }
 0x197   : > { %4105 = vmatpush.bf16.msrb.mxu1 %v11115_v32  ;;  %v1004_v57 = vshrl.u32 %v9758_v51, 16  ;;  %v1013_v32 = vshll.u32 %v9759_v27, 16 }
 0x198   : > { %v3946_v48 = vpop.f32.mrf.mxu3 }
 0x199   : > { %v12271_v34 = vadd.f32 %v3946_v48, %v3848_v3  ;;  %v3687_v19 = vpop.f32.mrf.mxu0  ;;  %v1511_v3 = vrot.slane %v1509_v15, 4  ;;  %4205 = vmatmul.bf16.vlgmr.msrb.gmra.mxu2 %v11057_v0  ;;  %v9746_v48 = vrot.slane %v750_v23, 9  ;;  %v12296_v23 = vpop.f32.mrf.mxu2  ;;  %v1007_v0 = vshll.u32 %v9758_v51, 16 }
 0x19a   : > { %v3688_v43 = vadd.f32 %v11866_v53, %v3687_v19  ;;  %v11146_v19 = vld [vmem:[%s15548_s1 + $0x238] sm:$0xff]  ;;  %15598 = vst [vmem:[#allocation41_spill] sm:$0xff] %v12296_v23  ;;  %v867_v51 = vsel %vm11777_vm5, %v865_v52, %v866_v36  ;;  %v9884_v36 = vld [vmem:[%s11565_s14 + $0x20] sm:$0x1] }
 0x19b   : > { %15597 = vst [vmem:[#allocation40_spill] sm:$0xff] %v12271_v34  ;;  %v9848_v34 = vld [vmem:[%s11565_s14 + $0x18] sm:$0xf]  ;;  %v1513_v15 = vsel %vm11777_vm5, %v1511_v3, %v1512_v17  ;;  %4395 = vmatpush.bf16.msrb.mxu0 %v11146_v19  ;;  %v864_v27 = vsel %vm11777_vm5, %v9746_v48, %v863_v18  ;;  %v12314_v17 = vrot.slane %v1701_v61, 5  ;;  %v1707_v18 = vrot.slane %v1705_v54, 4 }
 0x19c   : > { %3834 = vmatmul.bf16.gmra.mxu0 %v2524_v13  ;;  %v3787_v38 = vadd.f32 %v11966_v33, %v3688_v43  ;;  %v2718_v13 = vunpack.c.l.b16 %v1513_v15  ;;  %v1692_v40 = vshrl.u32 %v9848_v34, 16  ;;  %v1695_v43 = vshll.u32 %v9848_v34, 16 }
 0x19d   : > { %3988 = vmatmul.bf16.gmra.mxu3 %v11055_v42  ;;  %v3655_v42 = vadd.f32 %v11866_v53, %v12057_v12  ;;  %v1006_v12 = vrot.slane %v1004_v57, 4  ;;  %v1019_v34 = vrot.slane %v1017_v63, 4  ;;  %v2495_v48 = vunpack.c.l.b16 %v864_v27  ;;  %v11056_v27 = vld [vmem:[%s11565_s14 + $0xd8] sm:$0xff] }
 0x19e   : > { %v12300_v33 = vadd.f32 %v3885_v47, %v3787_v38  ;;  %v2753_v30 = vpack.c.b16 %v2718_v13, %v2717_v25  ;;  %v1009_v38 = vrot.slane %v1007_v0, 5  ;;  %v12311_v47 = vrot.slane %v1013_v32, 5  ;;  %v9813_v0 = vld [vmem:[%s11565_s14 + $0x18] sm:$0xe] }
 0x19f   : > { %v1694_v25 = vrot.slane %v1692_v40, 4  ;;  %v2496_v21 = vunpack.c.l.b16 %v867_v51  ;;  %v1708_v54 = vor.u32 %v1707_v18, %v12314_v17  ;;  %v1711_v63 = vshll.u32 %v9884_v36, 16  ;;  %v11058_v51 = vld [vmem:[%s11565_s14 + $0x24] sm:$0xff] }
 0x1a0   : > { %15599 = vst [vmem:[#allocation42_spill] sm:$0xff] %v12300_v33  ;;  %v3949_v6 = vpop.f32.mrf.mxu3  ;;  %4106 = vmatmul.bf16.vlgmr.msrb.gmra.mxu1 %v2753_v30  ;;  %v1010_v52 = vor.u32 %v1009_v38, %v1006_v12  ;;  %v1020_v57 = vor.u32 %v1019_v34, %v12311_v47  ;;  %v1023_v30 = vshll.u32 %v12281_v5, 16  ;;  %v9831_v13 = vrot.slane %v9813_v0, 9  ;;  %v12329_v34 = vld [vmem:[%s11565_s14 + $0x20] sm:$0x1] }
 0x1a1   : > { %v12303_v3 = vadd.f32 %v3949_v6, %v12053_v29  ;;  %v12309_v53 = vpop.f32.mrf.mxu0  ;;  %v3754_v6 = vadd.f32 %v12059_v62, %v3655_v42  ;;  %v1697_v29 = vrot.slane %v1695_v43, 5  ;;  %v9761_v62 = vld [vmem:[%s11565_s14 + $0x1c] sm:$0xf]  ;;  %v3890_v32 = vpop.f32.mrf.mxu2  ;;  %v2525_v43 = vpack.c.b16 %v2496_v21, %v2495_v48  ;;  %v9850_v36 = vld [vmem:[%s11565_s14 + $0x24] sm:$0xf] }
 0x1a2   : > { %v1516_v42 = vrot.slane %v9761_v62, 5  ;;  %v1011_v5 = vrot.slane %v1010_v52, 4  ;;  %v1021_v38 = vrot.slane %v1020_v57, 4  ;;  %v1025_v48 = vrot.slane %v1023_v30, 5 }
 0x1a3   : > { %15600 = vst [vmem:[#allocation43_spill] sm:$0xff] %v12303_v3  ;;  %v3853_v19 = vadd.f32 %v12017_v59, %v3754_v6  ;;  %v1698_v15 = vor.u32 %v1697_v29, %v1694_v25  ;;  %v9760_v59 = vld [vmem:[%s11565_s14 + $0x18] sm:$0xf]  ;;  %v12336_v29 = vld [vmem:[%s15549_s2] ss:$0 sm:$0xff]  ;;  %v1519_v52 = vrot.slane %v12329_v34, 5 }
 0x1a4   : > { %v1517_v6 = vsel %vm11777_vm5, %v9831_v13, %v1516_v42  ;;  %v1518_v25 = vrot.slane %v1516_v42, 4  ;;  %v1709_v57 = vrot.slane %v1708_v54, 4  ;;  %v1028_v0 = vshrl.u32 %v9760_v59, 16 }
 0x1a5   : > { %v1699_v21 = vrot.slane %v1698_v15, 4  ;;  %v1031_v42 = vshll.u32 %v9760_v59, 16  ;;  %v1037_v3 = vshll.u32 %v9761_v62, 16  ;;  %v1041_v30 = vshrl.u32 %v9761_v62, 16 }
 0x1a6   : > { %v1716_v15 = vshrl.u32 %v9850_v36, 16  ;;  %v3660_v54 = vadd.f32 %v12336_v29, %v12075_v20 }
 0x1a7   : > { %v1704_v62 = vsel %vm11592_vm2, %v1699_v21, %v12314_v17 }
 0x1a8   : > { %v3951_v61 = vpop.f32.mrf.mxu3 }
 0x1a9   : > { %v12323_v40 = vadd.f32 %v3951_v61, %v3853_v19  ;;  %v3692_v12 = vpop.f32.mrf.mxu0  ;;  %4210 = vmatmul.bf16.gmra.mxu2 %v11058_v51  ;;  %v1713_v19 = vrot.slane %v1711_v63, 5  ;;  %v9851_v61 = vld [vmem:[%s11565_s14 + $0x28] sm:$0xf]  ;;  %v1719_v51 = vshll.u32 %v9850_v36, 16 }
 0x1aa   : > { %v3693_v18 = vadd.f32 %v12336_v29, %v3692_v12  ;;  %v1520_v12 = vsel %vm11777_vm5, %v1518_v25, %v1519_v52  ;;  %v1725_v33 = vshll.u32 %v9851_v61, 16 }
 0x1ab   : > { %15601 = vst [vmem:[#allocation44_spill] sm:$0xff] %v12323_v40  ;;  %v2719_v40 = vunpack.c.l.b16 %v1517_v6  ;;  %v2720_v23 = vunpack.c.l.b16 %v1520_v12  ;;  %v1729_v6 = vshrl.u32 %v9851_v61, 16  ;;  %v1714_v20 = vsel %vm11592_vm2, %v1709_v57, %v1713_v19  ;;  %v9885_v57 = vld [vmem:[%s11565_s14 + $0x2c] sm:$0x1]  ;;  %v12375_v12 = vld [vmem:[%s11565_s14 + $0x28] sm:$0xf] }
 0x1ac   : > { %3839 = vmatmul.bf16.gmra.mxu0 %v2525_v43  ;;  %v3792_v13 = vadd.f32 %v11986_v10, %v3693_v18  ;;  %v1016_v10 = vsel %vm11592_vm2, %v1011_v5, %v12311_v47  ;;  %v1033_v18 = vrot.slane %v1031_v42, 5  ;;  %v12364_v47 = vpop.f32.mrf.mxu2  ;;  %v12366_v5 = vrot.slane %v1037_v3, 5 }
 0x1ad   : > { %3993 = vmatmul.bf16.gmra.mxu3 %v11056_v27  ;;  %v1026_v27 = vsel %vm11592_vm2, %v1021_v38, %v1025_v48  ;;  %v2754_v59 = vpack.c.b16 %v2720_v23, %v2719_v40  ;;  %v1043_v38 = vrot.slane %v1041_v30, 4  ;;  %v1718_v48 = vrot.slane %v1716_v15, 4  ;;  %v9814_v15 = vld [vmem:[%s11565_s14 + $0x24] sm:$0xe] }
 0x1ae   : > { %v12347_v63 = vadd.f32 %v3890_v32, %v3792_v13  ;;  %v1030_v32 = vrot.slane %v1028_v0, 4  ;;  %v1721_v17 = vrot.slane %v1719_v51, 5  ;;  %v12369_v23 = vrot.slane %v1725_v33, 5 }
 0x1af   : > { %v1731_v40 = vrot.slane %v1729_v6, 4  ;;  %v2645_v21 = vunpack.c.l.b16 %v1016_v10  ;;  %v2646_v52 = vunpack.c.l.b16 %v1026_v27  ;;  %v2879_v19 = vunpack.c.l.b16 %v1704_v62 }
 0x1b0   : > { %v3954_v43 = vpop.f32.mrf.mxu3  ;;  %4111 = vmatmul.bf16.gmra.mxu1 %v2754_v59  ;;  %v2880_v0 = vunpack.c.l.b16 %v1714_v20  ;;  %v1034_v61 = vor.u32 %v1033_v18, %v1030_v32  ;;  %v1047_v3 = vshll.u32 %v12329_v34, 16  ;;  %v1044_v13 = vor.u32 %v1043_v38, %v12366_v5  ;;  %v11059_v59 = vld [vmem:[%s11565_s14 + $0x30] sm:$0xff]  ;;  %v12385_v18 = vld [vmem:[%s11565_s14 + $0x2c] sm:$0x1] }
 0x1b1   : > { %v12358_v25 = vadd.f32 %v3954_v43, %v12071_v55  ;;  %v12362_v36 = vpop.f32.mrf.mxu0  ;;  %v3759_v55 = vadd.f32 %v12077_v2, %v3660_v54  ;;  %v1722_v42 = vor.u32 %v1721_v17, %v1718_v48  ;;  %v1732_v33 = vor.u32 %v1731_v40, %v12369_v23 }
 0x1b2   : > { %v1735_v30 = vshll.u32 %v9885_v57, 16  ;;  %v1523_v51 = vrot.slane %v12375_v12, 5  ;;  %v2681_v6 = vpack.c.b16 %v2646_v52, %v2645_v21  ;;  %v9832_v43 = vrot.slane %v9814_v15, 9  ;;  %v9762_v57 = vld [vmem:[%s11565_s14 + $0x24] sm:$0xf]  ;;  %v3763_v15 = vpop.f32.mrf.mxu1 }
 0x1b3   : > { %v3858_v2 = vadd.f32 %v12039_v58, %v3759_v55  ;;  %v2915_v34 = vpack.c.b16 %v2880_v0, %v2879_v19  ;;  %v1035_v27 = vrot.slane %v1034_v61, 4  ;;  %v1049_v62 = vrot.slane %v1047_v3, 5  ;;  %v9852_v3 = vld [vmem:[%s11565_s14 + $0x30] sm:$0xf] }
 0x1b4   : > { %v1045_v32 = vrot.slane %v1044_v13, 4  ;;  %v1723_v58 = vrot.slane %v1722_v42, 4  ;;  %v1524_v38 = vsel %vm11777_vm5, %v9832_v43, %v1523_v51  ;;  %v1525_v48 = vrot.slane %v1523_v51, 4  ;;  %v3895_v52 = vpop.f32.mrf.mxu2 }
 0x1b5   : > { %v1733_v55 = vrot.slane %v1732_v33, 4  ;;  %v1737_v40 = vrot.slane %v1735_v30, 5  ;;  %v1526_v21 = vrot.slane %v12385_v18, 5  ;;  %v2721_v19 = vunpack.c.l.b16 %v1524_v38 }
 0x1b6   : > { %v3665_v0 = vadd.f32 %v12336_v29, %v12095_v35  ;;  %v1040_v42 = vsel %vm11592_vm2, %v1035_v27, %v12366_v5  ;;  %v1728_v33 = vsel %vm11592_vm2, %v1723_v58, %v12369_v23  ;;  %v9853_v35 = vld [vmem:[%s11565_s14 + $0x34] sm:$0xf]  ;;  %v1061_v5 = vshll.u32 %v12375_v12, 16 }
 0x1b7   : > { %v1527_v13 = vsel %vm11777_vm5, %v1525_v48, %v1526_v21  ;;  %v1740_v27 = vshrl.u32 %v9852_v3, 16  ;;  %v1743_v23 = vshll.u32 %v9852_v3, 16  ;;  %v11145_v58 = vld [vmem:[%s15548_s1 + $0x230] sm:$0xff] }
 0x1b8   : > { %v3956_v54 = vpop.f32.mrf.mxu3  ;;  %v2722_v30 = vunpack.c.l.b16 %v1527_v13  ;;  %v3764_v38 = vadd.f32 %v3763_v15, %v3665_v0  ;;  %4396 = vmatpush.bf16.msrb.mxu0 %v11145_v58  ;;  %v9886_v13 = vld [vmem:[%s11565_s14 + $0x38] sm:$0x1] }
 0x1b9   : > { %v12381_v10 = vadd.f32 %v3956_v54, %v3858_v2  ;;  %v3697_v20 = vpop.f32.mrf.mxu0  ;;  %4215 = vmatmul.bf16.gmra.mxu2 %v11059_v59  ;;  %v1050_v2 = vsel %vm11592_vm2, %v1045_v32, %v1049_v62  ;;  %v1052_v54 = vshrl.u32 %v9762_v57, 16  ;;  %v1753_v32 = vshrl.u32 %v9853_v35, 16 }
 0x1ba   : > { %v3698_v17 = vadd.f32 %v12336_v29, %v3697_v20  ;;  %v2755_v62 = vpack.c.b16 %v2722_v30, %v2721_v19  ;;  %v1749_v20 = vshll.u32 %v9853_v35, 16  ;;  %v1742_v19 = vrot.slane %v1740_v27, 4  ;;  %v9765_v35 = vld [vmem:[%s11565_s14 + $0x34] sm:$0xf]  ;;  %v9815_v30 = vld [vmem:[%s11565_s14 + $0x30] sm:$0xe] }
 0x1bb   : > { %v1755_v0 = vrot.slane %v1753_v32, 4  ;;  %v1530_v15 = vrot.slane %v9765_v35, 5  ;;  %v12436_v32 = vld [vmem:[%s11565_s14 + $0x38] sm:$0x1] }
 0x1bc   : > { %4007 = vmatmul.bf16.vlgmr.msra.gmra.mxu0 %v2681_v6  ;;  %v3797_v61 = vadd.f32 %v12008_v49, %v3698_v17  ;;  %v1738_v49 = vsel %vm11592_vm2, %v1733_v55, %v1737_v40  ;;  %v1055_v6 = vshll.u32 %v9762_v57, 16  ;;  %v2647_v17 = vunpack.c.l.b16 %v1040_v42 }
 0x1bd   : > { %4304 = vmatmul.bf16.vlgmr.msra.gmra.mxu3 %v2915_v34  ;;  %v1065_v34 = vshrl.u32 %v12375_v12, 16  ;;  %v2648_v12 = vunpack.c.l.b16 %v1050_v2  ;;  %v2881_v55 = vunpack.c.l.b16 %v1728_v33  ;;  %v2882_v40 = vunpack.c.l.b16 %v1738_v49 }
 0x1be   : > { %v12407_v51 = vadd.f32 %v3895_v52, %v3797_v61  ;;  %v1057_v21 = vrot.slane %v1055_v6, 5  ;;  %v12421_v52 = vrot.slane %v1061_v5, 5  ;;  %v1745_v61 = vrot.slane %v1743_v23, 5  ;;  %v11060_v23 = vld [vmem:[%s11565_s14 + $0x3c] sm:$0xff] }
 0x1bf   : > { %v1067_v57 = vrot.slane %v1065_v34, 4  ;;  %v12423_v3 = vrot.slane %v1749_v20, 5  ;;  %v3863_v42 = vadd.f32 %v12065_v22, %v3764_v38  ;;  %v2682_v2 = vpack.c.b16 %v2648_v12, %v2647_v17 }
 0x1c0   : > { %v3959_v43 = vpop.f32.mrf.mxu3  ;;  %4116 = vmatmul.bf16.gmra.mxu1 %v2755_v62  ;;  %v2916_v33 = vpack.c.b16 %v2882_v40, %v2881_v55  ;;  %v9833_v5 = vrot.slane %v9815_v30, 9  ;;  %v1746_v27 = vor.u32 %v1745_v61, %v1742_v19  ;;  %v1759_v22 = vshll.u32 %v9886_v13, 16  ;;  %v9764_v55 = vld [vmem:[%s11565_s14 + $0x30] sm:$0xf]  ;;  %v9854_v19 = vld [vmem:[%s11565_s14 + $0x3c] sm:$0xf] }
 0x1c1   : > { %v12414_v59 = vadd.f32 %v3959_v43, %v12091_v31  ;;  %v12419_v48 = vpop.f32.mrf.mxu0  ;;  %v1054_v31 = vrot.slane %v1052_v54, 4  ;;  %v1068_v6 = vor.u32 %v1067_v57, %v12421_v52  ;;  %v1071_v43 = vshll.u32 %v12385_v18, 16 }
 0x1c2   : > { %v1756_v62 = vor.u32 %v1755_v0, %v12423_v3  ;;  %v1531_v58 = vsel %vm11777_vm5, %v9833_v5, %v1530_v15  ;;  %v1532_v38 = vrot.slane %v1530_v15, 4  ;;  %v3615_v17 = vadd.f32 %v12336_v29, %v11879_v16 }
 0x1c3   : > { %v1058_v54 = vor.u32 %v1057_v21, %v1054_v31  ;;  %v3670_v18 = vadd.f32 %v12336_v29, %v12116_v26  ;;  %v1533_v40 = vrot.slane %v12436_v32, 5  ;;  %v1069_v21 = vrot.slane %v1068_v6, 4 }
 0x1c4   : > { %v1073_v57 = vrot.slane %v1071_v43, 5  ;;  %v2723_v61 = vunpack.c.l.b16 %v1531_v58  ;;  %v1747_v0 = vrot.slane %v1746_v27, 4  ;;  %v1757_v16 = vrot.slane %v1756_v62, 4 }
 0x1c5   : > { %v1059_v31 = vrot.slane %v1058_v54, 4  ;;  %v1761_v13 = vrot.slane %v1759_v22, 5  ;;  %v1534_v26 = vsel %vm11777_vm5, %v1532_v38, %v1533_v40  ;;  %v1079_v30 = vshll.u32 %v9764_v55, 16 }
 0x1c6   : > { %v1085_v15 = vshll.u32 %v9765_v35, 16  ;;  %v3714_v5 = vadd.f32 %v11884_v24, %v3615_v17  ;;  %v1089_v54 = vshrl.u32 %v9765_v35, 16  ;;  %v1764_v6 = vshrl.u32 %v9854_v19, 16 }
 0x1c7   : > { %v1767_v43 = vshll.u32 %v9854_v19, 16  ;;  %v1074_v58 = vsel %vm11592_vm2, %v1069_v21, %v1073_v57  ;;  %v1752_v24 = vsel %vm11592_vm2, %v1747_v0, %v12423_v3  ;;  %v9887_v0 = vld [vmem:[%s11565_s14 + $0x44] sm:$0x1] }
 0x1c8   : > { %v3961_v49 = vpop.f32.mrf.mxu3  ;;  %v12468_v17 = vrot.slane %v1085_v15, 5  ;;  %v2650_v57 = vunpack.c.l.b16 %v1074_v58  ;;  %v2883_v19 = vunpack.c.l.b16 %v1752_v24  ;;  %v12488_v58 = vld [vmem:[%s11565_s14 + $0x44] sm:$0x1] }
 0x1c9   : > { %v12431_v34 = vadd.f32 %v3961_v49, %v3863_v42  ;;  %v3810_v20 = vpop.f32.mrf.mxu0  ;;  %4220 = vmatmul.bf16.gmra.mxu2 %v11060_v23  ;;  %v9855_v42 = vld [vmem:[%s11565_s14 + $0x40] sm:$0xf]  ;;  %v2724_v49 = vunpack.c.l.b16 %v1534_v26  ;;  %v3769_v23 = vadd.f32 %v11894_v45, %v3670_v18  ;;  %v1762_v45 = vsel %vm11592_vm2, %v1757_v16, %v1761_v13 }
 0x1ca   : > { %v12445_v12 = vadd.f32 %v3810_v20, %v11872_v9  ;;  %v1076_v9 = vshrl.u32 %v9764_v55, 16  ;;  %v1777_v27 = vshrl.u32 %v9855_v42, 16  ;;  %v1064_v20 = vsel %vm11592_vm2, %v1059_v31, %v12421_v52  ;;  %v12476_v16 = vld [vmem:[%s11565_s14 + $0x40] sm:$0xf] }
 0x1cb   : > { %v2756_v62 = vpack.c.b16 %v2724_v49, %v2723_v61  ;;  %v1091_v52 = vrot.slane %v1089_v54, 4  ;;  %v1766_v55 = vrot.slane %v1764_v6, 4  ;;  %v1769_v40 = vrot.slane %v1767_v43, 5  ;;  %v9816_v49 = vld [vmem:[%s11565_s14 + $0x3c] sm:$0xe] }
 0x1cc   : > { %4012 = vmatmul.bf16.gmra.mxu0 %v2682_v2  ;;  %v1078_v38 = vrot.slane %v1076_v9, 4  ;;  %v1779_v3 = vrot.slane %v1777_v27, 4  ;;  %v2649_v21 = vunpack.c.l.b16 %v1064_v20  ;;  %v2884_v61 = vunpack.c.l.b16 %v1762_v45  ;;  %v11061_v20 = vld [vmem:[%s11565_s14 + $0x48] sm:$0xff] }
 0x1cd   : > { %4309 = vmatmul.bf16.gmra.mxu3 %v2916_v33  ;;  %v1773_v33 = vshll.u32 %v9855_v42, 16  ;;  %v1537_v42 = vrot.slane %v12476_v16, 5  ;;  %v3868_v26 = vadd.f32 %v12089_v50, %v3769_v23  ;;  %v1092_v9 = vor.u32 %v1091_v52, %v12468_v17 }
 0x1ce   : > { %v1770_v15 = vor.u32 %v1769_v40, %v1766_v55  ;;  %v1783_v6 = vshll.u32 %v9887_v0, 16  ;;  %v9834_v43 = vrot.slane %v9816_v49, 9  ;;  %v2683_v27 = vpack.c.b16 %v2650_v57, %v2649_v21  ;;  %v9766_v21 = vld [vmem:[%s11565_s14 + $0x3c] sm:$0xf] }
 0x1cf   : > { %v12472_v31 = vrot.slane %v1773_v33, 5  ;;  %v3620_v50 = vadd.f32 %v12336_v29, %v11904_v4  ;;  %v1103_v49 = vshll.u32 %v9766_v21, 16 }
 0x1d0   : > { %v3964_v2 = vpop.f32.mrf.mxu3  ;;  %4121 = vmatmul.bf16.gmra.mxu1 %v2756_v62  ;;  %v2917_v62 = vpack.c.b16 %v2884_v61, %v2883_v19  ;;  %v1538_v24 = vsel %vm11777_vm5, %v9834_v43, %v1537_v42  ;;  %v1771_v55 = vrot.slane %v1770_v15, 4  ;;  %v1785_v4 = vrot.slane %v1783_v6, 5  ;;  %v9856_v61 = vld [vmem:[%s11565_s14 + $0x48] sm:$0xf] }
 0x1d1   : > { %v12456_v22 = vadd.f32 %v3964_v2, %v12112_v11  ;;  %v3812_v35 = vpop.f32.mrf.mxu0  ;;  %v1081_v11 = vrot.slane %v1079_v30, 5  ;;  %v1095_v30 = vshll.u32 %v12436_v32, 16  ;;  %v1780_v54 = vor.u32 %v1779_v3, %v12472_v31 }
 0x1d2   : > { %v12470_v18 = vadd.f32 %v3812_v35, %v3714_v5  ;;  %v1539_v2 = vrot.slane %v1537_v42, 4  ;;  %v1540_v35 = vrot.slane %v12488_v58, 5  ;;  %v2725_v52 = vunpack.c.l.b16 %v1538_v24  ;;  %v9857_v42 = vld [vmem:[%s11565_s14 + $0x4c] sm:$0xf] }
 0x1d3   : > { %v1082_v13 = vor.u32 %v1081_v11, %v1078_v38  ;;  %v1093_v38 = vrot.slane %v1092_v9, 4  ;;  %v1097_v11 = vrot.slane %v1095_v30, 5  ;;  %v1781_v40 = vrot.slane %v1780_v54, 4 }
 0x1d4   : > { %v1541_v3 = vsel %vm11777_vm5, %v1539_v2, %v1540_v35  ;;  %v3719_v19 = vadd.f32 %v11907_v8, %v3620_v50  ;;  %v1776_v30 = vsel %vm11592_vm2, %v1771_v55, %v12472_v31  ;;  %v1100_v15 = vshrl.u32 %v9766_v21, 16 }
 0x1d5   : > { %v1083_v23 = vrot.slane %v1082_v13, 4  ;;  %v2726_v57 = vunpack.c.l.b16 %v1541_v3  ;;  %v1098_v13 = vsel %vm11592_vm2, %v1093_v38, %v1097_v11  ;;  %v1786_v8 = vsel %vm11592_vm2, %v1781_v40, %v1785_v4 }
 0x1d6   : > { %v1788_v54 = vshrl.u32 %v9856_v61, 16  ;;  %v1791_v43 = vshll.u32 %v9856_v61, 16  ;;  %v1797_v2 = vshll.u32 %v9857_v42, 16  ;;  %v2652_v50 = vunpack.c.l.b16 %v1098_v13 }
 0x1d7   : > { %v1088_v0 = vsel %vm11592_vm2, %v1083_v23, %v12468_v17  ;;  %v1109_v17 = vshll.u32 %v12476_v16, 16  ;;  %v1102_v23 = vrot.slane %v1100_v15, 4  ;;  %v1105_v24 = vrot.slane %v1103_v49, 5  ;;  %v11062_v15 = vld [vmem:[%s11565_s14 + $0x54] sm:$0xff]  ;;  %v12544_v49 = vld [vmem:[%s11565_s14 + $0x50] sm:$0x1] }
 0x1d8   : > { %v3966_v5 = vpop.f32.mrf.mxu3  ;;  %v1790_v11 = vrot.slane %v1788_v54, 4  ;;  %v1793_v55 = vrot.slane %v1791_v43, 5  ;;  %v12533_v40 = vrot.slane %v1797_v2, 5 }
 0x1d9   : > { %v12484_v33 = vadd.f32 %v3966_v5, %v3868_v26  ;;  %v3815_v32 = vpop.f32.mrf.mxu0  ;;  %4225 = vmatmul.bf16.gmra.mxu2 %v11061_v20  ;;  %v2757_v26 = vpack.c.b16 %v2726_v57, %v2725_v52  ;;  %v1113_v5 = vshrl.u32 %v12476_v16, 16  ;;  %v2651_v20 = vunpack.c.l.b16 %v1088_v0  ;;  %v12530_v52 = vld [vmem:[%s11565_s14 + $0x4c] sm:$0xf] }
 0x1da   : > { %v12496_v45 = vadd.f32 %v3815_v32, %v11900_v60  ;;  %v3675_v60 = vadd.f32 %v12336_v29, %v12139_v46  ;;  %v2885_v32 = vunpack.c.l.b16 %v1776_v30  ;;  %v2886_v16 = vunpack.c.l.b16 %v1786_v8 }
 0x1db   : > { %v12527_v35 = vrot.slane %v1109_v17, 5  ;;  %v1115_v38 = vrot.slane %v1113_v5, 4  ;;  %v1544_v3 = vrot.slane %v12530_v52, 5  ;;  %v2684_v57 = vpack.c.b16 %v2652_v50, %v2651_v20 }
 0x1dc   : > { %4017 = vmatmul.bf16.gmra.mxu0 %v2683_v27  ;;  %v1801_v27 = vshrl.u32 %v9857_v42, 16  ;;  %v3774_v31 = vadd.f32 %v11919_v28, %v3675_v60  ;;  %v9888_v28 = vld [vmem:[%s11565_s14 + $0x50] sm:$0x1]  ;;  %v2918_v60 = vpack.c.b16 %v2886_v16, %v2885_v32  ;;  %v1106_v0 = vor.u32 %v1105_v24, %v1102_v23  ;;  %v9858_v32 = vld [vmem:[%s11565_s14 + $0x54] sm:$0xf] }
 0x1dd   : > { %4314 = vmatmul.bf16.gmra.mxu3 %v2917_v62  ;;  %v1546_v42 = vrot.slane %v1544_v3, 4  ;;  %v1119_v30 = vshll.u32 %v12488_v58, 16  ;;  %v1807_v8 = vshll.u32 %v9888_v28, 16  ;;  %v3625_v58 = vadd.f32 %v12336_v29, %v11928_v39  ;;  %v9859_v28 = vld [vmem:[%s11565_s14 + $0x58] sm:$0xf] }
 0x1de   : > { %v1803_v4 = vrot.slane %v1801_v27, 4  ;;  %v3873_v21 = vadd.f32 %v12122_v14, %v3774_v31  ;;  %v1794_v14 = vor.u32 %v1793_v55, %v1790_v11  ;;  %v9768_v27 = vld [vmem:[%s11565_s14 + $0x48] sm:$0xf]  ;;  %v1107_v20 = vrot.slane %v1106_v0, 4 }
 0x1df   : > { %v1809_v24 = vrot.slane %v1807_v8, 5  ;;  %v1124_v11 = vshrl.u32 %v9768_v27, 16  ;;  %v1127_v39 = vshll.u32 %v9768_v27, 16  ;;  %v15604_v8 = vld [vmem:[#allocation3_spill] sm:$0xff] }
 0x1e0   : > { %v3969_v9 = vpop.f32.mrf.mxu3  ;;  %4126 = vmatmul.bf16.gmra.mxu1 %v2757_v26  ;;  %v1804_v5 = vor.u32 %v1803_v4, %v12533_v40  ;;  %v1795_v23 = vrot.slane %v1794_v14, 4 }
 0x1e1   : > { %v12517_v46 = vadd.f32 %v3969_v9, %v12135_v1  ;;  %v3817_v6 = vpop.f32.mrf.mxu0  ;;  %v11144_v1 = vld [vmem:[%s15548_s1 + $0x228] sm:$0xff]  ;;  %v1116_v9 = vor.u32 %v1115_v38, %v12527_v35  ;;  %v3680_v38 = vadd.f32 %v12336_v29, %v12180_v56  ;;  %v1112_v56 = vsel %vm11592_vm2, %v1107_v20, %v12527_v35  ;;  %v12584_v20 = vld [vmem:[%s11565_s14 + $0x58] sm:$0xf] }
 0x1e2   : > { %v12522_v62 = vadd.f32 %v3817_v6, %v3719_v19  ;;  %4397 = vmatpush.bf16.msrb.mxu0 %v11144_v1  ;;  %v9817_v19 = vld [vmem:[%s11565_s14 + $0x48] sm:$0xe]  ;;  %v1547_v6 = vrot.slane %v12544_v49, 5  ;;  %v1121_v1 = vrot.slane %v1119_v30, 5  ;;  %v1825_v30 = vshrl.u32 %v9859_v28, 16 }
 0x1e3   : > { %v9835_v13 = vrot.slane %v9817_v19, 9  ;;  %v1117_v50 = vrot.slane %v1116_v9, 4  ;;  %v1815_v19 = vshll.u32 %v9858_v32, 16  ;;  %v1800_v9 = vsel %vm11592_vm2, %v1795_v23, %v12533_v40 }
 0x1e4   : > { %v1548_v31 = vsel %vm11777_vm5, %v1546_v42, %v1547_v6  ;;  %v1126_v35 = vrot.slane %v1124_v11, 4  ;;  %v1129_v14 = vrot.slane %v1127_v39, 5  ;;  %v2887_v27 = vunpack.c.l.b16 %v1800_v9  ;;  %v9818_v11 = vld [vmem:[%s11565_s14 + $0x54] sm:$0xe] }
 0x1e5   : > { %v1545_v54 = vsel %vm11777_vm5, %v9835_v13, %v1544_v3  ;;  %v2728_v16 = vunpack.c.l.b16 %v1548_v31  ;;  %v1133_v3 = vshll.u32 %v12530_v52, 16  ;;  %v1122_v13 = vsel %vm11592_vm2, %v1117_v50, %v1121_v1 }
 0x1e6   : > { %v2727_v2 = vunpack.c.l.b16 %v1545_v54  ;;  %v1817_v40 = vrot.slane %v1815_v19, 5  ;;  %v1827_v1 = vrot.slane %v1825_v30, 4  ;;  %v15608_v30 = vld [vmem:[#allocation4_spill] sm:$0xff] }
 0x1e8   : > { %v3971_v61 = vpop.f32.mrf.mxu3  ;;  %v2758_v55 = vpack.c.b16 %v2728_v16, %v2727_v2  ;;  %v2653_v2 = vunpack.c.l.b16 %v1112_v56  ;;  %v15605_v16 = vld [vmem:[#allocation31_spill] sm:$0xff] }
 0x1e9   : > { %v12538_v26 = vadd.f32 %v3971_v61, %v3873_v21  ;;  %v3820_v17 = vpop.f32.mrf.mxu0  ;;  %4230 = vmatmul.bf16.gmra.mxu2 %v11062_v15  ;;  %v1137_v21 = vshrl.u32 %v12530_v52, 16  ;;  %v3724_v61 = vadd.f32 %v11931_v41, %v3625_v58  ;;  %v1821_v41 = vshll.u32 %v9859_v28, 16 }
 0x1ea   : > { %v12551_v43 = vadd.f32 %v3820_v17, %v11924_v37  ;;  %v1805_v37 = vrot.slane %v1804_v5, 4  ;;  %v3779_v15 = vadd.f32 %v15604_v8, %v3680_v38  ;;  %v12581_v5 = vrot.slane %v1133_v3, 5  ;;  %v9889_v38 = vld [vmem:[%s11565_s14 + $0x5c] sm:$0x1] }
 0x1eb   : > { %v1139_v54 = vrot.slane %v1137_v21, 4  ;;  %v2654_v58 = vunpack.c.l.b16 %v1122_v13  ;;  %v12586_v50 = vrot.slane %v1821_v41, 5 }
 0x1ec   : > { %4022 = vmatmul.bf16.gmra.mxu0 %v2684_v57  ;;  %v1812_v57 = vshrl.u32 %v9858_v32, 16  ;;  %v1810_v52 = vsel %vm11592_vm2, %v1805_v37, %v1809_v24  ;;  %v1551_v32 = vrot.slane %v12584_v20, 5  ;;  %v3878_v23 = vadd.f32 %v15605_v16, %v3779_v15 }
 0x1ed   : > { %4319 = vmatmul.bf16.gmra.mxu3 %v2918_v60  ;;  %v15602_v60 = vld [vmem:[#allocation33_spill] sm:$0xff]  ;;  %v2888_v31 = vunpack.c.l.b16 %v1810_v52  ;;  %v1130_v37 = vor.u32 %v1129_v14, %v1126_v35  ;;  %v1143_v24 = vshll.u32 %v12544_v49, 16  ;;  %v1140_v28 = vor.u32 %v1139_v54, %v12581_v5 }
 0x1ee   : > { %v1814_v6 = vrot.slane %v1812_v57, 4  ;;  %v1553_v3 = vrot.slane %v1551_v32, 4  ;;  %v2685_v57 = vpack.c.b16 %v2654_v58, %v2653_v2  ;;  %v1828_v13 = vor.u32 %v1827_v1, %v12586_v50  ;;  %v15607_v52 = vld [vmem:[#allocation5_spill] sm:$0xff]  ;;  %v9770_v2 = vld [vmem:[%s11565_s14 + $0x54] sm:$0xf] }
 0x1ef   : > { %v2919_v19 = vpack.c.b16 %v2888_v31, %v2887_v27  ;;  %v1831_v49 = vshll.u32 %v9889_v38, 16  ;;  %v3630_v41 = vadd.f32 %v12336_v29, %v15607_v52  ;;  %v1131_v15 = vrot.slane %v1130_v37, 4  ;;  %v9860_v1 = vld [vmem:[%s11565_s14 + $0x60] sm:$0xf]  ;;  %v9861_v38 = vld [vmem:[%s11565_s14 + $0x64] sm:$0xf] }
 0x1f0   : > { %v3974_v4 = vpop.f32.mrf.mxu3  ;;  %4131 = vmatmul.bf16.gmra.mxu1 %v2758_v55  ;;  %v1818_v55 = vor.u32 %v1817_v40, %v1814_v6  ;;  %v1141_v14 = vrot.slane %v1140_v28, 4  ;;  %v1145_v54 = vrot.slane %v1143_v24, 5  ;;  %v1829_v27 = vrot.slane %v1828_v13, 4 }
 0x1f1   : > { %v12566_v0 = vadd.f32 %v3974_v4, %v15602_v60  ;;  %v3822_v42 = vpop.f32.mrf.mxu0  ;;  %v9836_v4 = vrot.slane %v9818_v11, 9  ;;  %v12598_v60 = vld [vmem:[%s11565_s14 + $0x5c] sm:$0x1]  ;;  %v1833_v31 = vrot.slane %v1831_v49, 5  ;;  %v1136_v24 = vsel %vm11592_vm2, %v1131_v15, %v12581_v5 }
 0x1f2   : > { %v12579_v17 = vadd.f32 %v3822_v42, %v3724_v61  ;;  %v11063_v61 = vld [vmem:[%s11565_s14 + $0x60] sm:$0xff]  ;;  %v1554_v9 = vrot.slane %v12598_v60, 5  ;;  %v1819_v6 = vrot.slane %v1818_v55, 4  ;;  %v1146_v28 = vsel %vm11592_vm2, %v1141_v14, %v1145_v54 }
 0x1f3   : > { %15603 = vst [vmem:[#allocation33_spill] sm:$0xff] %v12566_v0  ;;  %v1552_v42 = vsel %vm11777_vm5, %v9836_v4, %v1551_v32  ;;  %v15609_v32 = vld [vmem:[#allocation6_spill] sm:$0xff]  ;;  %v1148_v4 = vshrl.u32 %v9770_v2, 16  ;;  %v1836_v5 = vshrl.u32 %v9860_v1, 16  ;;  %v1834_v49 = vsel %vm11592_vm2, %v1829_v27, %v1833_v31  ;;  %v12638_v27 = vld [vmem:[%s11565_s14 + $0x64] sm:$0xf] }
 0x1f4   : > { %v2729_v35 = vunpack.c.l.b16 %v1552_v42  ;;  %v1555_v40 = vsel %vm11777_vm5, %v1553_v3, %v1554_v9  ;;  %v3729_v16 = vadd.f32 %v15609_v32, %v3630_v41  ;;  %v1824_v55 = vsel %vm11592_vm2, %v1819_v6, %v12586_v50  ;;  %v15613_v50 = vld [vmem:[#allocation7_spill] sm:$0xff]  ;;  %v9890_v31 = vld [vmem:[%s11565_s14 + $0x68] sm:$0x1] }
 0x1f5   : > { %v2730_v58 = vunpack.c.l.b16 %v1555_v40  ;;  %v1151_v3 = vshll.u32 %v9770_v2, 16  ;;  %v1839_v42 = vshll.u32 %v9860_v1, 16  ;;  %v1845_v9 = vshll.u32 %v9861_v38, 16 }
 0x1f6   : > { %v1849_v52 = vshrl.u32 %v9861_v38, 16  ;;  %v2655_v15 = vunpack.c.l.b16 %v1136_v24  ;;  %v2889_v14 = vunpack.c.l.b16 %v1824_v55  ;;  %v2890_v6 = vunpack.c.l.b16 %v1834_v49  ;;  %v11064_v49 = vld [vmem:[%s11565_s14 + $0x6c] sm:$0xff] }
 0x1f7   : > { %v2759_v11 = vpack.c.b16 %v2730_v58, %v2729_v35  ;;  %v2656_v35 = vunpack.c.l.b16 %v1146_v28  ;;  %v1153_v54 = vrot.slane %v1151_v3, 5  ;;  %v1838_v58 = vrot.slane %v1836_v5, 4 }
 0x1f8   : > { %v3976_v39 = vpop.f32.mrf.mxu3  ;;  %v1841_v1 = vrot.slane %v1839_v42, 5  ;;  %v12641_v32 = vrot.slane %v1845_v9, 5  ;;  %v1167_v55 = vshll.u32 %v12598_v60, 16  ;;  %v1855_v5 = vshll.u32 %v9890_v31, 16  ;;  %v12655_v42 = vld [vmem:[%s11565_s14 + $0x68] sm:$0x1] }
 0x1f9   : > { %v12594_v21 = vadd.f32 %v3976_v39, %v3878_v23  ;;  %v3825_v56 = vpop.f32.mrf.mxu0  ;;  %4235 = vmatmul.bf16.gmra.mxu2 %v11063_v61  ;;  %v15610_v23 = vld [vmem:[#allocation39_spill] sm:$0xff]  ;;  %v1157_v61 = vshll.u32 %v12584_v20, 16  ;;  %v2686_v38 = vpack.c.b16 %v2656_v35, %v2655_v15  ;;  %v15616_v15 = vld [vmem:[#allocation8_spill] sm:$0xff] }
 0x1fa   : > { %v12607_v8 = vadd.f32 %v3825_v56, %v15608_v30  ;;  %v3685_v37 = vadd.f32 %v12336_v29, %v15610_v23  ;;  %v1161_v56 = vshrl.u32 %v12584_v20, 16  ;;  %v1150_v20 = vrot.slane %v1148_v4, 4 }
 0x1fb   : > { %15606 = vst [vmem:[#allocation3_spill] sm:$0xff] %v12594_v21  ;;  %v12635_v40 = vrot.slane %v1157_v61, 5  ;;  %v1558_v23 = vrot.slane %v12638_v27, 5  ;;  %v2920_v61 = vpack.c.b16 %v2890_v6, %v2889_v14  ;;  %v9772_v14 = vld [vmem:[%s11565_s14 + $0x60] sm:$0xf]  ;;  %v1169_v6 = vrot.slane %v1167_v55, 5 }
 0x1fc   : > { %4027 = vmatmul.bf16.gmra.mxu0 %v2685_v57  ;;  %v15611_v57 = vld [vmem:[#allocation37_spill] sm:$0xff]  ;;  %v3784_v41 = vadd.f32 %v15613_v50, %v3685_v37  ;;  %v1163_v2 = vrot.slane %v1161_v56, 4  ;;  %v15614_v37 = vld [vmem:[#allocation36_spill] sm:$0xff]  ;;  %v1154_v28 = vor.u32 %v1153_v54, %v1150_v20  ;;  %v1181_v55 = vshll.u32 %v12638_v27, 16 }
 0x1fd   : > { %4324 = vmatmul.bf16.gmra.mxu3 %v2919_v19  ;;  %v1560_v3 = vrot.slane %v1558_v23, 4 }
 0x1fe   : > { %v3883_v24 = vadd.f32 %v15614_v37, %v3784_v41  ;;  %v1164_v56 = vor.u32 %v1163_v2, %v12635_v40  ;;  %v1561_v41 = vrot.slane %v12655_v42, 5  ;;  %v1155_v54 = vrot.slane %v1154_v28, 4  ;;  %v9863_v37 = vld [vmem:[%s11565_s14 + $0x70] sm:$0xf] }
 0x1ff   : > { %v3690_v28 = vadd.f32 %v12336_v29, %v12309_v53 }
 0x200   : > { %v3979_v39 = vpop.f32.mrf.mxu3  ;;  %4136 = vmatmul.bf16.gmra.mxu1 %v2759_v11  ;;  %v9819_v11 = vld [vmem:[%s11565_s14 + $0x60] sm:$0xe]  ;;  %v1562_v2 = vsel %vm11777_vm5, %v1560_v3, %v1561_v41  ;;  %v1185_v3 = vshrl.u32 %v12638_v27, 16  ;;  %v1160_v53 = vsel %vm11592_vm2, %v1155_v54, %v12635_v40  ;;  %v12692_v40 = vrot.slane %v1181_v55, 5 }
 0x201   : > { %v12626_v19 = vadd.f32 %v3979_v39, %v15611_v57  ;;  %v3827_v13 = vpop.f32.mrf.mxu0  ;;  %v9837_v4 = vrot.slane %v9819_v11, 9 }
 0x202   : > { %v12633_v30 = vadd.f32 %v3827_v13, %v3729_v16  ;;  %v1851_v16 = vrot.slane %v1849_v52, 4  ;;  %v11143_v13 = vld [vmem:[%s15548_s1 + $0x220] sm:$0xff]  ;;  %v1842_v52 = vor.u32 %v1841_v1, %v1838_v58  ;;  %v15617_v58 = vld [vmem:[#allocation9_spill] sm:$0xff]  ;;  %v1165_v1 = vrot.slane %v1164_v56, 4 }
 0x203   : > { %15612 = vst [vmem:[#allocation31_spill] sm:$0xff] %v12626_v19  ;;  %v1559_v50 = vsel %vm11777_vm5, %v9837_v4, %v1558_v23  ;;  %4398 = vmatpush.bf16.msrb.mxu0 %v11143_v13  ;;  %v3635_v31 = vadd.f32 %v12336_v29, %v15617_v58  ;;  %v9862_v23 = vld [vmem:[%s11565_s14 + $0x6c] sm:$0xf]  ;;  %v1172_v4 = vshrl.u32 %v9772_v14, 16  ;;  %v1175_v13 = vshll.u32 %v9772_v14, 16  ;;  %v15633_v19 = vld [vmem:[#allocation19_spill] sm:$0xff] }
 0x204   : > { %v1852_v60 = vor.u32 %v1851_v16, %v12641_v32  ;;  %v2731_v20 = vunpack.c.l.b16 %v1559_v50  ;;  %v1857_v16 = vrot.slane %v1855_v5, 5  ;;  %v1843_v11 = vrot.slane %v1842_v52, 4  ;;  %v15618_v50 = vld [vmem:[#allocation10_spill] sm:$0xff] }
 0x205   : > { %v1869_v56 = vshll.u32 %v9863_v37, 16  ;;  %v1873_v5 = vshrl.u32 %v9863_v37, 16  ;;  %v3734_v41 = vadd.f32 %v15618_v50, %v3635_v31  ;;  %v15619_v52 = vld [vmem:[#allocation42_spill] sm:$0xff]  ;;  %v1177_v58 = vrot.slane %v1175_v13, 5  ;;  %v15621_v31 = vld [vmem:[#allocation11_spill] sm:$0xff] }
 0x206   : > { %v1848_v14 = vsel %vm11592_vm2, %v1843_v11, %v12641_v32  ;;  %v1187_v54 = vrot.slane %v1185_v3, 4  ;;  %v2657_v11 = vunpack.c.l.b16 %v1160_v53  ;;  %v12698_v13 = vld [vmem:[%s11565_s14 + $0x70] sm:$0xf]  ;;  %v15622_v3 = vld [vmem:[#allocation41_spill] sm:$0xff] }
 0x207   : > { %v1875_v32 = vrot.slane %v1873_v5, 4  ;;  %v1565_v55 = vrot.slane %v12698_v13, 5  ;;  %v9820_v50 = vld [vmem:[%s11565_s14 + $0x6c] sm:$0xe] }
 0x208   : > { %v3981_v39 = vpop.f32.mrf.mxu3 }
 0x209   : > { %v12647_v57 = vadd.f32 %v3981_v39, %v3883_v24  ;;  %v3830_v9 = vpop.f32.mrf.mxu0  ;;  %4240 = vmatmul.bf16.gmra.mxu2 %v11064_v49  ;;  %v2732_v24 = vunpack.c.l.b16 %v1562_v2  ;;  %v1853_v39 = vrot.slane %v1852_v60, 4  ;;  %v1174_v2 = vrot.slane %v1172_v4, 4 }
 0x20a   : > { %v12662_v35 = vadd.f32 %v3830_v9, %v15616_v15  ;;  %v1170_v15 = vsel %vm11592_vm2, %v1165_v1, %v1169_v6  ;;  %v9891_v6 = vld [vmem:[%s11565_s14 + $0x74] sm:$0x1] }
 0x20b   : > { %15615 = vst [vmem:[#allocation5_spill] sm:$0xff] %v12647_v57  ;;  %v2760_v49 = vpack.c.b16 %v2732_v24, %v2731_v20  ;;  %v1858_v20 = vsel %vm11592_vm2, %v1853_v39, %v1857_v16  ;;  %v2658_v16 = vunpack.c.l.b16 %v1170_v15  ;;  %v2891_v39 = vunpack.c.l.b16 %v1848_v14  ;;  %v9866_v57 = vld [vmem:[%s11565_s14 + $0x84] sm:$0xf] }
 0x20c   : > { %4032 = vmatmul.bf16.gmra.mxu0 %v2686_v38  ;;  %v1860_v38 = vshrl.u32 %v9862_v23, 16  ;;  %v2892_v4 = vunpack.c.l.b16 %v1858_v20  ;;  %v1879_v5 = vshll.u32 %v9891_v6, 16  ;;  %v9838_v15 = vrot.slane %v9820_v50, 9 }
 0x20d   : > { %4329 = vmatmul.bf16.gmra.mxu3 %v2920_v61  ;;  %v1863_v61 = vshll.u32 %v9862_v23, 16  ;;  %v3789_v23 = vadd.f32 %v15621_v31, %v3690_v28  ;;  %v1178_v28 = vor.u32 %v1177_v58, %v1174_v2  ;;  %v2687_v20 = vpack.c.b16 %v2658_v16, %v2657_v11  ;;  %v11065_v58 = vld [vmem:[%s11565_s14 + $0x78] sm:$0xff]  ;;  %v12712_v31 = vld [vmem:[%s11565_s14 + $0x74] sm:$0x1] }
 0x20e   : > { %v1862_v1 = vrot.slane %v1860_v38, 4  ;;  %v2921_v2 = vpack.c.b16 %v2892_v4, %v2891_v39  ;;  %v1881_v50 = vrot.slane %v1879_v5, 5 }
 0x20f   : > { %v1865_v24 = vrot.slane %v1863_v61, 5  ;;  %v3888_v38 = vadd.f32 %v15622_v3, %v3789_v23  ;;  %v1188_v61 = vor.u32 %v1187_v54, %v12692_v40  ;;  %v15624_v23 = vld [vmem:[#allocation13_spill] sm:$0xff]  ;;  %v1179_v6 = vrot.slane %v1178_v28, 4 }
 0x210   : > { %v3984_v9 = vpop.f32.mrf.mxu3  ;;  %4141 = vmatmul.bf16.gmra.mxu1 %v2760_v49  ;;  %v12700_v49 = vpop.f32.mrf.mxu2  ;;  %v3640_v54 = vadd.f32 %v12336_v29, %v15624_v23  ;;  %v9774_v29 = vld [vmem:[%s11565_s14 + $0x6c] sm:$0xf] }
 0x211   : > { %v12677_v60 = vadd.f32 %v3984_v9, %v15619_v52  ;;  %v3832_v27 = vpop.f32.mrf.mxu0  ;;  %v12695_v9 = vrot.slane %v1869_v56, 5  ;;  %v1191_v56 = vshll.u32 %v12655_v42, 16  ;;  %v1866_v52 = vor.u32 %v1865_v24, %v1862_v1 }
 0x212   : > { %v12690_v37 = vadd.f32 %v3832_v27, %v3734_v41  ;;  %v1567_v27 = vrot.slane %v1565_v55, 4  ;;  %v1566_v1 = vsel %vm11777_vm5, %v9838_v15, %v1565_v55  ;;  %v1568_v24 = vrot.slane %v12712_v31, 5 }
 0x213   : > { %15620 = vst [vmem:[#allocation4_spill] sm:$0xff] %v12677_v60  ;;  %v1876_v53 = vor.u32 %v1875_v32, %v12695_v9  ;;  %v15625_v32 = vld [vmem:[#allocation12_spill] sm:$0xff]  ;;  %v1189_v11 = vrot.slane %v1188_v61, 4  ;;  %v1193_v16 = vrot.slane %v1191_v56, 5  ;;  %v2733_v39 = vunpack.c.l.b16 %v1566_v1 }
 0x214   : > { %v1867_v4 = vrot.slane %v1866_v52, 4  ;;  %v1569_v28 = vsel %vm11777_vm5, %v1567_v27, %v1568_v24  ;;  %v11424_v61 = vld [vmem:[%s15549_s2] ss:$0 sm:$0xff]  ;;  %v1184_v5 = vsel %vm11592_vm2, %v1179_v6, %v12692_v40  ;;  %v1196_v27 = vshrl.u32 %v9774_v29, 16 }
 0x215   : > { %v2734_v55 = vunpack.c.l.b16 %v1569_v28  ;;  %v3695_v56 = vadd.f32 %v11424_v61, %v12362_v36  ;;  %v1205_v24 = vshll.u32 %v12698_v13, 16  ;;  %v1209_v6 = vshrl.u32 %v12698_v13, 16 }
 0x216   : > { %v1872_v36 = vsel %vm11592_vm2, %v1867_v4, %v12695_v9  ;;  %v1198_v9 = vrot.slane %v1196_v27, 4 }
 0x217   : > { %v2761_v23 = vpack.c.b16 %v2734_v55, %v2733_v39  ;;  %v1211_v13 = vrot.slane %v1209_v6, 4 }
 0x218   : > { %v3986_v41 = vpop.f32.mrf.mxu3 }
 0x219   : > { %v12708_v14 = vadd.f32 %v3986_v41, %v3888_v38  ;;  %v3835_v42 = vpop.f32.mrf.mxu0  ;;  %4245 = vmatmul.bf16.gmra.mxu2 %v11065_v58  ;;  %v1877_v38 = vrot.slane %v1876_v53, 4  ;;  %v15626_v41 = vld [vmem:[#allocation14_spill] sm:$0xff]  ;;  %v9864_v58 = vld [vmem:[%s11565_s14 + $0x78] sm:$0xf] }
 0x21a   : > { %v12720_v3 = vadd.f32 %v3835_v42, %v15625_v32  ;;  %v3739_v15 = vadd.f32 %v15626_v41, %v3640_v54  ;;  %v1194_v42 = vsel %vm11592_vm2, %v1189_v11, %v1193_v16  ;;  %v1884_v32 = vshrl.u32 %v9864_v58, 16  ;;  %v15628_v11 = vld [vmem:[#allocation15_spill] sm:$0xff] }
 0x21b   : > { %15623 = vst [vmem:[#allocation6_spill] sm:$0xff] %v12708_v14  ;;  %v1882_v1 = vsel %vm11592_vm2, %v1877_v38, %v1881_v50  ;;  %v1887_v39 = vshll.u32 %v9864_v58, 16  ;;  %v3794_v16 = vadd.f32 %v15628_v11, %v3695_v56  ;;  %v2659_v38 = vunpack.c.l.b16 %v1184_v5  ;;  %v9821_v11 = vld [vmem:[%s11565_s14 + $0x78] sm:$0xe] }
 0x21c   : > { %4037 = vmatmul.bf16.gmra.mxu0 %v2687_v20  ;;  %v12731_v52 = vpop.f32.mrf.mxu2  ;;  %v1199_v20 = vshll.u32 %v9774_v29, 16  ;;  %v2660_v50 = vunpack.c.l.b16 %v1194_v42  ;;  %v1886_v58 = vrot.slane %v1884_v32, 4 }
 0x21d   : > { %4334 = vmatmul.bf16.gmra.mxu3 %v2921_v2  ;;  %v12736_v53 = vpop.f32.mrf.mxu1  ;;  %v9865_v2 = vld [vmem:[%s11565_s14 + $0x7c] sm:$0xf]  ;;  %v1889_v14 = vrot.slane %v1887_v39, 5  ;;  %v3893_v5 = vadd.f32 %v12364_v47, %v3794_v16  ;;  %v9776_v47 = vld [vmem:[%s11565_s14 + $0x78] sm:$0xf] }
 0x21e   : > { %v1893_v28 = vshll.u32 %v9865_v2, 16  ;;  %v1897_v55 = vshrl.u32 %v9865_v2, 16  ;;  %v1201_v4 = vrot.slane %v1199_v20, 5 }
 0x220   : > { %v3989_v54 = vpop.f32.mrf.mxu3  ;;  %4146 = vmatmul.bf16.gmra.mxu1 %v2761_v23  ;;  %v12756_v60 = vrot.slane %v1893_v28, 5  ;;  %v1899_v2 = vrot.slane %v1897_v55, 4  ;;  %v1202_v20 = vor.u32 %v1201_v4, %v1198_v9  ;;  %v9892_v23 = vld [vmem:[%s11565_s14 + $0x80] sm:$0x1]  ;;  %v1215_v28 = vshll.u32 %v12712_v31, 16 }
 0x221   : > { %v12748_v40 = vadd.f32 %v3989_v54, %v12347_v63  ;;  %v3837_v29 = vpop.f32.mrf.mxu0  ;;  %v2893_v63 = vunpack.c.l.b16 %v1872_v36  ;;  %v2894_v54 = vunpack.c.l.b16 %v1882_v1  ;;  %v9777_v36 = vld [vmem:[%s11565_s14 + $0x7c] sm:$0xf]  ;;  %v1890_v55 = vor.u32 %v1889_v14, %v1886_v58  ;;  %v12780_v31 = vld [vmem:[%s11565_s14 + $0x80] sm:$0x1] }
 0x222   : > { %v12752_v41 = vadd.f32 %v3837_v29, %v3739_v15  ;;  %v15629_v15 = vld [vmem:[#allocation17_spill] sm:$0xff]  ;;  %v1572_v32 = vrot.slane %v9777_v36, 5  ;;  %v1900_v9 = vor.u32 %v1899_v2, %v12756_v60  ;;  %v1903_v4 = vshll.u32 %v9892_v23, 16 }
 0x223   : > { %15627 = vst [vmem:[#allocation39_spill] sm:$0xff] %v12748_v40  ;;  %v12754_v40 = vrot.slane %v1205_v24, 5  ;;  %v3645_v27 = vadd.f32 %v11424_v61, %v15629_v15  ;;  %v2688_v24 = vpack.c.b16 %v2660_v50, %v2659_v38  ;;  %v2922_v6 = vpack.c.b16 %v2894_v54, %v2893_v63  ;;  %v15631_v50 = vld [vmem:[#allocation18_spill] sm:$0xff] }
 0x224   : > { %v12758_v56 = vpop.f32.mrf.mxu2  ;;  %v9839_v15 = vrot.slane %v9821_v11, 9  ;;  %v1574_v38 = vrot.slane %v1572_v32, 4  ;;  %v3700_v54 = vadd.f32 %v11424_v61, %v12419_v48  ;;  %v1220_v14 = vshrl.u32 %v9776_v47, 16 }
 0x225   : > { %v12763_v42 = vpop.f32.mrf.mxu1  ;;  %v1212_v29 = vor.u32 %v1211_v13, %v12754_v40  ;;  %v3744_v63 = vadd.f32 %v15631_v50, %v3645_v27  ;;  %v1203_v13 = vrot.slane %v1202_v20, 4  ;;  %v1223_v58 = vshll.u32 %v9776_v47, 16  ;;  %v11142_v20 = vld [vmem:[%s15548_s1 + $0x218] sm:$0xff] }
 0x226   : > { %v1573_v2 = vsel %vm11777_vm5, %v9839_v15, %v1572_v32  ;;  %v1575_v23 = vrot.slane %v12780_v31, 5  ;;  %v1217_v48 = vrot.slane %v1215_v28, 5  ;;  %v1891_v61 = vrot.slane %v1890_v55, 4  ;;  %4399 = vmatpush.bf16.msrb.mxu0 %v11142_v20 }
 0x227   : > { %v1213_v27 = vrot.slane %v1212_v29, 4  ;;  %v2735_v11 = vunpack.c.l.b16 %v1573_v2  ;;  %v1905_v50 = vrot.slane %v1903_v4, 5  ;;  %v1229_v47 = vshll.u32 %v9777_v36, 16 }
 0x228   : > { %v3991_v1 = vpop.f32.mrf.mxu3  ;;  %v1576_v32 = vsel %vm11777_vm5, %v1574_v38, %v1575_v23  ;;  %v1908_v29 = vshrl.u32 %v9866_v57, 16  ;;  %v1911_v28 = vshll.u32 %v9866_v57, 16  ;;  %v3799_v21 = vadd.f32 %v15633_v19, %v3700_v54 }
 0x229   : > { %v12766_v39 = vadd.f32 %v3991_v1, %v3893_v5  ;;  %v3840_v16 = vpop.f32.mrf.mxu0  ;;  %v15632_v5 = vld [vmem:[#allocation16_spill] sm:$0xff]  ;;  %v2736_v55 = vunpack.c.l.b16 %v1576_v32  ;;  %v1225_v4 = vrot.slane %v1223_v58, 5  ;;  %v1896_v57 = vsel %vm11592_vm2, %v1891_v61, %v12756_v60 }
 0x22a   : > { %v12776_v1 = vadd.f32 %v3840_v16, %v15632_v5  ;;  %v1901_v16 = vrot.slane %v1900_v9, 4  ;;  %v1222_v9 = vrot.slane %v1220_v14, 4  ;;  %v12810_v23 = vrot.slane %v1229_v47, 5 }
 0x22b   : > { %15630 = vst [vmem:[#allocation37_spill] sm:$0xff] %v12766_v39  ;;  %v11066_v39 = vld [vmem:[%s11565_s14 + $0x84] sm:$0xff]  ;;  %v2762_v38 = vpack.c.b16 %v2736_v55, %v2735_v11  ;;  %v1910_v58 = vrot.slane %v1908_v29, 4  ;;  %v1913_v20 = vrot.slane %v1911_v28, 5  ;;  %v2895_v60 = vunpack.c.l.b16 %v1896_v57  ;;  %v9893_v11 = vld [vmem:[%s11565_s14 + $0x8c] sm:$0x1] }
 0x22c   : > { %4042 = vmatmul.bf16.gmra.mxu0 %v2688_v24  ;;  %4250 = vmatmul.bf16.gmra.mxu2 %v11066_v39  ;;  %v12789_v5 = vpop.f32.mrf.mxu2  ;;  %v1233_v24 = vshrl.u32 %v9777_v36, 16  ;;  %v1208_v39 = vsel %vm11592_vm2, %v1203_v13, %v12754_v40  ;;  %v1218_v36 = vsel %vm11592_vm2, %v1213_v27, %v1217_v48  ;;  %v1906_v54 = vsel %vm11592_vm2, %v1901_v16, %v1905_v50 }
 0x22d   : > { %4339 = vmatmul.bf16.gmra.mxu3 %v2922_v6  ;;  %v12793_v15 = vpop.f32.mrf.mxu1  ;;  %v9867_v6 = vld [vmem:[%s11565_s14 + $0x88] sm:$0xf]  ;;  %v1226_v27 = vor.u32 %v1225_v4, %v1222_v9  ;;  %v2661_v48 = vunpack.c.l.b16 %v1208_v39  ;;  %v2662_v32 = vunpack.c.l.b16 %v1218_v36  ;;  %v2896_v61 = vunpack.c.l.b16 %v1906_v54  ;;  %v15636_v4 = vld [vmem:[#allocation20_spill] sm:$0xff] }
 0x22e   : > { %v1917_v40 = vshll.u32 %v9867_v6, 16  ;;  %v1921_v13 = vshrl.u32 %v9867_v6, 16  ;;  %v1914_v6 = vor.u32 %v1913_v20, %v1910_v58  ;;  %v1927_v39 = vshll.u32 %v9893_v11, 16 }
 0x22f   : > { %v3910_v36 = vadd.f32 %v15636_v4, %v12445_v12  ;;  %v2689_v57 = vpack.c.b16 %v2662_v32, %v2661_v48  ;;  %v11067_v48 = vld [vmem:[%s11565_s14 + $0x90] sm:$0xff] }
 0x230   : > { %v3994_v2 = vpop.f32.mrf.mxu3  ;;  %4151 = vmatmul.bf16.gmra.mxu1 %v2762_v38  ;;  %v12815_v55 = vrot.slane %v1917_v40, 5  ;;  %v1923_v16 = vrot.slane %v1921_v13, 4  ;;  %v2923_v38 = vpack.c.b16 %v2896_v61, %v2895_v60  ;;  %v9778_v13 = vld [vmem:[%s11565_s14 + $0x84] sm:$0xf]  ;;  %v1915_v12 = vrot.slane %v1914_v6, 4 }
 0x231   : > { %v12801_v0 = vadd.f32 %v3994_v2, %v12407_v51  ;;  %v3842_v19 = vpop.f32.mrf.mxu0  ;;  %v1235_v51 = vrot.slane %v1233_v24, 4  ;;  %v1239_v24 = vshll.u32 %v12780_v31, 16  ;;  %v1227_v2 = vrot.slane %v1226_v27, 4  ;;  %v15637_v31 = vld [vmem:[#allocation21_spill] sm:$0xff]  ;;  %v9869_v6 = vld [vmem:[%s11565_s14 + $0x94] sm:$0xf] }
 0x232   : > { %v12812_v14 = vadd.f32 %v3842_v19, %v3744_v63  ;;  %v3898_v63 = vadd.f32 %v12700_v49, %v3799_v21  ;;  %v9779_v21 = vld [vmem:[%s11565_s14 + $0x88] sm:$0xf]  ;;  %v9822_v49 = vld [vmem:[%s11565_s14 + $0x84] sm:$0xe]  ;;  %v3912_v54 = vadd.f32 %v15637_v31, %v12470_v18  ;;  %v1924_v40 = vor.u32 %v1923_v16, %v12815_v55  ;;  %v12839_v61 = vld [vmem:[%s11565_s14 + $0x8c] sm:$0x1] }
 0x233   : > { %15634 = vst [vmem:[#allocation7_spill] sm:$0xff] %v12801_v0  ;;  %v1236_v47 = vor.u32 %v1235_v51, %v12810_v23  ;;  %v9840_v51 = vrot.slane %v9822_v49, 9  ;;  %v1579_v58 = vrot.slane %v9779_v21, 5  ;;  %v1241_v11 = vrot.slane %v1239_v24, 5 }
 0x234   : > { %v12817_v50 = vpop.f32.mrf.mxu2  ;;  %v1232_v32 = vsel %vm11592_vm2, %v1227_v2, %v12810_v23  ;;  %v1929_v60 = vrot.slane %v1927_v39, 5  ;;  %v1247_v24 = vshll.u32 %v9778_v13, 16  ;;  %v1582_v4 = vrot.slane %v12839_v61, 5 }
 0x235   : > { %v12822_v29 = vpop.f32.mrf.mxu1  ;;  %v1237_v27 = vrot.slane %v1236_v47, 4  ;;  %v1580_v18 = vsel %vm11777_vm5, %v9840_v51, %v1579_v58  ;;  %v1581_v16 = vrot.slane %v1579_v58, 4  ;;  %v1244_v47 = vshrl.u32 %v9778_v13, 16 }
 0x236   : > { %v1253_v23 = vshll.u32 %v9779_v21, 16  ;;  %v1257_v2 = vshrl.u32 %v9779_v21, 16  ;;  %v2737_v49 = vunpack.c.l.b16 %v1580_v18  ;;  %v1945_v58 = vshrl.u32 %v9869_v6, 16 }
 0x237   : > { %v1242_v13 = vsel %vm11592_vm2, %v1237_v27, %v1241_v11  ;;  %v1249_v18 = vrot.slane %v1247_v24, 5 }
 0x238   : > { %v3996_v28 = vpop.f32.mrf.mxu3  ;;  %v1947_v0 = vrot.slane %v1945_v58, 4 }
 0x239   : > { %v12824_v9 = vadd.f32 %v3996_v28, %v3898_v63  ;;  %v4008_v19 = vpop.f32.mrf.mxu0  ;;  %v9868_v63 = vld [vmem:[%s11565_s14 + $0x90] sm:$0xf] }
 0x23a   : > { %v4009_v20 = vadd.f32 %v4008_v19, %v3910_v36  ;;  %v1925_v36 = vrot.slane %v1924_v40, 4  ;;  %v1932_v51 = vshrl.u32 %v9868_v63, 16  ;;  %v1941_v40 = vshll.u32 %v9869_v6, 16 }
 0x23b   : > { %15635 = vst [vmem:[#allocation36_spill] sm:$0xff] %v12824_v9 }
 0x23c   : > { %v4108_v28 = vadd.f32 %v12736_v53, %v4009_v20  ;;  %4047 = vmatmul.bf16.gmra.mxu0 %v2689_v57  ;;  %4255 = vmatmul.bf16.gmra.mxu2 %v11067_v48  ;;  %v12847_v39 = vpop.f32.mrf.mxu2  ;;  %v1935_v53 = vshll.u32 %v9868_v63, 16  ;;  %v1583_v57 = vsel %vm11777_vm5, %v1581_v16, %v1582_v4  ;;  %v1246_v48 = vrot.slane %v1244_v47, 4 }
 0x23d   : > { %4344 = vmatmul.bf16.gmra.mxu3 %v2923_v38  ;;  %v12850_v31 = vpop.f32.mrf.mxu1  ;;  %v2738_v21 = vunpack.c.l.b16 %v1583_v57  ;;  %v1930_v16 = vsel %vm11592_vm2, %v1925_v36, %v1929_v60  ;;  %v1259_v4 = vrot.slane %v1257_v2, 4  ;;  %v1934_v6 = vrot.slane %v1932_v51, 4 }
 0x23e   : > { %v4207_v19 = vadd.f32 %v12731_v52, %v4108_v28  ;;  %v1920_v52 = vsel %vm11592_vm2, %v1915_v12, %v12815_v55  ;;  %v12863_v28 = vrot.slane %v1253_v23, 5  ;;  %v1937_v9 = vrot.slane %v1935_v53, 5 }
 0x23f   : > { %v2763_v27 = vpack.c.b16 %v2738_v21, %v2737_v49  ;;  %v2663_v57 = vunpack.c.l.b16 %v1232_v32  ;;  %v2897_v12 = vunpack.c.l.b16 %v1920_v52  ;;  %v2898_v47 = vunpack.c.l.b16 %v1930_v16 }
 0x240   : > { %v4305_v38 = vpop.f32.mrf.mxu3  ;;  %v1250_v60 = vor.u32 %v1249_v18, %v1246_v48  ;;  %v1260_v24 = vor.u32 %v1259_v4, %v12863_v28  ;;  %v1263_v32 = vshll.u32 %v12839_v61, 16  ;;  %v1938_v23 = vor.u32 %v1937_v9, %v1934_v6  ;;  %v9823_v61 = vld [vmem:[%s11565_s14 + $0x90] sm:$0xe]  ;;  %v11210_v6 = vld [vmem:[%s15550_s3 + $0x78] sm:$0xff] }
 0x241   : > { %v12856_v20 = vadd.f32 %v4305_v38, %v4207_v19  ;;  %v4010_v63 = vpop.f32.mrf.mxu0  ;;  %v2664_v19 = vunpack.c.l.b16 %v1242_v13  ;;  %v9894_v38 = vld [vmem:[%s11565_s14 + $0x98] sm:$0x1]  ;;  %4156 = vmatmul.bf16.gmra.mxu1 %v2763_v27  ;;  %v2924_v21 = vpack.c.b16 %v2898_v47, %v2897_v12  ;;  %v9780_v18 = vld [vmem:[%s11565_s14 + $0x90] sm:$0xf]  ;;  %v9870_v12 = vld [vmem:[%s11565_s14 + $0x9c] sm:$0xf]  ;;  %8299 = vmatpush.bf16.msra.mxu2 %v11210_v6 }
 0x242   : > { %v4011_v11 = vadd.f32 %v4010_v63, %v3912_v54  ;;  %v1951_v2 = vshll.u32 %v9894_v38, 16  ;;  %v1251_v52 = vrot.slane %v1250_v60, 4  ;;  %v1261_v48 = vrot.slane %v1260_v24, 4 }
 0x243   : > { %15638 = vst [vmem:[#allocation8_spill] sm:$0xff] %v12856_v20  ;;  %v12866_v20 = vrot.slane %v1941_v40, 5  ;;  %v2690_v58 = vpack.c.b16 %v2664_v19, %v2663_v57  ;;  %v9841_v63 = vrot.slane %v9823_v61, 9  ;;  %v1265_v27 = vrot.slane %v1263_v32, 5  ;;  %v15640_v57 = vld [vmem:[#allocation23_spill] sm:$0xff] }
 0x244   : > { %v4110_v55 = vadd.f32 %v12763_v42, %v4011_v11  ;;  %v12870_v36 = vpop.f32.mrf.mxu2  ;;  %v15639_v42 = vld [vmem:[#allocation22_spill] sm:$0xff]  ;;  %v1953_v11 = vrot.slane %v1951_v2, 5  ;;  %v3917_v19 = vadd.f32 %v15640_v57, %v12522_v62  ;;  %v1268_v32 = vshrl.u32 %v9780_v18, 16 }
 0x245   : > { %v12874_v49 = vpop.f32.mrf.mxu1  ;;  %v3915_v53 = vadd.f32 %v15639_v42, %v12496_v45  ;;  %v1948_v13 = vor.u32 %v1947_v0, %v12866_v20  ;;  %v1939_v45 = vrot.slane %v1938_v23, 4  ;;  %v11068_v0 = vld [vmem:[%s11565_s14 + $0x9c] sm:$0xff]  ;;  %v1271_v23 = vshll.u32 %v9780_v18, 16  ;;  %v11141_v57 = vld [vmem:[%s15548_s1 + $0x210] sm:$0xff] }
 0x246   : > { %v4209_v54 = vadd.f32 %v12758_v56, %v4110_v55  ;;  %v9781_v56 = vld [vmem:[%s11565_s14 + $0x94] sm:$0xf]  ;;  %v12891_v55 = vld [vmem:[%s11565_s14 + $0x98] sm:$0x1]  ;;  %v9871_v42 = vld [vmem:[%s11565_s14 + $0xa0] sm:$0xf]  ;;  %4400 = vmatpush.bf16.msrb.mxu0 %v11141_v57 }
 0x247   : > { %v1586_v16 = vrot.slane %v9781_v56, 5  ;;  %v1949_v38 = vrot.slane %v1948_v13, 4  ;;  %v1589_v62 = vrot.slane %v12891_v55, 5  ;;  %v1277_v2 = vshll.u32 %v9781_v56, 16 }
 0x248   : > { %v4307_v51 = vpop.f32.mrf.mxu3  ;;  %v1969_v6 = vshrl.u32 %v9871_v42, 16 }
 0x249   : > { %v12879_v40 = vadd.f32 %v4307_v51, %v4209_v54  ;;  %v4013_v9 = vpop.f32.mrf.mxu0  ;;  %v1587_v47 = vsel %vm11777_vm5, %v9841_v63, %v1586_v16  ;;  %v1588_v60 = vrot.slane %v1586_v16, 4  ;;  %v1256_v54 = vsel %vm11592_vm2, %v1251_v52, %v12863_v28  ;;  %v11202_v52 = vld [vmem:[%s15550_s3 + $0x38] sm:$0xff] }
 0x24a   : > { %v4014_v4 = vadd.f32 %v4013_v9, %v3915_v53  ;;  %v1281_v51 = vshrl.u32 %v9781_v56, 16  ;;  %v2739_v13 = vunpack.c.l.b16 %v1587_v47  ;;  %v1266_v56 = vsel %vm11592_vm2, %v1261_v48, %v1265_v27  ;;  %8210 = vmatpush.bf16.msra.mxu1 %v11202_v52 }
 0x24b   : > { %v1590_v28 = vsel %vm11777_vm5, %v1588_v60, %v1589_v62  ;;  %v1954_v18 = vsel %vm11592_vm2, %v1949_v38, %v1953_v11  ;;  %v1273_v48 = vrot.slane %v1271_v23, 5  ;;  %v12924_v27 = vrot.slane %v1277_v2, 5 }
 0x24c   : > { %v4113_v24 = vadd.f32 %v12793_v15, %v4014_v4  ;;  %4052 = vmatmul.bf16.gmra.mxu0 %v2690_v58  ;;  %4260 = vmatmul.bf16.gmra.mxu2 %v11068_v0  ;;  %v12902_v53 = vpop.f32.mrf.mxu2  ;;  %v1956_v58 = vshrl.u32 %v9870_v12, 16  ;;  %v2740_v63 = vunpack.c.l.b16 %v1590_v28  ;;  %v1270_v4 = vrot.slane %v1268_v32, 4 }
 0x24d   : > { %4349 = vmatmul.bf16.gmra.mxu3 %v2924_v21  ;;  %v12905_v15 = vpop.f32.mrf.mxu1  ;;  %v1959_v21 = vshll.u32 %v9870_v12, 16  ;;  %v1965_v0 = vshll.u32 %v9871_v42, 16  ;;  %v1283_v47 = vrot.slane %v1281_v51, 4  ;;  %v2665_v60 = vunpack.c.l.b16 %v1256_v54 }
 0x24e   : > { %v4212_v61 = vadd.f32 %v12789_v5, %v4113_v24  ;;  %v1944_v5 = vsel %vm11592_vm2, %v1939_v45, %v12866_v20  ;;  %v2764_v20 = vpack.c.b16 %v2740_v63, %v2739_v13  ;;  %v1958_v11 = vrot.slane %v1956_v58, 4  ;;  %v9895_v13 = vld [vmem:[%s11565_s14 + $0xa4] sm:$0x1] }
 0x24f   : > { %v1961_v38 = vrot.slane %v1959_v21, 5  ;;  %v2666_v24 = vunpack.c.l.b16 %v1266_v56  ;;  %v2899_v32 = vunpack.c.l.b16 %v1944_v5  ;;  %v2900_v62 = vunpack.c.l.b16 %v1954_v18  ;;  %v9783_v18 = vld [vmem:[%s11565_s14 + $0xa0] sm:$0xf] }
 0x250   : > { %v4310_v9 = vpop.f32.mrf.mxu3  ;;  %v1971_v23 = vrot.slane %v1969_v6, 4  ;;  %v1274_v2 = vor.u32 %v1273_v48, %v1270_v4  ;;  %v1284_v51 = vor.u32 %v1283_v47, %v12924_v27  ;;  %v1975_v4 = vshll.u32 %v9895_v13, 16  ;;  %v9824_v6 = vld [vmem:[%s11565_s14 + $0x9c] sm:$0xe] }
 0x251   : > { %v12919_v16 = vadd.f32 %v4310_v9, %v4212_v61  ;;  %v4015_v12 = vpop.f32.mrf.mxu0  ;;  %4161 = vmatmul.bf16.gmra.mxu1 %v2764_v20  ;;  %v12927_v61 = vrot.slane %v1965_v0, 5  ;;  %v1962_v21 = vor.u32 %v1961_v38, %v1958_v11  ;;  %v2691_v56 = vpack.c.b16 %v2666_v24, %v2665_v60  ;;  %v9782_v0 = vld [vmem:[%s11565_s14 + $0x9c] sm:$0xf]  ;;  %v11069_v11 = vld [vmem:[%s11565_s14 + $0xa8] sm:$0xff]  ;;  %v12947_v38 = vld [vmem:[%s11565_s14 + $0xa4] sm:$0x1] }
 0x252   : > { %v4016_v45 = vadd.f32 %v4015_v12, %v3917_v19  ;;  %v1287_v19 = vshll.u32 %v12891_v55, 16  ;;  %v2925_v5 = vpack.c.b16 %v2900_v62, %v2899_v32  ;;  %v1275_v12 = vrot.slane %v1274_v2, 4 }
 0x253   : > { %v1972_v55 = vor.u32 %v1971_v23, %v12927_v61  ;;  %v1285_v48 = vrot.slane %v1284_v51, 4  ;;  %v9842_v20 = vrot.slane %v9824_v6, 9  ;;  %v1292_v60 = vshrl.u32 %v9782_v0, 16 }
 0x254   : > { %v4115_v42 = vadd.f32 %v12822_v29, %v4016_v45  ;;  %v12932_v58 = vpop.f32.mrf.mxu2  ;;  %v15641_v29 = vld [vmem:[#allocation24_spill] sm:$0xff]  ;;  %v1289_v47 = vrot.slane %v1287_v19, 5  ;;  %v1295_v24 = vshll.u32 %v9782_v0, 16  ;;  %v1977_v2 = vrot.slane %v1975_v4, 5  ;;  %v15642_v19 = vld [vmem:[#allocation25_spill] sm:$0xff] }
 0x255   : > { %v12935_v28 = vpop.f32.mrf.mxu1  ;;  %v3920_v9 = vadd.f32 %v15641_v29, %v12551_v43  ;;  %v1963_v43 = vrot.slane %v1962_v21, 4  ;;  %v1973_v23 = vrot.slane %v1972_v55, 4  ;;  %v1596_v51 = vrot.slane %v12947_v38, 5  ;;  %v9873_v55 = vld [vmem:[%s11565_s14 + $0xac] sm:$0xf] }
 0x256   : > { %v4214_v54 = vadd.f32 %v12817_v50, %v4115_v42  ;;  %v1593_v50 = vrot.slane %v9783_v18, 5  ;;  %v3922_v13 = vadd.f32 %v15642_v19, %v12579_v17  ;;  %v1290_v21 = vsel %vm11592_vm2, %v1285_v48, %v1289_v47 }
 0x257   : > { %v1301_v17 = vshll.u32 %v9783_v18, 16  ;;  %v1294_v0 = vrot.slane %v1292_v60, 4  ;;  %v1297_v6 = vrot.slane %v1295_v24, 5 }
 0x258   : > { %v4312_v52 = vpop.f32.mrf.mxu3  ;;  %v1594_v32 = vsel %vm11777_vm5, %v9842_v20, %v1593_v50  ;;  %v1595_v62 = vrot.slane %v1593_v50, 4  ;;  %v1305_v50 = vshrl.u32 %v9783_v18, 16  ;;  %v1989_v20 = vshll.u32 %v9873_v55, 16 }
 0x259   : > { %v12940_v63 = vadd.f32 %v4312_v52, %v4214_v54  ;;  %v4018_v57 = vpop.f32.mrf.mxu0  ;;  %v1280_v54 = vsel %vm11592_vm2, %v1275_v12, %v12924_v27  ;;  %v9872_v52 = vld [vmem:[%s11565_s14 + $0xa8] sm:$0xf]  ;;  %v2741_v29 = vunpack.c.l.b16 %v1594_v32  ;;  %v1298_v24 = vor.u32 %v1297_v6, %v1294_v0 }
 0x25a   : > { %v4019_v45 = vadd.f32 %v4018_v57, %v3920_v9  ;;  %v1597_v27 = vsel %vm11777_vm5, %v1595_v62, %v1596_v51  ;;  %v1980_v48 = vshrl.u32 %v9872_v52, 16  ;;  %v1983_v47 = vshll.u32 %v9872_v52, 16  ;;  %v9896_v52 = vld [vmem:[%s11565_s14 + $0xb0] sm:$0x1] }
 0x25b   : > { %v2742_v57 = vunpack.c.l.b16 %v1597_v27  ;;  %v2667_v32 = vunpack.c.l.b16 %v1280_v54  ;;  %v2668_v62 = vunpack.c.l.b16 %v1290_v21  ;;  %v12976_v18 = vrot.slane %v1301_v17, 5  ;;  %v15643_v21 = vld [vmem:[#allocation26_spill] sm:$0xff] }
 0x25c   : > { %v4118_v42 = vadd.f32 %v12850_v31, %v4019_v45  ;;  %4057 = vmatmul.bf16.gmra.mxu0 %v2691_v56  ;;  %4265 = vmatmul.bf16.gmra.mxu2 %v11069_v11  ;;  %v12961_v31 = vpop.f32.mrf.mxu2  ;;  %v1968_v56 = vsel %vm11592_vm2, %v1963_v43, %v12927_v61  ;;  %v1993_v45 = vshrl.u32 %v9873_v55, 16  ;;  %v1307_v51 = vrot.slane %v1305_v50, 4  ;;  %v9785_v50 = vld [vmem:[%s11565_s14 + $0xac] sm:$0xf] }
 0x25d   : > { %4354 = vmatmul.bf16.gmra.mxu3 %v2925_v5  ;;  %v12967_v5 = vpop.f32.mrf.mxu1  ;;  %v2765_v43 = vpack.c.b16 %v2742_v57, %v2741_v29  ;;  %v1311_v17 = vshll.u32 %v12947_v38, 16  ;;  %v2692_v27 = vpack.c.b16 %v2668_v62, %v2667_v32  ;;  %v1299_v0 = vrot.slane %v1298_v24, 4  ;;  %v11070_v32 = vld [vmem:[%s11565_s14 + $0xb4] sm:$0xff]  ;;  %v9784_v62 = vld [vmem:[%s11565_s14 + $0xa8] sm:$0xf] }
 0x25e   : > { %v4217_v9 = vadd.f32 %v12847_v39, %v4118_v42  ;;  %v1978_v39 = vsel %vm11592_vm2, %v1973_v23, %v1977_v2  ;;  %v2901_v42 = vunpack.c.l.b16 %v1968_v56  ;;  %v1982_v23 = vrot.slane %v1980_v48, 4  ;;  %v9825_v48 = vld [vmem:[%s11565_s14 + $0xa8] sm:$0xe]  ;;  %v13004_v24 = vld [vmem:[%s11565_s14 + $0xb0] sm:$0x1] }
 0x25f   : > { %v2902_v60 = vunpack.c.l.b16 %v1978_v39  ;;  %v1985_v2 = vrot.slane %v1983_v47, 5  ;;  %v1995_v29 = vrot.slane %v1993_v45, 4  ;;  %v3925_v56 = vadd.f32 %v15643_v21, %v12607_v8  ;;  %v15644_v45 = vld [vmem:[#allocation27_spill] sm:$0xff] }
 0x260   : > { %v4315_v4 = vpop.f32.mrf.mxu3  ;;  %v1308_v6 = vor.u32 %v1307_v51, %v12976_v18  ;;  %v1999_v39 = vshll.u32 %v9896_v52, 16  ;;  %v1600_v8 = vrot.slane %v9785_v50, 5  ;;  %v9874_v52 = vld [vmem:[%s11565_s14 + $0xb4] sm:$0xf]  ;;  %v1319_v21 = vshll.u32 %v9784_v62, 16 }
 0x261   : > { %v12972_v12 = vadd.f32 %v4315_v4, %v4217_v9  ;;  %v4020_v61 = vpop.f32.mrf.mxu0  ;;  %4166 = vmatmul.bf16.gmra.mxu1 %v2765_v43  ;;  %v12980_v9 = vrot.slane %v1989_v20, 5  ;;  %v2926_v4 = vpack.c.b16 %v2902_v60, %v2901_v42  ;;  %v3927_v43 = vadd.f32 %v15644_v45, %v12633_v30 }
 0x262   : > { %v4021_v11 = vadd.f32 %v4020_v61, %v3922_v13  ;;  %v9843_v61 = vrot.slane %v9825_v48, 9  ;;  %v1304_v42 = vsel %vm11592_vm2, %v1299_v0, %v12976_v18  ;;  %v1309_v60 = vrot.slane %v1308_v6, 4 }
 0x263   : > { %v1996_v38 = vor.u32 %v1995_v29, %v12980_v9  ;;  %v1603_v29 = vrot.slane %v13004_v24, 5  ;;  %v1316_v18 = vshrl.u32 %v9784_v62, 16 }
 0x264   : > { %v4120_v19 = vadd.f32 %v12874_v49, %v4021_v11  ;;  %v12982_v13 = vpop.f32.mrf.mxu2  ;;  %v1313_v11 = vrot.slane %v1311_v17, 5  ;;  %v1601_v51 = vsel %vm11777_vm5, %v9843_v61, %v1600_v8 }
 0x265   : > { %v12988_v55 = vpop.f32.mrf.mxu1  ;;  %v1318_v62 = vrot.slane %v1316_v18, 4 }
 0x266   : > { %v4219_v54 = vadd.f32 %v12870_v36, %v4120_v19  ;;  %v1986_v36 = vor.u32 %v1985_v2, %v1982_v23  ;;  %v1602_v19 = vrot.slane %v1600_v8, 4  ;;  %v2001_v2 = vrot.slane %v1999_v39, 5 }
 0x267   : > { %v1314_v48 = vsel %vm11592_vm2, %v1309_v60, %v1313_v11  ;;  %v2004_v8 = vshrl.u32 %v9874_v52, 16  ;;  %v2669_v60 = vunpack.c.l.b16 %v1304_v42  ;;  %v11140_v42 = vld [vmem:[%s15548_s1 + $0x208] sm:$0xff] }
 0x268   : > { %v4317_v49 = vpop.f32.mrf.mxu3  ;;  %v1987_v30 = vrot.slane %v1986_v36, 4  ;;  %v11209_v36 = vld [vmem:[%s15550_s3 + $0x70] sm:$0xff]  ;;  %4401 = vmatpush.bf16.msrb.mxu0 %v11140_v42 }
 0x269   : > { %v12992_v57 = vadd.f32 %v4317_v49, %v4219_v54  ;;  %v4023_v47 = vpop.f32.mrf.mxu0  ;;  %v1997_v54 = vrot.slane %v1996_v38, 4  ;;  %v2743_v49 = vunpack.c.l.b16 %v1601_v51  ;;  %8300 = vmatpush.bf16.msra.mxu2 %v11209_v36  ;;  %v1321_v51 = vrot.slane %v1319_v21, 5 }
 0x26a   : > { %v4024_v20 = vadd.f32 %v4023_v47, %v3925_v56  ;;  %v9875_v56 = vld [vmem:[%s11565_s14 + $0xb8] sm:$0xf]  ;;  %v2007_v47 = vshll.u32 %v9874_v52, 16 }
 0x26b   : > { %v1322_v21 = vor.u32 %v1321_v51, %v1318_v62 }
 0x26c   : > { %v4123_v23 = vadd.f32 %v12905_v15, %v4024_v20  ;;  %4062 = vmatmul.bf16.gmra.mxu0 %v2692_v27  ;;  %4270 = vmatmul.bf16.gmra.mxu2 %v11070_v32  ;;  %v13012_v17 = vpop.f32.mrf.mxu2  ;;  %v1325_v15 = vshll.u32 %v9785_v50, 16  ;;  %v1329_v27 = vshrl.u32 %v9785_v50, 16  ;;  %v2013_v50 = vshll.u32 %v9875_v56, 16 }
 0x26d   : > { %4359 = vmatmul.bf16.gmra.mxu3 %v2926_v4  ;;  %v13015_v6 = vpop.f32.mrf.mxu1  ;;  %v1604_v4 = vsel %vm11777_vm5, %v1602_v19, %v1603_v29  ;;  %v2017_v20 = vshrl.u32 %v9875_v56, 16  ;;  %v2002_v32 = vsel %vm11592_vm2, %v1997_v54, %v2001_v2  ;;  %v2006_v56 = vrot.slane %v2004_v8, 4  ;;  %v15645_v8 = vld [vmem:[#allocation28_spill] sm:$0xff] }
 0x26e   : > { %v4222_v0 = vadd.f32 %v12902_v53, %v4123_v23  ;;  %v2744_v38 = vunpack.c.l.b16 %v1604_v4  ;;  %v1992_v53 = vsel %vm11592_vm2, %v1987_v30, %v12980_v9  ;;  %v13031_v23 = vrot.slane %v1325_v15, 5  ;;  %v11201_v9 = vld [vmem:[%s15550_s3 + $0x30] sm:$0xff]  ;;  %v9897_v15 = vld [vmem:[%s11565_s14 + $0xbc] sm:$0x1] }
 0x26f   : > { %v1331_v52 = vrot.slane %v1329_v27, 4  ;;  %v2670_v30 = vunpack.c.l.b16 %v1314_v48  ;;  %v2903_v29 = vunpack.c.l.b16 %v1992_v53  ;;  %v2904_v54 = vunpack.c.l.b16 %v2002_v32  ;;  %8211 = vmatpush.bf16.msra.mxu1 %v11201_v9  ;;  %v9826_v32 = vld [vmem:[%s11565_s14 + $0xb4] sm:$0xe] }
 0x270   : > { %v4320_v39 = vpop.f32.mrf.mxu3  ;;  %v2766_v19 = vpack.c.b16 %v2744_v38, %v2743_v49  ;;  %v13037_v18 = vrot.slane %v2013_v50, 5  ;;  %v1335_v49 = vshll.u32 %v13004_v24, 16  ;;  %v1323_v51 = vrot.slane %v1322_v21, 4  ;;  %v9876_v21 = vld [vmem:[%s11565_s14 + $0xc0] sm:$0xf] }
 0x271   : > { %v13024_v61 = vadd.f32 %v4320_v39, %v4222_v0  ;;  %v4025_v45 = vpop.f32.mrf.mxu0  ;;  %v2009_v0 = vrot.slane %v2007_v47, 5  ;;  %v9787_v39 = vld [vmem:[%s11565_s14 + $0xb8] sm:$0xf]  ;;  %v3930_v47 = vadd.f32 %v15645_v8, %v12662_v35  ;;  %v2693_v38 = vpack.c.b16 %v2670_v30, %v2669_v60  ;;  %v11071_v60 = vld [vmem:[%s11565_s14 + $0xc0] sm:$0xff]  ;;  %v9786_v30 = vld [vmem:[%s11565_s14 + $0xb4] sm:$0xf] }
 0x272   : > { %v4026_v11 = vadd.f32 %v4025_v45, %v3927_v43  ;;  %4171 = vmatmul.bf16.gmra.mxu1 %v2766_v19  ;;  %v2019_v43 = vrot.slane %v2017_v20, 4  ;;  %v1607_v53 = vrot.slane %v9787_v39, 5  ;;  %v2927_v20 = vpack.c.b16 %v2904_v54, %v2903_v29 }
 0x273   : > { %v2010_v24 = vor.u32 %v2009_v0, %v2006_v56  ;;  %v2023_v45 = vshll.u32 %v9897_v15, 16  ;;  %v1337_v19 = vrot.slane %v1335_v49, 5  ;;  %v13060_v56 = vld [vmem:[%s11565_s14 + $0xbc] sm:$0x1]  ;;  %v15646_v15 = vld [vmem:[#allocation29_spill] sm:$0xff] }
 0x274   : > { %v4125_v2 = vadd.f32 %v12935_v28, %v4026_v11  ;;  %v13044_v27 = vpop.f32.mrf.mxu2  ;;  %v1332_v28 = vor.u32 %v1331_v52, %v13031_v23  ;;  %v9844_v11 = vrot.slane %v9826_v32, 9  ;;  %v1609_v52 = vrot.slane %v1607_v53, 4 }
 0x275   : > { %v13048_v36 = vpop.f32.mrf.mxu1  ;;  %v2011_v0 = vrot.slane %v2010_v24, 4  ;;  %v2025_v42 = vrot.slane %v2023_v45, 5  ;;  %v1349_v45 = vshll.u32 %v9787_v39, 16  ;;  %v1353_v32 = vshrl.u32 %v9787_v39, 16 }
 0x276   : > { %v4224_v4 = vadd.f32 %v12932_v58, %v4125_v2  ;;  %v2020_v58 = vor.u32 %v2019_v43, %v13037_v18  ;;  %v1333_v9 = vrot.slane %v1332_v28, 4  ;;  %v1608_v29 = vsel %vm11777_vm5, %v9844_v11, %v1607_v53 }
 0x277   : > { %v1610_v2 = vrot.slane %v13060_v56, 5  ;;  %v2745_v49 = vunpack.c.l.b16 %v1608_v29  ;;  %v1340_v28 = vshrl.u32 %v9786_v30, 16  ;;  %v2031_v11 = vshll.u32 %v9876_v21, 16 }
 0x278   : > { %v4322_v48 = vpop.f32.mrf.mxu3  ;;  %v2021_v43 = vrot.slane %v2020_v58, 4  ;;  %v1338_v24 = vsel %vm11592_vm2, %v1333_v9, %v1337_v19 }
 0x279   : > { %v13053_v50 = vadd.f32 %v4322_v48, %v4224_v4  ;;  %v4028_v62 = vpop.f32.mrf.mxu0  ;;  %v3932_v4 = vadd.f32 %v15646_v15, %v12690_v37  ;;  %v1343_v48 = vshll.u32 %v9786_v30, 16  ;;  %v9877_v37 = vld [vmem:[%s11565_s14 + $0xc4] sm:$0xf]  ;;  %v2033_v15 = vrot.slane %v2031_v11, 5 }
 0x27a   : > { %v4029_v35 = vadd.f32 %v4028_v62, %v3930_v47  ;;  %v1611_v47 = vsel %vm11777_vm5, %v1609_v52, %v1610_v2  ;;  %v2028_v62 = vshrl.u32 %v9876_v21, 16  ;;  %v1342_v52 = vrot.slane %v1340_v28, 4  ;;  %v9898_v28 = vld [vmem:[%s11565_s14 + $0xc8] sm:$0x1] }
 0x27b   : > { %v1345_v9 = vrot.slane %v1343_v48, 5  ;;  %v2041_v30 = vshrl.u32 %v9877_v37, 16  ;;  %v13089_v2 = vrot.slane %v1349_v45, 5 }
 0x27c   : > { %v4128_v54 = vadd.f32 %v12967_v5, %v4029_v35  ;;  %4067 = vmatmul.bf16.gmra.mxu0 %v2693_v38  ;;  %4275 = vmatmul.bf16.gmra.mxu2 %v11071_v60  ;;  %v13069_v8 = vpop.f32.mrf.mxu2  ;;  %v1328_v38 = vsel %vm11592_vm2, %v1323_v51, %v13031_v23  ;;  %v2026_v23 = vsel %vm11592_vm2, %v2021_v43, %v2025_v42  ;;  %v2037_v60 = vshll.u32 %v9877_v37, 16 }
 0x27d   : > { %4364 = vmatmul.bf16.gmra.mxu3 %v2927_v20  ;;  %v13079_v53 = vpop.f32.mrf.mxu1  ;;  %v2746_v20 = vunpack.c.l.b16 %v1611_v47  ;;  %v2671_v39 = vunpack.c.l.b16 %v1328_v38  ;;  %v2030_v21 = vrot.slane %v2028_v62, 4  ;;  %v2906_v42 = vunpack.c.l.b16 %v2026_v23  ;;  %v9827_v23 = vld [vmem:[%s11565_s14 + $0xc0] sm:$0xe] }
 0x27e   : > { %v4227_v5 = vadd.f32 %v12961_v31, %v4128_v54  ;;  %v2016_v31 = vsel %vm11592_vm2, %v2011_v0, %v13037_v18  ;;  %v1355_v54 = vrot.slane %v1353_v32, 4  ;;  %v2672_v0 = vunpack.c.l.b16 %v1338_v24  ;;  %v15647_v24 = vld [vmem:[#allocation30_spill] sm:$0xff] }
 0x27f   : > { %v2767_v51 = vpack.c.b16 %v2746_v20, %v2745_v49  ;;  %v2905_v43 = vunpack.c.l.b16 %v2016_v31  ;;  %v1346_v49 = vor.u32 %v1345_v9, %v1342_v52  ;;  %v13093_v47 = vrot.slane %v2037_v60, 5  ;;  %v13102_v20 = vld [vmem:[%s11565_s14 + $0xc4] sm:$0xf] }
 0x280   : > { %v4325_v58 = vpop.f32.mrf.mxu3  ;;  %v2043_v48 = vrot.slane %v2041_v30, 4  ;;  %v1359_v38 = vshll.u32 %v13060_v56, 16  ;;  %v1356_v45 = vor.u32 %v1355_v54, %v13089_v2  ;;  %v2034_v32 = vor.u32 %v2033_v15, %v2030_v21  ;;  %v13114_v54 = vld [vmem:[%s11565_s14 + $0xc8] sm:$0x1] }
 0x281   : > { %v13082_v35 = vadd.f32 %v4325_v58, %v4227_v5  ;;  %v4030_v19 = vpop.f32.mrf.mxu0  ;;  %v3935_v58 = vadd.f32 %v15647_v24, %v12720_v3  ;;  %v1614_v62 = vrot.slane %v13102_v20, 5  ;;  %v2928_v56 = vpack.c.b16 %v2906_v42, %v2905_v43  ;;  %v15648_v42 = vld [vmem:[#allocation32_spill] sm:$0xff] }
 0x282   : > { %v4031_v29 = vadd.f32 %v4030_v19, %v3932_v4  ;;  %4176 = vmatmul.bf16.gmra.mxu1 %v2767_v51  ;;  %v2047_v31 = vshll.u32 %v9898_v28, 16  ;;  %v1347_v19 = vrot.slane %v1346_v49, 4  ;;  %v2044_v52 = vor.u32 %v2043_v48, %v13093_v47 }
 0x283   : > { %v9845_v9 = vrot.slane %v9827_v23, 9  ;;  %v1616_v3 = vrot.slane %v1614_v62, 4  ;;  %v1361_v30 = vrot.slane %v1359_v38, 5  ;;  %v1357_v21 = vrot.slane %v1356_v45, 4 }
 0x284   : > { %v4130_v18 = vadd.f32 %v12988_v55, %v4031_v29  ;;  %v13095_v4 = vpop.f32.mrf.mxu2  ;;  %v11072_v29 = vld [vmem:[%s11565_s14 + $0xcc] sm:$0xff]  ;;  %v2035_v15 = vrot.slane %v2034_v32, 4  ;;  %v3937_v49 = vadd.f32 %v15648_v42, %v12752_v41  ;;  %v1352_v48 = vsel %vm11592_vm2, %v1347_v19, %v13089_v2 }
 0x285   : > { %v13099_v37 = vpop.f32.mrf.mxu1  ;;  %v2049_v38 = vrot.slane %v2047_v31, 5  ;;  %v1362_v2 = vsel %vm11592_vm2, %v1357_v21, %v1361_v30  ;;  %v1373_v23 = vshll.u32 %v13102_v20, 16  ;;  %v2673_v21 = vunpack.c.l.b16 %v1352_v48 }
 0x286   : > { %v4229_v5 = vadd.f32 %v12982_v13, %v4130_v18  ;;  %v2694_v13 = vpack.c.b16 %v2672_v0, %v2671_v39  ;;  %v9788_v18 = vld [vmem:[%s11565_s14 + $0xc0] sm:$0xf]  ;;  %v1615_v39 = vsel %vm11777_vm5, %v9845_v9, %v1614_v62  ;;  %v1617_v0 = vrot.slane %v13114_v54, 5  ;;  %v9879_v62 = vld [vmem:[%s11565_s14 + $0xd0] sm:$0xf] }
 0x287   : > { %v2747_v28 = vunpack.c.l.b16 %v1615_v39  ;;  %v1364_v32 = vshrl.u32 %v9788_v18, 16  ;;  %v1367_v41 = vshll.u32 %v9788_v18, 16  ;;  %v2040_v31 = vsel %vm11592_vm2, %v2035_v15, %v13093_v47 }
 0x288   : > { %v4327_v55 = vpop.f32.mrf.mxu3  ;;  %v2065_v18 = vshrl.u32 %v9879_v62, 16  ;;  %v2674_v15 = vunpack.c.l.b16 %v1362_v2  ;;  %v9791_v2 = vld [vmem:[%s11565_s14 + $0xd0] sm:$0xf] }
 0x289   : > { %v13108_v11 = vadd.f32 %v4327_v55, %v4229_v5  ;;  %v4033_v51 = vpop.f32.mrf.mxu0  ;;  %v2045_v5 = vrot.slane %v2044_v52, 4  ;;  %v9878_v55 = vld [vmem:[%s11565_s14 + $0xcc] sm:$0xf]  ;;  %v1366_v39 = vrot.slane %v1364_v32, 4  ;;  %v1369_v47 = vrot.slane %v1367_v41, 5  ;;  %v15649_v41 = vld [vmem:[#allocation34_spill] sm:$0xff] }
 0x28a   : > { %v4034_v60 = vadd.f32 %v4033_v51, %v3935_v58  ;;  %v1377_v51 = vshrl.u32 %v13102_v20, 16  ;;  %v2055_v52 = vshll.u32 %v9878_v55, 16  ;;  %v11208_v20 = vld [vmem:[%s15550_s3 + $0x68] sm:$0xff] }
 0x28b   : > { %8301 = vmatpush.bf16.msra.mxu2 %v11208_v20  ;;  %v11073_v20 = vld [vmem:[%s11565_s14 + $0xd8] sm:$0xff] }
 0x28c   : > { %v4133_v43 = vadd.f32 %v13015_v6, %v4034_v60  ;;  %4072 = vmatmul.bf16.gmra.mxu0 %v2694_v13  ;;  %4280 = vmatmul.bf16.gmra.mxu2 %v11072_v29  ;;  %v13127_v24 = vpop.f32.mrf.mxu2  ;;  %v1618_v6 = vsel %vm11777_vm5, %v1616_v3, %v1617_v0  ;;  %v2050_v60 = vsel %vm11592_vm2, %v2045_v5, %v2049_v38  ;;  %v2061_v29 = vshll.u32 %v9879_v62, 16 }
 0x28d   : > { %4369 = vmatmul.bf16.gmra.mxu3 %v2928_v56  ;;  %v13132_v45 = vpop.f32.mrf.mxu1  ;;  %v2748_v13 = vunpack.c.l.b16 %v1618_v6  ;;  %v2907_v0 = vunpack.c.l.b16 %v2040_v31  ;;  %v1379_v42 = vrot.slane %v1377_v51, 4  ;;  %v2908_v5 = vunpack.c.l.b16 %v2050_v60  ;;  %v11139_v60 = vld [vmem:[%s15548_s1 + $0x200] sm:$0xff] }
 0x28e   : > { %v4232_v58 = vadd.f32 %v13012_v17, %v4133_v43  ;;  %v2052_v17 = vshrl.u32 %v9878_v55, 16  ;;  %v13149_v43 = vrot.slane %v1373_v23, 5  ;;  %v2057_v55 = vrot.slane %v2055_v52, 5  ;;  %4402 = vmatpush.bf16.msrb.mxu0 %v11139_v60 }
 0x28f   : > { %v2768_v9 = vpack.c.b16 %v2748_v13, %v2747_v28  ;;  %v13153_v48 = vrot.slane %v2061_v29, 5  ;;  %v2067_v6 = vrot.slane %v2065_v18, 4  ;;  %v3940_v62 = vadd.f32 %v15649_v41, %v12776_v1  ;;  %v9828_v29 = vld [vmem:[%s11565_s14 + $0xcc] sm:$0xe]  ;;  %v9881_v41 = vld [vmem:[%s11565_s14 + $0xdc] sm:$0xf] }
 0x290   : > { %v4330_v56 = vpop.f32.mrf.mxu3  ;;  %v2054_v38 = vrot.slane %v2052_v17, 4  ;;  %v1370_v13 = vor.u32 %v1369_v47, %v1366_v39  ;;  %v2695_v23 = vpack.c.b16 %v2674_v15, %v2673_v21  ;;  %v1380_v51 = vor.u32 %v1379_v42, %v13149_v43  ;;  %v9790_v15 = vld [vmem:[%s11565_s14 + $0xcc] sm:$0xf] }
 0x291   : > { %v13142_v19 = vadd.f32 %v4330_v56, %v4232_v58  ;;  %v4035_v3 = vpop.f32.mrf.mxu0  ;;  %v1383_v17 = vshll.u32 %v13114_v54, 16  ;;  %v2929_v1 = vpack.c.b16 %v2908_v5, %v2907_v0  ;;  %v9846_v21 = vrot.slane %v9828_v29, 9  ;;  %v13178_v0 = vld [vmem:[%s11565_s14 + $0xd4] sm:$0x1] }
 0x292   : > { %v4036_v30 = vadd.f32 %v4035_v3, %v3937_v49  ;;  %4181 = vmatmul.bf16.gmra.mxu1 %v2768_v9  ;;  %v9899_v49 = vld [vmem:[%s11565_s14 + $0xd4] sm:$0x1]  ;;  %v2058_v9 = vor.u32 %v2057_v55, %v2054_v38  ;;  %v1371_v47 = vrot.slane %v1370_v13, 4  ;;  %v1381_v42 = vrot.slane %v1380_v51, 4 }
 0x293   : > { %v2071_v3 = vshll.u32 %v9899_v49, 16  ;;  %v1624_v38 = vrot.slane %v13178_v0, 5  ;;  %v2085_v29 = vshll.u32 %v9881_v41, 16 }
 0x294   : > { %v4135_v28 = vadd.f32 %v13048_v36, %v4036_v30  ;;  %v13155_v58 = vpop.f32.mrf.mxu2  ;;  %v11200_v36 = vld [vmem:[%s15550_s3 + $0x28] sm:$0xff]  ;;  %v2068_v30 = vor.u32 %v2067_v6, %v13153_v48  ;;  %v2059_v49 = vrot.slane %v2058_v9, 4 }
 0x295   : > { %v13160_v56 = vpop.f32.mrf.mxu1  ;;  %8212 = vmatpush.bf16.msra.mxu1 %v11200_v36  ;;  %v2073_v6 = vrot.slane %v2071_v3, 5  ;;  %v1388_v36 = vshrl.u32 %v9790_v15, 16 }
 0x296   : > { %v4234_v32 = vadd.f32 %v13044_v27, %v4135_v28  ;;  %v1621_v27 = vrot.slane %v9791_v2, 5  ;;  %v1385_v28 = vrot.slane %v1383_v17, 5  ;;  %v2069_v13 = vrot.slane %v2068_v30, 4  ;;  %v15650_v30 = vld [vmem:[#allocation35_spill] sm:$0xff] }
 0x298   : > { %v4332_v31 = vpop.f32.mrf.mxu3  ;;  %v1623_v54 = vrot.slane %v1621_v27, 4  ;;  %v1622_v5 = vsel %vm11777_vm5, %v9846_v21, %v1621_v27  ;;  %v3942_v21 = vadd.f32 %v15650_v30, %v12812_v14 }
 0x299   : > { %v13168_v52 = vadd.f32 %v4332_v31, %v4234_v32  ;;  %v4038_v18 = vpop.f32.mrf.mxu0  ;;  %v9880_v32 = vld [vmem:[%s11565_s14 + $0xd8] sm:$0xf]  ;;  %v1391_v31 = vshll.u32 %v9790_v15, 16  ;;  %v2074_v15 = vsel %vm11592_vm2, %v2069_v13, %v2073_v6 }
 0x29a   : > { %v4039_v39 = vadd.f32 %v4038_v18, %v3940_v62  ;;  %v2749_v62 = vunpack.c.l.b16 %v1622_v5  ;;  %v1625_v17 = vsel %vm11777_vm5, %v1623_v54, %v1624_v38  ;;  %v2076_v3 = vshrl.u32 %v9880_v32, 16 }
 0x29b   : > { %v2750_v9 = vunpack.c.l.b16 %v1625_v17  ;;  %v2079_v60 = vshll.u32 %v9880_v32, 16  ;;  %v2089_v18 = vshrl.u32 %v9881_v41, 16  ;;  %v1376_v54 = vsel %vm11592_vm2, %v1371_v47, %v13149_v43  ;;  %v9900_v43 = vld [vmem:[%s11565_s14 + $0xe0] sm:$0x1] }
 0x29c   : > { %v4138_v55 = vadd.f32 %v13079_v53, %v4039_v39  ;;  %4077 = vmatmul.bf16.gmra.mxu0 %v2695_v23  ;;  %4285 = vmatmul.bf16.gmra.mxu2 %v11073_v20  ;;  %v13186_v51 = vpop.f32.mrf.mxu2  ;;  %v1397_v23 = vshll.u32 %v9791_v2, 16  ;;  %v1390_v5 = vrot.slane %v1388_v36, 4  ;;  %v1393_v38 = vrot.slane %v1391_v31, 5 }
 0x29d   : > { %4374 = vmatmul.bf16.gmra.mxu3 %v2929_v1  ;;  %v13193_v53 = vpop.f32.mrf.mxu1  ;;  %v1401_v1 = vshrl.u32 %v9791_v2, 16  ;;  %v2769_v39 = vpack.c.b16 %v2750_v9, %v2749_v62  ;;  %v2064_v2 = vsel %vm11592_vm2, %v2059_v49, %v13153_v48  ;;  %v2078_v47 = vrot.slane %v2076_v3, 4  ;;  %v9793_v9 = vld [vmem:[%s11565_s14 + $0xdc] sm:$0xf] }
 0x29e   : > { %v13191_v27 = vadd.f32 %v13069_v8, %v4138_v55  ;;  %v1386_v8 = vsel %vm11592_vm2, %v1381_v42, %v1385_v28  ;;  %v13209_v14 = vrot.slane %v1397_v23, 5  ;;  %v2081_v42 = vrot.slane %v2079_v60, 5 }
 0x29f   : > { %v1403_v32 = vrot.slane %v1401_v1, 4  ;;  %v13212_v28 = vrot.slane %v2085_v29, 5  ;;  %v2091_v41 = vrot.slane %v2089_v18, 4  ;;  %v2675_v62 = vunpack.c.l.b16 %v1376_v54 }
 0x2a0   : > { %v2676_v48 = vunpack.c.l.b16 %v1386_v8  ;;  %v2909_v49 = vunpack.c.l.b16 %v2064_v2  ;;  %v2910_v6 = vunpack.c.l.b16 %v2074_v15  ;;  %v1394_v13 = vor.u32 %v1393_v38, %v1390_v5 }
 0x2a1   : > { %v4040_v20 = vpop.f32.mrf.mxu0  ;;  %v1404_v36 = vor.u32 %v1403_v32, %v13209_v14  ;;  %v1407_v31 = vshll.u32 %v13178_v0, 16  ;;  %v2095_v17 = vshll.u32 %v9900_v43, 16  ;;  %v2082_v3 = vor.u32 %v2081_v42, %v2078_v47  ;;  %v11074_v32 = vld [vmem:[%s11565_s14 + $0xe4] sm:$0xff]  ;;  %v13226_v43 = vld [vmem:[%s11565_s14 + $0xe0] sm:$0x1] }
 0x2a2   : > { %v13207_v55 = vadd.f32 %v4040_v20, %v3942_v21  ;;  %4186 = vmatmul.bf16.gmra.mxu1 %v2769_v39  ;;  %v2092_v60 = vor.u32 %v2091_v41, %v13212_v28  ;;  %v1628_v29 = vrot.slane %v9793_v9, 5  ;;  %v2696_v18 = vpack.c.b16 %v2676_v48, %v2675_v62  ;;  %v9829_v21 = vld [vmem:[%s11565_s14 + $0xd8] sm:$0xe]  ;;  %v15652_v20 = vld [vmem:[#allocation38_spill] sm:$0xff] }
 0x2a3   : > { %v2930_v30 = vpack.c.b16 %v2910_v6, %v2909_v49  ;;  %v1395_v8 = vrot.slane %v1394_v13, 4  ;;  %v9847_v39 = vrot.slane %v9829_v21, 9  ;;  %v1405_v15 = vrot.slane %v1404_v36, 4  ;;  %v9792_v49 = vld [vmem:[%s11565_s14 + $0xd8] sm:$0xf] }
 0x2a4   : > { %v13218_v1 = vpop.f32.mrf.mxu2  ;;  %v1630_v0 = vrot.slane %v1628_v29, 4  ;;  %v1409_v5 = vrot.slane %v1407_v31, 5  ;;  %v2097_v38 = vrot.slane %v2095_v17, 5  ;;  %v2083_v47 = vrot.slane %v2082_v3, 4  ;;  %v9882_v17 = vld [vmem:[%s11565_s14 + $0xe4] sm:$0xf] }
 0x2a5   : > { %v13216_v23 = vpop.f32.mrf.mxu1  ;;  %15651 = vst [vmem:[#allocation9_spill] sm:$0xff] %v13218_v1  ;;  %v2093_v42 = vrot.slane %v2092_v60, 4  ;;  %v1629_v41 = vsel %vm11777_vm5, %v9847_v39, %v1628_v29  ;;  %v1631_v62 = vrot.slane %v13226_v43, 5  ;;  %v1400_v31 = vsel %vm11592_vm2, %v1395_v8, %v13209_v14  ;;  %v9883_v3 = vld [vmem:[%s11565_s14 + $0xe8] sm:$0xf] }
 0x2a6   : > { %v2751_v6 = vunpack.c.l.b16 %v1629_v41  ;;  %v2088_v29 = vsel %vm11592_vm2, %v2083_v47, %v13212_v28  ;;  %v1415_v21 = vshll.u32 %v9792_v49, 16  ;;  %v1425_v39 = vshrl.u32 %v9793_v9, 16 }
 0x2a7   : > { %v1632_v13 = vsel %vm11777_vm5, %v1630_v0, %v1631_v62  ;;  %v2677_v47 = vunpack.c.l.b16 %v1400_v31 }
 0x2a8   : > { %v2752_v60 = vunpack.c.l.b16 %v1632_v13 }
 0x2a9   : > { %v4043_v54 = vpop.f32.mrf.mxu0 }
 0x2aa   : > { %v4044_v2 = vadd.f32 %v4043_v54, %v15652_v20  ;;  %v1421_v54 = vshll.u32 %v9793_v9, 16  ;;  %v2770_v8 = vpack.c.b16 %v2752_v60, %v2751_v6  ;;  %v2100_v20 = vshrl.u32 %v9882_v17, 16 }
 0x2ac   : > { %v4143_v48 = vadd.f32 %v13132_v45, %v4044_v2  ;;  %4082 = vmatmul.bf16.gmra.mxu0 %v2696_v18  ;;  %4290 = vmatmul.bf16.gmra.mxu2 %v11074_v32  ;;  %v1410_v45 = vsel %vm11592_vm2, %v1405_v15, %v1409_v5  ;;  %v2098_v18 = vsel %vm11592_vm2, %v2093_v42, %v2097_v38  ;;  %v2103_v2 = vshll.u32 %v9882_v17, 16  ;;  %v15653_v32 = vld [vmem:[#allocation40_spill] sm:$0xff]  ;;  %v9901_v17 = vld [vmem:[%s11565_s14 + $0xec] sm:$0x1] }
 0x2ad   : > { %4379 = vmatmul.bf16.gmra.mxu3 %v2930_v30  ;;  %v13250_v30 = vpop.f32.mrf.mxu1  ;;  %v2109_v15 = vshll.u32 %v9883_v3, 16  ;;  %v2113_v5 = vshrl.u32 %v9883_v3, 16  ;;  %v2678_v38 = vunpack.c.l.b16 %v1410_v45  ;;  %v2911_v42 = vunpack.c.l.b16 %v2088_v29  ;;  %v11207_v3 = vld [vmem:[%s15550_s3 + $0x60] sm:$0xff] }
 0x2ae   : > { %v13236_v36 = vadd.f32 %v13127_v24, %v4143_v48  ;;  %v1412_v24 = vshrl.u32 %v9792_v49, 16  ;;  %v2912_v41 = vunpack.c.l.b16 %v2098_v18  ;;  %v1417_v48 = vrot.slane %v1415_v21, 5  ;;  %8302 = vmatpush.bf16.msra.mxu2 %v11207_v3 }
 0x2af   : > { %v13252_v14 = vpop.f32.mrf.mxu2  ;;  %v1423_v9 = vrot.slane %v1421_v54, 5  ;;  %v1427_v49 = vrot.slane %v1425_v39, 4  ;;  %v2102_v13 = vrot.slane %v2100_v20, 4  ;;  %v2105_v6 = vrot.slane %v2103_v2, 5  ;;  %v15655_v2 = vld [vmem:[#allocation43_spill] sm:$0xff] }
 0x2b0   : > { %v1414_v62 = vrot.slane %v1412_v24, 4  ;;  %v2111_v60 = vrot.slane %v2109_v15, 5  ;;  %v2115_v1 = vrot.slane %v2113_v5, 4  ;;  %v2697_v31 = vpack.c.b16 %v2678_v38, %v2677_v47  ;;  %v11199_v5 = vld [vmem:[%s15550_s3 + $0x20] sm:$0xff] }
 0x2b1   : > { %v4045_v0 = vpop.f32.mrf.mxu0  ;;  %v2931_v45 = vpack.c.b16 %v2912_v41, %v2911_v42  ;;  %v1431_v18 = vshll.u32 %v13226_v43, 16  ;;  %v1428_v54 = vor.u32 %v1427_v49, %v1423_v9  ;;  %v2106_v39 = vor.u32 %v2105_v6, %v2102_v13  ;;  %8213 = vmatpush.bf16.msra.mxu1 %v11199_v5  ;;  %v9902_v5 = vld [vmem:[%s11565_s14 + $0x18] sm:$0xe] }
 0x2b2   : > { %v13255_v28 = vadd.f32 %v4045_v0, %v15653_v32  ;;  %4191 = vmatmul.bf16.gmra.mxu1 %v2770_v8  ;;  %v1418_v29 = vor.u32 %v1417_v48, %v1414_v62  ;;  %v2116_v8 = vor.u32 %v2115_v1, %v2111_v60  ;;  %v2119_v20 = vshll.u32 %v9901_v17, 16 }
 0x2b3   : > { %v1433_v43 = vrot.slane %v1431_v18, 5  ;;  %v1429_v38 = vrot.slane %v1428_v54, 4  ;;  %v2107_v42 = vrot.slane %v2106_v39, 4 }
 0x2b4   : > { %v1419_v47 = vrot.slane %v1418_v29, 4  ;;  %v2117_v41 = vrot.slane %v2116_v8, 4  ;;  %v2121_v62 = vrot.slane %v2119_v20, 5  ;;  %v11425_v20 = vld [vmem:[%s11565_s14 + $0x1c] sm:$0xf] }
 0x2b5   : > { %v13261_v0 = vpop.f32.mrf.mxu1  ;;  %v2112_v17 = vsel %vm11592_vm2, %v2107_v42, %v2111_v60 }
 0x2b6   : > { %v1424_v6 = vsel %vm11592_vm2, %v1419_v47, %v1423_v9  ;;  %v2122_v3 = vsel %vm11592_vm2, %v2117_v41, %v2121_v62  ;;  %v2913_v18 = vunpack.c.l.b16 %v2112_v17  ;;  %v9920_v47 = vrot.slane %v9902_v5, 9 }
 0x2b7   : > { %v13264_v24 = vpop.f32.mrf.mxu2 }
 0x2b8   : > { %15654 = vst [vmem:[#allocation10_spill] sm:$0xff] %v13264_v24 }
 0x2b9   : > { %v4048_v21 = vpop.f32.mrf.mxu0 }
 0x2ba   : > { %v4049_v15 = vadd.f32 %v4048_v21, %v15655_v2  ;;  %v2914_v21 = vunpack.c.l.b16 %v2122_v3  ;;  %v2197_v2 = vrot.slane %v11425_v20, 5 }
 0x2bc   : > { %v4148_v32 = vadd.f32 %v13193_v53, %v4049_v15  ;;  %4087 = vmatmul.bf16.gmra.mxu0 %v2697_v31  ;;  %v1434_v53 = vsel %vm11592_vm2, %v1429_v38, %v1433_v43  ;;  %v15656_v31 = vld [vmem:[#allocation44_spill] sm:$0xff]  ;;  %v2932_v9 = vpack.c.b16 %v2914_v21, %v2913_v18  ;;  %v2199_v43 = vrot.slane %v2197_v2, 4 }
 0x2bd   : > { %4384 = vmatmul.bf16.gmra.mxu3 %v2931_v45  ;;  %v2679_v45 = vunpack.c.l.b16 %v1424_v6  ;;  %v2680_v29 = vunpack.c.l.b16 %v1434_v53  ;;  %v11426_v38 = vld [vmem:[%s11565_s14 + $0x20] sm:$0x1]  ;;  %v9903_v21 = vld [vmem:[%s11565_s14 + $0x24] sm:$0xe] }
 0x2be   : > { %v13272_v1 = vadd.f32 %v13186_v51, %v4148_v32  ;;  %v4157_v48 = vpop.f32.mrf.mxu1  ;;  %v2200_v42 = vrot.slane %v11426_v38, 5 }
 0x2bf   : > { %v4256_v49 = vpop.f32.mrf.mxu2  ;;  %v2698_v54 = vpack.c.b16 %v2680_v29, %v2679_v45  ;;  %v11427_v29 = vld [vmem:[%s11565_s14 + $0x28] sm:$0xf] }
 0x2c1   : > { %v4050_v13 = vpop.f32.mrf.mxu0 }
 0x2c2   : > { %v13283_v51 = vadd.f32 %v4050_v13, %v15656_v31  ;;  %v2198_v13 = vsel %vm11777_vm5, %v9920_v47, %v2197_v2  ;;  %v11428_v2 = vld [vmem:[%s11565_s14 + $0x2c] sm:$0x1] }
 0x2c3   : > { %v2951_v17 = vunpack.c.l.b16 %v2198_v13 }
 0x2c6   : > { %v13285_v39 = vpop.f32.mrf.mxu1 }
 0x2c7   : > { %15657 = vst [vmem:[#allocation42_spill] sm:$0xff] %v13285_v39  ;;  %v13288_v15 = vpop.f32.mrf.mxu2 }
 0x2c8   : > { %15658 = vst [vmem:[#allocation11_spill] sm:$0xff] %v13288_v15 }
 0x2c9   : > { %v4053_v8 = vpop.f32.mrf.mxu0 }
 0x2ca   : > { %v4054_v60 = vadd.f32 %v4053_v8, %v12358_v25  ;;  %v2201_v25 = vsel %vm11777_vm5, %v2199_v43, %v2200_v42 }
 0x2cb   : > { %v2952_v3 = vunpack.c.l.b16 %v2201_v25 }
 0x2cc   : > { %v4153_v32 = vadd.f32 %v13250_v30, %v4054_v60  ;;  %4092 = vmatmul.bf16.gmra.mxu0 %v2698_v54  ;;  %v11206_v54 = vld [vmem:[%s15550_s3 + $0x58] sm:$0xff]  ;;  %v2207_v60 = vrot.slane %v11428_v2, 5 }
 0x2cd   : > { %4389 = vmatmul.bf16.gmra.mxu3 %v2932_v9  ;;  %v2987_v31 = vpack.c.b16 %v2952_v3, %v2951_v17  ;;  %8303 = vmatpush.bf16.msra.mxu2 %v11206_v54  ;;  %v11429_v3 = vld [vmem:[%s11565_s14 + $0x34] sm:$0xf]  ;;  %v11430_v54 = vld [vmem:[%s11565_s14 + $0x38] sm:$0x1] }
 0x2ce   : > { %v13295_v41 = vadd.f32 %v13252_v14, %v4153_v32  ;;  %v4162_v6 = vpop.f32.mrf.mxu1  ;;  %v2204_v14 = vrot.slane %v11427_v29, 5  ;;  %v9904_v29 = vld [vmem:[%s11565_s14 + $0x30] sm:$0xe] }
 0x2cf   : > { %v4261_v53 = vpop.f32.mrf.mxu2 }
 0x2d0   : > { %v2206_v20 = vrot.slane %v2204_v14, 4 }
 0x2d1   : > { %v4055_v62 = vpop.f32.mrf.mxu0 }
 0x2d2   : > { %v13302_v30 = vadd.f32 %v4055_v62, %v12381_v10  ;;  %v9921_v10 = vrot.slane %v9903_v21, 9  ;;  %v2208_v43 = vsel %vm11777_vm5, %v2206_v20, %v2207_v60 }
 0x2d6   : > { %v13310_v9 = vpop.f32.mrf.mxu1 }
 0x2d7   : > { %15659 = vst [vmem:[#allocation41_spill] sm:$0xff] %v13310_v9  ;;  %v13313_v5 = vpop.f32.mrf.mxu2 }
 0x2d8   : > { %15660 = vst [vmem:[#allocation13_spill] sm:$0xff] %v13313_v5  ;;  %v11447_v5 = vld [vmem:[%s11565_s14 + $0xa0] sm:$0xf] }
 0x2d9   : > { %v4058_v45 = vpop.f32.mrf.mxu0 }
 0x2da   : > { %v4059_v18 = vadd.f32 %v4058_v45, %v12414_v59  ;;  %v11198_v59 = vld [vmem:[%s15550_s3 + $0x18] sm:$0xff] }
 0x2db   : > { %8214 = vmatpush.bf16.msra.mxu1 %v11198_v59 }
 0x2dc   : > { %v4158_v8 = vadd.f32 %v4157_v48, %v4059_v18  ;;  %4403 = vmatmul.bf16.vlgmr.msrb.gmra.mxu0 %v2987_v31  ;;  %v2205_v48 = vsel %vm11777_vm5, %v9921_v10, %v2204_v14  ;;  %v2211_v31 = vrot.slane %v11429_v3, 5  ;;  %v9922_v14 = vrot.slane %v9904_v29, 9 }
 0x2dd   : > { %v2953_v42 = vunpack.c.l.b16 %v2205_v48 }
 0x2de   : > { %v13315_v32 = vadd.f32 %v4256_v49, %v4158_v8  ;;  %v2954_v49 = vunpack.c.l.b16 %v2208_v43  ;;  %v4167_v62 = vpop.f32.mrf.mxu1  ;;  %v2213_v21 = vrot.slane %v2211_v31, 4  ;;  %v2214_v8 = vrot.slane %v11430_v54, 5 }
 0x2df   : > { %v4266_v13 = vpop.f32.mrf.mxu2  ;;  %v2212_v2 = vsel %vm11777_vm5, %v9922_v14, %v2211_v31 }
 0x2e0   : > { %15661 = vst [vmem:[#allocation12_spill] sm:$0xff] %v13315_v32  ;;  %v2988_v25 = vpack.c.b16 %v2954_v49, %v2953_v42  ;;  %v2955_v59 = vunpack.c.l.b16 %v2212_v2  ;;  %v11431_v42 = vld [vmem:[%s11565_s14 + $0x40] sm:$0xf]  ;;  %v15709_v32 = vmov 0  }
 0x2e1   : > { %v4060_v47 = vpop.f32.mrf.mxu0  ;;  %v2218_v49 = vrot.slane %v11431_v42, 5 }
 0x2e2   : > { %v13325_v38 = vadd.f32 %v4060_v47, %v12431_v34 }
 0x2e3   : > { %v2220_v29 = vrot.slane %v2218_v49, 4 }
 0x2e4   : > { %15662 = vst [vmem:[#allocation14_spill] sm:$0xff] %v13325_v38 }
 0x2e6   : > { %v13333_v10 = vpop.f32.mrf.mxu1 }
 0x2e7   : > { %15664 = vst [vmem:[#allocation17_spill] sm:$0xff] %v13333_v10  ;;  %v13339_v60 = vpop.f32.mrf.mxu2 }
 0x2e8   : > { %15665 = vst [vmem:[#allocation18_spill] sm:$0xff] %v13339_v60 }
 0x2e9   : > { %v4063_v17 = vpop.f32.mrf.mxu0 }
 0x2ea   : > { %v4064_v45 = vadd.f32 %v4063_v17, %v12456_v22  ;;  %v2215_v22 = vsel %vm11777_vm5, %v2213_v21, %v2214_v8  ;;  %v9905_v17 = vld [vmem:[%s11565_s14 + $0x3c] sm:$0xe]  ;;  %v11205_v21 = vld [vmem:[%s15550_s3 + $0x50] sm:$0xff] }
 0x2eb   : > { %v2956_v47 = vunpack.c.l.b16 %v2215_v22  ;;  %8304 = vmatpush.bf16.msra.mxu2 %v11205_v21 }
 0x2ec   : > { %v4163_v18 = vadd.f32 %v4162_v6, %v4064_v45  ;;  %4408 = vmatmul.bf16.gmra.mxu0 %v2988_v25  ;;  %v9923_v45 = vrot.slane %v9905_v17, 9 }
 0x2ed   : > { %v2989_v48 = vpack.c.b16 %v2956_v47, %v2955_v59 }
 0x2ee   : > { %v13331_v34 = vadd.f32 %v4261_v53, %v4163_v18  ;;  %v11432_v18 = vld [vmem:[%s11565_s14 + $0x44] sm:$0x1] }
 0x2ef   : > { %v4172_v43 = vpop.f32.mrf.mxu1  ;;  %v4271_v3 = vpop.f32.mrf.mxu2  ;;  %v2221_v14 = vrot.slane %v11432_v18, 5  ;;  %v11434_v18 = vld [vmem:[%s11565_s14 + $0x50] sm:$0x1] }
 0x2f0   : > { %15663 = vst [vmem:[#allocation15_spill] sm:$0xff] %v13331_v34 }
 0x2f1   : > { %v4065_v20 = vpop.f32.mrf.mxu0 }
 0x2f2   : > { %v13342_v6 = vadd.f32 %v4065_v20, %v12484_v33 }
 0x2f4   : > { %15666 = vst [vmem:[#allocation16_spill] sm:$0xff] %v13342_v6 }
 0x2f7   : > { %v13363_v20 = vpop.f32.mrf.mxu1  ;;  %v13365_v59 = vpop.f32.mrf.mxu2 }
 0x2f8   : > { %15669 = vst [vmem:[#allocation21_spill] sm:$0xff] %v13363_v20 }
 0x2f9   : > { %v4068_v53 = vpop.f32.mrf.mxu0  ;;  %15670 = vst [vmem:[#allocation22_spill] sm:$0xff] %v13365_v59  ;;  %v11436_v59 = vld [vmem:[%s11565_s14 + $0x5c] sm:$0x1] }
 0x2fa   : > { %v4069_v25 = vadd.f32 %v4068_v53, %v12517_v46  ;;  %v2219_v46 = vsel %vm11777_vm5, %v9923_v45, %v2218_v49  ;;  %v11433_v53 = vld [vmem:[%s11565_s14 + $0x4c] sm:$0xf] }
 0x2fb   : > { %v2957_v2 = vunpack.c.l.b16 %v2219_v46  ;;  %v2225_v42 = vrot.slane %v11433_v53, 5  ;;  %v15671_v49 = vld [vmem:[#allocation33_spill] sm:$0xff] }
 0x2fc   : > { %v4168_v31 = vadd.f32 %v4167_v62, %v4069_v25  ;;  %4413 = vmatmul.bf16.gmra.mxu0 %v2989_v48  ;;  %v2222_v62 = vsel %vm11777_vm5, %v2220_v29, %v2221_v14  ;;  %v2228_v14 = vrot.slane %v11434_v18, 5 }
 0x2fd   : > { %v2958_v22 = vunpack.c.l.b16 %v2222_v62  ;;  %v2227_v29 = vrot.slane %v2225_v42, 4 }
 0x2fe   : > { %v13348_v33 = vadd.f32 %v4266_v13, %v4168_v31  ;;  %v11197_v13 = vld [vmem:[%s15550_s3 + $0x10] sm:$0xff] }
 0x2ff   : > { %8215 = vmatpush.bf16.msra.mxu1 %v11197_v13  ;;  %v2990_v47 = vpack.c.b16 %v2958_v22, %v2957_v2  ;;  %v4177_v31 = vpop.f32.mrf.mxu1  ;;  %v2229_v13 = vsel %vm11777_vm5, %v2227_v29, %v2228_v14  ;;  %v15673_v2 = vld [vmem:[#allocation3_spill] sm:$0xff] }
 0x300   : > { %15667 = vst [vmem:[#allocation19_spill] sm:$0xff] %v13348_v33  ;;  %v11446_v33 = vld [vmem:[%s11565_s14 + $0x98] sm:$0x1] }
 0x301   : > { %v4070_v54 = vpop.f32.mrf.mxu0 }
 0x302   : > { %v13358_v8 = vadd.f32 %v4070_v54, %v12538_v26  ;;  %v9906_v26 = vld [vmem:[%s11565_s14 + $0x48] sm:$0xe]  ;;  %v4276_v54 = vpop.f32.mrf.mxu2 }
 0x303   : > { %v9924_v45 = vrot.slane %v9906_v26, 9 }
 0x304   : > { %15668 = vst [vmem:[#allocation20_spill] sm:$0xff] %v13358_v8 }
 0x305   : > { %v2226_v62 = vsel %vm11777_vm5, %v9924_v45, %v2225_v42  ;;  %v9907_v42 = vld [vmem:[%s11565_s14 + $0x54] sm:$0xe] }
 0x306   : > { %v2959_v22 = vunpack.c.l.b16 %v2226_v62  ;;  %v9925_v29 = vrot.slane %v9907_v42, 9  ;;  %v13390_v62 = vpop.f32.mrf.mxu3 }
 0x309   : > { %v4073_v48 = vpop.f32.mrf.mxu0 }
 0x30a   : > { %v4074_v25 = vadd.f32 %v4073_v48, %v15671_v49  ;;  %v13380_v48 = vpop.f32.mrf.mxu1 }
 0x30b   : > { %15675 = vst [vmem:[#allocation25_spill] sm:$0xff] %v13380_v48  ;;  %v11438_v48 = vld [vmem:[%s11565_s14 + $0x68] sm:$0x1] }
 0x30c   : > { %v4173_v17 = vadd.f32 %v4172_v43, %v4074_v25  ;;  %4418 = vmatmul.bf16.gmra.mxu0 %v2990_v47  ;;  %v2960_v47 = vunpack.c.l.b16 %v2229_v13  ;;  %v11435_v25 = vld [vmem:[%s11565_s14 + $0x58] sm:$0xf] }
 0x30d   : > { %v2232_v26 = vrot.slane %v11435_v25, 5 }
 0x30e   : > { %v13371_v21 = vadd.f32 %v4271_v3, %v4173_v17  ;;  %v2991_v53 = vpack.c.b16 %v2960_v47, %v2959_v22  ;;  %v13382_v3 = vpop.f32.mrf.mxu2  ;;  %v15677_v17 = vld [vmem:[#allocation31_spill] sm:$0xff] }
 0x30f   : > { %15676 = vst [vmem:[#allocation26_spill] sm:$0xff] %v13382_v3  ;;  %v2234_v14 = vrot.slane %v2232_v26, 4  ;;  %v2233_v47 = vsel %vm11777_vm5, %v9925_v29, %v2232_v26  ;;  %v11196_v26 = vld [vmem:[%s15550_s3 + $0x8] sm:$0xff] }
 0x310   : > { %15672 = vst [vmem:[#allocation23_spill] sm:$0xff] %v13371_v21  ;;  %v2961_v25 = vunpack.c.l.b16 %v2233_v47  ;;  %8216 = vmatpush.bf16.msra.mxu1 %v11196_v26 }
 0x311   : > { %v4075_v46 = vpop.f32.mrf.mxu0 }
 0x312   : > { %v13378_v43 = vadd.f32 %v4075_v46, %v15673_v2  ;;  %v2235_v46 = vrot.slane %v11436_v59, 5  ;;  %v4182_v22 = vpop.f32.mrf.mxu1  ;;  %v11204_v59 = vld [vmem:[%s15550_s3 + $0x48] sm:$0xff] }
 0x313   : > { %8305 = vmatpush.bf16.msra.mxu2 %v11204_v59 }
 0x314   : > { %15674 = vst [vmem:[#allocation24_spill] sm:$0xff] %v13378_v43  ;;  %v9910_v43 = vld [vmem:[%s11565_s14 + $0x78] sm:$0xe] }
 0x319   : > { %v4078_v49 = vpop.f32.mrf.mxu0 }
 0x31a   : > { %v4079_v18 = vadd.f32 %v4078_v49, %v15677_v17  ;;  %v2236_v49 = vsel %vm11777_vm5, %v2234_v14, %v2235_v46  ;;  %v13406_v14 = vpop.f32.mrf.mxu3  ;;  %v15681_v46 = vld [vmem:[#allocation4_spill] sm:$0xff]  ;;  %v13410_v3 = vpop.f32.mrf.mxu1 }
 0x31b   : > { %v2962_v17 = vunpack.c.l.b16 %v2236_v49  ;;  %15682 = vst [vmem:[#allocation29_spill] sm:$0xff] %v13410_v3 }
 0x31c   : > { %v4178_v45 = vadd.f32 %v4177_v31, %v4079_v18  ;;  %4423 = vmatmul.bf16.gmra.mxu0 %v2991_v53  ;;  %v15679_v31 = vld [vmem:[#allocation5_spill] sm:$0xff] }
 0x31d   : > { %v2992_v18 = vpack.c.b16 %v2962_v17, %v2961_v25  ;;  %v2242_v25 = vrot.slane %v11438_v48, 5 }
 0x31e   : > { %v13388_v2 = vadd.f32 %v4276_v54, %v4178_v45  ;;  %v4281_v54 = vpop.f32.mrf.mxu2  ;;  %v11437_v45 = vld [vmem:[%s11565_s14 + $0x64] sm:$0xf] }
 0x31f   : > { %v2239_v29 = vrot.slane %v11437_v45, 5 }
 0x320   : > { %15678 = vst [vmem:[#allocation27_spill] sm:$0xff] %v13388_v2 }
 0x321   : > { %v4080_v13 = vpop.f32.mrf.mxu0  ;;  %v2241_v2 = vrot.slane %v2239_v29, 4 }
 0x322   : > { %v13397_v53 = vadd.f32 %v4080_v13, %v15679_v31  ;;  %v9908_v31 = vld [vmem:[%s11565_s14 + $0x60] sm:$0xe] }
 0x323   : > { %v9926_v59 = vrot.slane %v9908_v31, 9 }
 0x324   : > { %15680 = vst [vmem:[#allocation28_spill] sm:$0xff] %v13397_v53  ;;  %v15687_v53 = vld [vmem:[#allocation39_spill] sm:$0xff] }
 0x325   : > { %v2240_v45 = vsel %vm11777_vm5, %v9926_v59, %v2239_v29  ;;  %v9909_v29 = vld [vmem:[%s11565_s14 + $0x6c] sm:$0xe] }
 0x326   : > { %v13412_v49 = vpop.f32.mrf.mxu2 }
 0x327   : > { %15683 = vst [vmem:[#allocation30_spill] sm:$0xff] %v13412_v49  ;;  %v4187_v49 = vpop.f32.mrf.mxu1 }
 0x329   : > { %v4083_v42 = vpop.f32.mrf.mxu0 }
 0x32a   : > { %v4084_v13 = vadd.f32 %v4083_v42, %v15681_v46  ;;  %v2243_v42 = vsel %vm11777_vm5, %v2241_v2, %v2242_v25  ;;  %v15685_v46 = vld [vmem:[#allocation6_spill] sm:$0xff]  ;;  %v9927_v2 = vrot.slane %v9909_v29, 9 }
 0x32b   : > { %v2964_v31 = vunpack.c.l.b16 %v2243_v42 }
 0x32c   : > { %v4183_v47 = vadd.f32 %v4182_v22, %v4084_v13  ;;  %4428 = vmatmul.bf16.gmra.mxu0 %v2992_v18  ;;  %v13424_v18 = vpop.f32.mrf.mxu3  ;;  %v2963_v13 = vunpack.c.l.b16 %v2240_v45 }
 0x32e   : > { %v13415_v17 = vadd.f32 %v4281_v54, %v4183_v47  ;;  %v4286_v48 = vpop.f32.mrf.mxu2  ;;  %v2993_v3 = vpack.c.b16 %v2964_v31, %v2963_v13  ;;  %v11439_v47 = vld [vmem:[%s11565_s14 + $0x70] sm:$0xf] }
 0x32f   : > { %v13434_v42 = vpop.f32.mrf.mxu1 }
 0x330   : > { %15684 = vst [vmem:[#allocation32_spill] sm:$0xff] %v13415_v17  ;;  %v2246_v17 = vrot.slane %v11439_v47, 5 }
 0x331   : > { %v4085_v26 = vpop.f32.mrf.mxu0  ;;  %15689 = vst [vmem:[#allocation38_spill] sm:$0xff] %v13434_v42 }
 0x332   : > { %v13422_v22 = vadd.f32 %v4085_v26, %v15685_v46  ;;  %v2248_v25 = vrot.slane %v2246_v17, 4  ;;  %v11440_v26 = vld [vmem:[%s11565_s14 + $0x74] sm:$0x1] }
 0x333   : > { %v2249_v46 = vrot.slane %v11440_v26, 5 }
 0x334   : > { %15686 = vst [vmem:[#allocation34_spill] sm:$0xff] %v13422_v22  ;;  %v13430_v22 = vpop.f32.mrf.mxu3 }
 0x336   : > { %v13436_v31 = vpop.f32.mrf.mxu2 }
 0x337   : > { %15690 = vst [vmem:[#allocation40_spill] sm:$0xff] %v13436_v31  ;;  %v4192_v26 = vpop.f32.mrf.mxu1  ;;  %v15693_v31 = vld [vmem:[#allocation7_spill] sm:$0xff] }
 0x339   : > { %v4088_v54 = vpop.f32.mrf.mxu0 }
 0x33a   : > { %v4089_v21 = vadd.f32 %v4088_v54, %v15687_v53  ;;  %v2247_v53 = vsel %vm11777_vm5, %v9927_v2, %v2246_v17  ;;  %v11218_v17 = vld [vmem:[%s15550_s3 + $0xb8] sm:$0xff] }
 0x33b   : > { %v2965_v54 = vunpack.c.l.b16 %v2247_v53  ;;  %8388 = vmatpush.bf16.msrb.mxu3 %v11218_v17  ;;  %v11442_v53 = vld [vmem:[%s11565_s14 + $0x80] sm:$0x1] }
 0x33c   : > { %v4188_v59 = vadd.f32 %v4187_v49, %v4089_v21  ;;  %4433 = vmatmul.bf16.gmra.mxu0 %v2993_v3  ;;  %v2250_v21 = vsel %vm11777_vm5, %v2248_v25, %v2249_v46  ;;  %v15691_v3 = vld [vmem:[#allocation37_spill] sm:$0xff]  ;;  %v9928_v46 = vrot.slane %v9910_v43, 9 }
 0x33d   : > { %v2966_v47 = vunpack.c.l.b16 %v2250_v21  ;;  %v2256_v21 = vrot.slane %v11442_v53, 5 }
 0x33e   : > { %v13432_v45 = vadd.f32 %v4286_v48, %v4188_v59  ;;  %v13445_v48 = vpop.f32.mrf.mxu3  ;;  %v4291_v2 = vpop.f32.mrf.mxu2 }
 0x33f   : > { %v2994_v29 = vpack.c.b16 %v2966_v47, %v2965_v54  ;;  %v15695_v47 = vld [vmem:[#allocation36_spill] sm:$0xff] }
 0x340   : > { %15688 = vst [vmem:[#allocation35_spill] sm:$0xff] %v13432_v45  ;;  %v11441_v45 = vld [vmem:[%s11565_s14 + $0x7c] sm:$0xf] }
 0x341   : > { %v4090_v13 = vpop.f32.mrf.mxu0  ;;  %v2253_v42 = vrot.slane %v11441_v45, 5  ;;  %v11217_v45 = vld [vmem:[%s15550_s3 + $0xb0] sm:$0xff] }
 0x342   : > { %v13443_v49 = vadd.f32 %v4090_v13, %v15691_v3  ;;  %8389 = vmatpush.bf16.msrb.mxu3 %v11217_v45 }
 0x343   : > { %v2255_v13 = vrot.slane %v2253_v42, 4  ;;  %v2254_v54 = vsel %vm11777_vm5, %v9928_v46, %v2253_v42  ;;  %v11215_v42 = vld [vmem:[%s15550_s3 + $0xa0] sm:$0xff] }
 0x344   : > { %15692 = vst [vmem:[#allocation43_spill] sm:$0xff] %v13443_v49 }
 0x346   : > { %v13463_v43 = vpop.f32.mrf.mxu3 }
 0x349   : > { %v4093_v59 = vpop.f32.mrf.mxu0 }
 0x34a   : > { %v4094_v20 = vadd.f32 %v4093_v59, %v15693_v31  ;;  %v11216_v59 = vld [vmem:[%s15550_s3 + $0xa8] sm:$0xff] }
 0x34b   : > { %8390 = vmatpush.bf16.msrb.mxu3 %v11216_v59  ;;  %v11203_v59 = vld [vmem:[%s15550_s3 + $0x40] sm:$0xff] }
 0x34c   : > { %v4193_v25 = vadd.f32 %v4192_v26, %v4094_v20  ;;  %4438 = vmatmul.bf16.gmra.mxu0 %v2994_v29  ;;  %v2257_v20 = vsel %vm11777_vm5, %v2255_v13, %v2256_v21  ;;  %v2967_v26 = vunpack.c.l.b16 %v2254_v54  ;;  %v11443_v13 = vld [vmem:[%s11565_s14 + $0x88] sm:$0xf]  ;;  %v15697_v21 = vld [vmem:[#allocation8_spill] sm:$0xff]  ;;  %v11214_v54 = vld [vmem:[%s15550_s3 + $0x98] sm:$0xff]  ;;  %8306 = vmatpush.bf16.msra.mxu2 %v11203_v59 }
 0x34d   : > { %v2968_v17 = vunpack.c.l.b16 %v2257_v20  ;;  %v2260_v53 = vrot.slane %v11443_v13, 5  ;;  %v11212_v59 = vld [vmem:[%s15550_s3 + $0x88] sm:$0xff] }
 0x34e   : > { %v13454_v3 = vadd.f32 %v4291_v2, %v4193_v25  ;;  %v11195_v25 = vld [vmem:[%s15550_s3] sm:$0xff]  ;;  %v13483_v20 = vpop.f32.mrf.mxu3 }
 0x34f   : > { %v2995_v2 = vpack.c.b16 %v2968_v17, %v2967_v26  ;;  %8391 = vmatpush.bf16.msrb.mxu3 %v11215_v42  ;;  %8217 = vmatpush.bf16.msra.mxu1 %v11195_v25  ;;  %v2262_v17 = vrot.slane %v2260_v53, 4  ;;  %v11444_v42 = vld [vmem:[%s11565_s14 + $0x8c] sm:$0x1]  ;;  %v11213_v25 = vld [vmem:[%s15550_s3 + $0x90] sm:$0xff] }
 0x350   : > { %15694 = vst [vmem:[#allocation44_spill] sm:$0xff] %v13454_v3  ;;  %v2263_v13 = vrot.slane %v11444_v42, 5 }
 0x351   : > { %v4095_v31 = vpop.f32.mrf.mxu0 }
 0x352   : > { %v13466_v29 = vadd.f32 %v4095_v31, %v15695_v47  ;;  %v9911_v31 = vld [vmem:[%s11565_s14 + $0x84] sm:$0xe] }
 0x353   : > { %8392 = vmatpush.bf16.msrb.mxu3 %v11214_v54  ;;  %v9929_v26 = vrot.slane %v9911_v31, 9  ;;  %v2264_v31 = vsel %vm11777_vm5, %v2262_v17, %v2263_v13 }
 0x354   : > { %15696 = vst [vmem:[#allocation33_spill] sm:$0xff] %v13466_v29  ;;  %v2970_v17 = vunpack.c.l.b16 %v2264_v31  ;;  %v9912_v31 = vld [vmem:[%s11565_s14 + $0x90] sm:$0xe] }
 0x356   : > { %v13505_v13 = vpop.f32.mrf.mxu3 }
 0x357   : > { %8393 = vmatpush.bf16.msrb.mxu3 %v11213_v25  ;;  %v4932_v25 = vld [vmem:[#allocation2] sm:$0xf]  ;;  %15700 = vst [vmem:[#allocation3_spill] sm:$0xff] %v13505_v13 }
 0x359   : > { %v4404_v46 = vpop.f32.mrf.mxu0 }
 0x35a   : > { %v4405_v45 = vadd.f32 %v4404_v46, %v15697_v21 }
 0x35b   : > { %8394 = vmatpush.bf16.msrb.mxu3 %v11212_v59 }
 0x35c   : > { %v4494_v47 = vmax.f32 %v4405_v45, 0.0  ;;  %4443 = vmatmul.bf16.gmra.mxu0 %v2995_v2  ;;  %v2261_v45 = vsel %vm11777_vm5, %v9929_v26, %v2260_v53 }
 0x35d   : > { %v2969_v26 = vunpack.c.l.b16 %v2261_v45 }
 0x35e   : > { %v4530_v46 = vpack.c.bf16 %v4494_v47, %v4494_v47  ;;  %v13533_v8 = vpop.f32.mrf.mxu3 }
 0x35f   : > { %v2996_v45 = vpack.c.b16 %v2970_v17, %v2969_v26  ;;  %15705 = vst [vmem:[#allocation31_spill] sm:$0xff] %v13533_v8 }
 0x360   : > { %v4570_v21 = vshrl.u32 %v4530_v46, 16  ;;  %v4573_v3 = vshll.u32 %v4530_v46, 16 }
 0x361   : > { %v4406_v2 = vpop.f32.mrf.mxu0 }
 0x362   : > { %v4572_v54 = vrot.slane %v4570_v21, 7  ;;  %v4407_v47 = vadd.f32 %v4406_v2, %v12879_v40  ;;  %v11211_v21 = vld [vmem:[%s15550_s3 + $0x80] sm:$0xff]  ;;  %v11445_v2 = vld [vmem:[%s11565_s14 + $0x94] sm:$0xf] }
 0x363   : > { %8395 = vmatpush.bf16.msrb.mxu3 %v11211_v21  ;;  %v4938_v21 = vld [vmem:[#allocation2 + $0x8] sm:$0x1] }
 0x364   : > { %v4575_v29 = vor.u32 %v4573_v3, %v4572_v54  ;;  %v4495_v53 = vmax.f32 %v4407_v47, 0.0  ;;  %v2267_v3 = vrot.slane %v11445_v2, 5  ;;  %v2270_v2 = vrot.slane %v11446_v33, 5 }
 0x365   : > { %v4576_v10 = vrot.slane %v4572_v54, 4 }
 0x366   : > { %v4933_v40 = vsel %vm13501_vm8, %v4575_v29, %v4932_v25  ;;  %v4531_v46 = vpack.c.bf16 %v4495_v53, %v4495_v53  ;;  %v9930_v53 = vrot.slane %v9912_v31, 9 }
 0x367   : > { %4934 = vst [vmem:[#allocation2] sm:$0xf] %v4933_v40  ;;  %v2269_v40 = vrot.slane %v2267_v3, 4 }
 0x368   : > { %v4578_v47 = vshrl.u32 %v4531_v46, 16  ;;  %v4581_v60 = vshll.u32 %v4531_v46, 16 }
 0x369   : > { %v4409_v59 = vpop.f32.mrf.mxu0 }
 0x36a   : > { %v4580_v49 = vrot.slane %v4578_v47, 7  ;;  %v4410_v29 = vadd.f32 %v4409_v59, %v12919_v16 }
 0x36c   : > { %v4583_v17 = vor.u32 %v4581_v60, %v4580_v49  ;;  %v4585_v46 = vrot.slane %v4580_v49, 4  ;;  %v4496_v16 = vmax.f32 %v4410_v29, 0.0  ;;  %4448 = vmatmul.bf16.gmra.mxu0 %v2996_v45  ;;  %v2268_v49 = vsel %vm11777_vm5, %v9930_v53, %v2267_v3 }
 0x36d   : > { %v15553_v45 = vmov 0  }
 0x36e   : > { %v5060_v47 = vld [vmem:[#allocation2] sm:$0x1]  ;;  %v4584_v59 = vsel %vm13516_vm12, %v4576_v10, %v4583_v17  ;;  %v4532_v31 = vpack.c.bf16 %v4496_v16, %v4496_v16  ;;  %v4939_v54 = vsel %vm13523_vm13, %v4585_v46, %v4938_v21  ;;  %v2271_v10 = vsel %vm11777_vm5, %v2269_v40, %v2270_v2  ;;  %v4941_v21 = vld [vmem:[#allocation2 + $0xc] sm:$0xf] }
 0x36f   : > { %v5061_v33 = vsel %vm13523_vm13, 0, %v5060_v47  ;;  %4935 = vst [vmem:[#allocation2 + $0x4] sm:$0xf] %v4584_v59  ;;  %v2971_v47 = vunpack.c.l.b16 %v2268_v49  ;;  %v2972_v59 = vunpack.c.l.b16 %v2271_v10  ;;  %v2274_v40 = vrot.slane %v11447_v5, 5  ;;  %v4945_v5 = vld [vmem:[#allocation2 + $0x14] sm:$0x1] }
 0x370   : > { %5062 = vst [vmem:[#allocation2] sm:$0x1] %v5061_v33  ;;  %v4587_v60 = vshrl.u32 %v4532_v31, 16  ;;  %v4590_v16 = vshll.u32 %v4532_v31, 16  ;;  %v9913_v33 = vld [vmem:[%s11565_s14 + $0x9c] sm:$0xe] }
 0x371   : > { %5173 = vst [vmem:[#allocation2] sm:$0xf] %v15553_v45  ;;  %v4411_v29 = vpop.f32.mrf.mxu0  ;;  %v2276_v10 = vrot.slane %v2274_v40, 4  ;;  %v11265_v31 = vld [vmem:[%s15550_s3 + $0x230] sm:$0xff] }
 0x372   : > { %4940 = vst [vmem:[#allocation2 + $0x8] sm:$0x1] %v4939_v54  ;;  %v4589_v17 = vrot.slane %v4587_v60, 7  ;;  %v4412_v46 = vadd.f32 %v4411_v29, %v12940_v63  ;;  %v2997_v63 = vpack.c.b16 %v2972_v59, %v2971_v47  ;;  %v9931_v54 = vrot.slane %v9913_v33, 9  ;;  %v11448_v29 = vld [vmem:[%s11565_s14 + $0xa4] sm:$0x1] }
 0x373   : > { %5174 = vst [vmem:[#allocation2 + $0x4] sm:$0xf] %v15553_v45 }
 0x374   : > { %v4592_v3 = vor.u32 %v4590_v16, %v4589_v17  ;;  %v4497_v53 = vmax.f32 %v4412_v46, 0.0  ;;  %v2277_v16 = vrot.slane %v11448_v29, 5 }
 0x376   : > { %v4942_v2 = vsel %vm13501_vm8, %v4592_v3, %v4941_v21  ;;  %v4533_v34 = vpack.c.bf16 %v4497_v53, %v4497_v53  ;;  %v13553_v3 = vpop.f32.mrf.mxu3 }
 0x377   : > { %4943 = vst [vmem:[#allocation2 + $0xc] sm:$0xf] %v4942_v2 }
 0x378   : > { %v4595_v60 = vshrl.u32 %v4533_v34, 16  ;;  %v4598_v49 = vshll.u32 %v4533_v34, 16  ;;  %v5612_v9 = vld [vmem:[#allocation2] sm:$0xe]  ;;  %15708 = vst [vmem:[#allocation5_spill] sm:$0xff] %v13553_v3  ;;  %v4593_v34 = vrot.slane %v4589_v17, 4 }
 0x379   : > { %v5115_v46 = vld [vmem:[#allocation2 + $0x8] sm:$0x1]  ;;  %v4414_v45 = vpop.f32.mrf.mxu0  ;;  %v5180_v21 = vld [vmem:[#allocation2] sm:$0xf] }
 0x37a   : > { %v5116_v53 = vsel %vm13548_vm14, 0, %v5115_v46  ;;  %v4597_v6 = vrot.slane %v4595_v60, 7  ;;  %v4415_v2 = vadd.f32 %v4414_v45, %v12972_v12  ;;  %v11147_v47 = vld [vmem:[#allocation2] sm:$0xff]  ;;  %v5229_v33 = vshrl.u32 %v5180_v21, 16 }
 0x37b   : > { %v5181_v59 = vld [vmem:[#allocation2 + $0x4] sm:$0xf]  ;;  %5117 = vst [vmem:[#allocation2 + $0x8] sm:$0x1] %v5116_v53  ;;  %v5232_v15 = vshll.u32 %v5180_v21, 16  ;;  %8218 = vmatmul.bf16.vlgmr.msra.gmra.mxu1 %v11147_v47  ;;  %v10442_v46 = vrot.slane %v5612_v9, 9 }
 0x37c   : > { %v5238_v29 = vshll.u32 %v5181_v59, 16  ;;  %v5242_v8 = vshrl.u32 %v5181_v59, 16  ;;  %5175 = vst [vmem:[#allocation2 + $0x8] sm:$0x1] %v15709_v32  ;;  %v4600_v39 = vor.u32 %v4598_v49, %v4597_v6  ;;  %v4602_v38 = vrot.slane %v4597_v6, 4  ;;  %4453 = vmatmul.bf16.gmra.mxu0 %v2997_v63  ;;  %v11234_v9 = vld [vmem:[%s15550_s3 + $0x138] sm:$0xff] }
 0x37d   : > { %v4498_v13 = vmax.f32 %v4415_v2, 0.0  ;;  %v5231_v3 = vrot.slane %v5229_v33, 4  ;;  %v5234_v60 = vrot.slane %v5232_v15, 5  ;;  %v5678_v53 = vrot.slane %v5181_v59, 5  ;;  %v9914_v47 = vld [vmem:[%s11565_s14 + $0xa8] sm:$0xe]  ;;  %8566 = vmatpush.bf16.msrb.mxu2 %v11234_v9 }
 0x37e   : > { %v5240_v24 = vrot.slane %v5238_v29, 5  ;;  %v5063_v12 = vld [vmem:[#allocation2 + $0xc] sm:$0x1]  ;;  %v4601_v45 = vsel %vm13516_vm12, %v4593_v34, %v4600_v39  ;;  %v4946_v17 = vsel %vm13523_vm13, %v4602_v38, %v4945_v5  ;;  %v5244_v49 = vrot.slane %v5242_v8, 4 }
 0x37f   : > { %v4534_v21 = vpack.c.bf16 %v4498_v13, %v4498_v13  ;;  %v5064_v6 = vsel %vm13523_vm13, 0, %v5063_v12  ;;  %4944 = vst [vmem:[#allocation2 + $0x10] sm:$0xf] %v4601_v45  ;;  %v5235_v63 = vor.u32 %v5234_v60, %v5231_v3  ;;  %v2275_v39 = vsel %vm11777_vm5, %v9931_v54, %v2274_v40  ;;  %v11226_v13 = vld [vmem:[%s15550_s3 + $0xf8] sm:$0xff]  ;;  %v11449_v59 = vld [vmem:[%s11565_s14 + $0xac] sm:$0xf]  ;;  %v13582_v45 = vpop.f32.mrf.mxu3 }
 0x380   : > { %5065 = vst [vmem:[#allocation2 + $0xc] sm:$0x1] %v5064_v6  ;;  %v2278_v38 = vsel %vm11777_vm5, %v2276_v10, %v2277_v16  ;;  %v5679_v8 = vsel %vm11777_vm5, %v10442_v46, %v5678_v53  ;;  %v5245_v2 = vor.u32 %v5244_v49, %v5240_v24  ;;  %v2281_v33 = vrot.slane %v11449_v59, 5  ;;  %8477 = vmatpush.bf16.msrb.mxu1 %v11226_v13  ;;  %v4948_v16 = vld [vmem:[#allocation2 + $0x18] sm:$0xf] }
 0x381   : > { %v4604_v15 = vshrl.u32 %v4534_v21, 16  ;;  %4947 = vst [vmem:[#allocation2 + $0x14] sm:$0x1] %v4946_v17  ;;  %v4416_v5 = vpop.f32.mrf.mxu0  ;;  %v5236_v3 = vrot.slane %v5235_v63, 4  ;;  %v4607_v40 = vshll.u32 %v4534_v21, 16  ;;  %v5680_v10 = vrot.slane %v5678_v53, 4 }
 0x382   : > { %v4417_v54 = vadd.f32 %v4416_v5, %v12992_v57  ;;  %v2973_v60 = vunpack.c.l.b16 %v2275_v39  ;;  %v2974_v12 = vunpack.c.l.b16 %v2278_v38  ;;  %v9932_v63 = vrot.slane %v9914_v47, 9  ;;  %v11450_v59 = vld [vmem:[%s11565_s14 + $0xb0] sm:$0x1] }
 0x383   : > { %v13579_v34 = vrot.slane %v4604_v15, 7  ;;  %v5212_v29 = vld [vmem:[#allocation2 + $0x8] sm:$0x1]  ;;  %v7150_v49 = vunpack.c.l.b16 %v5679_v8  ;;  %v5241_v21 = vsel %vm11592_vm2, %v5236_v3, %v5240_v24  ;;  %v5246_v57 = vrot.slane %v5245_v2, 4 }
 0x384   : > { %v4499_v17 = vmax.f32 %v4417_v54, 0.0  ;;  %v5681_v6 = vrot.slane %v5212_v29, 5  ;;  %v5248_v53 = vshll.u32 %v5212_v29, 16  ;;  %v2283_v13 = vrot.slane %v2281_v33, 4 }
 0x385   : > { %v4609_v46 = vor.u32 %v4607_v40, %v13579_v34  ;;  %v4610_v5 = vrot.slane %v13579_v34, 4  ;;  %v2284_v40 = vrot.slane %v11450_v59, 5  ;;  %v7086_v2 = vunpack.c.l.b16 %v5241_v21 }
 0x386   : > { %v4535_v9 = vpack.c.bf16 %v4499_v17, %v4499_v17  ;;  %v5682_v39 = vsel %vm11777_vm5, %v5680_v10, %v5681_v6  ;;  %v13591_v38 = vld [vmem:[#allocation2 + $0x10] sm:$0xf]  ;;  %v5250_v8 = vrot.slane %v5248_v53, 5  ;;  %v2998_v29 = vpack.c.b16 %v2974_v12, %v2973_v60 }
 0x387   : > { %v4949_v15 = vsel %vm13501_vm8, %v4609_v46, %v4948_v16  ;;  %v7151_v47 = vunpack.c.l.b16 %v5682_v39  ;;  %v11148_v54 = vld [vmem:[#allocation2 + $0xc] sm:$0xff]  ;;  %v13597_v46 = vsel %vm11777_vm5, %v9932_v63, %v2281_v33  ;;  %v5262_v53 = vshll.u32 %v13591_v38, 16  ;;  %v4952_v39 = vld [vmem:[#allocation2 + $0x20] sm:$0x1] }
 0x388   : > { %4950 = vst [vmem:[#allocation2 + $0x18] sm:$0xf] %v4949_v15  ;;  %v5118_v24 = vld [vmem:[#allocation2 + $0x14] sm:$0x1]  ;;  %v4612_v3 = vshrl.u32 %v4535_v9, 16  ;;  %v5251_v6 = vsel %vm11592_vm2, %v5246_v57, %v5250_v8  ;;  %v4615_v21 = vshll.u32 %v4535_v9, 16 }
 0x389   : > { %v5182_v16 = vld [vmem:[#allocation2 + $0xc] sm:$0xf]  ;;  %v5119_v10 = vsel %vm13548_vm14, 0, %v5118_v24  ;;  %v7182_v17 = vpack.c.b16 %v7151_v47, %v7150_v49  ;;  %v4419_v34 = vpop.f32.mrf.mxu0  ;;  %v7087_v12 = vunpack.c.l.b16 %v5251_v6  ;;  %v5685_v33 = vrot.slane %v13591_v38, 5 }
 0x38a   : > { %5120 = vst [vmem:[#allocation2 + $0x14] sm:$0x1] %v5119_v10  ;;  %v4614_v15 = vrot.slane %v4612_v3, 7  ;;  %v4420_v60 = vadd.f32 %v4419_v34, %v13024_v61  ;;  %v5253_v63 = vshrl.u32 %v5182_v16, 16  ;;  %v5256_v59 = vshll.u32 %v5182_v16, 16  ;;  %v11163_v42 = vld [vmem:[#allocation2 + $0xc] sm:$0xff] }
 0x38b   : > { %8396 = vmatmul.bf16.vlgmr.msrb.gmra.mxu3 %v7182_v17  ;;  %v2285_v49 = vsel %vm11777_vm5, %v2283_v13, %v2284_v40  ;;  %v7118_v8 = vpack.c.b16 %v7087_v12, %v7086_v2  ;;  %8223 = vmatmul.bf16.gmra.mxu1 %v11148_v54  ;;  %v5613_v3 = vld [vmem:[#allocation2 + $0xc] sm:$0xe]  ;;  %v5264_v61 = vrot.slane %v5262_v53, 5  ;;  %v5266_v34 = vshrl.u32 %v13591_v38, 16  ;;  %v13609_v17 = vpop.f32.mrf.mxu3 }
 0x38c   : > { %v4617_v47 = vor.u32 %v4615_v21, %v4614_v15  ;;  %v4619_v24 = vrot.slane %v4614_v15, 4  ;;  %v4500_v57 = vmax.f32 %v4420_v60, 0.0  ;;  %4458 = vmatmul.bf16.gmra.mxu0 %v2998_v29  ;;  %v5255_v9 = vrot.slane %v5253_v63, 4  ;;  %15710 = vst [vmem:[#allocation4_spill] sm:$0xff] %v13609_v17 }
 0x38d   : > { %v5258_v10 = vrot.slane %v5256_v59, 5  ;;  %8307 = vmatmul.bf16.vlgmr.msra.gmra.mxu2 %v7118_v8  ;;  %v10443_v54 = vrot.slane %v5613_v3, 9  ;;  %v5268_v53 = vrot.slane %v5266_v34, 4  ;;  %v5687_v15 = vrot.slane %v5685_v33, 4 }
 0x38e   : > { %v4618_v16 = vsel %vm13516_vm12, %v4610_v5, %v4617_v47  ;;  %v4953_v13 = vsel %vm13523_vm13, %v4619_v24, %v4952_v39  ;;  %v4536_v40 = vpack.c.bf16 %v4500_v57, %v4500_v57  ;;  %v2975_v21 = vunpack.c.l.b16 %v13597_v46 }
 0x38f   : > { %v5066_v6 = vld [vmem:[#allocation2 + $0x18] sm:$0x1]  ;;  %4951 = vst [vmem:[#allocation2 + $0x1c] sm:$0xf] %v4618_v16  ;;  %v5259_v29 = vor.u32 %v5258_v10, %v5255_v9  ;;  %v2976_v60 = vunpack.c.l.b16 %v2285_v49  ;;  %v5686_v63 = vsel %vm11777_vm5, %v10443_v54, %v5685_v33  ;;  %v5269_v47 = vor.u32 %v5268_v53, %v5264_v61  ;;  %v4955_v9 = vld [vmem:[#allocation2 + $0x24] sm:$0xf] }
 0x390   : > { %v5067_v2 = vsel %vm13523_vm13, 0, %v5066_v6  ;;  %v4621_v38 = vshrl.u32 %v4536_v40, 16  ;;  %4954 = vst [vmem:[#allocation2 + $0x20] sm:$0x1] %v4953_v13  ;;  %v4624_v5 = vshll.u32 %v4536_v40, 16  ;;  %v7152_v33 = vunpack.c.l.b16 %v5686_v63 }
 0x391   : > { %5068 = vst [vmem:[#allocation2 + $0x18] sm:$0x1] %v5067_v2  ;;  %v4421_v12 = vpop.f32.mrf.mxu0  ;;  %v5213_v39 = vld [vmem:[#allocation2 + $0x14] sm:$0x1]  ;;  %v5260_v59 = vrot.slane %v5259_v29, 4  ;;  %v5270_v40 = vrot.slane %v5269_v47, 4  ;;  %v2999_v53 = vpack.c.b16 %v2976_v60, %v2975_v21 }
 0x392   : > { %v13620_v24 = vrot.slane %v4621_v38, 7  ;;  %v4422_v57 = vadd.f32 %v4421_v12, %v13053_v50  ;;  %v5688_v8 = vrot.slane %v5213_v39, 5  ;;  %v5272_v3 = vshll.u32 %v5213_v39, 16  ;;  %v13624_v10 = vld [vmem:[%s11565_s14 + $0xb8] sm:$0xf] }
 0x393   : > { %v15555_v46 = vrot.slane %v13624_v10, 5  ;;  %v13631_v16 = vld [vmem:[%s11565_s14 + $0xb4] sm:$0xe]  ;;  %v5265_v50 = vsel %vm11592_vm2, %v5260_v59, %v5264_v61  ;;  %v13644_v63 = vpop.f32.mrf.mxu3 }
 0x394   : > { %v4626_v49 = vor.u32 %v4624_v5, %v13620_v24  ;;  %v4501_v34 = vmax.f32 %v4422_v57, 0.0  ;;  %v5689_v6 = vsel %vm11777_vm5, %v5687_v15, %v5688_v8  ;;  %v5274_v2 = vrot.slane %v5272_v3, 5  ;;  %15711 = vst [vmem:[#allocation6_spill] sm:$0xff] %v13644_v63 }
 0x395   : > { %v7153_v13 = vunpack.c.l.b16 %v5689_v6  ;;  %v9933_v39 = vrot.slane %v13631_v16, 9  ;;  %v2290_v61 = vrot.slane %v15555_v46, 4  ;;  %v7088_v57 = vunpack.c.l.b16 %v5265_v50  ;;  %v11452_v6 = vld [vmem:[%s11565_s14 + $0xbc] sm:$0x1]  ;;  %v5614_v50 = vld [vmem:[#allocation2 + $0x18] sm:$0xe] }
 0x396   : > { %v4956_v54 = vsel %vm13501_vm8, %v4626_v49, %v4955_v9  ;;  %v4537_v29 = vpack.c.bf16 %v4501_v34, %v4501_v34  ;;  %v13637_v38 = vld [vmem:[#allocation2 + $0x1c] sm:$0xf]  ;;  %v5275_v15 = vsel %vm11592_vm2, %v5270_v40, %v5274_v2  ;;  %v4959_v40 = vld [vmem:[#allocation2 + $0x2c] sm:$0x1]  ;;  %v4627_v63 = vrot.slane %v13620_v24, 4 }
 0x397   : > { %4957 = vst [vmem:[#allocation2 + $0x24] sm:$0xf] %v4956_v54  ;;  %v7183_v5 = vpack.c.b16 %v7153_v13, %v7152_v33  ;;  %v5121_v59 = vld [vmem:[#allocation2 + $0x20] sm:$0x1]  ;;  %v7089_v21 = vunpack.c.l.b16 %v5275_v15  ;;  %v5692_v49 = vrot.slane %v13637_v38, 5  ;;  %v2291_v33 = vrot.slane %v11452_v6, 5 }
 0x398   : > { %v5184_v12 = vld [vmem:[#allocation2 + $0x18] sm:$0xf]  ;;  %v4629_v47 = vshrl.u32 %v4537_v29, 16  ;;  %v5122_v3 = vsel %vm13548_vm14, 0, %v5121_v59  ;;  %v4632_v13 = vshll.u32 %v4537_v29, 16  ;;  %v5286_v32 = vshll.u32 %v13637_v38, 16 }
 0x399   : > { %v11149_v60 = vld [vmem:[#allocation2 + $0x18] sm:$0xff]  ;;  %v5277_v8 = vshrl.u32 %v5184_v12, 16  ;;  %v4424_v9 = vpop.f32.mrf.mxu0  ;;  %v5280_v34 = vshll.u32 %v5184_v12, 16  ;;  %5123 = vst [vmem:[#allocation2 + $0x20] sm:$0x1] %v5122_v3  ;;  %v7119_v54 = vpack.c.b16 %v7089_v21, %v7088_v57  ;;  %v5290_v59 = vshrl.u32 %v13637_v38, 16 }
 0x39a   : > { %v4631_v16 = vrot.slane %v4629_v47, 7  ;;  %v4425_v2 = vadd.f32 %v4424_v9, %v13082_v35  ;;  %v5288_v47 = vrot.slane %v5286_v32, 5  ;;  %v10444_v24 = vrot.slane %v5614_v50, 9  ;;  %v11453_v6 = vld [vmem:[%s11565_s14 + $0xc4] sm:$0xf] }
 0x39b   : > { %8401 = vmatmul.bf16.gmra.mxu3 %v7183_v5  ;;  %v5279_v15 = vrot.slane %v5277_v8, 4  ;;  %v5282_v46 = vrot.slane %v5280_v34, 5  ;;  %8228 = vmatmul.bf16.gmra.mxu1 %v11149_v60  ;;  %v5292_v35 = vrot.slane %v5290_v59, 4  ;;  %v5694_v60 = vrot.slane %v5692_v49, 4  ;;  %v11225_v34 = vld [vmem:[%s15550_s3 + $0xf0] sm:$0xff] }
 0x39c   : > { %v4634_v12 = vor.u32 %v4632_v13, %v4631_v16  ;;  %v4636_v17 = vrot.slane %v4631_v16, 4  ;;  %v4502_v3 = vmax.f32 %v4425_v2, 0.0  ;;  %4463 = vmatmul.bf16.gmra.mxu0 %v2999_v53  ;;  %v9916_v53 = vld [vmem:[%s11565_s14 + $0xc0] sm:$0xe]  ;;  %v2292_v9 = vsel %vm11777_vm5, %v2290_v61, %v2291_v33  ;;  %8478 = vmatpush.bf16.msrb.mxu1 %v11225_v34 }
 0x39d   : > { %v5283_v29 = vor.u32 %v5282_v46, %v5279_v15  ;;  %8312 = vmatmul.bf16.gmra.mxu2 %v7119_v54  ;;  %v11233_v46 = vld [vmem:[%s15550_s3 + $0x130] sm:$0xff]  ;;  %v2295_v16 = vrot.slane %v11453_v6, 5  ;;  %v5693_v54 = vsel %vm11777_vm5, %v10444_v24, %v5692_v49  ;;  %v5293_v50 = vor.u32 %v5292_v35, %v5288_v47  ;;  %v13676_v15 = vpop.f32.mrf.mxu3 }
 0x39e   : > { %v5069_v57 = vld [vmem:[#allocation2 + $0x24] sm:$0x1]  ;;  %v4635_v5 = vsel %vm13516_vm12, %v4627_v63, %v4634_v12  ;;  %v4960_v21 = vsel %vm13523_vm13, %v4636_v17, %v4959_v40  ;;  %v4538_v38 = vpack.c.bf16 %v4502_v3, %v4502_v3  ;;  %v15712_v63 = vrot.slane %v13624_v10, 5  ;;  %8567 = vmatpush.bf16.msrb.mxu2 %v11233_v46  ;;  %v4962_v12 = vld [vmem:[#allocation2 + $0x30] sm:$0xf] }
 0x39f   : > { %v5070_v8 = vsel %vm13523_vm13, 0, %v5069_v57  ;;  %4958 = vst [vmem:[#allocation2 + $0x28] sm:$0xf] %v4635_v5  ;;  %v5284_v10 = vrot.slane %v5283_v29, 4  ;;  %v2978_v57 = vunpack.c.l.b16 %v2292_v9  ;;  %v9934_v5 = vrot.slane %v9916_v53, 9 }
 0x3a0   : > { %5071 = vst [vmem:[#allocation2 + $0x24] sm:$0x1] %v5070_v8  ;;  %v4638_v32 = vshrl.u32 %v4538_v38, 16  ;;  %v2289_v17 = vsel %vm11777_vm5, %v9933_v39, %v15712_v63  ;;  %v4641_v13 = vshll.u32 %v4538_v38, 16  ;;  %v5214_v2 = vld [vmem:[#allocation2 + $0x20] sm:$0x1]  ;;  %v7154_v29 = vunpack.c.l.b16 %v5693_v54 }
 0x3a1   : > { %4961 = vst [vmem:[#allocation2 + $0x2c] sm:$0x1] %v4960_v21  ;;  %v4426_v40 = vpop.f32.mrf.mxu0  ;;  %v5695_v33 = vrot.slane %v5214_v2, 5  ;;  %v5296_v59 = vshll.u32 %v5214_v2, 16  ;;  %v2977_v3 = vunpack.c.l.b16 %v2289_v17  ;;  %v5289_v24 = vsel %vm11592_vm2, %v5284_v10, %v5288_v47 }
 0x3a2   : > { %v13678_v39 = vrot.slane %v4638_v32, 7  ;;  %v4427_v61 = vadd.f32 %v4426_v40, %v13108_v11  ;;  %v5294_v11 = vrot.slane %v5293_v50, 4  ;;  %v2297_v63 = vrot.slane %v2295_v16, 4 }
 0x3a3   : > { %v5696_v49 = vsel %vm11777_vm5, %v5694_v60, %v5695_v33  ;;  %v5298_v8 = vrot.slane %v5296_v59, 5  ;;  %v3000_v9 = vpack.c.b16 %v2978_v57, %v2977_v3  ;;  %v13692_v6 = vsel %vm11777_vm5, %v9934_v5, %v2295_v16 }
 0x3a4   : > { %v4643_v21 = vor.u32 %v4641_v13, %v13678_v39  ;;  %v4503_v38 = vmax.f32 %v4427_v61, 0.0  ;;  %v7155_v35 = vunpack.c.l.b16 %v5696_v49  ;;  %v7090_v40 = vunpack.c.l.b16 %v5289_v24 }
 0x3a5   : > { %v5299_v17 = vsel %vm11592_vm2, %v5294_v11, %v5298_v8  ;;  %v4644_v61 = vrot.slane %v13678_v39, 4  ;;  %v13699_v11 = vpop.f32.mrf.mxu3 }
 0x3a6   : > { %v4963_v32 = vsel %vm13501_vm8, %v4643_v21, %v4962_v12  ;;  %v4539_v46 = vpack.c.bf16 %v4503_v38, %v4503_v38  ;;  %v7184_v53 = vpack.c.b16 %v7155_v35, %v7154_v29  ;;  %v5187_v60 = vld [vmem:[#allocation2 + $0x28] sm:$0xf]  ;;  %v7091_v2 = vunpack.c.l.b16 %v5299_v17  ;;  %v4966_v38 = vld [vmem:[#allocation2 + $0x38] sm:$0x1]  ;;  %v5615_v17 = vld [vmem:[#allocation2 + $0x24] sm:$0xe] }
 0x3a7   : > { %4964 = vst [vmem:[#allocation2 + $0x30] sm:$0xf] %v4963_v32  ;;  %v5186_v34 = vld [vmem:[#allocation2 + $0x24] sm:$0xf]  ;;  %v11454_v12 = vld [vmem:[%s11565_s14 + $0xc8] sm:$0x1] }
 0x3a8   : > { %v5124_v47 = vld [vmem:[#allocation2 + $0x2c] sm:$0x1]  ;;  %v4646_v13 = vshrl.u32 %v4539_v46, 16  ;;  %v11150_v54 = vld [vmem:[#allocation2 + $0x24] sm:$0xff]  ;;  %v5301_v10 = vshrl.u32 %v5186_v34, 16  ;;  %v5304_v59 = vshll.u32 %v5186_v34, 16  ;;  %v7120_v5 = vpack.c.b16 %v7091_v2, %v7090_v40 }
 0x3a9   : > { %v5125_v50 = vsel %vm13548_vm14, 0, %v5124_v47  ;;  %v4429_v33 = vpop.f32.mrf.mxu0  ;;  %v2298_v3 = vrot.slane %v11454_v12, 5  ;;  %v4649_v21 = vshll.u32 %v4539_v46, 16  ;;  %v5310_v35 = vshll.u32 %v5187_v60, 16 }
 0x3aa   : > { %5126 = vst [vmem:[#allocation2 + $0x2c] sm:$0x1] %v5125_v50  ;;  %v4648_v57 = vrot.slane %v4646_v13, 7  ;;  %v4430_v16 = vadd.f32 %v4429_v33, %v13142_v19  ;;  %v5303_v49 = vrot.slane %v5301_v10, 4  ;;  %v5306_v29 = vrot.slane %v5304_v59, 5 }
 0x3ab   : > { %8406 = vmatmul.bf16.gmra.mxu3 %v7184_v53  ;;  %v5314_v24 = vshrl.u32 %v5187_v60, 16  ;;  %8233 = vmatmul.bf16.gmra.mxu1 %v11150_v54  ;;  %v5699_v34 = vrot.slane %v5187_v60, 5  ;;  %v5312_v46 = vrot.slane %v5310_v35, 5  ;;  %v2299_v19 = vsel %vm11777_vm5, %v2297_v63, %v2298_v3 }
 0x3ac   : > { %v4651_v8 = vor.u32 %v4649_v21, %v4648_v57  ;;  %v4653_v39 = vrot.slane %v4648_v57, 4  ;;  %v4504_v32 = vmax.f32 %v4430_v16, 0.0  ;;  %4468 = vmatmul.bf16.gmra.mxu0 %v3000_v9  ;;  %v5307_v47 = vor.u32 %v5306_v29, %v5303_v49  ;;  %v4969_v49 = vld [vmem:[#allocation2 + $0x3c] sm:$0xf]  ;;  %v13720_v29 = vld [vmem:[%s11565_s14 + $0xd0] sm:$0xf] }
 0x3ad   : > { %v5316_v13 = vrot.slane %v5314_v24, 4  ;;  %8317 = vmatmul.bf16.gmra.mxu2 %v7120_v5  ;;  %v4140_v9 = vadd.f32 %v13099_v37, %v13207_v55  ;;  %v10445_v54 = vrot.slane %v5615_v17, 9  ;;  %v5701_v63 = vrot.slane %v5699_v34, 4  ;;  %v13727_v17 = vld [vmem:[%s11565_s14 + $0xcc] sm:$0xe] }
 0x3ae   : > { %v5072_v53 = vld [vmem:[#allocation2 + $0x30] sm:$0x1]  ;;  %v4652_v40 = vsel %vm13516_vm12, %v4644_v61, %v4651_v8  ;;  %v4967_v2 = vsel %vm13523_vm13, %v4653_v39, %v4966_v38  ;;  %v4540_v10 = vpack.c.bf16 %v4504_v32, %v4504_v32  ;;  %v2979_v33 = vunpack.c.l.b16 %v13692_v6 }
 0x3af   : > { %v5073_v60 = vsel %vm13523_vm13, 0, %v5072_v53  ;;  %4965 = vst [vmem:[#allocation2 + $0x34] sm:$0xf] %v4652_v40  ;;  %v2980_v61 = vunpack.c.l.b16 %v2299_v19  ;;  %v5700_v37 = vsel %vm11777_vm5, %v10445_v54, %v5699_v34  ;;  %v5308_v55 = vrot.slane %v5307_v47, 4 }
 0x3b0   : > { %5074 = vst [vmem:[#allocation2 + $0x30] sm:$0x1] %v5073_v60  ;;  %v4655_v50 = vshrl.u32 %v4540_v10, 16  ;;  %v4658_v59 = vshll.u32 %v4540_v10, 16  ;;  %v5317_v57 = vor.u32 %v5316_v13, %v5312_v46  ;;  %v4336_v6 = vadd.f32 %v13390_v62, %v13191_v27  ;;  %v13732_v13 = vpop.f32.mrf.mxu3 }
 0x3b1   : > { %4968 = vst [vmem:[#allocation2 + $0x38] sm:$0x1] %v4967_v2  ;;  %v4431_v12 = vpop.f32.mrf.mxu0  ;;  %v5215_v3 = vld [vmem:[#allocation2 + $0x2c] sm:$0x1]  ;;  %v2302_v35 = vrot.slane %v13720_v29, 5  ;;  %v7156_v32 = vunpack.c.l.b16 %v5700_v37  ;;  %v5313_v34 = vsel %vm11592_vm2, %v5308_v55, %v5312_v46  ;;  %v4239_v62 = vadd.f32 %v13095_v4, %v4140_v9 }
 0x3b2   : > { %v13714_v21 = vrot.slane %v4655_v50, 7  ;;  %v4432_v16 = vadd.f32 %v4431_v12, %v13168_v52  ;;  %v5702_v5 = vrot.slane %v5215_v3, 5  ;;  %v5320_v38 = vshll.u32 %v5215_v3, 16 }
 0x3b3   : > { %v5318_v47 = vrot.slane %v5317_v57, 4  ;;  %v3001_v40 = vpack.c.b16 %v2980_v61, %v2979_v33  ;;  %v9935_v54 = vrot.slane %v13727_v17, 9  ;;  %v2304_v4 = vrot.slane %v2302_v35, 4  ;;  %v11456_v57 = vld [vmem:[%s11565_s14 + $0xd4] sm:$0x1] }
 0x3b4   : > { %v4660_v24 = vor.u32 %v4658_v59, %v13714_v21  ;;  %v4505_v8 = vmax.f32 %v4432_v16, 0.0  ;;  %v5703_v39 = vsel %vm11777_vm5, %v5701_v63, %v5702_v5  ;;  %v5322_v27 = vrot.slane %v5320_v38, 5 }
 0x3b5   : > { %v7157_v52 = vunpack.c.l.b16 %v5703_v39  ;;  %v7092_v63 = vunpack.c.l.b16 %v5313_v34  ;;  %v2305_v16 = vrot.slane %v11456_v57, 5  ;;  %v4661_v34 = vrot.slane %v13714_v21, 4 }
 0x3b6   : > { %v4970_v19 = vsel %vm13501_vm8, %v4660_v24, %v4969_v49  ;;  %v4541_v53 = vpack.c.bf16 %v4505_v8, %v4505_v8  ;;  %v13736_v2 = vld [vmem:[#allocation2 + $0x34] sm:$0xf]  ;;  %v5323_v60 = vsel %vm11592_vm2, %v5318_v47, %v5322_v27  ;;  %v4973_v8 = vld [vmem:[#allocation2 + $0x44] sm:$0x1]  ;;  %v4338_v21 = vadd.f32 %v13406_v14, %v4239_v62  ;;  %v11224_v62 = vld [vmem:[%s15550_s3 + $0xe8] sm:$0xff] }
 0x3b7   : > { %4971 = vst [vmem:[#allocation2 + $0x3c] sm:$0xf] %v4970_v19  ;;  %v7185_v10 = vpack.c.b16 %v7157_v52, %v7156_v32  ;;  %v5188_v46 = vld [vmem:[#allocation2 + $0x30] sm:$0xf]  ;;  %v7093_v59 = vunpack.c.l.b16 %v5323_v60  ;;  %v5706_v37 = vrot.slane %v13736_v2, 5  ;;  %v5334_v17 = vshll.u32 %v13736_v2, 16  ;;  %8479 = vmatpush.bf16.msrb.mxu1 %v11224_v62 }
 0x3b8   : > { %v5127_v9 = vld [vmem:[#allocation2 + $0x38] sm:$0x1]  ;;  %v4663_v50 = vshrl.u32 %v4541_v53, 16  ;;  %v11151_v12 = vld [vmem:[#allocation2 + $0x30] sm:$0xff]  ;;  %v5325_v33 = vshrl.u32 %v5188_v46, 16  ;;  %v5328_v55 = vshll.u32 %v5188_v46, 16  ;;  %v2306_v14 = vsel %vm11777_vm5, %v2304_v4, %v2305_v16 }
 0x3b9   : > { %v5128_v61 = vsel %vm13548_vm14, 0, %v5127_v9  ;;  %v4434_v3 = vpop.f32.mrf.mxu0  ;;  %v4666_v38 = vshll.u32 %v4541_v53, 16  ;;  %v7121_v24 = vpack.c.b16 %v7093_v59, %v7092_v63  ;;  %v5338_v52 = vshrl.u32 %v13736_v2, 16  ;;  %v5616_v60 = vld [vmem:[#allocation2 + $0x30] sm:$0xe] }
 0x3ba   : > { %5129 = vst [vmem:[#allocation2 + $0x38] sm:$0x1] %v5128_v61  ;;  %v4665_v5 = vrot.slane %v4663_v50, 7  ;;  %v4435_v49 = vadd.f32 %v4434_v3, %v4336_v6  ;;  %v5327_v39 = vrot.slane %v5325_v33, 4  ;;  %v5330_v32 = vrot.slane %v5328_v55, 5  ;;  %v11232_v61 = vld [vmem:[%s15550_s3 + $0x128] sm:$0xff] }
 0x3bb   : > { %8411 = vmatmul.bf16.gmra.mxu3 %v7185_v10  ;;  %8238 = vmatmul.bf16.gmra.mxu1 %v11151_v12  ;;  %v13750_v53 = vrot.slane %v5334_v17, 5  ;;  %v5340_v6 = vrot.slane %v5338_v52, 4  ;;  %v10446_v63 = vrot.slane %v5616_v60, 9  ;;  %v5708_v59 = vrot.slane %v5706_v37, 4  ;;  %v13759_v12 = vpop.f32.mrf.mxu3  ;;  %v13774_v55 = vld [vmem:[%s11565_s14 + $0xdc] sm:$0xf] }
 0x3bc   : > { %v4668_v47 = vor.u32 %v4666_v38, %v4665_v5  ;;  %v4670_v27 = vrot.slane %v4665_v5, 4  ;;  %v4506_v19 = vmax.f32 %v4435_v49, 0.0  ;;  %4473 = vmatmul.bf16.gmra.mxu0 %v3001_v40  ;;  %v5331_v46 = vor.u32 %v5330_v32, %v5327_v39  ;;  %8568 = vmatpush.bf16.msrb.mxu2 %v11232_v61  ;;  %v11250_v39 = vld [vmem:[%s15550_s3 + $0x1b8] sm:$0xff]  ;;  %v4976_v17 = vld [vmem:[#allocation2 + $0x48] sm:$0xf] }
 0x3bd   : > { %8322 = vmatmul.bf16.gmra.mxu2 %v7121_v24  ;;  %v2303_v3 = vsel %vm11777_vm5, %v9935_v54, %v2302_v35  ;;  %v2309_v57 = vrot.slane %v13774_v55, 5  ;;  %v5707_v29 = vsel %vm11777_vm5, %v10446_v63, %v5706_v37  ;;  %v5341_v54 = vor.u32 %v5340_v6, %v13750_v53  ;;  %8744 = vmatpush.bf16.msra.mxu0 %v11250_v39 }
 0x3be   : > { %v5075_v9 = vld [vmem:[#allocation2 + $0x3c] sm:$0x1]  ;;  %v4669_v10 = vsel %vm13516_vm12, %v4661_v34, %v4668_v47  ;;  %v4974_v2 = vsel %vm13523_vm13, %v4670_v27, %v4973_v8  ;;  %v4542_v50 = vpack.c.bf16 %v4506_v19, %v4506_v19  ;;  %v5332_v35 = vrot.slane %v5331_v46, 4  ;;  %v13790_v47 = vld [vmem:[%s11565_s14 + $0xd8] sm:$0xe] }
 0x3bf   : > { %v5076_v40 = vsel %vm13523_vm13, 0, %v5075_v9  ;;  %4972 = vst [vmem:[#allocation2 + $0x40] sm:$0xf] %v4669_v10  ;;  %v4341_v32 = vadd.f32 %v13424_v18, %v13236_v36  ;;  %v4145_v37 = vadd.f32 %v13160_v56, %v13255_v28  ;;  %v2981_v52 = vunpack.c.l.b16 %v2303_v3  ;;  %v11249_v28 = vld [vmem:[%s15550_s3 + $0x1b0] sm:$0xff] }
 0x3c0   : > { %5077 = vst [vmem:[#allocation2 + $0x3c] sm:$0x1] %v5076_v40  ;;  %v4672_v33 = vshrl.u32 %v4542_v50, 16  ;;  %v4675_v5 = vshll.u32 %v4542_v50, 16  ;;  %v2982_v34 = vunpack.c.l.b16 %v2306_v14  ;;  %v7158_v46 = vunpack.c.l.b16 %v5707_v29 }
 0x3c1   : > { %4975 = vst [vmem:[#allocation2 + $0x44] sm:$0x1] %v4974_v2  ;;  %v4436_v38 = vpop.f32.mrf.mxu0  ;;  %v5216_v49 = vld [vmem:[#allocation2 + $0x38] sm:$0x1]  ;;  %v5337_v36 = vsel %vm11592_vm2, %v5332_v35, %v13750_v53  ;;  %v5342_v18 = vrot.slane %v5341_v54, 4  ;;  %v9936_v2 = vrot.slane %v13790_v47, 9  ;;  %8745 = vmatpush.bf16.msra.mxu0 %v11249_v28 }
 0x3c2   : > { %v13780_v4 = vrot.slane %v4672_v33, 7  ;;  %v4437_v16 = vadd.f32 %v4436_v38, %v4338_v21  ;;  %v5709_v24 = vrot.slane %v5216_v49, 5  ;;  %v5344_v8 = vshll.u32 %v5216_v49, 16  ;;  %v11458_v54 = vld [vmem:[%s11565_s14 + $0xe0] sm:$0x1] }
 0x3c3   : > { %v2311_v50 = vrot.slane %v2309_v57, 4  ;;  %v4244_v21 = vadd.f32 %v13155_v58, %v4145_v37  ;;  %v3002_v63 = vpack.c.b16 %v2982_v34, %v2981_v52  ;;  %v7094_v14 = vunpack.c.l.b16 %v5337_v36  ;;  %v4980_v34 = vld [vmem:[#allocation2 + $0x50] sm:$0x1]  ;;  %v5617_v36 = vld [vmem:[#allocation2 + $0x3c] sm:$0xe] }
 0x3c4   : > { %v4677_v27 = vor.u32 %v4675_v5, %v13780_v4  ;;  %v4507_v19 = vmax.f32 %v4437_v16, 0.0  ;;  %v5710_v60 = vsel %vm11777_vm5, %v5708_v59, %v5709_v24  ;;  %v5346_v56 = vrot.slane %v5344_v8, 5  ;;  %v11248_v24 = vld [vmem:[%s15550_s3 + $0x1a8] sm:$0xff]  ;;  %v13816_v8 = vpop.f32.mrf.mxu3 }
 0x3c5   : > { %v7159_v6 = vunpack.c.l.b16 %v5710_v60  ;;  %v4678_v58 = vrot.slane %v13780_v4, 4  ;;  %v2312_v16 = vrot.slane %v11458_v54, 5  ;;  %8746 = vmatpush.bf16.msra.mxu0 %v11248_v24  ;;  %v4346_v24 = vadd.f32 %v13445_v48, %v13272_v1  ;;  %v11245_v48 = vld [vmem:[%s15550_s3 + $0x190] sm:$0xff] }
 0x3c6   : > { %v4977_v9 = vsel %vm13501_vm8, %v4677_v27, %v4976_v17  ;;  %v4543_v10 = vpack.c.bf16 %v4507_v19, %v4507_v19  ;;  %v5347_v53 = vsel %vm11592_vm2, %v5342_v18, %v5346_v56  ;;  %v5191_v59 = vld [vmem:[#allocation2 + $0x40] sm:$0xf] }
 0x3c7   : > { %4978 = vst [vmem:[#allocation2 + $0x48] sm:$0xf] %v4977_v9  ;;  %v7186_v40 = vpack.c.b16 %v7159_v6, %v7158_v46  ;;  %v5190_v33 = vld [vmem:[#allocation2 + $0x3c] sm:$0xf]  ;;  %v7095_v62 = vunpack.c.l.b16 %v5347_v53  ;;  %v5358_v4 = vshll.u32 %v5191_v59, 16  ;;  %v5362_v19 = vshrl.u32 %v5191_v59, 16 }
 0x3c8   : > { %v5130_v61 = vld [vmem:[#allocation2 + $0x44] sm:$0x1]  ;;  %v4680_v3 = vshrl.u32 %v4543_v10, 16  ;;  %v11152_v5 = vld [vmem:[#allocation2 + $0x3c] sm:$0xff]  ;;  %v5349_v38 = vshrl.u32 %v5190_v33, 16  ;;  %v5352_v35 = vshll.u32 %v5190_v33, 16 }
 0x3c9   : > { %v5131_v49 = vsel %vm13548_vm14, 0, %v5130_v61  ;;  %v4439_v29 = vpop.f32.mrf.mxu0  ;;  %v4683_v37 = vshll.u32 %v4543_v10, 16  ;;  %v7122_v52 = vpack.c.b16 %v7095_v62, %v7094_v14  ;;  %v5713_v18 = vrot.slane %v5191_v59, 5 }
 0x3ca   : > { %5132 = vst [vmem:[#allocation2 + $0x44] sm:$0x1] %v5131_v49  ;;  %v4682_v39 = vrot.slane %v4680_v3, 7  ;;  %v4440_v17 = vadd.f32 %v4439_v29, %v4341_v32  ;;  %v5351_v47 = vrot.slane %v5349_v38, 4  ;;  %v5354_v27 = vrot.slane %v5352_v35, 5  ;;  %v11247_v32 = vld [vmem:[%s15550_s3 + $0x1a0] sm:$0xff] }
 0x3cb   : > { %8416 = vmatmul.bf16.gmra.mxu3 %v7186_v40  ;;  %8243 = vmatmul.bf16.gmra.mxu1 %v11152_v5  ;;  %v13818_v28 = vrot.slane %v5358_v4, 5  ;;  %v5364_v9 = vrot.slane %v5362_v19, 4  ;;  %v4343_v59 = vadd.f32 %v13430_v22, %v4244_v21  ;;  %v10447_v61 = vrot.slane %v5617_v36, 9  ;;  %v13837_v38 = vld [vmem:[%s11565_s14 + $0xe8] sm:$0xf] }
 0x3cc   : > { %v4685_v60 = vor.u32 %v4683_v37, %v4682_v39  ;;  %v4687_v46 = vrot.slane %v4682_v39, 4  ;;  %v4508_v6 = vmax.f32 %v4440_v17, 0.0  ;;  %4478 = vmatmul.bf16.gmra.mxu0 %v3002_v63  ;;  %v5355_v56 = vor.u32 %v5354_v27, %v5351_v47  ;;  %v4983_v37 = vld [vmem:[#allocation2 + $0x54] sm:$0xf]  ;;  %v13855_v47 = vpop.f32.mrf.mxu3 }
 0x3cd   : > { %8327 = vmatmul.bf16.gmra.mxu2 %v7122_v52  ;;  %v2310_v3 = vsel %vm11777_vm5, %v9936_v2, %v2309_v57  ;;  %v5715_v62 = vrot.slane %v5713_v18, 4  ;;  %v2313_v5 = vsel %vm11777_vm5, %v2311_v50, %v2312_v16  ;;  %v2316_v22 = vrot.slane %v13837_v38, 5  ;;  %8747 = vmatpush.bf16.msra.mxu0 %v11247_v32  ;;  %v11246_v16 = vld [vmem:[%s15550_s3 + $0x198] sm:$0xff] }
 0x3ce   : > { %v5078_v10 = vld [vmem:[#allocation2 + $0x48] sm:$0x1]  ;;  %v4686_v40 = vsel %vm13516_vm12, %v4678_v58, %v4685_v60  ;;  %v4981_v53 = vsel %vm13523_vm13, %v4687_v46, %v4980_v34  ;;  %v4544_v63 = vpack.c.bf16 %v4508_v6, %v4508_v6  ;;  %v5714_v55 = vsel %vm11777_vm5, %v10447_v61, %v5713_v18  ;;  %v13853_v34 = vld [vmem:[%s11565_s14 + $0xe4] sm:$0xe] }
 0x3cf   : > { %v5079_v33 = vsel %vm13523_vm13, 0, %v5078_v10  ;;  %4979 = vst [vmem:[#allocation2 + $0x4c] sm:$0xf] %v4686_v40  ;;  %v5356_v29 = vrot.slane %v5355_v56, 4  ;;  %v5365_v57 = vor.u32 %v5364_v9, %v13818_v28  ;;  %v4150_v39 = vadd.f32 %v13216_v23, %v13283_v51  ;;  %v15713_v9 = vld [vmem:[#allocation9_spill] sm:$0xff] }
 0x3d0   : > { %5080 = vst [vmem:[#allocation2 + $0x48] sm:$0x1] %v5079_v33  ;;  %v4689_v14 = vshrl.u32 %v4544_v63, 16  ;;  %v4692_v21 = vshll.u32 %v4544_v63, 16  ;;  %v2983_v17 = vunpack.c.l.b16 %v2310_v3  ;;  %v2984_v52 = vunpack.c.l.b16 %v2313_v5 }
 0x3d1   : > { %4982 = vst [vmem:[#allocation2 + $0x50] sm:$0x1] %v4981_v53  ;;  %v4441_v49 = vpop.f32.mrf.mxu0  ;;  %v5217_v58 = vld [vmem:[#allocation2 + $0x44] sm:$0x1]  ;;  %v7160_v60 = vunpack.c.l.b16 %v5714_v55  ;;  %v5361_v1 = vsel %vm11592_vm2, %v5356_v29, %v13818_v28  ;;  %v5366_v23 = vrot.slane %v5365_v57, 4  ;;  %8748 = vmatpush.bf16.msra.mxu0 %v11246_v16  ;;  %v9937_v18 = vrot.slane %v13853_v34, 9 }
 0x3d2   : > { %v13843_v2 = vrot.slane %v4689_v14, 7  ;;  %v4442_v35 = vadd.f32 %v4441_v49, %v4343_v59  ;;  %v5716_v50 = vrot.slane %v5217_v58, 5  ;;  %v5368_v54 = vshll.u32 %v5217_v58, 16  ;;  %v11460_v55 = vld [vmem:[%s11565_s14 + $0xec] sm:$0x1] }
 0x3d3   : > { %v2318_v56 = vrot.slane %v2316_v22, 4  ;;  %v4249_v32 = vadd.f32 %v15713_v9, %v4150_v39  ;;  %v3003_v40 = vpack.c.b16 %v2984_v52, %v2983_v17  ;;  %v7096_v61 = vunpack.c.l.b16 %v5361_v1  ;;  %v11244_v57 = vld [vmem:[%s15550_s3 + $0x188] sm:$0xff]  ;;  %v4987_v39 = vld [vmem:[#allocation2 + $0x5c] sm:$0x1] }
 0x3d4   : > { %v4694_v27 = vor.u32 %v4692_v21, %v13843_v2  ;;  %v4509_v4 = vmax.f32 %v4442_v35, 0.0  ;;  %v5717_v19 = vsel %vm11777_vm5, %v5715_v62, %v5716_v50  ;;  %v5370_v51 = vrot.slane %v5368_v54, 5 }
 0x3d5   : > { %v7161_v46 = vunpack.c.l.b16 %v5717_v19  ;;  %v4695_v21 = vrot.slane %v13843_v2, 4  ;;  %v2319_v29 = vrot.slane %v11460_v55, 5  ;;  %8749 = vmatpush.bf16.msra.mxu0 %v11245_v48  ;;  %v5618_v19 = vld [vmem:[#allocation2 + $0x48] sm:$0xe] }
 0x3d6   : > { %v4984_v6 = vsel %vm13501_vm8, %v4694_v27, %v4983_v37  ;;  %v4545_v36 = vpack.c.bf16 %v4509_v4, %v4509_v4  ;;  %v5371_v10 = vsel %vm11592_vm2, %v5366_v23, %v5370_v51  ;;  %v5193_v53 = vld [vmem:[#allocation2 + $0x4c] sm:$0xf]  ;;  %v13884_v51 = vpop.f32.mrf.mxu3 }
 0x3d7   : > { %4985 = vst [vmem:[#allocation2 + $0x54] sm:$0xf] %v4984_v6  ;;  %v7187_v28 = vpack.c.b16 %v7161_v46, %v7160_v60  ;;  %v5192_v63 = vld [vmem:[#allocation2 + $0x48] sm:$0xf]  ;;  %v7097_v3 = vunpack.c.l.b16 %v5371_v10  ;;  %v5382_v52 = vshll.u32 %v5193_v53, 16  ;;  %v5386_v2 = vshrl.u32 %v5193_v53, 16 }
 0x3d8   : > { %v5133_v59 = vld [vmem:[#allocation2 + $0x50] sm:$0x1]  ;;  %v4697_v33 = vshrl.u32 %v4545_v36, 16  ;;  %v11153_v14 = vld [vmem:[#allocation2 + $0x48] sm:$0xff]  ;;  %v5373_v62 = vshrl.u32 %v5192_v63, 16  ;;  %v5376_v58 = vshll.u32 %v5192_v63, 16 }
 0x3d9   : > { %v5134_v5 = vsel %vm13548_vm14, 0, %v5133_v59  ;;  %v4444_v49 = vpop.f32.mrf.mxu0  ;;  %v4700_v50 = vshll.u32 %v4545_v36, 16  ;;  %v7123_v16 = vpack.c.b16 %v7097_v3, %v7096_v61  ;;  %v5720_v60 = vrot.slane %v5193_v53, 5  ;;  %8750 = vmatpush.bf16.msra.mxu0 %v11244_v57  ;;  %v11231_v59 = vld [vmem:[%s15550_s3 + $0x120] sm:$0xff] }
 0x3da   : > { %5135 = vst [vmem:[#allocation2 + $0x50] sm:$0x1] %v5134_v5  ;;  %v4699_v35 = vrot.slane %v4697_v33, 7  ;;  %v4445_v54 = vadd.f32 %v4444_v49, %v4346_v24  ;;  %v5375_v37 = vrot.slane %v5373_v62, 4  ;;  %v5378_v17 = vrot.slane %v5376_v58, 5  ;;  %v11243_v24 = vld [vmem:[%s15550_s3 + $0x180] sm:$0xff]  ;;  %8569 = vmatpush.bf16.msrb.mxu2 %v11231_v59 }
 0x3db   : > { %8421 = vmatmul.bf16.gmra.mxu3 %v7187_v28  ;;  %8248 = vmatmul.bf16.gmra.mxu1 %v11153_v14  ;;  %v5384_v1 = vrot.slane %v5382_v52, 5  ;;  %v5388_v23 = vrot.slane %v5386_v2, 4  ;;  %v4348_v28 = vadd.f32 %v13463_v43, %v4249_v32  ;;  %v5722_v63 = vrot.slane %v5720_v60, 4  ;;  %v11223_v32 = vld [vmem:[%s15550_s3 + $0xe0] sm:$0xff] }
 0x3dc   : > { %v4702_v34 = vor.u32 %v4700_v50, %v4699_v35  ;;  %v4704_v27 = vrot.slane %v4699_v35, 4  ;;  %v4510_v4 = vmax.f32 %v4445_v54, 0.0  ;;  %4483 = vmatmul.bf16.gmra.mxu0 %v3003_v40  ;;  %v5379_v46 = vor.u32 %v5378_v17, %v5375_v37  ;;  %8480 = vmatpush.bf16.msrb.mxu1 %v11223_v32  ;;  %v4990_v58 = vld [vmem:[#allocation2 + $0x60] sm:$0xf] }
 0x3dd   : > { %8332 = vmatmul.bf16.gmra.mxu2 %v7123_v16  ;;  %v10448_v40 = vrot.slane %v5618_v19, 9  ;;  %v2317_v33 = vsel %vm11777_vm5, %v9937_v18, %v2316_v22  ;;  %v2320_v43 = vsel %vm11777_vm5, %v2318_v56, %v2319_v29  ;;  %8751 = vmatpush.bf16.msra.mxu0 %v11243_v24  ;;  %v4155_v56 = vadd.f32 %v13261_v0, %v13302_v30 }
 0x3de   : > { %v5081_v48 = vld [vmem:[#allocation2 + $0x54] sm:$0x1]  ;;  %v4703_v6 = vsel %vm13516_vm12, %v4695_v21, %v4702_v34  ;;  %v4988_v36 = vsel %vm13523_vm13, %v4704_v27, %v4987_v39  ;;  %v4546_v9 = vpack.c.bf16 %v4510_v4, %v4510_v4  ;;  %v5380_v5 = vrot.slane %v5379_v46, 4 }
 0x3df   : > { %v5082_v10 = vsel %vm13523_vm13, 0, %v5081_v48  ;;  %4986 = vst [vmem:[#allocation2 + $0x58] sm:$0xf] %v4703_v6  ;;  %v5721_v62 = vsel %vm11777_vm5, %v10448_v40, %v5720_v60  ;;  %v5389_v21 = vor.u32 %v5388_v23, %v5384_v1  ;;  %v2985_v55 = vunpack.c.l.b16 %v2317_v33  ;;  %v13922_v60 = vpop.f32.mrf.mxu3  ;;  %v4994_v33 = vld [vmem:[#allocation2 + $0x68] sm:$0x1] }
 0x3e0   : > { %5083 = vst [vmem:[#allocation2 + $0x54] sm:$0x1] %v5082_v10  ;;  %v4706_v53 = vshrl.u32 %v4546_v9, 16  ;;  %v4709_v61 = vshll.u32 %v4546_v9, 16  ;;  %v2986_v29 = vunpack.c.l.b16 %v2320_v43  ;;  %v7162_v54 = vunpack.c.l.b16 %v5721_v62 }
 0x3e1   : > { %4989 = vst [vmem:[#allocation2 + $0x5c] sm:$0x1] %v4988_v36  ;;  %v4446_v3 = vpop.f32.mrf.mxu0  ;;  %v5218_v14 = vld [vmem:[#allocation2 + $0x50] sm:$0x1]  ;;  %v5385_v39 = vsel %vm11592_vm2, %v5380_v5, %v5384_v1  ;;  %v5390_v37 = vrot.slane %v5389_v21, 4  ;;  %v4351_v30 = vadd.f32 %v13483_v20, %v13295_v41 }
 0x3e2   : > { %v13907_v38 = vrot.slane %v4706_v53, 7  ;;  %v4447_v22 = vadd.f32 %v4446_v3, %v4348_v28  ;;  %v5723_v18 = vrot.slane %v5218_v14, 5  ;;  %v5392_v49 = vshll.u32 %v5218_v14, 16  ;;  %v15714_v36 = vld [vmem:[#allocation10_spill] sm:$0xff] }
 0x3e3   : > { %v3004_v27 = vpack.c.b16 %v2986_v29, %v2985_v55  ;;  %v7098_v23 = vunpack.c.l.b16 %v5385_v39  ;;  %v4254_v9 = vadd.f32 %v15714_v36, %v4155_v56  ;;  %v5619_v21 = vld [vmem:[#allocation2 + $0x54] sm:$0xe] }
 0x3e4   : > { %v4711_v57 = vor.u32 %v4709_v61, %v13907_v38  ;;  %v4511_v35 = vmax.f32 %v4447_v22, 0.0  ;;  %v5724_v50 = vsel %vm11777_vm5, %v5722_v63, %v5723_v18  ;;  %v5394_v17 = vrot.slane %v5392_v49, 5 }
 0x3e5   : > { %v7163_v16 = vunpack.c.l.b16 %v5724_v50  ;;  %v4712_v20 = vrot.slane %v13907_v38, 4  ;;  %v15715_v50 = vld [vmem:[#allocation3_spill] sm:$0xff] }
 0x3e6   : > { %v4991_v52 = vsel %vm13501_vm8, %v4711_v57, %v4990_v58  ;;  %v4547_v0 = vpack.c.bf16 %v4511_v35, %v4511_v35  ;;  %v5395_v34 = vsel %vm11592_vm2, %v5390_v37, %v5394_v17  ;;  %v5195_v4 = vld [vmem:[#allocation2 + $0x58] sm:$0xf]  ;;  %v10449_v35 = vrot.slane %v5619_v21, 9  ;;  %v13935_v37 = vpop.f32.mrf.mxu1 }
 0x3e7   : > { %4992 = vst [vmem:[#allocation2 + $0x60] sm:$0xf] %v4991_v52  ;;  %v7188_v2 = vpack.c.b16 %v7163_v16, %v7162_v54  ;;  %v5194_v19 = vld [vmem:[#allocation2 + $0x54] sm:$0xf]  ;;  %v7099_v24 = vunpack.c.l.b16 %v5395_v34  ;;  %v5406_v61 = vshll.u32 %v5195_v4, 16  ;;  %v5410_v3 = vshrl.u32 %v5195_v4, 16 }
 0x3e8   : > { %v5136_v46 = vld [vmem:[#allocation2 + $0x5c] sm:$0x1]  ;;  %v4714_v1 = vshrl.u32 %v4547_v0, 16  ;;  %v11154_v48 = vld [vmem:[#allocation2 + $0x54] sm:$0xff]  ;;  %v5397_v6 = vshrl.u32 %v5194_v19, 16  ;;  %v5400_v10 = vshll.u32 %v5194_v19, 16  ;;  %v4353_v54 = vadd.f32 %v15715_v50, %v4254_v9 }
 0x3e9   : > { %v5137_v41 = vsel %vm13548_vm14, 0, %v5136_v46  ;;  %v4449_v28 = vpop.f32.mrf.mxu0  ;;  %v4717_v53 = vshll.u32 %v4547_v0, 16  ;;  %v7124_v59 = vpack.c.b16 %v7099_v24, %v7098_v23  ;;  %v5727_v38 = vrot.slane %v5195_v4, 5  ;;  %v15716_v23 = vld [vmem:[#allocation14_spill] sm:$0xff] }
 0x3ea   : > { %5138 = vst [vmem:[#allocation2 + $0x5c] sm:$0x1] %v5137_v41  ;;  %v4716_v40 = vrot.slane %v4714_v1, 7  ;;  %v4450_v63 = vadd.f32 %v4449_v28, %v4351_v30  ;;  %v5399_v43 = vrot.slane %v5397_v6, 4  ;;  %v5402_v32 = vrot.slane %v5400_v10, 5  ;;  %v15717_v24 = vld [vmem:[#allocation42_spill] sm:$0xff] }
 0x3eb   : > { %8426 = vmatmul.bf16.gmra.mxu3 %v7188_v2  ;;  %8253 = vmatmul.bf16.gmra.mxu1 %v11154_v48  ;;  %v5408_v18 = vrot.slane %v5406_v61, 5  ;;  %v5412_v49 = vrot.slane %v5410_v3, 4  ;;  %v5729_v39 = vrot.slane %v5727_v38, 4  ;;  %v5728_v30 = vsel %vm11777_vm5, %v10449_v35, %v5727_v38  ;;  %v4997_v6 = vld [vmem:[#allocation2 + $0x6c] sm:$0xf] }
 0x3ec   : > { %v4719_v14 = vor.u32 %v4717_v53, %v4716_v40  ;;  %v4721_v62 = vrot.slane %v4716_v40, 4  ;;  %v4512_v5 = vmax.f32 %v4450_v63, 0.0  ;;  %4488 = vmatmul.bf16.gmra.mxu0 %v3004_v27  ;;  %v5403_v22 = vor.u32 %v5402_v32, %v5399_v43  ;;  %v13939_v27 = vpop.f32.mrf.mxu3  ;;  %v15719_v43 = vld [vmem:[#allocation31_spill] sm:$0xff] }
 0x3ed   : > { %8337 = vmatmul.bf16.gmra.mxu2 %v7124_v59  ;;  %v5413_v34 = vor.u32 %v5412_v49, %v5408_v18  ;;  %v4160_v48 = vadd.f32 %v15717_v24, %v15716_v23 }
 0x3ee   : > { %v5084_v56 = vld [vmem:[#allocation2 + $0x60] sm:$0x1]  ;;  %v4720_v58 = vsel %vm13516_vm12, %v4712_v20, %v4719_v14  ;;  %v4995_v55 = vsel %vm13523_vm13, %v4721_v62, %v4994_v33  ;;  %v4548_v29 = vpack.c.bf16 %v4512_v5, %v4512_v5  ;;  %v5404_v2 = vrot.slane %v5403_v22, 4  ;;  %v5620_v24 = vld [vmem:[#allocation2 + $0x60] sm:$0xe] }
 0x3ef   : > { %v5085_v57 = vsel %vm13523_vm13, 0, %v5084_v56  ;;  %4993 = vst [vmem:[#allocation2 + $0x64] sm:$0xf] %v4720_v58  ;;  %v7164_v20 = vunpack.c.l.b16 %v5728_v30  ;;  %v5414_v40 = vrot.slane %v5413_v34, 4  ;;  %v15718_v33 = vld [vmem:[#allocation12_spill] sm:$0xff]  ;;  %v15720_v56 = vld [vmem:[#allocation11_spill] sm:$0xff] }
 0x3f0   : > { %5086 = vst [vmem:[#allocation2 + $0x60] sm:$0x1] %v5085_v57  ;;  %v4723_v16 = vshrl.u32 %v4548_v29, 16  ;;  %v4726_v17 = vshll.u32 %v4548_v29, 16  ;;  %v5409_v10 = vsel %vm11592_vm2, %v5404_v2, %v5408_v18  ;;  %v4356_v32 = vadd.f32 %v15719_v43, %v15718_v33  ;;  %v11230_v43 = vld [vmem:[%s15550_s3 + $0x118] sm:$0xff] }
 0x3f1   : > { %4996 = vst [vmem:[#allocation2 + $0x68] sm:$0x1] %v4995_v55  ;;  %v4451_v52 = vpop.f32.mrf.mxu0  ;;  %v5219_v0 = vld [vmem:[#allocation2 + $0x5c] sm:$0x1]  ;;  %v7100_v38 = vunpack.c.l.b16 %v5409_v10  ;;  %v4259_v58 = vadd.f32 %v15720_v56, %v4160_v48  ;;  %8570 = vmatpush.bf16.msrb.mxu2 %v11230_v43 }
 0x3f2   : > { %v4725_v4 = vrot.slane %v4723_v16, 7  ;;  %v4452_v19 = vadd.f32 %v4451_v52, %v4353_v54  ;;  %v5730_v46 = vrot.slane %v5219_v0, 5  ;;  %v5416_v1 = vshll.u32 %v5219_v0, 16  ;;  %v5001_v0 = vld [vmem:[#allocation2 + $0x74] sm:$0x1] }
 0x3f4   : > { %v4728_v36 = vor.u32 %v4726_v17, %v4725_v4  ;;  %v4513_v9 = vmax.f32 %v4452_v19, 0.0  ;;  %v5731_v41 = vsel %vm11777_vm5, %v5729_v39, %v5730_v46  ;;  %v5418_v53 = vrot.slane %v5416_v1, 5  ;;  %v11179_v17 = vld [vmem:[#allocation2 + $0x18] sm:$0xff]  ;;  %v13958_v19 = vpop.f32.mrf.mxu3 }
 0x3f5   : > { %v7165_v28 = vunpack.c.l.b16 %v5731_v41  ;;  %v4729_v52 = vrot.slane %v4725_v4, 4 }
 0x3f6   : > { %v4998_v63 = vsel %vm13501_vm8, %v4728_v36, %v4997_v6  ;;  %v4549_v59 = vpack.c.bf16 %v4513_v9, %v4513_v9  ;;  %v5419_v3 = vsel %vm11592_vm2, %v5414_v40, %v5418_v53  ;;  %v5197_v14 = vld [vmem:[#allocation2 + $0x64] sm:$0xf]  ;;  %v10450_v53 = vrot.slane %v5620_v24, 9 }
 0x3f7   : > { %4999 = vst [vmem:[#allocation2 + $0x6c] sm:$0xf] %v4998_v63  ;;  %v7189_v61 = vpack.c.b16 %v7165_v28, %v7164_v20  ;;  %v5196_v62 = vld [vmem:[#allocation2 + $0x60] sm:$0xf]  ;;  %v7101_v22 = vunpack.c.l.b16 %v5419_v3  ;;  %v5430_v34 = vshll.u32 %v5197_v14, 16  ;;  %v5434_v48 = vshrl.u32 %v5197_v14, 16 }
 0x3f8   : > { %v5139_v5 = vld [vmem:[#allocation2 + $0x68] sm:$0x1]  ;;  %v4731_v21 = vshrl.u32 %v4549_v59, 16  ;;  %v11155_v18 = vld [vmem:[#allocation2 + $0x60] sm:$0xff]  ;;  %v5421_v49 = vshrl.u32 %v5196_v62, 16  ;;  %v13956_v29 = vpop.f32.mrf.mxu1  ;;  %v5424_v35 = vshll.u32 %v5196_v62, 16 }
 0x3f9   : > { %v5140_v55 = vsel %vm13548_vm14, 0, %v5139_v5  ;;  %v4454_v57 = vpop.f32.mrf.mxu0  ;;  %v4734_v54 = vshll.u32 %v4549_v59, 16  ;;  %v7125_v39 = vpack.c.b16 %v7101_v22, %v7100_v38  ;;  %v5734_v6 = vrot.slane %v5197_v14, 5  ;;  %v15721_v63 = vld [vmem:[#allocation5_spill] sm:$0xff] }
 0x3fa   : > { %5141 = vst [vmem:[#allocation2 + $0x68] sm:$0x1] %v5140_v55  ;;  %v4733_v50 = vrot.slane %v4731_v21, 7  ;;  %v4455_v16 = vadd.f32 %v4454_v57, %v4356_v32  ;;  %v5423_v30 = vrot.slane %v5421_v49, 4  ;;  %v5426_v2 = vrot.slane %v5424_v35, 5  ;;  %v11222_v32 = vld [vmem:[%s15550_s3 + $0xd8] sm:$0xff] }
 0x3fb   : > { %8431 = vmatmul.bf16.gmra.mxu3 %v7189_v61  ;;  %8258 = vmatmul.bf16.gmra.mxu1 %v11155_v18  ;;  %v5432_v9 = vrot.slane %v5430_v34, 5  ;;  %v5436_v10 = vrot.slane %v5434_v48, 4  ;;  %v4358_v59 = vadd.f32 %v15721_v63, %v4259_v58  ;;  %v5735_v62 = vsel %vm11777_vm5, %v10450_v53, %v5734_v6  ;;  %v15722_v58 = vld [vmem:[#allocation16_spill] sm:$0xff]  ;;  %v15723_v55 = vld [vmem:[#allocation41_spill] sm:$0xff]  ;;  %v5004_v35 = vld [vmem:[#allocation2 + $0x78] sm:$0xf] }
 0x3fc   : > { %v4736_v46 = vor.u32 %v4734_v54, %v4733_v50  ;;  %v4738_v1 = vrot.slane %v4733_v50, 4  ;;  %v4514_v23 = vmax.f32 %v4455_v16, 0.0  ;;  %8752 = vmatmul.bf16.vlgmr.msra.gmra.mxu0 %v11179_v17  ;;  %v5427_v36 = vor.u32 %v5426_v2, %v5423_v30  ;;  %8481 = vmatpush.bf16.msrb.mxu1 %v11222_v32  ;;  %v13986_v34 = vpop.f32.mrf.mxu3  ;;  %v15725_v63 = vld [vmem:[#allocation13_spill] sm:$0xff] }
 0x3fd   : > { %8342 = vmatmul.bf16.gmra.mxu2 %v7125_v39  ;;  %v5736_v5 = vrot.slane %v5734_v6, 4  ;;  %v5437_v38 = vor.u32 %v5436_v10, %v5432_v9  ;;  %v4165_v57 = vadd.f32 %v15723_v55, %v15722_v58  ;;  %v7166_v17 = vunpack.c.l.b16 %v5735_v62  ;;  %v11180_v32 = vld [vmem:[#allocation2 + $0x24] sm:$0xff] }
 0x3fe   : > { %v5087_v41 = vld [vmem:[#allocation2 + $0x6c] sm:$0x1]  ;;  %v4737_v4 = vsel %vm13516_vm12, %v4729_v52, %v4736_v46  ;;  %v5002_v20 = vsel %vm13523_vm13, %v4738_v1, %v5001_v0  ;;  %v4550_v28 = vpack.c.bf16 %v4514_v23, %v4514_v23  ;;  %v5428_v21 = vrot.slane %v5427_v36, 4  ;;  %v15724_v23 = vld [vmem:[#allocation15_spill] sm:$0xff] }
 0x3ff   : > { %v5088_v40 = vsel %vm13523_vm13, 0, %v5087_v41  ;;  %5000 = vst [vmem:[#allocation2 + $0x70] sm:$0xf] %v4737_v4  ;;  %v5438_v30 = vrot.slane %v5437_v38, 4  ;;  %v4361_v24 = vadd.f32 %v13582_v45, %v15724_v23  ;;  %v13994_v4 = vpop.f32.mrf.mxu2 }
 0x400   : > { %5089 = vst [vmem:[#allocation2 + $0x6c] sm:$0x1] %v5088_v40  ;;  %v4740_v33 = vshrl.u32 %v4550_v28, 16  ;;  %v13973_v61 = vpop.f32.mrf.mxu1  ;;  %v4743_v18 = vshll.u32 %v4550_v28, 16  ;;  %v5433_v0 = vsel %vm11592_vm2, %v5428_v21, %v5432_v9 }
 0x401   : > { %5003 = vst [vmem:[#allocation2 + $0x74] sm:$0x1] %v5002_v20  ;;  %v4456_v3 = vpop.f32.mrf.mxu0  ;;  %v5220_v14 = vld [vmem:[#allocation2 + $0x68] sm:$0x1]  ;;  %v7102_v28 = vunpack.c.l.b16 %v5433_v0 }
 0x402   : > { %v13977_v22 = vrot.slane %v4740_v33, 7  ;;  %v4457_v49 = vadd.f32 %v4456_v3, %v4358_v59  ;;  %v5737_v56 = vrot.slane %v5220_v14, 5  ;;  %v5440_v50 = vshll.u32 %v5220_v14, 16  ;;  %v14004_v14 = vld [vmem:[%s15551_s4] ss:$0 sm:$0xff] }
 0x403   : > { %v4264_v59 = vadd.f32 %v15725_v63, %v4165_v57 }
 0x404   : > { %v4745_v54 = vor.u32 %v4743_v18, %v13977_v22  ;;  %v4515_v16 = vmax.f32 %v4457_v49, 0.0  ;;  %v5738_v39 = vsel %vm11777_vm5, %v5736_v5, %v5737_v56  ;;  %v5442_v2 = vrot.slane %v5440_v50, 5  ;;  %v5008_v49 = vld [vmem:[#allocation2 + $0x80] sm:$0x1] }
 0x405   : > { %v7167_v52 = vunpack.c.l.b16 %v5738_v39  ;;  %v4746_v18 = vrot.slane %v13977_v22, 4  ;;  %v8220_v39 = vadd.f32 %v14004_v14, %v13956_v29 }
 0x406   : > { %v5005_v46 = vsel %vm13501_vm8, %v4745_v54, %v5004_v35  ;;  %v4551_v1 = vpack.c.bf16 %v4515_v16, %v4515_v16  ;;  %v5443_v6 = vsel %vm11592_vm2, %v5438_v30, %v5442_v2  ;;  %v5199_v36 = vld [vmem:[#allocation2 + $0x70] sm:$0xf]  ;;  %v5621_v54 = vld [vmem:[#allocation2 + $0x6c] sm:$0xe] }
 0x407   : > { %5006 = vst [vmem:[#allocation2 + $0x78] sm:$0xf] %v5005_v46  ;;  %v7190_v48 = vpack.c.b16 %v7167_v52, %v7166_v17  ;;  %v5198_v41 = vld [vmem:[#allocation2 + $0x6c] sm:$0xf]  ;;  %v7103_v10 = vunpack.c.l.b16 %v5443_v6  ;;  %v5454_v55 = vshll.u32 %v5199_v36, 16  ;;  %v5458_v16 = vshrl.u32 %v5199_v36, 16 }
 0x408   : > { %v5142_v9 = vld [vmem:[#allocation2 + $0x74] sm:$0x1]  ;;  %v4748_v20 = vshrl.u32 %v4551_v1, 16  ;;  %v11156_v40 = vld [vmem:[#allocation2 + $0x6c] sm:$0xff]  ;;  %v5445_v53 = vshrl.u32 %v5198_v41, 16  ;;  %v13999_v33 = vpop.f32.mrf.mxu1  ;;  %v5448_v3 = vshll.u32 %v5198_v41, 16 }
 0x409   : > { %v5143_v45 = vsel %vm13548_vm14, 0, %v5142_v9  ;;  %v4459_v43 = vpop.f32.mrf.mxu0  ;;  %v4751_v5 = vshll.u32 %v4551_v1, 16  ;;  %v7126_v38 = vpack.c.b16 %v7103_v10, %v7102_v28  ;;  %v5741_v17 = vrot.slane %v5199_v36, 5  ;;  %v15726_v36 = vld [vmem:[#allocation4_spill] sm:$0xff] }
 0x40a   : > { %5144 = vst [vmem:[#allocation2 + $0x74] sm:$0x1] %v5143_v45  ;;  %v4750_v62 = vrot.slane %v4748_v20, 7  ;;  %v4460_v21 = vadd.f32 %v4459_v43, %v4361_v24  ;;  %v5447_v56 = vrot.slane %v5445_v53, 4  ;;  %v5450_v58 = vrot.slane %v5448_v3, 5 }
 0x40b   : > { %8436 = vmatmul.bf16.gmra.mxu3 %v7190_v48  ;;  %8263 = vmatmul.bf16.gmra.mxu1 %v11156_v40  ;;  %v5456_v0 = vrot.slane %v5454_v55, 5  ;;  %v5460_v23 = vrot.slane %v5458_v16, 4  ;;  %v10451_v29 = vrot.slane %v5621_v54, 9  ;;  %v4363_v41 = vadd.f32 %v15726_v36, %v4264_v59  ;;  %v15729_v36 = vld [vmem:[#allocation19_spill] sm:$0xff] }
 0x40c   : > { %v4753_v57 = vor.u32 %v4751_v5, %v4750_v62  ;;  %v4755_v35 = vrot.slane %v4750_v62, 4  ;;  %v4516_v50 = vmax.f32 %v4460_v21, 0.0  ;;  %8757 = vmatmul.bf16.gmra.mxu0 %v11180_v32  ;;  %v5451_v52 = vor.u32 %v5450_v58, %v5447_v56  ;;  %v5011_v62 = vld [vmem:[#allocation2 + $0x84] sm:$0xf] }
 0x40d   : > { %8347 = vmatmul.bf16.gmra.mxu2 %v7126_v38  ;;  %v5742_v10 = vsel %vm11777_vm5, %v10451_v29, %v5741_v17  ;;  %v5743_v40 = vrot.slane %v5741_v17, 4  ;;  %v5461_v53 = vor.u32 %v5460_v23, %v5456_v0  ;;  %v8222_v17 = vadd.f32 %v14004_v14, %v13973_v61 }
 0x40e   : > { %v5090_v30 = vld [vmem:[#allocation2 + $0x78] sm:$0x1]  ;;  %v4754_v22 = vsel %vm13516_vm12, %v4746_v18, %v4753_v57  ;;  %v5009_v2 = vsel %vm13523_vm13, %v4755_v35, %v5008_v49  ;;  %v4552_v46 = vpack.c.bf16 %v4516_v50, %v4516_v50  ;;  %v14013_v1 = vpop.f32.mrf.mxu3  ;;  %v5452_v6 = vrot.slane %v5451_v52, 4  ;;  %v15727_v35 = vld [vmem:[#allocation20_spill] sm:$0xff]  ;;  %v15728_v50 = vld [vmem:[#allocation17_spill] sm:$0xff] }
 0x40f   : > { %v5091_v24 = vsel %vm13523_vm13, 0, %v5090_v30  ;;  %5007 = vst [vmem:[#allocation2 + $0x7c] sm:$0xf] %v4754_v22  ;;  %v7168_v18 = vunpack.c.l.b16 %v5742_v10  ;;  %v5462_v55 = vrot.slane %v5461_v53, 4  ;;  %v4170_v54 = vadd.f32 %v15728_v50, %v15727_v35 }
 0x410   : > { %5092 = vst [vmem:[#allocation2 + $0x78] sm:$0x1] %v5091_v24  ;;  %v4757_v48 = vshrl.u32 %v4552_v46, 16  ;;  %v8308_v9 = vpop.f32.mrf.mxu2  ;;  %v14018_v20 = vpop.f32.mrf.mxu1  ;;  %v4760_v45 = vshll.u32 %v4552_v46, 16  ;;  %v5457_v49 = vsel %vm11592_vm2, %v5452_v6, %v5456_v0 }
 0x411   : > { %5010 = vst [vmem:[#allocation2 + $0x80] sm:$0x1] %v5009_v2  ;;  %v5221_v28 = vld [vmem:[#allocation2 + $0x74] sm:$0x1]  ;;  %v14024_v43 = vadd.f32 %v8308_v9, %v8220_v39  ;;  %v4461_v32 = vpop.f32.mrf.mxu0  ;;  %v7104_v23 = vunpack.c.l.b16 %v5457_v49 }
 0x412   : > { %v14022_v63 = vrot.slane %v4757_v48, 7  ;;  %v5744_v3 = vrot.slane %v5221_v28, 5  ;;  %v4462_v5 = vadd.f32 %v4461_v32, %v4363_v41  ;;  %v5464_v59 = vshll.u32 %v5221_v28, 16  ;;  %v15730_v41 = vld [vmem:[#allocation6_spill] sm:$0xff] }
 0x413   : > { %v4366_v9 = vadd.f32 %v15730_v41, %v15729_v36  ;;  %v15731_v49 = vld [vmem:[#allocation18_spill] sm:$0xff] }
 0x414   : > { %v4762_v21 = vor.u32 %v4760_v45, %v14022_v63  ;;  %v5745_v38 = vsel %vm11777_vm5, %v5743_v40, %v5744_v3  ;;  %v4517_v56 = vmax.f32 %v4462_v5, 0.0  ;;  %v5466_v57 = vrot.slane %v5464_v59, 5  ;;  %v11181_v3 = vld [vmem:[#allocation2 + $0x30] sm:$0xff] }
 0x415   : > { %v7169_v58 = vunpack.c.l.b16 %v5745_v38  ;;  %v5622_v38 = vld [vmem:[#allocation2 + $0x78] sm:$0xe] }
 0x416   : > { %v5012_v16 = vsel %vm13501_vm8, %v4762_v21, %v5011_v62  ;;  %v14035_v39 = vpop.f32.mrf.mxu3  ;;  %v4553_v52 = vpack.c.bf16 %v4517_v56, %v4517_v56  ;;  %v5467_v0 = vsel %vm11592_vm2, %v5462_v55, %v5466_v57  ;;  %v5201_v22 = vld [vmem:[#allocation2 + $0x7c] sm:$0xf]  ;;  %v4269_v56 = vadd.f32 %v15731_v49, %v4170_v54  ;;  %v5015_v55 = vld [vmem:[#allocation2 + $0x8c] sm:$0x1]  ;;  %v5018_v49 = vld [vmem:[#allocation2 + $0x90] sm:$0xf] }
 0x417   : > { %5013 = vst [vmem:[#allocation2 + $0x84] sm:$0xf] %v5012_v16  ;;  %v7191_v30 = vpack.c.b16 %v7169_v58, %v7168_v18  ;;  %v5200_v2 = vld [vmem:[#allocation2 + $0x78] sm:$0xf]  ;;  %v7105_v24 = vunpack.c.l.b16 %v5467_v0  ;;  %v5478_v62 = vshll.u32 %v5201_v22, 16  ;;  %v4763_v58 = vrot.slane %v14022_v63, 4 }
 0x418   : > { %v5145_v46 = vld [vmem:[#allocation2 + $0x80] sm:$0x1]  ;;  %v11157_v29 = vld [vmem:[#allocation2 + $0x78] sm:$0xff]  ;;  %v5469_v48 = vshrl.u32 %v5200_v2, 16  ;;  %v5472_v6 = vshll.u32 %v5200_v2, 16  ;;  %v4765_v28 = vshrl.u32 %v4553_v52, 16  ;;  %v8310_v10 = vpop.f32.mrf.mxu2  ;;  %v14045_v40 = vpop.f32.mrf.mxu1 }
 0x419   : > { %v5146_v61 = vsel %vm13548_vm14, 0, %v5145_v46  ;;  %v14047_v53 = vadd.f32 %v8310_v10, %v8222_v17  ;;  %v4464_v45 = vpop.f32.mrf.mxu0  ;;  %v7127_v32 = vpack.c.b16 %v7105_v24, %v7104_v23  ;;  %v4768_v59 = vshll.u32 %v4553_v52, 16 }
 0x41a   : > { %5147 = vst [vmem:[#allocation2 + $0x80] sm:$0x1] %v5146_v61  ;;  %v4767_v5 = vrot.slane %v4765_v28, 7  ;;  %v4465_v21 = vadd.f32 %v4464_v45, %v4366_v9  ;;  %v5471_v18 = vrot.slane %v5469_v48, 4  ;;  %v5474_v57 = vrot.slane %v5472_v6, 5 }
 0x41b   : > { %8441 = vmatmul.bf16.gmra.mxu3 %v7191_v30  ;;  %8268 = vmatmul.bf16.gmra.mxu1 %v11157_v29  ;;  %v5482_v35 = vshrl.u32 %v5201_v22, 16  ;;  %v5748_v0 = vrot.slane %v5201_v22, 5  ;;  %v10452_v30 = vrot.slane %v5622_v38, 9  ;;  %v5480_v23 = vrot.slane %v5478_v62, 5 }
 0x41c   : > { %8762 = vmatmul.bf16.gmra.mxu0 %v11181_v3  ;;  %v4770_v50 = vor.u32 %v4768_v59, %v4767_v5  ;;  %v4772_v16 = vrot.slane %v4767_v5, 4  ;;  %v4518_v17 = vmax.f32 %v4465_v21, 0.0  ;;  %v5475_v46 = vor.u32 %v5474_v57, %v5471_v18  ;;  %v11221_v5 = vld [vmem:[%s15550_s3 + $0xd0] sm:$0xff] }
 0x41d   : > { %8352 = vmatmul.bf16.gmra.mxu2 %v7127_v32  ;;  %v5484_v24 = vrot.slane %v5482_v35, 4  ;;  %v8225_v22 = vadd.f32 %v14004_v14, %v13999_v33  ;;  %v4368_v6 = vadd.f32 %v13676_v15, %v4269_v56  ;;  %v5749_v28 = vsel %vm11777_vm5, %v10452_v30, %v5748_v0  ;;  %v11229_v15 = vld [vmem:[%s15550_s3 + $0x110] sm:$0xff]  ;;  %8482 = vmatpush.bf16.msrb.mxu1 %v11221_v5 }
 0x41e   : > { %v5093_v2 = vld [vmem:[#allocation2 + $0x84] sm:$0x1]  ;;  %v14051_v52 = vpop.f32.mrf.mxu3  ;;  %v4771_v54 = vsel %vm13516_vm12, %v4763_v58, %v4770_v50  ;;  %v5016_v29 = vsel %vm13523_vm13, %v4772_v16, %v5015_v55  ;;  %v4554_v48 = vpack.c.bf16 %v4518_v17, %v4518_v17  ;;  %v5750_v10 = vrot.slane %v5748_v0, 4  ;;  %8571 = vmatpush.bf16.msrb.mxu2 %v11229_v15  ;;  %v15733_v16 = vld [vmem:[#allocation21_spill] sm:$0xff]  ;;  %v15735_v15 = vld [vmem:[#allocation22_spill] sm:$0xff] }
 0x41f   : > { %v5094_v63 = vsel %vm13523_vm13, 0, %v5093_v2  ;;  %5014 = vst [vmem:[#allocation2 + $0x88] sm:$0xf] %v4771_v54  ;;  %v5476_v62 = vrot.slane %v5475_v46, 4  ;;  %v5485_v33 = vor.u32 %v5484_v24, %v5480_v23  ;;  %v7170_v57 = vunpack.c.l.b16 %v5749_v28  ;;  %v15732_v50 = vld [vmem:[#allocation24_spill] sm:$0xff] }
 0x420   : > { %5095 = vst [vmem:[#allocation2 + $0x84] sm:$0x1] %v5094_v63  ;;  %v4774_v36 = vshrl.u32 %v4554_v48, 16  ;;  %v8313_v41 = vpop.f32.mrf.mxu2  ;;  %v14062_v9 = vpop.f32.mrf.mxu1  ;;  %v4777_v21 = vshll.u32 %v4554_v48, 16  ;;  %v4175_v17 = vadd.f32 %v15733_v16, %v15732_v50  ;;  %v8227_v48 = vadd.f32 %v14004_v14, %v14018_v20 }
 0x421   : > { %v5222_v61 = vld [vmem:[#allocation2 + $0x80] sm:$0x1]  ;;  %5017 = vst [vmem:[#allocation2 + $0x8c] sm:$0x1] %v5016_v29  ;;  %v14066_v45 = vadd.f32 %v8313_v41, %v8225_v22  ;;  %v4466_v32 = vpop.f32.mrf.mxu0  ;;  %v5481_v2 = vsel %vm11592_vm2, %v5476_v62, %v5480_v23  ;;  %v5486_v30 = vrot.slane %v5485_v33, 4  ;;  %v15734_v41 = vld [vmem:[#allocation23_spill] sm:$0xff] }
 0x422   : > { %v5751_v3 = vrot.slane %v5222_v61, 5  ;;  %v14074_v59 = vrot.slane %v4774_v36, 7  ;;  %v4467_v38 = vadd.f32 %v4466_v32, %v4368_v6  ;;  %v5488_v18 = vshll.u32 %v5222_v61, 16 }
 0x423   : > { %v4371_v23 = vadd.f32 %v13699_v11, %v15734_v41  ;;  %v4274_v5 = vadd.f32 %v15735_v15, %v4175_v17 }
 0x424   : > { %v5752_v56 = vsel %vm11777_vm5, %v5750_v10, %v5751_v3  ;;  %v4779_v58 = vor.u32 %v4777_v21, %v14074_v59  ;;  %v4519_v55 = vmax.f32 %v4467_v38, 0.0  ;;  %v5490_v46 = vrot.slane %v5488_v18, 5 }
 0x425   : > { %v7171_v35 = vunpack.c.l.b16 %v5752_v56  ;;  %v7106_v3 = vunpack.c.l.b16 %v5481_v2  ;;  %v4780_v21 = vrot.slane %v14074_v59, 4 }
 0x426   : > { %v14081_v0 = vpop.f32.mrf.mxu3  ;;  %v5019_v24 = vsel %vm13501_vm8, %v4779_v58, %v5018_v49  ;;  %v4555_v63 = vpack.c.bf16 %v4519_v55, %v4519_v55  ;;  %v5491_v22 = vsel %vm11592_vm2, %v5486_v30, %v5490_v46  ;;  %v5203_v33 = vld [vmem:[#allocation2 + $0x88] sm:$0xf]  ;;  %v11182_v49 = vld [vmem:[#allocation2 + $0x3c] sm:$0xff] }
 0x427   : > { %v7192_v54 = vpack.c.b16 %v7171_v35, %v7170_v57  ;;  %v5202_v29 = vld [vmem:[#allocation2 + $0x84] sm:$0xf]  ;;  %5020 = vst [vmem:[#allocation2 + $0x90] sm:$0xf] %v5019_v24  ;;  %v7107_v62 = vunpack.c.l.b16 %v5491_v22  ;;  %v5022_v35 = vld [vmem:[#allocation2 + $0x98] sm:$0x1] }
 0x428   : > { %v11158_v6 = vld [vmem:[#allocation2 + $0x84] sm:$0xff]  ;;  %v5493_v36 = vshrl.u32 %v5202_v29, 16  ;;  %v5148_v61 = vld [vmem:[#allocation2 + $0x8c] sm:$0x1]  ;;  %v4782_v28 = vshrl.u32 %v4555_v63, 16  ;;  %v8315_v10 = vpop.f32.mrf.mxu2  ;;  %v14093_v32 = vpop.f32.mrf.mxu1  ;;  %v4785_v56 = vshll.u32 %v4555_v63, 16 }
 0x429   : > { %v5149_v20 = vsel %vm13548_vm14, 0, %v5148_v61  ;;  %v14099_v38 = vadd.f32 %v8315_v10, %v8227_v48  ;;  %v4469_v18 = vpop.f32.mrf.mxu0  ;;  %v7128_v55 = vpack.c.b16 %v7107_v62, %v7106_v3  ;;  %v5623_v57 = vld [vmem:[#allocation2 + $0x84] sm:$0xe]  ;;  %v5755_v50 = vrot.slane %v5203_v33, 5 }
 0x42a   : > { %5150 = vst [vmem:[#allocation2 + $0x8c] sm:$0x1] %v5149_v20  ;;  %v4784_v11 = vrot.slane %v4782_v28, 7  ;;  %v4470_v58 = vadd.f32 %v4469_v18, %v4371_v23  ;;  %v5495_v16 = vrot.slane %v5493_v36, 4  ;;  %v5496_v17 = vshll.u32 %v5202_v29, 16 }
 0x42b   : > { %8446 = vmatmul.bf16.gmra.mxu3 %v7192_v54  ;;  %8273 = vmatmul.bf16.gmra.mxu1 %v11158_v6  ;;  %v5502_v2 = vshll.u32 %v5203_v33, 16  ;;  %v5506_v24 = vshrl.u32 %v5203_v33, 16  ;;  %v10453_v22 = vrot.slane %v5623_v57, 9  ;;  %v8230_v61 = vadd.f32 %v14004_v14, %v14045_v40  ;;  %v15736_v57 = vld [vmem:[#allocation28_spill] sm:$0xff] }
 0x42c   : > { %8767 = vmatmul.bf16.gmra.mxu0 %v11182_v49  ;;  %v4787_v30 = vor.u32 %v4785_v56, %v4784_v11  ;;  %v4789_v59 = vrot.slane %v4784_v11, 4  ;;  %v4520_v46 = vmax.f32 %v4470_v58, 0.0  ;;  %v5498_v63 = vrot.slane %v5496_v17, 5  ;;  %v5025_v17 = vld [vmem:[#allocation2 + $0x9c] sm:$0xf] }
 0x42d   : > { %8357 = vmatmul.bf16.gmra.mxu2 %v7128_v55  ;;  %v5504_v54 = vrot.slane %v5502_v2, 5  ;;  %v5508_v29 = vrot.slane %v5506_v24, 4  ;;  %v4373_v3 = vadd.f32 %v13732_v13, %v4274_v5  ;;  %v5756_v20 = vsel %vm11777_vm5, %v10453_v22, %v5755_v50 }
 0x42e   : > { %v14101_v48 = vpop.f32.mrf.mxu3  ;;  %v5096_v41 = vld [vmem:[#allocation2 + $0x90] sm:$0x1]  ;;  %v4788_v23 = vsel %vm13516_vm12, %v4780_v21, %v4787_v30  ;;  %v5023_v6 = vsel %vm13523_vm13, %v4789_v59, %v5022_v35  ;;  %v4556_v36 = vpack.c.bf16 %v4520_v46, %v4520_v46  ;;  %v5499_v10 = vor.u32 %v5498_v63, %v5495_v16  ;;  %v15737_v35 = vld [vmem:[#allocation25_spill] sm:$0xff] }
 0x42f   : > { %v5097_v28 = vsel %vm13523_vm13, 0, %v5096_v41  ;;  %5021 = vst [vmem:[#allocation2 + $0x94] sm:$0xf] %v4788_v23  ;;  %v5757_v49 = vrot.slane %v5755_v50, 4  ;;  %v5509_v56 = vor.u32 %v5508_v29, %v5504_v54  ;;  %v4180_v16 = vadd.f32 %v15737_v35, %v15736_v57  ;;  %v15738_v29 = vld [vmem:[#allocation27_spill] sm:$0xff] }
 0x430   : > { %5098 = vst [vmem:[#allocation2 + $0x90] sm:$0x1] %v5097_v28  ;;  %v4791_v62 = vshrl.u32 %v4556_v36, 16  ;;  %v8318_v33 = vpop.f32.mrf.mxu2  ;;  %v14112_v15 = vpop.f32.mrf.mxu1  ;;  %v5500_v11 = vrot.slane %v5499_v10, 4  ;;  %v4794_v55 = vshll.u32 %v4556_v36, 16  ;;  %v7172_v24 = vunpack.c.l.b16 %v5756_v20 }
 0x431   : > { %5024 = vst [vmem:[#allocation2 + $0x98] sm:$0x1] %v5023_v6  ;;  %v14116_v21 = vadd.f32 %v8318_v33, %v8230_v61  ;;  %v4471_v18 = vpop.f32.mrf.mxu0  ;;  %v5223_v40 = vld [vmem:[#allocation2 + $0x8c] sm:$0x1]  ;;  %v5510_v41 = vrot.slane %v5509_v56, 4  ;;  %v4376_v61 = vadd.f32 %v13759_v12, %v15738_v29  ;;  %v8232_v28 = vadd.f32 %v14004_v14, %v14062_v9  ;;  %v15739_v12 = vld [vmem:[#allocation26_spill] sm:$0xff] }
 0x432   : > { %v14118_v58 = vrot.slane %v4791_v62, 7  ;;  %v4472_v13 = vadd.f32 %v4471_v18, %v4373_v3  ;;  %v5758_v5 = vrot.slane %v5223_v40, 5  ;;  %v5512_v2 = vshll.u32 %v5223_v40, 16 }
 0x433   : > { %v5505_v63 = vsel %vm11592_vm2, %v5500_v11, %v5504_v54 }
 0x434   : > { %v4796_v30 = vor.u32 %v4794_v55, %v14118_v58  ;;  %v4521_v59 = vmax.f32 %v4472_v13, 0.0  ;;  %v5759_v46 = vsel %vm11777_vm5, %v5757_v49, %v5758_v5  ;;  %v5514_v23 = vrot.slane %v5512_v2, 5 }
 0x435   : > { %v7173_v22 = vunpack.c.l.b16 %v5759_v46  ;;  %v7108_v49 = vunpack.c.l.b16 %v5505_v63  ;;  %v4279_v13 = vadd.f32 %v15739_v12, %v4180_v16  ;;  %v4797_v5 = vrot.slane %v14118_v58, 4 }
 0x436   : > { %v14125_v50 = vpop.f32.mrf.mxu3  ;;  %v5026_v6 = vsel %vm13501_vm8, %v4796_v30, %v5025_v17  ;;  %v4557_v36 = vpack.c.bf16 %v4521_v59, %v4521_v59  ;;  %v5515_v3 = vsel %vm11592_vm2, %v5510_v41, %v5514_v23  ;;  %v5205_v56 = vld [vmem:[#allocation2 + $0x94] sm:$0xf]  ;;  %v11183_v17 = vld [vmem:[#allocation2 + $0x48] sm:$0xff] }
 0x437   : > { %5027 = vst [vmem:[#allocation2 + $0x9c] sm:$0xf] %v5026_v6  ;;  %v7193_v10 = vpack.c.b16 %v7173_v22, %v7172_v24  ;;  %v11159_v62 = vld [vmem:[#allocation2 + $0x90] sm:$0xff]  ;;  %v7109_v11 = vunpack.c.l.b16 %v5515_v3  ;;  %v5029_v22 = vld [vmem:[#allocation2 + $0xa4] sm:$0x1]  ;;  %v5762_v16 = vrot.slane %v5205_v56, 5 }
 0x438   : > { %v5204_v33 = vld [vmem:[#allocation2 + $0x90] sm:$0xf]  ;;  %v5151_v54 = vld [vmem:[#allocation2 + $0x98] sm:$0x1]  ;;  %v4799_v20 = vshrl.u32 %v4557_v36, 16  ;;  %v8320_v18 = vpop.f32.mrf.mxu2  ;;  %v14137_v40 = vpop.f32.mrf.mxu1  ;;  %v4802_v30 = vshll.u32 %v4557_v36, 16 }
 0x439   : > { %v5517_v55 = vshrl.u32 %v5204_v33, 16  ;;  %v5152_v9 = vsel %vm13548_vm14, 0, %v5151_v54  ;;  %v14143_v57 = vadd.f32 %v8320_v18, %v8232_v28  ;;  %v4474_v35 = vpop.f32.mrf.mxu0  ;;  %v7129_v46 = vpack.c.b16 %v7109_v11, %v7108_v49  ;;  %v5624_v24 = vld [vmem:[#allocation2 + $0x90] sm:$0xe] }
 0x43a   : > { %5153 = vst [vmem:[#allocation2 + $0x98] sm:$0x1] %v5152_v9  ;;  %v4801_v2 = vrot.slane %v4799_v20, 7  ;;  %v4475_v59 = vadd.f32 %v4474_v35, %v4376_v61  ;;  %v5520_v41 = vshll.u32 %v5204_v33, 16  ;;  %v5526_v23 = vshll.u32 %v5205_v56, 16 }
 0x43b   : > { %8451 = vmatmul.bf16.gmra.mxu3 %v7193_v10  ;;  %8278 = vmatmul.bf16.gmra.mxu1 %v11159_v62  ;;  %v5519_v63 = vrot.slane %v5517_v55, 4  ;;  %v5530_v28 = vshrl.u32 %v5205_v56, 16  ;;  %v10454_v54 = vrot.slane %v5624_v24, 9  ;;  %v8235_v49 = vadd.f32 %v14004_v14, %v14093_v32  ;;  %v11220_v32 = vld [vmem:[%s15550_s3 + $0xc8] sm:$0xff] }
 0x43c   : > { %8772 = vmatmul.bf16.gmra.mxu0 %v11183_v17  ;;  %v4804_v6 = vor.u32 %v4802_v30, %v4801_v2  ;;  %v4806_v58 = vrot.slane %v4801_v2, 4  ;;  %v4522_v29 = vmax.f32 %v4475_v59, 0.0  ;;  %v5522_v36 = vrot.slane %v5520_v41, 5  ;;  %v11228_v17 = vld [vmem:[%s15550_s3 + $0x108] sm:$0xff]  ;;  %8483 = vmatpush.bf16.msrb.mxu1 %v11220_v32 }
 0x43d   : > { %8362 = vmatmul.bf16.gmra.mxu2 %v7129_v46  ;;  %v5528_v10 = vrot.slane %v5526_v23, 5  ;;  %v5532_v33 = vrot.slane %v5530_v28, 4  ;;  %v4378_v55 = vadd.f32 %v13816_v8, %v4279_v13  ;;  %v5764_v30 = vrot.slane %v5762_v16, 4  ;;  %v15740_v23 = vld [vmem:[#allocation34_spill] sm:$0xff] }
 0x43e   : > { %v14145_v3 = vpop.f32.mrf.mxu3  ;;  %v5099_v61 = vld [vmem:[#allocation2 + $0x9c] sm:$0x1]  ;;  %v4805_v20 = vsel %vm13516_vm12, %v4797_v5, %v4804_v6  ;;  %v5030_v62 = vsel %vm13523_vm13, %v4806_v58, %v5029_v22  ;;  %v4558_v18 = vpack.c.bf16 %v4522_v29, %v4522_v29  ;;  %v5523_v56 = vor.u32 %v5522_v36, %v5519_v63  ;;  %8572 = vmatpush.bf16.msrb.mxu2 %v11228_v17  ;;  %v15741_v6 = vld [vmem:[#allocation29_spill] sm:$0xff] }
 0x43f   : > { %v5100_v11 = vsel %vm13523_vm13, 0, %v5099_v61  ;;  %5028 = vst [vmem:[#allocation2 + $0xa0] sm:$0xf] %v4805_v20  ;;  %v5763_v5 = vsel %vm11777_vm5, %v10454_v54, %v5762_v16  ;;  %v5533_v46 = vor.u32 %v5532_v33, %v5528_v10  ;;  %v4185_v58 = vadd.f32 %v15741_v6, %v15740_v23  ;;  %v5032_v29 = vld [vmem:[#allocation2 + $0xa8] sm:$0xf] }
 0x440   : > { %5101 = vst [vmem:[#allocation2 + $0x9c] sm:$0x1] %v5100_v11  ;;  %v4808_v12 = vshrl.u32 %v4558_v18, 16  ;;  %v8323_v9 = vpop.f32.mrf.mxu2  ;;  %v14156_v35 = vpop.f32.mrf.mxu1  ;;  %v5524_v59 = vrot.slane %v5523_v56, 4  ;;  %v4811_v22 = vshll.u32 %v4558_v18, 16  ;;  %v7174_v61 = vunpack.c.l.b16 %v5763_v5 }
 0x441   : > { %5031 = vst [vmem:[#allocation2 + $0xa4] sm:$0x1] %v5030_v62  ;;  %v14166_v2 = vadd.f32 %v8323_v9, %v8235_v49  ;;  %v4476_v8 = vpop.f32.mrf.mxu0  ;;  %v5224_v13 = vld [vmem:[#allocation2 + $0x98] sm:$0x1]  ;;  %v5534_v33 = vrot.slane %v5533_v46, 4  ;;  %v8237_v9 = vadd.f32 %v14004_v14, %v14112_v15 }
 0x442   : > { %v14168_v24 = vrot.slane %v4808_v12, 7  ;;  %v4477_v63 = vadd.f32 %v4476_v8, %v4378_v55  ;;  %v5765_v41 = vrot.slane %v5224_v13, 5  ;;  %v5536_v28 = vshll.u32 %v5224_v13, 16  ;;  %v15742_v55 = vld [vmem:[#allocation32_spill] sm:$0xff] }
 0x443   : > { %v5529_v18 = vsel %vm11592_vm2, %v5524_v59, %v5528_v10  ;;  %v4381_v12 = vadd.f32 %v13855_v47, %v15742_v55  ;;  %v15743_v47 = vld [vmem:[#allocation30_spill] sm:$0xff] }
 0x444   : > { %v4813_v54 = vor.u32 %v4811_v22, %v14168_v24  ;;  %v4523_v36 = vmax.f32 %v4477_v63, 0.0  ;;  %v5766_v16 = vsel %vm11777_vm5, %v5764_v30, %v5765_v41  ;;  %v5538_v49 = vrot.slane %v5536_v28, 5 }
 0x445   : > { %v7175_v62 = vunpack.c.l.b16 %v5766_v16  ;;  %v7110_v46 = vunpack.c.l.b16 %v5529_v18  ;;  %v4284_v23 = vadd.f32 %v15743_v47, %v4185_v58  ;;  %v4814_v6 = vrot.slane %v14168_v24, 4  ;;  %v5036_v18 = vld [vmem:[#allocation2 + $0xb0] sm:$0x1] }
 0x446   : > { %v14175_v20 = vpop.f32.mrf.mxu3  ;;  %v5033_v11 = vsel %vm13501_vm8, %v4813_v54, %v5032_v29  ;;  %v4559_v56 = vpack.c.bf16 %v4523_v36, %v4523_v36  ;;  %v5539_v17 = vsel %vm11592_vm2, %v5534_v33, %v5538_v49  ;;  %v5207_v63 = vld [vmem:[#allocation2 + $0xa0] sm:$0xf]  ;;  %v11184_v54 = vld [vmem:[#allocation2 + $0x54] sm:$0xff] }
 0x447   : > { %5034 = vst [vmem:[#allocation2 + $0xa8] sm:$0xf] %v5033_v11  ;;  %v7194_v5 = vpack.c.b16 %v7175_v62, %v7174_v61  ;;  %v11160_v32 = vld [vmem:[#allocation2 + $0x9c] sm:$0xff]  ;;  %v7111_v22 = vunpack.c.l.b16 %v5539_v17  ;;  %v5769_v33 = vrot.slane %v5207_v63, 5  ;;  %v5550_v11 = vshll.u32 %v5207_v63, 16 }
 0x448   : > { %v5206_v8 = vld [vmem:[#allocation2 + $0x9c] sm:$0xf]  ;;  %v5154_v10 = vld [vmem:[#allocation2 + $0xa4] sm:$0x1]  ;;  %v4816_v13 = vshrl.u32 %v4559_v56, 16  ;;  %v8325_v30 = vpop.f32.mrf.mxu2  ;;  %v14187_v59 = vpop.f32.mrf.mxu1  ;;  %v4819_v16 = vshll.u32 %v4559_v56, 16 }
 0x449   : > { %v5541_v41 = vshrl.u32 %v5206_v8, 16  ;;  %v5155_v15 = vsel %vm13548_vm14, 0, %v5154_v10  ;;  %v14193_v29 = vadd.f32 %v8325_v30, %v8237_v9  ;;  %v4479_v28 = vpop.f32.mrf.mxu0  ;;  %v7130_v62 = vpack.c.b16 %v7111_v22, %v7110_v46  ;;  %v5625_v9 = vld [vmem:[#allocation2 + $0x9c] sm:$0xe] }
 0x44a   : > { %5156 = vst [vmem:[#allocation2 + $0xa4] sm:$0x1] %v5155_v15  ;;  %v4818_v36 = vrot.slane %v4816_v13, 7  ;;  %v4480_v61 = vadd.f32 %v4479_v28, %v4381_v12  ;;  %v5544_v49 = vshll.u32 %v5206_v8, 16  ;;  %v5554_v10 = vshrl.u32 %v5207_v63, 16  ;;  %v11242_v13 = vld [vmem:[%s15550_s3 + $0x178] sm:$0xff] }
 0x44b   : > { %8456 = vmatmul.bf16.gmra.mxu3 %v7194_v5  ;;  %8283 = vmatmul.bf16.gmra.mxu1 %v11160_v32  ;;  %v5543_v58 = vrot.slane %v5541_v41, 4  ;;  %v5552_v5 = vrot.slane %v5550_v11, 5  ;;  %v8240_v63 = vadd.f32 %v14004_v14, %v14137_v40  ;;  %v10455_v47 = vrot.slane %v5625_v9, 9  ;;  %v15745_v9 = vld [vmem:[#allocation38_spill] sm:$0xff] }
 0x44c   : > { %8777 = vmatmul.bf16.gmra.mxu0 %v11184_v54  ;;  %v4821_v55 = vor.u32 %v4819_v16, %v4818_v36  ;;  %v4823_v17 = vrot.slane %v4818_v36, 4  ;;  %v4524_v24 = vmax.f32 %v4480_v61, 0.0  ;;  %v5546_v12 = vrot.slane %v5544_v49, 5  ;;  %8655 = vmatpush.bf16.msra.mxu3 %v11242_v13  ;;  %v5039_v13 = vld [vmem:[#allocation2 + $0xb4] sm:$0xf] }
 0x44d   : > { %8367 = vmatmul.bf16.gmra.mxu2 %v7130_v62  ;;  %v5556_v22 = vrot.slane %v5554_v10, 4  ;;  %v4383_v28 = vadd.f32 %v13884_v51, %v4284_v23  ;;  %v5771_v16 = vrot.slane %v5769_v33, 4  ;;  %v5770_v40 = vsel %vm11777_vm5, %v10455_v47, %v5769_v33  ;;  %v11241_v51 = vld [vmem:[%s15550_s3 + $0x170] sm:$0xff] }
 0x44e   : > { %v14198_v56 = vpop.f32.mrf.mxu3  ;;  %v5102_v32 = vld [vmem:[#allocation2 + $0xa8] sm:$0x1]  ;;  %v4822_v30 = vsel %vm13516_vm12, %v4814_v6, %v4821_v55  ;;  %v5037_v8 = vsel %vm13523_vm13, %v4823_v17, %v5036_v18  ;;  %v4560_v46 = vpack.c.bf16 %v4524_v24, %v4524_v24  ;;  %v5547_v15 = vor.u32 %v5546_v12, %v5543_v58  ;;  %v15744_v24 = vld [vmem:[#allocation43_spill] sm:$0xff] }
 0x44f   : > { %v5103_v41 = vsel %vm13523_vm13, 0, %v5102_v32  ;;  %5035 = vst [vmem:[#allocation2 + $0xac] sm:$0xf] %v4822_v30  ;;  %v5557_v11 = vor.u32 %v5556_v22, %v5552_v5  ;;  %v4190_v10 = vadd.f32 %v15745_v9, %v15744_v24  ;;  %v11240_v22 = vld [vmem:[%s15550_s3 + $0x168] sm:$0xff] }
 0x450   : > { %5104 = vst [vmem:[#allocation2 + $0xa8] sm:$0x1] %v5103_v41  ;;  %v4825_v54 = vshrl.u32 %v4560_v46, 16  ;;  %v8328_v6 = vpop.f32.mrf.mxu2  ;;  %v14209_v36 = vpop.f32.mrf.mxu1  ;;  %v5548_v49 = vrot.slane %v5547_v15, 4  ;;  %v4828_v58 = vshll.u32 %v4560_v46, 16  ;;  %8656 = vmatpush.bf16.msra.mxu3 %v11241_v51 }
 0x451   : > { %5038 = vst [vmem:[#allocation2 + $0xb0] sm:$0x1] %v5037_v8  ;;  %v14211_v61 = vadd.f32 %v8328_v6, %v8240_v63  ;;  %v4481_v62 = vpop.f32.mrf.mxu0  ;;  %v5225_v18 = vld [vmem:[#allocation2 + $0xa4] sm:$0x1]  ;;  %v7176_v8 = vunpack.c.l.b16 %v5770_v40  ;;  %v5558_v47 = vrot.slane %v5557_v11, 4 }
 0x452   : > { %v14218_v23 = vrot.slane %v4825_v54, 7  ;;  %v4482_v55 = vadd.f32 %v4481_v62, %v4383_v28  ;;  %v5772_v17 = vrot.slane %v5225_v18, 5  ;;  %v5560_v12 = vshll.u32 %v5225_v18, 16  ;;  %v15746_v28 = vld [vmem:[#allocation35_spill] sm:$0xff] }
 0x453   : > { %v5553_v41 = vsel %vm11592_vm2, %v5548_v49, %v5552_v5  ;;  %v4386_v54 = vadd.f32 %v13922_v60, %v15746_v28  ;;  %v8242_v18 = vadd.f32 %v14004_v14, %v14156_v35  ;;  %v11239_v35 = vld [vmem:[%s15550_s3 + $0x160] sm:$0xff] }
 0x454   : > { %v4830_v32 = vor.u32 %v4828_v58, %v14218_v23  ;;  %v4525_v33 = vmax.f32 %v4482_v55, 0.0  ;;  %v5773_v30 = vsel %vm11777_vm5, %v5771_v16, %v5772_v17  ;;  %v5562_v15 = vrot.slane %v5560_v12, 5  ;;  %8657 = vmatpush.bf16.msra.mxu3 %v11240_v22  ;;  %v11185_v22 = vld [vmem:[#allocation2 + $0x60] sm:$0xff] }
 0x455   : > { %v7177_v63 = vunpack.c.l.b16 %v5773_v30  ;;  %v7112_v17 = vunpack.c.l.b16 %v5553_v41 }
 0x456   : > { %v14228_v46 = vpop.f32.mrf.mxu3  ;;  %v5040_v6 = vsel %vm13501_vm8, %v4830_v32, %v5039_v13  ;;  %v4561_v16 = vpack.c.bf16 %v4525_v33, %v4525_v33  ;;  %v14236_v62 = vld [vmem:[#allocation2 + $0xac] sm:$0xf]  ;;  %v5563_v51 = vsel %vm11592_vm2, %v5558_v47, %v5562_v15  ;;  %v15747_v13 = vld [vmem:[#allocation40_spill] sm:$0xff]  ;;  %v4831_v33 = vrot.slane %v14218_v23, 4  ;;  %v5043_v47 = vld [vmem:[#allocation2 + $0xbc] sm:$0x1] }
 0x457   : > { %5041 = vst [vmem:[#allocation2 + $0xb4] sm:$0xf] %v5040_v6  ;;  %v7195_v40 = vpack.c.b16 %v7177_v63, %v7176_v8  ;;  %v11161_v5 = vld [vmem:[#allocation2 + $0xa8] sm:$0xff]  ;;  %v7113_v24 = vunpack.c.l.b16 %v5563_v51  ;;  %v4289_v12 = vadd.f32 %v15747_v13, %v4190_v10  ;;  %v5776_v10 = vrot.slane %v14236_v62, 5  ;;  %v11219_v23 = vld [vmem:[%s15550_s3 + $0xc0] sm:$0xff] }
 0x458   : > { %v5208_v49 = vld [vmem:[#allocation2 + $0xa8] sm:$0xf]  ;;  %v5157_v11 = vld [vmem:[#allocation2 + $0xb0] sm:$0x1]  ;;  %v4833_v58 = vshrl.u32 %v4561_v16, 16  ;;  %v8330_v60 = vpop.f32.mrf.mxu2  ;;  %v14242_v55 = vpop.f32.mrf.mxu1  ;;  %v4836_v41 = vshll.u32 %v4561_v16, 16  ;;  %8658 = vmatpush.bf16.msra.mxu3 %v11239_v35  ;;  %8484 = vmatpush.bf16.msrb.mxu1 %v11219_v23  ;;  %v8245_v35 = vadd.f32 %v14004_v14, %v14187_v59 }
 0x459   : > { %v5565_v9 = vshrl.u32 %v5208_v49, 16  ;;  %v5158_v32 = vsel %vm13548_vm14, 0, %v5157_v11  ;;  %v14251_v30 = vadd.f32 %v8330_v60, %v8242_v18  ;;  %v4484_v8 = vpop.f32.mrf.mxu0  ;;  %v7131_v28 = vpack.c.b16 %v7113_v24, %v7112_v17  ;;  %v5626_v16 = vld [vmem:[#allocation2 + $0xa8] sm:$0xe] }
 0x45a   : > { %5159 = vst [vmem:[#allocation2 + $0xb0] sm:$0x1] %v5158_v32  ;;  %v4835_v63 = vrot.slane %v4833_v58, 7  ;;  %v4485_v15 = vadd.f32 %v4484_v8, %v4386_v54  ;;  %v5568_v51 = vshll.u32 %v5208_v49, 16  ;;  %v5574_v11 = vshll.u32 %v14236_v62, 16  ;;  %v11238_v54 = vld [vmem:[%s15550_s3 + $0x158] sm:$0xff] }
 0x45b   : > { %8461 = vmatmul.bf16.gmra.mxu3 %v7195_v40  ;;  %8288 = vmatmul.bf16.gmra.mxu1 %v11161_v5  ;;  %v5567_v6 = vrot.slane %v5565_v9, 4  ;;  %v5578_v40 = vshrl.u32 %v14236_v62, 16 }
 0x45c   : > { %8782 = vmatmul.bf16.gmra.mxu0 %v11185_v22  ;;  %v4838_v18 = vor.u32 %v4836_v41, %v4835_v63  ;;  %v4840_v60 = vrot.slane %v4835_v63, 4  ;;  %v4526_v58 = vmax.f32 %v4485_v15, 0.0  ;;  %v5570_v49 = vrot.slane %v5568_v51, 5  ;;  %8659 = vmatpush.bf16.msra.mxu3 %v11238_v54  ;;  %v15748_v54 = vld [vmem:[#allocation33_spill] sm:$0xff] }
 0x45d   : > { %8372 = vmatmul.bf16.gmra.mxu2 %v7131_v28  ;;  %v5576_v17 = vrot.slane %v5574_v11, 5  ;;  %v5580_v62 = vrot.slane %v5578_v40, 4  ;;  %v10456_v22 = vrot.slane %v5626_v16, 9  ;;  %v4388_v41 = vadd.f32 %v13939_v27, %v4289_v12 }
 0x45e   : > { %v14262_v5 = vpop.f32.mrf.mxu3  ;;  %v5105_v24 = vld [vmem:[#allocation2 + $0xb4] sm:$0x1]  ;;  %v4839_v9 = vsel %vm13516_vm12, %v4831_v33, %v4838_v18  ;;  %v5044_v13 = vsel %vm13523_vm13, %v4840_v60, %v5043_v47  ;;  %v4562_v32 = vpack.c.bf16 %v4526_v58, %v4526_v58  ;;  %v5571_v63 = vor.u32 %v5570_v49, %v5567_v6  ;;  %v11227_v18 = vld [vmem:[%s15550_s3 + $0x100] sm:$0xff] }
 0x45f   : > { %v5106_v8 = vsel %vm13523_vm13, 0, %v5105_v24  ;;  %5042 = vst [vmem:[#allocation2 + $0xb8] sm:$0xf] %v4839_v9  ;;  %v5778_v51 = vrot.slane %v5776_v10, 4  ;;  %v11237_v47 = vld [vmem:[%s15550_s3 + $0x150] sm:$0xff]  ;;  %v5777_v6 = vsel %vm11777_vm5, %v10456_v22, %v5776_v10  ;;  %v5581_v12 = vor.u32 %v5580_v62, %v5576_v17  ;;  %8573 = vmatpush.bf16.msrb.mxu2 %v11227_v18 }
 0x460   : > { %5107 = vst [vmem:[#allocation2 + $0xb4] sm:$0x1] %v5106_v8  ;;  %v4842_v15 = vshrl.u32 %v4562_v32, 16  ;;  %v8333_v28 = vpop.f32.mrf.mxu2  ;;  %v14273_v33 = vpop.f32.mrf.mxu1  ;;  %v5572_v27 = vrot.slane %v5571_v63, 4  ;;  %v4845_v58 = vshll.u32 %v4562_v32, 16  ;;  %v4195_v49 = vadd.f32 %v13935_v37, %v15748_v54  ;;  %8660 = vmatpush.bf16.msra.mxu3 %v11237_v47  ;;  %v11236_v32 = vld [vmem:[%s15550_s3 + $0x148] sm:$0xff] }
 0x461   : > { %5045 = vst [vmem:[#allocation2 + $0xbc] sm:$0x1] %v5044_v13  ;;  %v14278_v59 = vadd.f32 %v8333_v28, %v8245_v35  ;;  %v4486_v11 = vpop.f32.mrf.mxu0  ;;  %v5226_v23 = vld [vmem:[#allocation2 + $0xb0] sm:$0x1]  ;;  %v5046_v24 = vld [vmem:[#allocation2 + $0xc0] sm:$0xf]  ;;  %v7178_v35 = vunpack.c.l.b16 %v5777_v6 }
 0x462   : > { %v14285_v60 = vrot.slane %v4842_v15, 7  ;;  %v4487_v16 = vadd.f32 %v4486_v11, %v4388_v41  ;;  %v5779_v40 = vrot.slane %v5226_v23, 5  ;;  %v5584_v9 = vshll.u32 %v5226_v23, 16 }
 0x463   : > { %v5577_v37 = vsel %vm11592_vm2, %v5572_v27, %v5576_v17  ;;  %v5582_v63 = vrot.slane %v5581_v12, 4  ;;  %v8247_v23 = vadd.f32 %v14004_v14, %v14209_v36  ;;  %v4294_v14 = vadd.f32 %v13994_v4, %v4195_v49 }
 0x464   : > { %v4847_v13 = vor.u32 %v4845_v58, %v14285_v60  ;;  %v4527_v10 = vmax.f32 %v4487_v16, 0.0  ;;  %v5780_v62 = vsel %vm11777_vm5, %v5778_v51, %v5779_v40  ;;  %v5586_v41 = vrot.slane %v5584_v9, 5  ;;  %v15749_v51 = vld [vmem:[#allocation44_spill] sm:$0xff]  ;;  %8661 = vmatpush.bf16.msra.mxu3 %v11236_v32 }
 0x465   : > { %v7179_v22 = vunpack.c.l.b16 %v5780_v62  ;;  %v4391_v47 = vadd.f32 %v13958_v19, %v15749_v51  ;;  %v7114_v54 = vunpack.c.l.b16 %v5577_v37  ;;  %v11235_v19 = vld [vmem:[%s15550_s3 + $0x140] sm:$0xff] }
 0x466   : > { %v14295_v8 = vpop.f32.mrf.mxu3  ;;  %v5047_v15 = vsel %vm13501_vm8, %v4847_v13, %v5046_v24  ;;  %v4563_v28 = vpack.c.bf16 %v4527_v10, %v4527_v10  ;;  %v14301_v11 = vld [vmem:[#allocation2 + $0xb8] sm:$0xf]  ;;  %v5587_v18 = vsel %vm11592_vm2, %v5582_v63, %v5586_v41  ;;  %v4848_v13 = vrot.slane %v14285_v60, 4  ;;  %v5050_v41 = vld [vmem:[#allocation2 + $0xc8] sm:$0x1] }
 0x467   : > { %5048 = vst [vmem:[#allocation2 + $0xc0] sm:$0xf] %v5047_v15  ;;  %v7196_v6 = vpack.c.b16 %v7179_v22, %v7178_v35  ;;  %v11162_v17 = vld [vmem:[#allocation2 + $0xb4] sm:$0xff]  ;;  %v7115_v24 = vunpack.c.l.b16 %v5587_v18  ;;  %v11186_v35 = vld [vmem:[#allocation2 + $0x6c] sm:$0xff]  ;;  %v5783_v4 = vrot.slane %v14301_v11, 5  ;;  %v5598_v51 = vshll.u32 %v14301_v11, 16 }
 0x468   : > { %v5210_v27 = vld [vmem:[#allocation2 + $0xb4] sm:$0xf]  ;;  %v5160_v12 = vld [vmem:[#allocation2 + $0xbc] sm:$0x1]  ;;  %v4850_v58 = vshrl.u32 %v4563_v28, 16  ;;  %v8335_v16 = vpop.f32.mrf.mxu2  ;;  %v14309_v40 = vpop.f32.mrf.mxu1  ;;  %v4853_v37 = vshll.u32 %v4563_v28, 16  ;;  %8662 = vmatpush.bf16.msra.mxu3 %v11235_v19 }
 0x469   : > { %v5589_v9 = vshrl.u32 %v5210_v27, 16  ;;  %v5161_v36 = vsel %vm13548_vm14, 0, %v5160_v12  ;;  %v14318_v10 = vadd.f32 %v8335_v16, %v8247_v23  ;;  %v4489_v62 = vpop.f32.mrf.mxu0  ;;  %v7132_v63 = vpack.c.b16 %v7115_v24, %v7114_v54  ;;  %v5627_v12 = vld [vmem:[#allocation2 + $0xb4] sm:$0xe] }
 0x46a   : > { %5162 = vst [vmem:[#allocation2 + $0xbc] sm:$0x1] %v5161_v36  ;;  %v4852_v22 = vrot.slane %v4850_v58, 7  ;;  %v4490_v32 = vadd.f32 %v4489_v62, %v4391_v47  ;;  %v5592_v15 = vshll.u32 %v5210_v27, 16  ;;  %v5602_v16 = vshrl.u32 %v14301_v11, 16 }
 0x46b   : > { %8466 = vmatmul.bf16.gmra.mxu3 %v7196_v6  ;;  %8293 = vmatmul.bf16.gmra.mxu1 %v11162_v17  ;;  %v5591_v49 = vrot.slane %v5589_v9, 4  ;;  %v5600_v6 = vrot.slane %v5598_v51, 5  ;;  %v11266_v17 = vld [vmem:[%s15550_s3 + $0x238] sm:$0xff]  ;;  %v14335_v11 = vld [vmem:[%s15551_s4] ss:$0 sm:$0xff]  ;;  %v10457_v62 = vrot.slane %v5627_v12, 9 }
 0x46c   : > { %8787 = vmatmul.bf16.gmra.mxu0 %v11186_v35  ;;  %v4855_v60 = vor.u32 %v4853_v37, %v4852_v22  ;;  %v4857_v23 = vrot.slane %v4852_v22, 4  ;;  %v4528_v18 = vmax.f32 %v4490_v32, 0.0  ;;  %v5594_v47 = vrot.slane %v5592_v15, 5  ;;  %8922 = vmatpush.bf16.msra.mxu2 %v11266_v17  ;;  %v5789_v15 = vld [vmem:[#allocation2 + $0xc] sm:$0xf] }
 0x46d   : > { %8377 = vmatmul.bf16.gmra.mxu2 %v7132_v63  ;;  %v5604_v9 = vrot.slane %v5602_v16, 4  ;;  %v8250_v19 = vadd.f32 %v14335_v11, %v14242_v55  ;;  %v4393_v22 = vadd.f32 %v13986_v34, %v4294_v14  ;;  %v11258_v34 = vld [vmem:[%s15550_s3 + $0x1f8] sm:$0xff]  ;;  %v5053_v17 = vld [vmem:[#allocation2 + $0xcc] sm:$0xf] }
 0x46e   : > { %v14323_v28 = vpop.f32.mrf.mxu3  ;;  %v5108_v58 = vld [vmem:[#allocation2 + $0xc0] sm:$0x1]  ;;  %v4856_v27 = vsel %vm13516_vm12, %v4848_v13, %v4855_v60  ;;  %v5051_v54 = vsel %vm13523_vm13, %v4857_v23, %v5050_v41  ;;  %v4564_v24 = vpack.c.bf16 %v4528_v18, %v4528_v18  ;;  %v5595_v35 = vor.u32 %v5594_v47, %v5591_v49  ;;  %v14341_v13 = vld [vmem:[#allocation2 + $0x10] sm:$0xf]  ;;  %8833 = vmatpush.bf16.msra.mxu1 %v11258_v34 }
 0x46f   : > { %v5109_v36 = vsel %vm13523_vm13, 0, %v5108_v58  ;;  %5049 = vst [vmem:[#allocation2 + $0xc4] sm:$0xf] %v4856_v27  ;;  %v5785_v41 = vrot.slane %v5783_v4, 4  ;;  %v5784_v49 = vsel %vm11777_vm5, %v10457_v62, %v5783_v4  ;;  %v5605_v18 = vor.u32 %v5604_v9, %v5600_v6 }
 0x470   : > { %5110 = vst [vmem:[#allocation2 + $0xc0] sm:$0x1] %v5109_v36  ;;  %v4859_v37 = vshrl.u32 %v4564_v24, 16  ;;  %v8338_v32 = vpop.f32.mrf.mxu2  ;;  %v14344_v63 = vpop.f32.mrf.mxu1  ;;  %v5596_v23 = vrot.slane %v5595_v35, 4  ;;  %v4862_v12 = vshll.u32 %v4564_v24, 16  ;;  %v5838_v27 = vshrl.u32 %v5789_v15, 16  ;;  %8923 = vmatpush.bf16.msra.mxu2 %v11265_v31 }
 0x471   : > { %5052 = vst [vmem:[#allocation2 + $0xc8] sm:$0x1] %v5051_v54  ;;  %v14346_v55 = vadd.f32 %v8338_v32, %v8250_v19  ;;  %v4491_v51 = vpop.f32.mrf.mxu0  ;;  %v5227_v60 = vld [vmem:[#allocation2 + $0xbc] sm:$0x1]  ;;  %v5841_v54 = vshll.u32 %v5789_v15, 16  ;;  %v5847_v19 = vshll.u32 %v14341_v13, 16  ;;  %v7180_v9 = vunpack.c.l.b16 %v5784_v49 }
 0x472   : > { %v4861_v14 = vrot.slane %v4859_v37, 7  ;;  %v4492_v16 = vadd.f32 %v4491_v51, %v4393_v22  ;;  %v5786_v47 = vrot.slane %v5227_v60, 5  ;;  %v5608_v58 = vshll.u32 %v5227_v60, 16 }
 0x473   : > { %v5601_v24 = vsel %vm11592_vm2, %v5596_v23, %v5600_v6  ;;  %v5606_v22 = vrot.slane %v5605_v18, 4  ;;  %v5851_v60 = vshrl.u32 %v14341_v13, 16  ;;  %v8252_v34 = vadd.f32 %v14335_v11, %v14273_v33  ;;  %v11187_v33 = vld [vmem:[#allocation2 + $0x78] sm:$0xff] }
 0x474   : > { %v4864_v36 = vor.u32 %v4862_v12, %v4861_v14  ;;  %v4529_v32 = vmax.f32 %v4492_v16, 0.0  ;;  %v5787_v4 = vsel %vm11777_vm5, %v5785_v41, %v5786_v47  ;;  %v5610_v37 = vrot.slane %v5608_v58, 5 }
 0x475   : > { %v7181_v35 = vunpack.c.l.b16 %v5787_v4  ;;  %v7116_v23 = vunpack.c.l.b16 %v5601_v24  ;;  %v5843_v4 = vrot.slane %v5841_v54, 5  ;;  %v6287_v24 = vrot.slane %v14341_v13, 5  ;;  %v6221_v54 = vld [vmem:[#allocation2 + $0xc] sm:$0xe] }
 0x476   : > { %v14356_v62 = vpop.f32.mrf.mxu3  ;;  %v5054_v15 = vsel %vm13501_vm8, %v4864_v36, %v5053_v17  ;;  %v4565_v51 = vpack.c.bf16 %v4529_v32, %v4529_v32  ;;  %v5611_v49 = vsel %vm11592_vm2, %v5606_v22, %v5610_v37  ;;  %v5840_v17 = vrot.slane %v5838_v27, 4  ;;  %v5821_v32 = vld [vmem:[#allocation2 + $0x14] sm:$0x1] }
 0x477   : > { %15750 = vst [vmem:[#allocation39_spill] sm:$0xff] %v14356_v62  ;;  %v7197_v41 = vpack.c.b16 %v7181_v35, %v7180_v9  ;;  %v7117_v18 = vunpack.c.l.b16 %v5611_v49  ;;  %v5849_v9 = vrot.slane %v5847_v19, 5  ;;  %v4865_v27 = vrot.slane %v4861_v14, 4 }
 0x478   : > { %5055 = vst [vmem:[#allocation2 + $0xcc] sm:$0xf] %v5054_v15  ;;  %v5163_v12 = vld [vmem:[#allocation2 + $0xc8] sm:$0x1]  ;;  %v4867_v16 = vshrl.u32 %v4565_v51, 16  ;;  %v8340_v47 = vpop.f32.mrf.mxu2  ;;  %v14367_v6 = vpop.f32.mrf.mxu1  ;;  %v4870_v22 = vshll.u32 %v4565_v51, 16 }
 0x479   : > { %v5164_v58 = vsel %vm13548_vm14, 0, %v5163_v12  ;;  %v14371_v36 = vadd.f32 %v8340_v47, %v8252_v34  ;;  %v7133_v37 = vpack.c.b16 %v7117_v18, %v7116_v23  ;;  %v5853_v15 = vrot.slane %v5851_v60, 4  ;;  %v5057_v12 = vld [vmem:[#allocation2 + $0xd4] sm:$0x1] }
 0x47a   : > { %5165 = vst [vmem:[#allocation2 + $0xc8] sm:$0x1] %v5164_v58  ;;  %v4869_v35 = vrot.slane %v4867_v16, 7  ;;  %v5857_v34 = vshll.u32 %v5821_v32, 16  ;;  %v6290_v19 = vrot.slane %v5821_v32, 5  ;;  %v8255_v16 = vadd.f32 %v14335_v11, %v14309_v40 }
 0x47b   : > { %8471 = vmatmul.bf16.gmra.mxu3 %v7197_v41  ;;  %8485 = vmatmul.bf16.vlgmr.msrb.gmra.mxu1 %v11163_v42  ;;  %v5844_v41 = vor.u32 %v5843_v4, %v5840_v17  ;;  %v5854_v60 = vor.u32 %v5853_v15, %v5849_v9  ;;  %v6289_v23 = vrot.slane %v6287_v24, 4  ;;  %v15751_v32 = vmov 0  }
 0x47c   : > { %8792 = vmatmul.bf16.gmra.mxu0 %v11187_v33  ;;  %v4872_v49 = vor.u32 %v4870_v22, %v4869_v35  ;;  %v4874_v62 = vrot.slane %v4869_v35, 4  ;;  %v10458_v33 = vrot.slane %v6221_v54, 9  ;;  %v5859_v25 = vrot.slane %v5857_v34, 5  ;;  %v5791_v35 = vld [vmem:[#allocation2 + $0x18] sm:$0xf] }
 0x47d   : > { %8382 = vmatmul.bf16.gmra.mxu2 %v7133_v37  ;;  %v6291_v40 = vsel %vm11777_vm5, %v6289_v23, %v6290_v19  ;;  %v5845_v26 = vrot.slane %v5844_v41, 4  ;;  %v5792_v22 = vld [vmem:[#allocation2 + $0x1c] sm:$0xf]  ;;  %v5865_v54 = vshll.u32 %v5791_v35, 16 }
 0x47e   : > { %v14374_v47 = vpop.f32.mrf.mxu3  ;;  %v4873_v51 = vsel %vm13516_vm12, %v4865_v27, %v4872_v49  ;;  %v5058_v14 = vsel %vm13523_vm13, %v4874_v62, %v5057_v12  ;;  %v6288_v4 = vsel %vm11777_vm5, %v10458_v33, %v6287_v24  ;;  %v5855_v62 = vrot.slane %v5854_v60, 4  ;;  %v11188_v33 = vld [vmem:[#allocation2 + $0x84] sm:$0xff] }
 0x47f   : > { %v5111_v58 = vld [vmem:[#allocation2 + $0xcc] sm:$0x1]  ;;  %5056 = vst [vmem:[#allocation2 + $0xd0] sm:$0xf] %v4873_v51  ;;  %v7359_v37 = vunpack.c.l.b16 %v6291_v40  ;;  %v7358_v49 = vunpack.c.l.b16 %v6288_v4  ;;  %v5862_v12 = vshrl.u32 %v5791_v35, 16  ;;  %v5850_v34 = vsel %vm11592_vm2, %v5845_v26, %v5849_v9 }
 0x480   : > { %v5112_v13 = vsel %vm13523_vm13, 0, %v5111_v58  ;;  %v8343_v18 = vpop.f32.mrf.mxu2  ;;  %v14384_v42 = vpop.f32.mrf.mxu1  ;;  %5059 = vst [vmem:[#allocation2 + $0xd4] sm:$0x1] %v5058_v14  ;;  %v5860_v15 = vsel %vm11592_vm2, %v5855_v62, %v5859_v25  ;;  %v5871_v19 = vshll.u32 %v5792_v22, 16  ;;  %v5875_v24 = vshrl.u32 %v5792_v22, 16 }
 0x481   : > { %5113 = vst [vmem:[#allocation2 + $0xcc] sm:$0x1] %v5112_v13  ;;  %v14387_v17 = vadd.f32 %v8343_v18, %v8255_v16  ;;  %v8257_v58 = vadd.f32 %v14335_v11, %v14344_v63  ;;  %v7295_v51 = vunpack.c.l.b16 %v5860_v15  ;;  %v7390_v16 = vpack.c.b16 %v7359_v37, %v7358_v49  ;;  %v11164_v13 = vld [vmem:[#allocation2 + $0x18] sm:$0xff]  ;;  %v5822_v25 = vld [vmem:[#allocation2 + $0x20] sm:$0x1] }
 0x482   : > { %5177 = vst [vmem:[#allocation2 + $0xcc] sm:$0xf] %v15751_v32  ;;  %v7294_v18 = vunpack.c.l.b16 %v5850_v34  ;;  %v5864_v40 = vrot.slane %v5862_v12, 4  ;;  %v5867_v4 = vrot.slane %v5865_v54, 5  ;;  %v5873_v26 = vrot.slane %v5871_v19, 5 }
 0x483   : > { %5178 = vst [vmem:[#allocation2 + $0xd0] sm:$0xf] %v15751_v32  ;;  %v5877_v63 = vrot.slane %v5875_v24, 4  ;;  %v6294_v35 = vrot.slane %v5792_v22, 5  ;;  %v5881_v37 = vshll.u32 %v5822_v25, 16  ;;  %v6297_v49 = vrot.slane %v5822_v25, 5 }
 0x484   : > { %v7326_v62 = vpack.c.b16 %v7295_v51, %v7294_v18  ;;  %v6222_v12 = vld [vmem:[#allocation2 + $0x18] sm:$0xe]  ;;  %v5868_v34 = vor.u32 %v5867_v4, %v5864_v40  ;;  %v8260_v19 = vadd.f32 %v14335_v11, %v14367_v6  ;;  %v5794_v25 = vld [vmem:[#allocation2 + $0x28] sm:$0xf] }
 0x485   : > { %v5878_v54 = vor.u32 %v5877_v63, %v5873_v26  ;;  %v6296_v24 = vrot.slane %v6294_v35, 4  ;;  %v5895_v31 = vshll.u32 %v5794_v25, 16 }
 0x486   : > { %v14396_v27 = vpop.f32.mrf.mxu3 }
 0x487   : > { %v5166_v14 = vld [vmem:[#allocation2 + $0xd4] sm:$0x1]  ;;  %v5879_v18 = vrot.slane %v5878_v54, 4 }
 0x488   : > { %v8345_v41 = vpop.f32.mrf.mxu2  ;;  %v14402_v60 = vpop.f32.mrf.mxu1  ;;  %v5167_v9 = vsel %vm13548_vm14, 0, %v5166_v14  ;;  %v5869_v14 = vrot.slane %v5868_v34, 4  ;;  %v8262_v34 = vadd.f32 %v14335_v11, %v14384_v42  ;;  %v6301_v42 = vrot.slane %v5794_v25, 5 }
 0x489   : > { %v14404_v23 = vadd.f32 %v8345_v41, %v8257_v58  ;;  %5168 = vst [vmem:[#allocation2 + $0xd4] sm:$0x1] %v5167_v9  ;;  %v10459_v41 = vrot.slane %v6222_v12, 9  ;;  %v5899_v12 = vshrl.u32 %v5794_v25, 16 }
 0x48a   : > { %5179 = vst [vmem:[#allocation2 + $0xd4] sm:$0x1] %v15751_v32  ;;  %v5883_v32 = vrot.slane %v5881_v37, 5 }
 0x48b   : > { %8663 = vmatmul.bf16.vlgmr.msra.gmra.mxu3 %v7390_v16  ;;  %8490 = vmatmul.bf16.gmra.mxu1 %v11164_v13  ;;  %v6298_v16 = vsel %vm11777_vm5, %v6296_v24, %v6297_v49  ;;  %v11257_v13 = vld [vmem:[%s15550_s3 + $0x1f0] sm:$0xff]  ;;  %v6295_v6 = vsel %vm11777_vm5, %v10459_v41, %v6294_v35  ;;  %v5874_v49 = vsel %vm11592_vm2, %v5869_v14, %v5873_v26  ;;  %v11165_v41 = vld [vmem:[#allocation2 + $0x24] sm:$0xff]  ;;  %v5897_v26 = vrot.slane %v5895_v31, 5 }
 0x48c   : > { %8797 = vmatmul.bf16.gmra.mxu0 %v11188_v33  ;;  %v5793_v33 = vld [vmem:[#allocation2 + $0x24] sm:$0xf]  ;;  %8834 = vmatpush.bf16.msra.mxu1 %v11257_v13  ;;  %v7361_v40 = vunpack.c.l.b16 %v6298_v16  ;;  %v5884_v9 = vsel %vm11592_vm2, %v5879_v18, %v5883_v32  ;;  %v7360_v37 = vunpack.c.l.b16 %v6295_v6  ;;  %v7296_v32 = vunpack.c.l.b16 %v5874_v49  ;;  %v11189_v16 = vld [vmem:[#allocation2 + $0x90] sm:$0xff]  ;;  %v5823_v13 = vld [vmem:[#allocation2 + $0x2c] sm:$0x1] }
 0x48d   : > { %8574 = vmatmul.bf16.vlgmr.msrb.gmra.mxu2 %v7326_v62  ;;  %v5886_v63 = vshrl.u32 %v5793_v33, 16  ;;  %v5889_v62 = vshll.u32 %v5793_v33, 16  ;;  %v7297_v35 = vunpack.c.l.b16 %v5884_v9  ;;  %v5901_v14 = vrot.slane %v5899_v12, 4 }
 0x48e   : > { %v14409_v15 = vpop.f32.mrf.mxu3  ;;  %v7391_v24 = vpack.c.b16 %v7361_v40, %v7360_v37  ;;  %v5905_v9 = vshll.u32 %v5823_v13, 16  ;;  %v6223_v40 = vld [vmem:[#allocation2 + $0x24] sm:$0xe]  ;;  %v6304_v37 = vrot.slane %v5823_v13, 5  ;;  %v5796_v13 = vld [vmem:[#allocation2 + $0x34] sm:$0xf] }
 0x48f   : > { %15752 = vst [vmem:[#allocation37_spill] sm:$0xff] %v14409_v15  ;;  %v5888_v18 = vrot.slane %v5886_v63, 4  ;;  %v5891_v33 = vrot.slane %v5889_v62, 5  ;;  %v7327_v6 = vpack.c.b16 %v7297_v35, %v7296_v32  ;;  %v5902_v49 = vor.u32 %v5901_v14, %v5897_v26 }
 0x490   : > { %v8348_v22 = vpop.f32.mrf.mxu2  ;;  %v14416_v58 = vpop.f32.mrf.mxu1  ;;  %v6303_v63 = vrot.slane %v6301_v42, 4  ;;  %v10460_v31 = vrot.slane %v6223_v40, 9  ;;  %v5907_v12 = vrot.slane %v5905_v9, 5 }
 0x491   : > { %v14418_v51 = vadd.f32 %v8348_v22, %v8260_v19 }
 0x492   : > { %v6305_v25 = vsel %vm11777_vm5, %v6303_v63, %v6304_v37  ;;  %v5919_v37 = vshll.u32 %v5796_v13, 16 }
 0x496   : > { %v14429_v4 = vpop.f32.mrf.mxu3 }
 0x497   : > { %15753 = vst [vmem:[#allocation7_spill] sm:$0xff] %v14429_v4 }
 0x498   : > { %v8350_v54 = vpop.f32.mrf.mxu2  ;;  %v14435_v19 = vpop.f32.mrf.mxu1 }
 0x499   : > { %v14437_v22 = vadd.f32 %v8350_v54, %v8262_v34  ;;  %v5892_v34 = vor.u32 %v5891_v33, %v5888_v18  ;;  %v8265_v54 = vadd.f32 %v14335_v11, %v14402_v60  ;;  %v5795_v18 = vld [vmem:[#allocation2 + $0x30] sm:$0xf]  ;;  %v7363_v33 = vunpack.c.l.b16 %v6305_v25  ;;  %v14461_v25 = vpop.f32.mrf.mxu0 }
 0x49a   : > { %v5910_v40 = vshrl.u32 %v5795_v18, 16  ;;  %15758 = vst [vmem:[#allocation3_spill] sm:$0xff] %v14461_v25 }
 0x49b   : > { %15754 = vst [vmem:[#allocation36_spill] sm:$0xff] %v14437_v22  ;;  %8668 = vmatmul.bf16.gmra.mxu3 %v7391_v24  ;;  %8495 = vmatmul.bf16.gmra.mxu1 %v11165_v41  ;;  %v5893_v32 = vrot.slane %v5892_v34, 4  ;;  %v6302_v41 = vsel %vm11777_vm5, %v10460_v31, %v6301_v42  ;;  %v5923_v34 = vshrl.u32 %v5796_v13, 16  ;;  %v8267_v42 = vadd.f32 %v14335_v11, %v14416_v58 }
 0x49c   : > { %8802 = vmatmul.bf16.gmra.mxu0 %v11189_v16  ;;  %v5903_v16 = vrot.slane %v5902_v49, 4  ;;  %v6308_v58 = vrot.slane %v5796_v13, 5 }
 0x49d   : > { %8579 = vmatmul.bf16.gmra.mxu2 %v7327_v6  ;;  %v7362_v6 = vunpack.c.l.b16 %v6302_v41  ;;  %v5898_v9 = vsel %vm11592_vm2, %v5893_v32, %v5897_v26  ;;  %v5824_v26 = vld [vmem:[#allocation2 + $0x38] sm:$0x1]  ;;  %v5912_v32 = vrot.slane %v5910_v40, 4  ;;  %v8270_v40 = vadd.f32 %v14335_v11, %v14435_v19 }
 0x49e   : > { %v14439_v4 = vpop.f32.mrf.mxu3  ;;  %v5908_v60 = vsel %vm11592_vm2, %v5903_v16, %v5907_v12  ;;  %v7298_v41 = vunpack.c.l.b16 %v5898_v9  ;;  %v11166_v16 = vld [vmem:[#allocation2 + $0x30] sm:$0xff]  ;;  %v11264_v9 = vld [vmem:[%s15550_s3 + $0x228] sm:$0xff] }
 0x49f   : > { %15755 = vst [vmem:[#allocation8_spill] sm:$0xff] %v14439_v4  ;;  %v7299_v49 = vunpack.c.l.b16 %v5908_v60  ;;  %v7392_v31 = vpack.c.b16 %v7363_v33, %v7362_v6  ;;  %v5921_v4 = vrot.slane %v5919_v37, 5  ;;  %v5929_v60 = vshll.u32 %v5824_v26, 16  ;;  %8924 = vmatpush.bf16.msra.mxu2 %v11264_v9 }
 0x4a0   : > { %v8353_v62 = vpop.f32.mrf.mxu2  ;;  %v14443_v24 = vpop.f32.mrf.mxu1  ;;  %v6311_v6 = vrot.slane %v5824_v26, 5  ;;  %v5797_v26 = vld [vmem:[#allocation2 + $0x3c] sm:$0xf] }
 0x4a1   : > { %v14445_v35 = vadd.f32 %v8353_v62, %v8265_v54  ;;  %v5913_v54 = vshll.u32 %v5795_v18, 16  ;;  %v7328_v22 = vpack.c.b16 %v7299_v49, %v7298_v41  ;;  %v5931_v13 = vrot.slane %v5929_v60, 5  ;;  %v11256_v41 = vld [vmem:[%s15550_s3 + $0x1e8] sm:$0xff]  ;;  %v14481_v19 = vpop.f32.mrf.mxu0 }
 0x4a2   : > { %15762 = vst [vmem:[#allocation31_spill] sm:$0xff] %v14481_v19  ;;  %8835 = vmatpush.bf16.msra.mxu1 %v11256_v41  ;;  %v8272_v19 = vadd.f32 %v14335_v11, %v14443_v24 }
 0x4a3   : > { %15756 = vst [vmem:[#allocation9_spill] sm:$0xff] %v14445_v35  ;;  %v5915_v18 = vrot.slane %v5913_v54, 5  ;;  %v5925_v35 = vrot.slane %v5923_v34, 4  ;;  %v6310_v54 = vrot.slane %v6308_v58, 4 }
 0x4a5   : > { %v6312_v49 = vsel %vm11777_vm5, %v6310_v54, %v6311_v6  ;;  %v5934_v6 = vshrl.u32 %v5797_v26, 16 }
 0x4a6   : > { %v14453_v14 = vpop.f32.mrf.mxu3  ;;  %v7365_v60 = vunpack.c.l.b16 %v6312_v49 }
 0x4a7   : > { %15757 = vst [vmem:[#allocation10_spill] sm:$0xff] %v14453_v14  ;;  %v11190_v14 = vld [vmem:[#allocation2 + $0x9c] sm:$0xff] }
 0x4a8   : > { %v8355_v63 = vpop.f32.mrf.mxu2  ;;  %v14459_v62 = vpop.f32.mrf.mxu1 }
 0x4a9   : > { %v14463_v12 = vadd.f32 %v8355_v63, %v8267_v42  ;;  %v6224_v42 = vld [vmem:[#allocation2 + $0x30] sm:$0xe]  ;;  %v5916_v63 = vor.u32 %v5915_v18, %v5912_v32  ;;  %v5798_v18 = vld [vmem:[#allocation2 + $0x40] sm:$0xf] }
 0x4aa   : > { %v10461_v34 = vrot.slane %v6224_v42, 9  ;;  %v6315_v24 = vrot.slane %v5798_v18, 5 }
 0x4ab   : > { %15759 = vst [vmem:[#allocation14_spill] sm:$0xff] %v14463_v12  ;;  %8673 = vmatmul.bf16.gmra.mxu3 %v7392_v31  ;;  %8500 = vmatmul.bf16.gmra.mxu1 %v11166_v16  ;;  %v5926_v31 = vor.u32 %v5925_v35, %v5921_v4  ;;  %v5917_v35 = vrot.slane %v5916_v63, 4  ;;  %v14497_v12 = vpop.f32.mrf.mxu0 }
 0x4ac   : > { %8807 = vmatmul.bf16.gmra.mxu0 %v11190_v14  ;;  %v6309_v32 = vsel %vm11777_vm5, %v10461_v34, %v6308_v58  ;;  %15765 = vst [vmem:[#allocation16_spill] sm:$0xff] %v14497_v12  ;;  %v11168_v12 = vld [vmem:[#allocation2 + $0x48] sm:$0xff] }
 0x4ad   : > { %8584 = vmatmul.bf16.gmra.mxu2 %v7328_v22  ;;  %v5927_v16 = vrot.slane %v5926_v31, 4  ;;  %v7364_v54 = vunpack.c.l.b16 %v6309_v32  ;;  %v5922_v63 = vsel %vm11592_vm2, %v5917_v35, %v5921_v4  ;;  %v5943_v31 = vshll.u32 %v5798_v18, 16 }
 0x4ae   : > { %v14465_v33 = vpop.f32.mrf.mxu3  ;;  %v5936_v32 = vrot.slane %v5934_v6, 4  ;;  %v8275_v6 = vadd.f32 %v14335_v11, %v14459_v62 }
 0x4af   : > { %15760 = vst [vmem:[#allocation42_spill] sm:$0xff] %v14465_v33  ;;  %v5932_v9 = vsel %vm11592_vm2, %v5927_v16, %v5931_v13  ;;  %v7393_v49 = vpack.c.b16 %v7365_v60, %v7364_v54  ;;  %v7300_v13 = vunpack.c.l.b16 %v5922_v63  ;;  %v11167_v16 = vld [vmem:[#allocation2 + $0x3c] sm:$0xff]  ;;  %v5945_v4 = vrot.slane %v5943_v31, 5 }
 0x4b0   : > { %v8358_v37 = vpop.f32.mrf.mxu2  ;;  %v14472_v14 = vpop.f32.mrf.mxu1  ;;  %v7301_v58 = vunpack.c.l.b16 %v5932_v9 }
 0x4b1   : > { %v14474_v22 = vadd.f32 %v8358_v37, %v8270_v40  ;;  %v5937_v40 = vshll.u32 %v5797_v26, 16  ;;  %v5947_v37 = vshrl.u32 %v5798_v18, 16  ;;  %v5825_v26 = vld [vmem:[#allocation2 + $0x44] sm:$0x1] }
 0x4b2   : > { %v5953_v9 = vshll.u32 %v5825_v26, 16  ;;  %v6318_v54 = vrot.slane %v5825_v26, 5  ;;  %v5799_v26 = vld [vmem:[#allocation2 + $0x48] sm:$0xf] }
 0x4b3   : > { %15761 = vst [vmem:[#allocation12_spill] sm:$0xff] %v14474_v22  ;;  %v5939_v33 = vrot.slane %v5937_v40, 5  ;;  %v5949_v35 = vrot.slane %v5947_v37, 4  ;;  %v7329_v22 = vpack.c.b16 %v7301_v58, %v7300_v13  ;;  %v6317_v40 = vrot.slane %v6315_v24, 4 }
 0x4b5   : > { %v5940_v63 = vor.u32 %v5939_v33, %v5936_v32 }
 0x4b6   : > { %v14487_v42 = vpop.f32.mrf.mxu3 }
 0x4b7   : > { %15763 = vst [vmem:[#allocation11_spill] sm:$0xff] %v14487_v42  ;;  %v11191_v42 = vld [vmem:[#allocation2 + $0xa8] sm:$0xff] }
 0x4b8   : > { %v8360_v34 = vpop.f32.mrf.mxu2  ;;  %v14493_v41 = vpop.f32.mrf.mxu1 }
 0x4b9   : > { %v14495_v25 = vadd.f32 %v8360_v34, %v8272_v19  ;;  %v6225_v19 = vld [vmem:[#allocation2 + $0x3c] sm:$0xe]  ;;  %v5950_v34 = vor.u32 %v5949_v35, %v5945_v4 }
 0x4ba   : > { %v10462_v58 = vrot.slane %v6225_v19, 9 }
 0x4bb   : > { %15764 = vst [vmem:[#allocation5_spill] sm:$0xff] %v14495_v25  ;;  %8678 = vmatmul.bf16.gmra.mxu3 %v7393_v49  ;;  %8505 = vmatmul.bf16.gmra.mxu1 %v11167_v16  ;;  %v5941_v49 = vrot.slane %v5940_v63, 4  ;;  %v5951_v33 = vrot.slane %v5950_v34, 4  ;;  %v5800_v16 = vld [vmem:[#allocation2 + $0x4c] sm:$0xf] }
 0x4bc   : > { %8812 = vmatmul.bf16.gmra.mxu0 %v11191_v42  ;;  %v5955_v42 = vrot.slane %v5953_v9, 5  ;;  %v6316_v13 = vsel %vm11777_vm5, %v10462_v58, %v6315_v24  ;;  %v5971_v63 = vshrl.u32 %v5800_v16, 16  ;;  %v8277_v24 = vadd.f32 %v14335_v11, %v14472_v14 }
 0x4bd   : > { %8589 = vmatmul.bf16.gmra.mxu2 %v7329_v22  ;;  %v6319_v22 = vsel %vm11777_vm5, %v6317_v40, %v6318_v54  ;;  %v7366_v19 = vunpack.c.l.b16 %v6316_v13  ;;  %v5946_v9 = vsel %vm11592_vm2, %v5941_v49, %v5945_v4  ;;  %v5967_v54 = vshll.u32 %v5800_v16, 16  ;;  %v14517_v40 = vpop.f32.mrf.mxu0  ;;  %v5826_v4 = vld [vmem:[#allocation2 + $0x50] sm:$0x1] }
 0x4be   : > { %v14499_v60 = vpop.f32.mrf.mxu3  ;;  %v7367_v32 = vunpack.c.l.b16 %v6319_v22  ;;  %v5956_v62 = vsel %vm11592_vm2, %v5951_v33, %v5955_v42  ;;  %15769 = vst [vmem:[#allocation4_spill] sm:$0xff] %v14517_v40  ;;  %v7302_v13 = vunpack.c.l.b16 %v5946_v9  ;;  %v6322_v14 = vrot.slane %v5800_v16, 5  ;;  %v11263_v9 = vld [vmem:[%s15550_s3 + $0x220] sm:$0xff] }
 0x4bf   : > { %15766 = vst [vmem:[#allocation41_spill] sm:$0xff] %v14499_v60  ;;  %v7303_v34 = vunpack.c.l.b16 %v5956_v62  ;;  %v5969_v60 = vrot.slane %v5967_v54, 5  ;;  %v5977_v62 = vshll.u32 %v5826_v4, 16  ;;  %8925 = vmatpush.bf16.msra.mxu2 %v11263_v9 }
 0x4c0   : > { %v8363_v31 = vpop.f32.mrf.mxu2  ;;  %v14503_v37 = vpop.f32.mrf.mxu1  ;;  %v7394_v42 = vpack.c.b16 %v7367_v32, %v7366_v19  ;;  %v6226_v32 = vld [vmem:[#allocation2 + $0x48] sm:$0xe]  ;;  %v6325_v19 = vrot.slane %v5826_v4, 5  ;;  %v5801_v4 = vld [vmem:[#allocation2 + $0x54] sm:$0xf] }
 0x4c1   : > { %v14505_v18 = vadd.f32 %v8363_v31, %v8275_v6  ;;  %v5958_v6 = vshrl.u32 %v5799_v26, 16  ;;  %v5961_v31 = vshll.u32 %v5799_v26, 16  ;;  %v7330_v40 = vpack.c.b16 %v7303_v34, %v7302_v13 }
 0x4c2   : > { %v10463_v16 = vrot.slane %v6226_v32, 9  ;;  %v5979_v54 = vrot.slane %v5977_v62, 5 }
 0x4c3   : > { %15767 = vst [vmem:[#allocation15_spill] sm:$0xff] %v14505_v18  ;;  %v5960_v49 = vrot.slane %v5958_v6, 4  ;;  %v5963_v26 = vrot.slane %v5961_v31, 5  ;;  %v5973_v18 = vrot.slane %v5971_v63, 4  ;;  %v8280_v6 = vadd.f32 %v14335_v11, %v14493_v41 }
 0x4c4   : > { %v6324_v31 = vrot.slane %v6322_v14, 4  ;;  %v6323_v41 = vsel %vm11777_vm5, %v10463_v16, %v6322_v14  ;;  %v8282_v14 = vadd.f32 %v14335_v11, %v14503_v37 }
 0x4c5   : > { %v14534_v63 = vpop.f32.mrf.mxu0  ;;  %v7368_v9 = vunpack.c.l.b16 %v6323_v41  ;;  %v11193_v41 = vld [vmem:[#allocation2 + $0xc0] sm:$0xff] }
 0x4c6   : > { %v14513_v35 = vpop.f32.mrf.mxu3  ;;  %15772 = vst [vmem:[#allocation19_spill] sm:$0xff] %v14534_v63  ;;  %v6326_v34 = vsel %vm11777_vm5, %v6324_v31, %v6325_v19  ;;  %v5982_v19 = vshrl.u32 %v5801_v4, 16  ;;  %v5985_v31 = vshll.u32 %v5801_v4, 16 }
 0x4c7   : > { %15768 = vst [vmem:[#allocation13_spill] sm:$0xff] %v14513_v35  ;;  %v11192_v35 = vld [vmem:[#allocation2 + $0xb4] sm:$0xff] }
 0x4c8   : > { %v8365_v58 = vpop.f32.mrf.mxu2  ;;  %v14521_v22 = vpop.f32.mrf.mxu1 }
 0x4c9   : > { %v14523_v33 = vadd.f32 %v8365_v58, %v8277_v24  ;;  %v5964_v24 = vor.u32 %v5963_v26, %v5960_v49  ;;  %v5974_v58 = vor.u32 %v5973_v18, %v5969_v60  ;;  %v11255_v18 = vld [vmem:[%s15550_s3 + $0x1e0] sm:$0xff]  ;;  %v5802_v49 = vld [vmem:[#allocation2 + $0x58] sm:$0xf]  ;;  %v7369_v26 = vunpack.c.l.b16 %v6326_v34 }
 0x4ca   : > { %8836 = vmatpush.bf16.msra.mxu1 %v11255_v18  ;;  %v5995_v63 = vshrl.u32 %v5802_v49, 16  ;;  %v6329_v37 = vrot.slane %v5802_v49, 5 }
 0x4cb   : > { %15770 = vst [vmem:[#allocation20_spill] sm:$0xff] %v14523_v33  ;;  %8683 = vmatmul.bf16.gmra.mxu3 %v7394_v42  ;;  %8510 = vmatmul.bf16.gmra.mxu1 %v11168_v12  ;;  %v5965_v42 = vrot.slane %v5964_v24, 4  ;;  %v5975_v13 = vrot.slane %v5974_v58, 4  ;;  %v7395_v34 = vpack.c.b16 %v7369_v26, %v7368_v9 }
 0x4cc   : > { %8817 = vmatmul.bf16.gmra.mxu0 %v11192_v35  ;;  %v5997_v4 = vrot.slane %v5995_v63, 4 }
 0x4cd   : > { %8594 = vmatmul.bf16.gmra.mxu2 %v7330_v40  ;;  %v5980_v62 = vsel %vm11592_vm2, %v5975_v13, %v5979_v54  ;;  %v11169_v13 = vld [vmem:[#allocation2 + $0x54] sm:$0xff] }
 0x4ce   : > { %v14525_v25 = vpop.f32.mrf.mxu3  ;;  %v7305_v24 = vunpack.c.l.b16 %v5980_v62 }
 0x4cf   : > { %15771 = vst [vmem:[#allocation17_spill] sm:$0xff] %v14525_v25  ;;  %v5984_v25 = vrot.slane %v5982_v19, 4  ;;  %v8285_v19 = vadd.f32 %v14335_v11, %v14521_v22 }
 0x4d0   : > { %v8368_v12 = vpop.f32.mrf.mxu2  ;;  %v14532_v35 = vpop.f32.mrf.mxu1 }
 0x4d1   : > { %v14536_v40 = vadd.f32 %v8368_v12, %v8280_v6  ;;  %v5970_v6 = vsel %vm11592_vm2, %v5965_v42, %v5969_v60  ;;  %v5991_v12 = vshll.u32 %v5802_v49, 16  ;;  %v5987_v60 = vrot.slane %v5985_v31, 5 }
 0x4d2   : > { %v7304_v54 = vunpack.c.l.b16 %v5970_v6  ;;  %v6227_v6 = vld [vmem:[#allocation2 + $0x54] sm:$0xe]  ;;  %v6331_v31 = vrot.slane %v6329_v37, 4 }
 0x4d3   : > { %15773 = vst [vmem:[#allocation6_spill] sm:$0xff] %v14536_v40  ;;  %v5993_v42 = vrot.slane %v5991_v12, 5  ;;  %v14557_v40 = vpop.f32.mrf.mxu0 }
 0x4d4   : > { %15776 = vst [vmem:[#allocation21_spill] sm:$0xff] %v14557_v40  ;;  %v7331_v33 = vpack.c.b16 %v7305_v24, %v7304_v54  ;;  %v10464_v54 = vrot.slane %v6227_v6, 9 }
 0x4d6   : > { %v14547_v32 = vpop.f32.mrf.mxu3 }
 0x4d7   : > { %15774 = vst [vmem:[#allocation18_spill] sm:$0xff] %v14547_v32  ;;  %v5827_v32 = vld [vmem:[#allocation2 + $0x5c] sm:$0x1] }
 0x4d8   : > { %v8370_v58 = vpop.f32.mrf.mxu2  ;;  %v14553_v16 = vpop.f32.mrf.mxu1  ;;  %v6001_v62 = vshll.u32 %v5827_v32, 16  ;;  %v6332_v9 = vrot.slane %v5827_v32, 5  ;;  %v5803_v32 = vld [vmem:[#allocation2 + $0x60] sm:$0xf] }
 0x4d9   : > { %v14555_v18 = vadd.f32 %v8370_v58, %v8282_v14  ;;  %v5988_v14 = vor.u32 %v5987_v60, %v5984_v25  ;;  %v5998_v58 = vor.u32 %v5997_v4, %v5993_v42  ;;  %v6330_v25 = vsel %vm11777_vm5, %v10464_v54, %v6329_v37 }
 0x4db   : > { %15775 = vst [vmem:[#allocation24_spill] sm:$0xff] %v14555_v18  ;;  %8688 = vmatmul.bf16.gmra.mxu3 %v7395_v34  ;;  %8515 = vmatmul.bf16.gmra.mxu1 %v11169_v13  ;;  %v6003_v34 = vrot.slane %v6001_v62, 5  ;;  %v5989_v49 = vrot.slane %v5988_v14, 4  ;;  %v5999_v13 = vrot.slane %v5998_v58, 4  ;;  %v6006_v62 = vshrl.u32 %v5803_v32, 16 }
 0x4dc   : > { %8822 = vmatmul.bf16.gmra.mxu0 %v11193_v41  ;;  %v5804_v41 = vld [vmem:[#allocation2 + $0x64] sm:$0xf]  ;;  %v8287_v58 = vadd.f32 %v14335_v11, %v14532_v35 }
 0x4dd   : > { %8599 = vmatmul.bf16.gmra.mxu2 %v7331_v33  ;;  %v6333_v33 = vsel %vm11777_vm5, %v6331_v31, %v6332_v9  ;;  %v6004_v22 = vsel %vm11592_vm2, %v5999_v13, %v6003_v34  ;;  %v5994_v6 = vsel %vm11592_vm2, %v5989_v49, %v5993_v42  ;;  %v6015_v9 = vshll.u32 %v5804_v41, 16  ;;  %v11170_v13 = vld [vmem:[#allocation2 + $0x60] sm:$0xff] }
 0x4de   : > { %v14559_v26 = vpop.f32.mrf.mxu3  ;;  %v7371_v60 = vunpack.c.l.b16 %v6333_v33  ;;  %v6019_v14 = vshrl.u32 %v5804_v41, 16  ;;  %v7307_v31 = vunpack.c.l.b16 %v6004_v22  ;;  %v7306_v34 = vunpack.c.l.b16 %v5994_v6 }
 0x4df   : > { %15777 = vst [vmem:[#allocation23_spill] sm:$0xff] %v14559_v26  ;;  %v6017_v26 = vrot.slane %v6015_v9, 5 }
 0x4e0   : > { %v8373_v12 = vpop.f32.mrf.mxu2  ;;  %v14563_v63 = vpop.f32.mrf.mxu1  ;;  %v6021_v42 = vrot.slane %v6019_v14, 4  ;;  %v7332_v49 = vpack.c.b16 %v7307_v31, %v7306_v34  ;;  %v5805_v34 = vld [vmem:[#allocation2 + $0x6c] sm:$0xf] }
 0x4e1   : > { %v14565_v24 = vadd.f32 %v8373_v12, %v8285_v19  ;;  %v6009_v19 = vshll.u32 %v5803_v32, 16  ;;  %v7370_v12 = vunpack.c.l.b16 %v6330_v25  ;;  %v6008_v32 = vrot.slane %v6006_v62, 4 }
 0x4e2   : > { %v6022_v6 = vor.u32 %v6021_v42, %v6017_v26  ;;  %v8290_v62 = vadd.f32 %v14335_v11, %v14553_v16  ;;  %v11254_v16 = vld [vmem:[%s15550_s3 + $0x1d8] sm:$0xff] }
 0x4e3   : > { %15778 = vst [vmem:[#allocation22_spill] sm:$0xff] %v14565_v24  ;;  %v7396_v33 = vpack.c.b16 %v7371_v60, %v7370_v12  ;;  %v6011_v25 = vrot.slane %v6009_v19, 5  ;;  %v6336_v24 = vrot.slane %v5804_v41, 5  ;;  %v11262_v60 = vld [vmem:[%s15550_s3 + $0x218] sm:$0xff]  ;;  %v6228_v12 = vld [vmem:[#allocation2 + $0x60] sm:$0xe]  ;;  %8837 = vmatpush.bf16.msra.mxu1 %v11254_v16 }
 0x4e4   : > { %8926 = vmatpush.bf16.msra.mxu2 %v11262_v60  ;;  %v10465_v31 = vrot.slane %v6228_v12, 9 }
 0x4e5   : > { %v6012_v15 = vor.u32 %v6011_v25, %v6008_v32  ;;  %v6338_v19 = vrot.slane %v6336_v24, 4  ;;  %v5806_v32 = vld [vmem:[#allocation2 + $0x70] sm:$0xf] }
 0x4e6   : > { %v14573_v4 = vpop.f32.mrf.mxu3  ;;  %v6039_v12 = vshll.u32 %v5806_v32, 16 }
 0x4e7   : > { %15779 = vst [vmem:[#allocation28_spill] sm:$0xff] %v14573_v4  ;;  %v5828_v4 = vld [vmem:[#allocation2 + $0x68] sm:$0x1] }
 0x4e8   : > { %v8375_v37 = vpop.f32.mrf.mxu2  ;;  %v14579_v54 = vpop.f32.mrf.mxu1  ;;  %v6025_v18 = vshll.u32 %v5828_v4, 16  ;;  %v6339_v22 = vrot.slane %v5828_v4, 5 }
 0x4e9   : > { %v14581_v40 = vadd.f32 %v8375_v37, %v8287_v58  ;;  %v6013_v37 = vrot.slane %v6012_v15, 4  ;;  %v6030_v15 = vshrl.u32 %v5805_v34, 16 }
 0x4ea   : > { %v6027_v41 = vrot.slane %v6025_v18, 5  ;;  %v6340_v4 = vsel %vm11777_vm5, %v6338_v19, %v6339_v22  ;;  %v6033_v22 = vshll.u32 %v5805_v34, 16  ;;  %v5829_v34 = vld [vmem:[#allocation2 + $0x74] sm:$0x1] }
 0x4eb   : > { %8693 = vmatmul.bf16.gmra.mxu3 %v7396_v33  ;;  %8520 = vmatmul.bf16.gmra.mxu1 %v11170_v13  ;;  %v6023_v33 = vrot.slane %v6022_v6, 4  ;;  %v6337_v13 = vsel %vm11777_vm5, %v10465_v31, %v6336_v24  ;;  %v7373_v25 = vunpack.c.l.b16 %v6340_v4  ;;  %v6043_v24 = vshrl.u32 %v5806_v32, 16 }
 0x4ec   : > { %v7372_v60 = vunpack.c.l.b16 %v6337_v13  ;;  %v8292_v6 = vadd.f32 %v14335_v11, %v14563_v63  ;;  %v6032_v13 = vrot.slane %v6030_v15, 4  ;;  %v6035_v16 = vrot.slane %v6033_v22, 5 }
 0x4ed   : > { %8604 = vmatmul.bf16.gmra.mxu2 %v7332_v49  ;;  %v6028_v18 = vsel %vm11592_vm2, %v6023_v33, %v6027_v41  ;;  %v6018_v49 = vsel %vm11592_vm2, %v6013_v37, %v6017_v26  ;;  %v11171_v37 = vld [vmem:[#allocation2 + $0x6c] sm:$0xff]  ;;  %v8400_v15 = vadd.f32 %v14035_v39, %v14047_v53 }
 0x4ee   : > { %v14583_v35 = vpop.f32.mrf.mxu3  ;;  %v7309_v19 = vunpack.c.l.b16 %v6028_v18  ;;  %v7397_v31 = vpack.c.b16 %v7373_v25, %v7372_v60  ;;  %v7308_v4 = vunpack.c.l.b16 %v6018_v49  ;;  %v6229_v25 = vld [vmem:[#allocation2 + $0x6c] sm:$0xe]  ;;  %v6346_v18 = vrot.slane %v5829_v34, 5 }
 0x4ef   : > { %15780 = vst [vmem:[#allocation25_spill] sm:$0xff] %v14583_v35  ;;  %v6045_v35 = vrot.slane %v6043_v24, 4  ;;  %v6036_v49 = vor.u32 %v6035_v16, %v6032_v13 }
 0x4f0   : > { %v8378_v9 = vpop.f32.mrf.mxu2  ;;  %v14590_v14 = vpop.f32.mrf.mxu1  ;;  %v7333_v63 = vpack.c.b16 %v7309_v19, %v7308_v4  ;;  %v5807_v4 = vld [vmem:[#allocation2 + $0x78] sm:$0xf] }
 0x4f1   : > { %v14592_v58 = vadd.f32 %v8378_v9, %v8290_v62  ;;  %v8398_v62 = vadd.f32 %v14013_v1, %v14024_v43  ;;  %v6049_v1 = vshll.u32 %v5829_v34, 16  ;;  %v6054_v13 = vshrl.u32 %v5807_v4, 16 }
 0x4f2   : > { %v6057_v16 = vshll.u32 %v5807_v4, 16 }
 0x4f3   : > { %15781 = vst [vmem:[#allocation27_spill] sm:$0xff] %v14592_v58  ;;  %v6343_v58 = vrot.slane %v5806_v32, 5  ;;  %v6051_v19 = vrot.slane %v6049_v1, 5 }
 0x4f5   : > { %v6345_v22 = vrot.slane %v6343_v58, 4 }
 0x4f6   : > { %v14603_v42 = vpop.f32.mrf.mxu3 }
 0x4f7   : > { %15782 = vst [vmem:[#allocation26_spill] sm:$0xff] %v14603_v42  ;;  %v6041_v42 = vrot.slane %v6039_v12, 5 }
 0x4f8   : > { %v8380_v9 = vpop.f32.mrf.mxu2  ;;  %v8486_v41 = vpop.f32.mrf.mxu1 }
 0x4f9   : > { %v14611_v33 = vadd.f32 %v8380_v9, %v8292_v6  ;;  %v14613_v26 = vadd.f32 %v8486_v41, %v8398_v62  ;;  %v6046_v60 = vor.u32 %v6045_v35, %v6041_v42  ;;  %v8295_v6 = vadd.f32 %v14335_v11, %v14579_v54  ;;  %v5808_v54 = vld [vmem:[#allocation2 + $0x7c] sm:$0xf] }
 0x4fa   : > { %v10466_v62 = vrot.slane %v6229_v25, 9  ;;  %v6347_v41 = vsel %vm11777_vm5, %v6345_v22, %v6346_v18  ;;  %v6063_v1 = vshll.u32 %v5808_v54, 16  ;;  %v6067_v25 = vshrl.u32 %v5808_v54, 16  ;;  %v11462_v18 = vld [vmem:[%s15551_s4] ss:$0 sm:$0xff] }
 0x4fb   : > { %8698 = vmatmul.bf16.gmra.mxu3 %v7397_v31  ;;  %8525 = vmatmul.bf16.gmra.mxu1 %v11171_v37  ;;  %v6037_v31 = vrot.slane %v6036_v49, 4  ;;  %v6047_v35 = vrot.slane %v6046_v60, 4  ;;  %v7375_v39 = vunpack.c.l.b16 %v6347_v41  ;;  %v8403_v49 = vadd.f32 %v14051_v52, %v14066_v45 }
 0x4fc   : > { %v6344_v11 = vsel %vm11777_vm5, %v10466_v62, %v6343_v58  ;;  %v8297_v58 = vadd.f32 %v11462_v18, %v14590_v14  ;;  %v11172_v62 = vld [vmem:[#allocation2 + $0x78] sm:$0xff]  ;;  %v6056_v41 = vrot.slane %v6054_v13, 4  ;;  %v6069_v4 = vrot.slane %v6067_v25, 4 }
 0x4fd   : > { %8609 = vmatmul.bf16.gmra.mxu2 %v7333_v63  ;;  %v6052_v53 = vsel %vm11592_vm2, %v6047_v35, %v6051_v19  ;;  %v6042_v34 = vsel %vm11592_vm2, %v6037_v31, %v6041_v42  ;;  %v7374_v63 = vunpack.c.l.b16 %v6344_v11  ;;  %v5830_v19 = vld [vmem:[#allocation2 + $0x80] sm:$0x1]  ;;  %v6059_v31 = vrot.slane %v6057_v16, 5 }
 0x4fe   : > { %v14615_v43 = vpop.f32.mrf.mxu3  ;;  %v7311_v60 = vunpack.c.l.b16 %v6052_v53  ;;  %v6065_v35 = vrot.slane %v6063_v1, 5  ;;  %v6350_v11 = vrot.slane %v5808_v54, 5  ;;  %v6073_v52 = vshll.u32 %v5830_v19, 16  ;;  %v6230_v53 = vld [vmem:[#allocation2 + $0x78] sm:$0xe] }
 0x4ff   : > { %v7398_v22 = vpack.c.b16 %v7375_v39, %v7374_v63  ;;  %v6353_v39 = vrot.slane %v5830_v19, 5  ;;  %v11261_v63 = vld [vmem:[%s15550_s3 + $0x210] sm:$0xff]  ;;  %v8405_v13 = vadd.f32 %v14081_v0, %v14099_v38  ;;  %v5810_v38 = vld [vmem:[#allocation2 + $0x88] sm:$0xf] }
 0x500   : > { %v8383_v12 = vpop.f32.mrf.mxu2  ;;  %v8488_v24 = vpop.f32.mrf.mxu1  ;;  %v6070_v18 = vor.u32 %v6069_v4, %v6065_v35  ;;  %v6352_v16 = vrot.slane %v6350_v11, 4  ;;  %8927 = vmatpush.bf16.msra.mxu2 %v11261_v63  ;;  %v6075_v54 = vrot.slane %v6073_v52, 5  ;;  %v11253_v19 = vld [vmem:[%s15550_s3 + $0x1d0] sm:$0xff] }
 0x501   : > { %v14621_v32 = vadd.f32 %v8383_v12, %v8295_v6  ;;  %v14623_v9 = vadd.f32 %v8488_v24, %v8400_v15  ;;  %v7310_v12 = vunpack.c.l.b16 %v6042_v34  ;;  %v6060_v34 = vor.u32 %v6059_v31, %v6056_v41  ;;  %8838 = vmatpush.bf16.msra.mxu1 %v11253_v19  ;;  %v6231_v19 = vld [vmem:[#allocation2 + $0x84] sm:$0xe] }
 0x503   : > { %v7334_v14 = vpack.c.b16 %v7311_v60, %v7310_v12  ;;  %v5809_v12 = vld [vmem:[#allocation2 + $0x84] sm:$0xf] }
 0x504   : > { %v6081_v52 = vshll.u32 %v5809_v12, 16 }
 0x506   : > { %v14631_v37 = vpop.f32.mrf.mxu3 }
 0x508   : > { %v8385_v6 = vpop.f32.mrf.mxu2  ;;  %v8491_v15 = vpop.f32.mrf.mxu1 }
 0x509   : > { %v14641_v42 = vadd.f32 %v8385_v6, %v8297_v58  ;;  %v14643_v24 = vadd.f32 %v8491_v15, %v8403_v49  ;;  %v10467_v58 = vrot.slane %v6230_v53, 9  ;;  %v6354_v6 = vsel %vm11777_vm5, %v6352_v16, %v6353_v39 }
 0x50a   : > { %v6061_v15 = vrot.slane %v6060_v34, 4  ;;  %v7377_v41 = vunpack.c.l.b16 %v6354_v6  ;;  %v6087_v53 = vshll.u32 %v5810_v38, 16  ;;  %v6091_v39 = vshrl.u32 %v5810_v38, 16 }
 0x50b   : > { %8703 = vmatmul.bf16.gmra.mxu3 %v7398_v22  ;;  %8530 = vmatmul.bf16.gmra.mxu1 %v11172_v62  ;;  %v6071_v22 = vrot.slane %v6070_v18, 4  ;;  %v6351_v0 = vsel %vm11777_vm5, %v10467_v58, %v6350_v11  ;;  %v8408_v11 = vadd.f32 %v14101_v48, %v14116_v21  ;;  %v11173_v58 = vld [vmem:[#allocation2 + $0x84] sm:$0xff]  ;;  %v6357_v48 = vrot.slane %v5810_v38, 5 }
 0x50c   : > { %v6066_v4 = vsel %vm11592_vm2, %v6061_v15, %v6065_v35  ;;  %v5831_v35 = vld [vmem:[#allocation2 + $0x8c] sm:$0x1]  ;;  %v6089_v6 = vrot.slane %v6087_v53, 5  ;;  %v6093_v15 = vrot.slane %v6091_v39, 4  ;;  %v10468_v53 = vrot.slane %v6231_v19, 9 }
 0x50d   : > { %8614 = vmatmul.bf16.gmra.mxu2 %v7334_v14  ;;  %v6078_v14 = vshrl.u32 %v5809_v12, 16  ;;  %v7312_v16 = vunpack.c.l.b16 %v6066_v4  ;;  %v6097_v21 = vshll.u32 %v5831_v35, 16  ;;  %v8410_v4 = vadd.f32 %v14125_v50, %v14143_v57  ;;  %v5812_v57 = vld [vmem:[#allocation2 + $0x94] sm:$0xf] }
 0x50e   : > { %v8664_v45 = vpop.f32.mrf.mxu3  ;;  %v6358_v50 = vsel %vm11777_vm5, %v10468_v53, %v6357_v48 }
 0x50f   : > { %v6099_v39 = vrot.slane %v6097_v21, 5  ;;  %v8413_v21 = vadd.f32 %v14145_v3, %v14166_v2  ;;  %v6364_v3 = vrot.slane %v5812_v57, 5 }
 0x510   : > { %v8575_v1 = vpop.f32.mrf.mxu2  ;;  %v8493_v25 = vpop.f32.mrf.mxu1 }
 0x511   : > { %v8576_v49 = vadd.f32 %v8575_v1, %v14613_v26  ;;  %v14651_v60 = vadd.f32 %v8493_v25, %v8405_v13  ;;  %v6076_v26 = vsel %vm11592_vm2, %v6071_v22, %v6075_v54  ;;  %v6080_v54 = vrot.slane %v6078_v14, 4 }
 0x512   : > { %v7313_v34 = vunpack.c.l.b16 %v6076_v26  ;;  %v6094_v26 = vor.u32 %v6093_v15, %v6089_v6  ;;  %v6359_v14 = vrot.slane %v6357_v48, 4  ;;  %v6111_v15 = vshll.u32 %v5812_v57, 16 }
 0x513   : > { %v14655_v62 = vadd.f32 %v8664_v45, %v8576_v49  ;;  %v7376_v45 = vunpack.c.l.b16 %v6351_v0  ;;  %v6083_v49 = vrot.slane %v6081_v52, 5 }
 0x514   : > { %v7335_v12 = vpack.c.b16 %v7313_v34, %v7312_v16  ;;  %v6113_v53 = vrot.slane %v6111_v15, 5 }
 0x515   : > { %v7399_v13 = vpack.c.b16 %v7377_v41, %v7376_v45  ;;  %v6360_v41 = vrot.slane %v5831_v35, 5 }
 0x516   : > { %v8666_v31 = vpop.f32.mrf.mxu3 }
 0x517   : > { %v6361_v38 = vsel %vm11777_vm5, %v6359_v14, %v6360_v41  ;;  %v11174_v14 = vld [vmem:[#allocation2 + $0x90] sm:$0xff] }
 0x518   : > { %v8577_v63 = vpop.f32.mrf.mxu2  ;;  %v8496_v18 = vpop.f32.mrf.mxu1  ;;  %v7379_v16 = vunpack.c.l.b16 %v6361_v38 }
 0x519   : > { %v8578_v1 = vadd.f32 %v8577_v63, %v14623_v9  ;;  %v14669_v25 = vadd.f32 %v8496_v18, %v8408_v11  ;;  %v6084_v9 = vor.u32 %v6083_v49, %v6080_v54  ;;  %v6095_v63 = vrot.slane %v6094_v26, 4  ;;  %v5811_v18 = vld [vmem:[#allocation2 + $0x90] sm:$0xf] }
 0x51a   : > { %v6102_v35 = vshrl.u32 %v5811_v18, 16  ;;  %v6105_v54 = vshll.u32 %v5811_v18, 16  ;;  %v7378_v49 = vunpack.c.l.b16 %v6358_v50  ;;  %v11260_v50 = vld [vmem:[%s15550_s3 + $0x208] sm:$0xff] }
 0x51b   : > { %8708 = vmatmul.bf16.gmra.mxu3 %v7399_v13  ;;  %v14671_v22 = vadd.f32 %v8666_v31, %v8578_v1  ;;  %8535 = vmatmul.bf16.gmra.mxu1 %v11173_v58  ;;  %v6085_v34 = vrot.slane %v6084_v9, 4  ;;  %v6100_v1 = vsel %vm11592_vm2, %v6095_v63, %v6099_v39  ;;  %v6232_v63 = vld [vmem:[#allocation2 + $0x90] sm:$0xe] }
 0x51c   : > { %v7400_v41 = vpack.c.b16 %v7379_v16, %v7378_v49  ;;  %8928 = vmatpush.bf16.msra.mxu2 %v11260_v50 }
 0x51d   : > { %8619 = vmatmul.bf16.gmra.mxu2 %v7335_v12  ;;  %v6115_v12 = vshrl.u32 %v5812_v57, 16 }
 0x51e   : > { %v8669_v0 = vpop.f32.mrf.mxu3 }
 0x51f   : > { %v6117_v39 = vrot.slane %v6115_v12, 4 }
 0x520   : > { %v8580_v52 = vpop.f32.mrf.mxu2  ;;  %v8498_v45 = vpop.f32.mrf.mxu1 }
 0x521   : > { %v8581_v31 = vadd.f32 %v8580_v52, %v14643_v24  ;;  %v14676_v11 = vadd.f32 %v8498_v45, %v8410_v4  ;;  %v6090_v24 = vsel %vm11592_vm2, %v6085_v34, %v6089_v6  ;;  %v5832_v52 = vld [vmem:[#allocation2 + $0x98] sm:$0x1]  ;;  %v6104_v6 = vrot.slane %v6102_v35, 4 }
 0x522   : > { %v7314_v9 = vunpack.c.l.b16 %v6090_v24  ;;  %v6107_v45 = vrot.slane %v6105_v54, 5  ;;  %v6121_v2 = vshll.u32 %v5832_v52, 16  ;;  %v6367_v18 = vrot.slane %v5832_v52, 5 }
 0x523   : > { %v14680_v13 = vadd.f32 %v8669_v0, %v8581_v31  ;;  %v7315_v0 = vunpack.c.l.b16 %v6100_v1  ;;  %v6118_v16 = vor.u32 %v6117_v39, %v6113_v53  ;;  %v8415_v1 = vadd.f32 %v14175_v20, %v14193_v29  ;;  %v5814_v29 = vld [vmem:[#allocation2 + $0xa0] sm:$0xf] }
 0x524   : > { %v6366_v24 = vrot.slane %v6364_v3, 4  ;;  %v10469_v54 = vrot.slane %v6232_v63, 9  ;;  %v6123_v57 = vrot.slane %v6121_v2, 5  ;;  %v6135_v39 = vshll.u32 %v5814_v29, 16 }
 0x525   : > { %v7336_v38 = vpack.c.b16 %v7315_v0, %v7314_v9  ;;  %v6119_v0 = vrot.slane %v6118_v16, 4 }
 0x526   : > { %v8671_v58 = vpop.f32.mrf.mxu3  ;;  %v6368_v12 = vsel %vm11777_vm5, %v6366_v24, %v6367_v18  ;;  %v6365_v20 = vsel %vm11777_vm5, %v10469_v54, %v6364_v3  ;;  %v8418_v3 = vadd.f32 %v14198_v56, %v14211_v61  ;;  %v6371_v56 = vrot.slane %v5814_v29, 5 }
 0x527   : > { %v7381_v9 = vunpack.c.l.b16 %v6368_v12  ;;  %v6233_v12 = vld [vmem:[#allocation2 + $0x9c] sm:$0xe] }
 0x528   : > { %v8582_v19 = vpop.f32.mrf.mxu2  ;;  %v8501_v48 = vpop.f32.mrf.mxu1 }
 0x529   : > { %v8583_v26 = vadd.f32 %v8582_v19, %v14651_v60  ;;  %v14691_v4 = vadd.f32 %v8501_v48, %v8413_v21  ;;  %v6108_v60 = vor.u32 %v6107_v45, %v6104_v6  ;;  %v5813_v19 = vld [vmem:[#allocation2 + $0x9c] sm:$0xf]  ;;  %v7380_v45 = vunpack.c.l.b16 %v6365_v20 }
 0x52a   : > { %v6126_v52 = vshrl.u32 %v5813_v19, 16  ;;  %v6129_v6 = vshll.u32 %v5813_v19, 16  ;;  %v8420_v20 = vadd.f32 %v14228_v46, %v14251_v30  ;;  %v5816_v30 = vld [vmem:[#allocation2 + $0xac] sm:$0xf] }
 0x52b   : > { %8713 = vmatmul.bf16.gmra.mxu3 %v7400_v41  ;;  %v14693_v31 = vadd.f32 %v8671_v58, %v8583_v26  ;;  %8540 = vmatmul.bf16.gmra.mxu1 %v11174_v14  ;;  %v6109_v21 = vrot.slane %v6108_v60, 4  ;;  %v11252_v41 = vld [vmem:[%s15550_s3 + $0x1c8] sm:$0xff]  ;;  %v7401_v18 = vpack.c.b16 %v7381_v9, %v7380_v45 }
 0x52c   : > { %8839 = vmatpush.bf16.msra.mxu1 %v11252_v41  ;;  %v6128_v24 = vrot.slane %v6126_v52, 4  ;;  %v6373_v41 = vrot.slane %v6371_v56, 4 }
 0x52d   : > { %8624 = vmatmul.bf16.gmra.mxu2 %v7336_v38  ;;  %v6114_v14 = vsel %vm11592_vm2, %v6109_v21, %v6113_v53  ;;  %v6139_v38 = vshrl.u32 %v5814_v29, 16  ;;  %v5833_v53 = vld [vmem:[#allocation2 + $0xa4] sm:$0x1] }
 0x52e   : > { %v8674_v34 = vpop.f32.mrf.mxu3  ;;  %v7316_v60 = vunpack.c.l.b16 %v6114_v14  ;;  %v6145_v61 = vshll.u32 %v5833_v53, 16  ;;  %v6374_v21 = vrot.slane %v5833_v53, 5  ;;  %v10470_v14 = vrot.slane %v6233_v12, 9 }
 0x52f   : > { %v6141_v54 = vrot.slane %v6139_v38, 4  ;;  %v5815_v38 = vld [vmem:[#allocation2 + $0xa8] sm:$0xf]  ;;  %v8423_v53 = vadd.f32 %v14262_v5, %v14278_v59  ;;  %v6378_v59 = vrot.slane %v5816_v30, 5 }
 0x530   : > { %v8585_v58 = vpop.f32.mrf.mxu2  ;;  %v8503_v35 = vpop.f32.mrf.mxu1  ;;  %v6147_v52 = vrot.slane %v6145_v61, 5  ;;  %v6375_v29 = vsel %vm11777_vm5, %v6373_v41, %v6374_v21  ;;  %v6372_v46 = vsel %vm11777_vm5, %v10470_v14, %v6371_v56  ;;  %v11176_v21 = vld [vmem:[#allocation2 + $0xa8] sm:$0xff] }
 0x531   : > { %v8586_v49 = vadd.f32 %v8585_v58, %v14669_v25  ;;  %v14701_v15 = vadd.f32 %v8503_v35, %v8415_v1  ;;  %v6124_v25 = vsel %vm11592_vm2, %v6119_v0, %v6123_v57  ;;  %v11175_v1 = vld [vmem:[#allocation2 + $0x9c] sm:$0xff]  ;;  %v6131_v58 = vrot.slane %v6129_v6, 5  ;;  %v6234_v14 = vld [vmem:[#allocation2 + $0xa8] sm:$0xe] }
 0x532   : > { %v7317_v2 = vunpack.c.l.b16 %v6124_v25  ;;  %v6137_v35 = vrot.slane %v6135_v39, 5 }
 0x533   : > { %v14705_v48 = vadd.f32 %v8674_v34, %v8586_v49  ;;  %v6132_v0 = vor.u32 %v6131_v58, %v6128_v24 }
 0x534   : > { %v7337_v49 = vpack.c.b16 %v7317_v2, %v7316_v60  ;;  %v7383_v2 = vunpack.c.l.b16 %v6375_v29  ;;  %v7382_v60 = vunpack.c.l.b16 %v6372_v46 }
 0x535   : > { %v6133_v45 = vrot.slane %v6132_v0, 4  ;;  %v5834_v0 = vld [vmem:[#allocation2 + $0xb0] sm:$0x1] }
 0x536   : > { %v8676_v26 = vpop.f32.mrf.mxu3 }
 0x538   : > { %v8587_v34 = vpop.f32.mrf.mxu2  ;;  %v8506_v63 = vpop.f32.mrf.mxu1 }
 0x539   : > { %v8588_v50 = vadd.f32 %v8587_v34, %v14676_v11  ;;  %v14719_v16 = vadd.f32 %v8506_v63, %v8418_v3  ;;  %v6142_v11 = vor.u32 %v6141_v54, %v6137_v35  ;;  %v6150_v63 = vshrl.u32 %v5815_v38, 16 }
 0x53b   : > { %8718 = vmatmul.bf16.gmra.mxu3 %v7401_v18  ;;  %v14721_v57 = vadd.f32 %v8676_v26, %v8588_v50  ;;  %8545 = vmatmul.bf16.gmra.mxu1 %v11175_v1  ;;  %v6143_v39 = vrot.slane %v6142_v11, 4  ;;  %v6153_v18 = vshll.u32 %v5815_v38, 16  ;;  %v6159_v50 = vshll.u32 %v5816_v30, 16 }
 0x53c   : > { %v6163_v1 = vshrl.u32 %v5816_v30, 16 }
 0x53d   : > { %8629 = vmatmul.bf16.gmra.mxu2 %v7337_v49  ;;  %v6148_v34 = vsel %vm11592_vm2, %v6143_v39, %v6147_v52  ;;  %v7402_v49 = vpack.c.b16 %v7383_v2, %v7382_v60  ;;  %v6155_v11 = vrot.slane %v6153_v18, 5  ;;  %v6381_v52 = vrot.slane %v5834_v0, 5 }
 0x53e   : > { %v8679_v19 = vpop.f32.mrf.mxu3  ;;  %v7319_v24 = vunpack.c.l.b16 %v6148_v34  ;;  %v6165_v41 = vrot.slane %v6163_v1, 4  ;;  %v6380_v39 = vrot.slane %v6378_v59, 4  ;;  %v10471_v2 = vrot.slane %v6234_v14, 9  ;;  %v11251_v1 = vld [vmem:[%s15550_s3 + $0x1c0] sm:$0xff] }
 0x53f   : > { %8840 = vmatpush.bf16.msra.mxu1 %v11251_v1  ;;  %v6398_v1 = vld [vmem:[#allocation2 + $0x18] sm:$0xf] }
 0x540   : > { %v8590_v9 = vpop.f32.mrf.mxu2  ;;  %v8508_v25 = vpop.f32.mrf.mxu1 }
 0x541   : > { %v8591_v26 = vadd.f32 %v8590_v9, %v14691_v4  ;;  %v14726_v6 = vadd.f32 %v8508_v25, %v8420_v20  ;;  %v6138_v4 = vsel %vm11592_vm2, %v6133_v45, %v6137_v35  ;;  %v6152_v35 = vrot.slane %v6150_v63, 4 }
 0x542   : > { %v7318_v56 = vunpack.c.l.b16 %v6138_v4  ;;  %v6161_v20 = vrot.slane %v6159_v50, 5  ;;  %v6169_v25 = vshll.u32 %v5834_v0, 16  ;;  %v8425_v45 = vadd.f32 %v14295_v8, %v14318_v10  ;;  %v5817_v50 = vld [vmem:[#allocation2 + $0xb4] sm:$0xf]  ;;  %v5818_v10 = vld [vmem:[#allocation2 + $0xb8] sm:$0xf] }
 0x543   : > { %v14730_v3 = vadd.f32 %v8679_v19, %v8591_v26  ;;  %v11259_v26 = vld [vmem:[%s15550_s3 + $0x200] sm:$0xff]  ;;  %v6382_v63 = vsel %vm11777_vm5, %v6380_v39, %v6381_v52  ;;  %v6379_v8 = vsel %vm11777_vm5, %v10471_v2, %v6378_v59  ;;  %v6235_v39 = vld [vmem:[#allocation2 + $0xb4] sm:$0xe]  ;;  %v15783_v2 = vld [vmem:[#allocation39_spill] sm:$0xff] }
 0x544   : > { %v7338_v5 = vpack.c.b16 %v7319_v24, %v7318_v56  ;;  %v6166_v29 = vor.u32 %v6165_v41, %v6161_v20  ;;  %8929 = vmatpush.bf16.msra.mxu2 %v11259_v26  ;;  %v6171_v34 = vrot.slane %v6169_v25, 5  ;;  %v6183_v56 = vshll.u32 %v5818_v10, 16  ;;  %v5835_v25 = vld [vmem:[#allocation2 + $0xbc] sm:$0x1] }
 0x546   : > { %v8681_v19 = vpop.f32.mrf.mxu3  ;;  %v6167_v60 = vrot.slane %v6166_v29, 4 }
 0x548   : > { %v8592_v58 = vpop.f32.mrf.mxu2  ;;  %v8511_v54 = vpop.f32.mrf.mxu1 }
 0x549   : > { %v8593_v61 = vadd.f32 %v8592_v58, %v14701_v15  ;;  %v14741_v12 = vadd.f32 %v8511_v54, %v8423_v53  ;;  %v6156_v15 = vor.u32 %v6155_v11, %v6152_v35  ;;  %v7385_v53 = vunpack.c.l.b16 %v6382_v63 }
 0x54a   : > { %v6174_v58 = vshrl.u32 %v5817_v50, 16  ;;  %v6177_v54 = vshll.u32 %v5817_v50, 16  ;;  %v10472_v50 = vrot.slane %v6235_v39, 9 }
 0x54b   : > { %8723 = vmatmul.bf16.gmra.mxu3 %v7402_v49  ;;  %v14743_v9 = vadd.f32 %v8681_v19, %v8593_v61  ;;  %8550 = vmatmul.bf16.gmra.mxu1 %v11176_v21  ;;  %v6157_v18 = vrot.slane %v6156_v15, 4  ;;  %v7384_v49 = vunpack.c.l.b16 %v6379_v8  ;;  %v6187_v61 = vshrl.u32 %v5818_v10, 16 }
 0x54c   : > { %v8428_v21 = vadd.f32 %v14323_v28, %v14346_v55  ;;  %v6176_v14 = vrot.slane %v6174_v58, 4  ;;  %v6179_v52 = vrot.slane %v6177_v54, 5  ;;  %v6185_v15 = vrot.slane %v6183_v56, 5  ;;  %v14784_v58 = vld [vmem:[#allocation2 + $0x1c] sm:$0xf] }
 0x54d   : > { %8634 = vmatmul.bf16.gmra.mxu2 %v7338_v5  ;;  %v6162_v24 = vsel %vm11592_vm2, %v6157_v18, %v6161_v20  ;;  %v7403_v19 = vpack.c.b16 %v7385_v53, %v7384_v49  ;;  %v11177_v20 = vld [vmem:[#allocation2 + $0xb4] sm:$0xff]  ;;  %v6189_v26 = vrot.slane %v6187_v61, 4  ;;  %v6385_v28 = vrot.slane %v5818_v10, 5  ;;  %v14788_v49 = vld [vmem:[#allocation2 + $0xc4] sm:$0xf] }
 0x54e   : > { %v7320_v41 = vunpack.c.l.b16 %v6162_v24  ;;  %v6193_v55 = vshll.u32 %v5835_v25, 16  ;;  %v5819_v56 = vld [vmem:[#allocation2 + $0xc0] sm:$0xf]  ;;  %v6447_v61 = vshrl.u32 %v6398_v1, 16 }
 0x54f   : > { %v6387_v63 = vrot.slane %v6385_v28, 4 }
 0x550   : > { %v8595_v38 = vpop.f32.mrf.mxu2  ;;  %v8513_v46 = vpop.f32.mrf.mxu1  ;;  %v6195_v8 = vrot.slane %v6193_v55, 5  ;;  %v8433_v55 = vadd.f32 %v14374_v47, %v14387_v17 }
 0x551   : > { %v14751_v30 = vadd.f32 %v8595_v38, %v14719_v16  ;;  %v14753_v4 = vadd.f32 %v8513_v46, %v8425_v45  ;;  %v6172_v16 = vsel %vm11592_vm2, %v6167_v60, %v6171_v34  ;;  %v14773_v45 = vpop.f32.mrf.mxu0  ;;  %v6388_v38 = vrot.slane %v5835_v25, 5 }
 0x552   : > { %v7321_v0 = vunpack.c.l.b16 %v6172_v16  ;;  %v6190_v46 = vor.u32 %v6189_v26, %v6185_v15  ;;  %v8430_v34 = vadd.f32 %v15783_v2, %v14371_v36  ;;  %v6386_v36 = vsel %vm11777_vm5, %v10472_v50, %v6385_v28 }
 0x553   : > { %v6389_v16 = vsel %vm11777_vm5, %v6387_v63, %v6388_v38  ;;  %v6198_v25 = vshrl.u32 %v5819_v56, 16  ;;  %v6211_v26 = vshrl.u32 %v14788_v49, 16  ;;  %v6449_v38 = vrot.slane %v6447_v61, 4 }
 0x554   : > { %v7339_v29 = vpack.c.b16 %v7321_v0, %v7320_v41  ;;  %v6191_v54 = vrot.slane %v6190_v46, 4  ;;  %v7387_v0 = vunpack.c.l.b16 %v6389_v16 }
 0x555   : > { %v6200_v47 = vrot.slane %v6198_v25, 4 }
 0x558   : > { %v8597_v35 = vpop.f32.mrf.mxu2  ;;  %v8516_v11 = vpop.f32.mrf.mxu1 }
 0x559   : > { %v14769_v5 = vadd.f32 %v8597_v35, %v14726_v6  ;;  %v14771_v59 = vadd.f32 %v8516_v11, %v8428_v21  ;;  %v6180_v6 = vor.u32 %v6179_v52, %v6176_v14  ;;  %v6450_v21 = vshll.u32 %v6398_v1, 16  ;;  %v14800_v28 = vpop.f32.mrf.mxu0  ;;  %v5836_v1 = vld [vmem:[#allocation2 + $0xc8] sm:$0x1] }
 0x55a   : > { %v6456_v35 = vshll.u32 %v14784_v58, 16  ;;  %v6460_v11 = vshrl.u32 %v14784_v58, 16  ;;  %v6201_v14 = vshll.u32 %v5819_v56, 16  ;;  %v6207_v52 = vshll.u32 %v14788_v49, 16 }
 0x55b   : > { %8728 = vmatmul.bf16.gmra.mxu3 %v7403_v19  ;;  %8555 = vmatmul.bf16.gmra.mxu1 %v11177_v20  ;;  %v6181_v24 = vrot.slane %v6180_v6, 4  ;;  %v7386_v19 = vunpack.c.l.b16 %v6386_v36  ;;  %v11194_v20 = vld [vmem:[#allocation2 + $0xcc] sm:$0xff]  ;;  %v6452_v6 = vrot.slane %v6450_v21, 5  ;;  %v6213_v36 = vrot.slane %v6211_v26, 4 }
 0x55c   : > { %8827 = vmatmul.bf16.gmra.mxu0 %v11194_v20  ;;  %v6462_v63 = vrot.slane %v6460_v11, 4  ;;  %v6203_v17 = vrot.slane %v6201_v14, 5  ;;  %v6392_v56 = vrot.slane %v14788_v49, 5  ;;  %v6217_v21 = vshll.u32 %v5836_v1, 16 }
 0x55d   : > { %8639 = vmatmul.bf16.gmra.mxu2 %v7339_v29  ;;  %v6186_v41 = vsel %vm11592_vm2, %v6181_v24, %v6185_v15  ;;  %v14798_v29 = vld [vmem:[#allocation2 + $0x20] sm:$0x1]  ;;  %v7404_v2 = vpack.c.b16 %v7387_v0, %v7386_v19  ;;  %v6209_v24 = vrot.slane %v6207_v52, 5  ;;  %v6453_v61 = vor.u32 %v6452_v6, %v6449_v38 }
 0x55e   : > { %v7322_v50 = vunpack.c.l.b16 %v6186_v41  ;;  %v6466_v16 = vshll.u32 %v14798_v29, 16  ;;  %v6395_v0 = vrot.slane %v5836_v1, 5  ;;  %v8435_v41 = vadd.f32 %v14396_v27, %v14404_v23 }
 0x55f   : > { %v6214_v11 = vor.u32 %v6213_v36, %v6209_v24  ;;  %v6394_v20 = vrot.slane %v6392_v56, 4  ;;  %v6454_v25 = vrot.slane %v6453_v61, 4  ;;  %v6219_v26 = vrot.slane %v6217_v21, 5 }
 0x560   : > { %v8600_v18 = vpop.f32.mrf.mxu2  ;;  %v8518_v60 = vpop.f32.mrf.mxu1  ;;  %v6468_v19 = vrot.slane %v6466_v16, 5 }
 0x561   : > { %v14778_v53 = vadd.f32 %v8600_v18, %v14741_v12  ;;  %v14780_v10 = vadd.f32 %v8518_v60, %v8430_v34  ;;  %v6196_v12 = vsel %vm11592_vm2, %v6191_v54, %v6195_v8  ;;  %v6458_v34 = vrot.slane %v6456_v35, 5  ;;  %v11178_v8 = vld [vmem:[#allocation2 + $0xc0] sm:$0xff] }
 0x562   : > { %v7323_v39 = vunpack.c.l.b16 %v6196_v12  ;;  %v6236_v12 = vld [vmem:[#allocation2 + $0xc0] sm:$0xe]  ;;  %v6204_v35 = vor.u32 %v6203_v17, %v6200_v47  ;;  %v6215_v27 = vrot.slane %v6214_v11, 4 }
 0x563   : > { %v10473_v6 = vrot.slane %v6236_v12, 9 }
 0x564   : > { %v7340_v54 = vpack.c.b16 %v7323_v39, %v7322_v50  ;;  %v6400_v39 = vld [vmem:[#allocation2 + $0x24] sm:$0xf]  ;;  %v6220_v16 = vsel %vm11592_vm2, %v6215_v27, %v6219_v26 }
 0x565   : > { %v6471_v50 = vshrl.u32 %v6400_v39, 16  ;;  %v15785_v27 = vld [vmem:[#allocation36_spill] sm:$0xff] }
 0x567   : > { %v6473_v12 = vrot.slane %v6471_v50, 4 }
 0x568   : > { %v8602_v46 = vpop.f32.mrf.mxu2  ;;  %v8521_v15 = vpop.f32.mrf.mxu1 }
 0x569   : > { %v14805_v18 = vadd.f32 %v8602_v46, %v14753_v4  ;;  %v14807_v60 = vadd.f32 %v8521_v15, %v8433_v55  ;;  %v6463_v4 = vor.u32 %v6462_v63, %v6458_v34  ;;  %v6396_v46 = vsel %vm11777_vm5, %v6394_v20, %v6395_v0  ;;  %v14820_v15 = vld [vmem:[#allocation2 + $0x28] sm:$0xf]  ;;  %v14836_v0 = vld [vmem:[#allocation2 + $0x2c] sm:$0x1] }
 0x56a   : > { %v6393_v63 = vsel %vm11777_vm5, %v10473_v6, %v6392_v56  ;;  %v7389_v1 = vunpack.c.l.b16 %v6396_v46  ;;  %v6480_v47 = vshll.u32 %v14820_v15, 16  ;;  %v6484_v17 = vshrl.u32 %v14820_v15, 16  ;;  %v15784_v56 = vld [vmem:[#allocation37_spill] sm:$0xff] }
 0x56b   : > { %8733 = vmatmul.bf16.gmra.mxu3 %v7404_v2  ;;  %8560 = vmatmul.bf16.gmra.mxu1 %v11178_v8  ;;  %v6464_v55 = vrot.slane %v6463_v4, 4  ;;  %v6205_v2 = vrot.slane %v6204_v35, 4  ;;  %v6474_v8 = vshll.u32 %v6400_v39, 16  ;;  %v8438_v4 = vadd.f32 %v15784_v56, %v14418_v51 }
 0x56c   : > { %v6482_v20 = vrot.slane %v6480_v47, 5  ;;  %v6490_v51 = vshll.u32 %v14836_v0, 16  ;;  %v6896_v46 = vrot.slane %v14784_v58, 5 }
 0x56d   : > { %8644 = vmatmul.bf16.gmra.mxu2 %v7340_v54  ;;  %v6469_v23 = vsel %vm11592_vm2, %v6464_v55, %v6468_v19  ;;  %v7388_v54 = vunpack.c.l.b16 %v6393_v63  ;;  %v6210_v61 = vsel %vm11592_vm2, %v6205_v2, %v6209_v24  ;;  %v6476_v35 = vrot.slane %v6474_v8, 5 }
 0x56e   : > { %v7503_v36 = vunpack.c.l.b16 %v6469_v23  ;;  %v7324_v24 = vunpack.c.l.b16 %v6210_v61  ;;  %v6492_v2 = vrot.slane %v6490_v51, 5  ;;  %v15786_v23 = vld [vmem:[#allocation7_spill] sm:$0xff]  ;;  %v14853_v61 = vld [vmem:[#allocation2 + $0x34] sm:$0xf] }
 0x56f   : > { %v6477_v39 = vor.u32 %v6476_v35, %v6473_v12  ;;  %v8440_v63 = vadd.f32 %v15786_v23, %v15785_v27  ;;  %v6508_v12 = vshrl.u32 %v14853_v61, 16  ;;  %v14867_v51 = vld [vmem:[#allocation2 + $0x38] sm:$0x1] }
 0x570   : > { %v8605_v14 = vpop.f32.mrf.mxu2  ;;  %v8523_v52 = vpop.f32.mrf.mxu1 }
 0x571   : > { %v14814_v49 = vadd.f32 %v8605_v14, %v14771_v59  ;;  %v14816_v38 = vadd.f32 %v8523_v52, %v8435_v41  ;;  %v6459_v59 = vsel %vm11592_vm2, %v6454_v25, %v6458_v34  ;;  %v7325_v34 = vunpack.c.l.b16 %v6220_v16 }
 0x572   : > { %v7502_v21 = vunpack.c.l.b16 %v6459_v59  ;;  %v7405_v41 = vpack.c.b16 %v7389_v1, %v7388_v54  ;;  %v6486_v25 = vrot.slane %v6484_v17, 4  ;;  %v6478_v59 = vrot.slane %v6477_v39, 4  ;;  %v6830_v1 = vld [vmem:[#allocation2 + $0x18] sm:$0xe]  ;;  %v6402_v54 = vld [vmem:[#allocation2 + $0x30] sm:$0xf] }
 0x573   : > { %v7341_v55 = vpack.c.b16 %v7325_v34, %v7324_v24  ;;  %v6498_v34 = vshll.u32 %v6402_v54, 16  ;;  %v6510_v27 = vrot.slane %v6508_v12, 4 }
 0x574   : > { %v7534_v26 = vpack.c.b16 %v7503_v36, %v7502_v21  ;;  %v6487_v6 = vor.u32 %v6486_v25, %v6482_v20  ;;  %v6898_v36 = vrot.slane %v6896_v46, 4  ;;  %v10474_v21 = vrot.slane %v6830_v1, 9 }
 0x575   : > { %v6483_v56 = vsel %vm11592_vm2, %v6478_v59, %v6482_v20 }
 0x576   : > { %v6488_v16 = vrot.slane %v6487_v6, 4  ;;  %v6500_v6 = vrot.slane %v6498_v34, 5 }
 0x578   : > { %v8607_v11 = vpop.f32.mrf.mxu2  ;;  %v8526_v19 = vpop.f32.mrf.mxu1  ;;  %v6493_v58 = vsel %vm11592_vm2, %v6488_v16, %v6492_v2  ;;  %v6903_v16 = vrot.slane %v14820_v15, 5 }
 0x579   : > { %v14839_v14 = vadd.f32 %v8607_v11, %v14780_v10  ;;  %v14841_v52 = vadd.f32 %v8526_v19, %v8438_v4  ;;  %v6899_v10 = vrot.slane %v14798_v29, 5  ;;  %v6495_v4 = vshrl.u32 %v6402_v54, 16  ;;  %v15787_v19 = vld [vmem:[#allocation9_spill] sm:$0xff]  ;;  %v15789_v54 = vld [vmem:[#allocation14_spill] sm:$0xff] }
 0x57a   : > { %v7505_v35 = vunpack.c.l.b16 %v6493_v58  ;;  %v6897_v11 = vsel %vm11777_vm5, %v10474_v21, %v6896_v46  ;;  %v6514_v46 = vshll.u32 %v14867_v51, 16  ;;  %v15790_v58 = vld [vmem:[#allocation10_spill] sm:$0xff] }
 0x57b   : > { %8738 = vmatmul.bf16.gmra.mxu3 %v7405_v41  ;;  %8841 = vmatmul.bf16.vlgmr.msra.gmra.mxu1 %v7534_v26  ;;  %v6900_v29 = vsel %vm11777_vm5, %v6898_v36, %v6899_v10  ;;  %v15788_v41 = vld [vmem:[#allocation8_spill] sm:$0xff]  ;;  %v7504_v26 = vunpack.c.l.b16 %v6483_v56  ;;  %v6497_v20 = vrot.slane %v6495_v4, 4  ;;  %v7566_v10 = vunpack.c.l.b16 %v6897_v11 }
 0x57c   : > { %v8443_v25 = vadd.f32 %v15788_v41, %v15787_v19  ;;  %v7567_v24 = vunpack.c.l.b16 %v6900_v29  ;;  %v6516_v36 = vrot.slane %v6514_v46, 5  ;;  %v8445_v21 = vadd.f32 %v15790_v58, %v15789_v54  ;;  %v6831_v11 = vld [vmem:[#allocation2 + $0x24] sm:$0xe]  ;;  %v14882_v41 = vld [vmem:[#allocation2 + $0x40] sm:$0xf] }
 0x57d   : > { %8649 = vmatmul.bf16.gmra.mxu2 %v7341_v55  ;;  %v7535_v59 = vpack.c.b16 %v7505_v35, %v7504_v26  ;;  %v6906_v29 = vrot.slane %v14836_v0, 5  ;;  %v6905_v19 = vrot.slane %v6903_v16, 4  ;;  %v10475_v26 = vrot.slane %v6831_v11, 9 }
 0x57f   : > { %v6907_v0 = vsel %vm11777_vm5, %v6905_v19, %v6906_v29  ;;  %v6910_v19 = vrot.slane %v14853_v61, 5 }
 0x580   : > { %v8610_v50 = vpop.f32.mrf.mxu2  ;;  %v8528_v8 = vpop.f32.mrf.mxu1 }
 0x581   : > { %v14849_v47 = vadd.f32 %v8610_v50, %v14807_v60  ;;  %v14851_v17 = vadd.f32 %v8528_v8, %v8440_v63  ;;  %v6504_v60 = vshll.u32 %v14853_v61, 16  ;;  %v7598_v50 = vpack.c.b16 %v7567_v24, %v7566_v10  ;;  %v15791_v10 = vld [vmem:[#allocation12_spill] sm:$0xff] }
 0x582   : > { %v6501_v8 = vor.u32 %v6500_v6, %v6497_v20  ;;  %v6904_v6 = vsel %vm11777_vm5, %v10475_v26, %v6903_v16  ;;  %v6913_v26 = vrot.slane %v14867_v51, 5 }
 0x583   : > { %v6506_v2 = vrot.slane %v6504_v60, 5  ;;  %v6404_v60 = vld [vmem:[#allocation2 + $0x3c] sm:$0xf] }
 0x584   : > { %v6502_v4 = vrot.slane %v6501_v8, 4  ;;  %v6522_v24 = vshll.u32 %v6404_v60, 16  ;;  %v14896_v8 = vld [vmem:[#allocation2 + $0x44] sm:$0x1] }
 0x585   : > { %v6511_v1 = vor.u32 %v6510_v27, %v6506_v2  ;;  %v7569_v27 = vunpack.c.l.b16 %v6907_v0  ;;  %v6538_v16 = vshll.u32 %v14896_v8, 16  ;;  %v15793_v0 = vld [vmem:[#allocation5_spill] sm:$0xff] }
 0x587   : > { %v6512_v34 = vrot.slane %v6511_v1, 4 }
 0x588   : > { %v8612_v55 = vpop.f32.mrf.mxu2  ;;  %v8531_v39 = vpop.f32.mrf.mxu1 }
 0x589   : > { %v14870_v23 = vadd.f32 %v8612_v55, %v14816_v38  ;;  %v8532_v63 = vadd.f32 %v8531_v39, %v8443_v25  ;;  %v6517_v15 = vsel %vm11592_vm2, %v6512_v34, %v6516_v36  ;;  %v6519_v25 = vshrl.u32 %v6404_v60, 16 }
 0x58a   : > { %v6507_v55 = vsel %vm11592_vm2, %v6502_v4, %v6506_v2  ;;  %v6532_v39 = vshrl.u32 %v14882_v41, 16  ;;  %v7507_v20 = vunpack.c.l.b16 %v6517_v15  ;;  %v6524_v36 = vrot.slane %v6522_v24, 5 }
 0x58b   : > { %8846 = vmatmul.bf16.gmra.mxu1 %v7535_v59  ;;  %v15792_v59 = vld [vmem:[#allocation42_spill] sm:$0xff]  ;;  %v6521_v1 = vrot.slane %v6519_v25, 4  ;;  %v6540_v15 = vrot.slane %v6538_v16, 5  ;;  %v15794_v25 = vld [vmem:[#allocation11_spill] sm:$0xff]  ;;  %v15796_v16 = vld [vmem:[#allocation41_spill] sm:$0xff] }
 0x58c   : > { %v8448_v46 = vadd.f32 %v15792_v59, %v15791_v10  ;;  %v8450_v24 = vadd.f32 %v15794_v25, %v15793_v0  ;;  %v6912_v10 = vrot.slane %v6910_v19, 4  ;;  %v6406_v59 = vld [vmem:[#allocation2 + $0x48] sm:$0xf] }
 0x58d   : > { %8930 = vmatmul.bf16.vlgmr.msra.gmra.mxu2 %v7598_v50  ;;  %v7506_v50 = vunpack.c.l.b16 %v6507_v55  ;;  %v6525_v60 = vor.u32 %v6524_v36, %v6521_v1  ;;  %v6543_v36 = vshrl.u32 %v6406_v59, 16 }
 0x58e   : > { %v6914_v51 = vsel %vm11777_vm5, %v6912_v10, %v6913_v26 }
 0x58f   : > { %v7536_v4 = vpack.c.b16 %v7507_v20, %v7506_v50 }
 0x590   : > { %v8615_v38 = vpop.f32.mrf.mxu2  ;;  %v8533_v56 = vpop.f32.mrf.mxu1 }
 0x591   : > { %v14878_v12 = vadd.f32 %v8615_v38, %v14841_v52  ;;  %v14880_v35 = vadd.f32 %v8533_v56, %v8445_v21  ;;  %v6528_v52 = vshll.u32 %v14882_v41, 16  ;;  %v6534_v21 = vrot.slane %v6532_v39, 4  ;;  %v6832_v39 = vld [vmem:[#allocation2 + $0x30] sm:$0xe] }
 0x592   : > { %v7568_v56 = vunpack.c.l.b16 %v6904_v6  ;;  %v10476_v50 = vrot.slane %v6832_v39, 9 }
 0x593   : > { %v6530_v2 = vrot.slane %v6528_v52, 5 }
 0x594   : > { %v7599_v34 = vpack.c.b16 %v7569_v27, %v7568_v56  ;;  %v6911_v56 = vsel %vm11777_vm5, %v10476_v50, %v6910_v19  ;;  %v6917_v50 = vrot.slane %v14882_v41, 5 }
 0x595   : > { %v6535_v11 = vor.u32 %v6534_v21, %v6530_v2  ;;  %v7570_v39 = vunpack.c.l.b16 %v6911_v56 }
 0x597   : > { %v6536_v20 = vrot.slane %v6535_v11, 4 }
 0x598   : > { %v8617_v54 = vpop.f32.mrf.mxu2  ;;  %v8536_v58 = vpop.f32.mrf.mxu1 }
 0x599   : > { %v14899_v29 = vadd.f32 %v8617_v54, %v14851_v17  ;;  %v8537_v38 = vadd.f32 %v8536_v58, %v8448_v46  ;;  %v6526_v17 = vrot.slane %v6525_v60, 4  ;;  %v14910_v46 = vld [vmem:[#allocation2 + $0x4c] sm:$0xf]  ;;  %v6541_v61 = vsel %vm11592_vm2, %v6536_v20, %v6540_v15  ;;  %v14924_v15 = vld [vmem:[#allocation2 + $0x50] sm:$0x1] }
 0x59a   : > { %v6546_v54 = vshll.u32 %v6406_v59, 16  ;;  %v6556_v58 = vshrl.u32 %v14910_v46, 16  ;;  %v7509_v21 = vunpack.c.l.b16 %v6541_v61  ;;  %v7571_v60 = vunpack.c.l.b16 %v6914_v51 }
 0x59b   : > { %8851 = vmatmul.bf16.gmra.mxu1 %v7536_v4  ;;  %v6531_v1 = vsel %vm11592_vm2, %v6526_v17, %v6530_v2  ;;  %v15795_v4 = vld [vmem:[#allocation15_spill] sm:$0xff]  ;;  %v6545_v2 = vrot.slane %v6543_v36, 4  ;;  %v6562_v19 = vshll.u32 %v14924_v15, 16  ;;  %v15799_v36 = vld [vmem:[#allocation13_spill] sm:$0xff] }
 0x59c   : > { %v7508_v11 = vunpack.c.l.b16 %v6531_v1  ;;  %v6558_v17 = vrot.slane %v6556_v58, 4  ;;  %v7600_v10 = vpack.c.b16 %v7571_v60, %v7570_v39  ;;  %v15798_v1 = vld [vmem:[#allocation20_spill] sm:$0xff]  ;;  %v6833_v60 = vld [vmem:[#allocation2 + $0x3c] sm:$0xe] }
 0x59d   : > { %8935 = vmatmul.bf16.gmra.mxu2 %v7599_v34  ;;  %v8453_v34 = vadd.f32 %v15796_v16, %v15795_v4  ;;  %v6564_v51 = vrot.slane %v6562_v19, 5 }
 0x59e   : > { %v7537_v20 = vpack.c.b16 %v7509_v21, %v7508_v11  ;;  %v6408_v21 = vld [vmem:[#allocation2 + $0x54] sm:$0xf]  ;;  %v6919_v11 = vrot.slane %v6917_v50, 4 }
 0x5a0   : > { %v8620_v55 = vpop.f32.mrf.mxu2  ;;  %v8538_v52 = vpop.f32.mrf.mxu1 }
 0x5a1   : > { %v14906_v6 = vadd.f32 %v8620_v55, %v8532_v63  ;;  %v14908_v27 = vadd.f32 %v8538_v52, %v8450_v24  ;;  %v6552_v63 = vshll.u32 %v14910_v46, 16  ;;  %v6548_v24 = vrot.slane %v6546_v54, 5 }
 0x5a2   : > { %v8455_v54 = vadd.f32 %v15799_v36, %v15798_v1  ;;  %v14952_v36 = vld [vmem:[#allocation2 + $0x5c] sm:$0x1] }
 0x5a3   : > { %v6554_v26 = vrot.slane %v6552_v63, 5  ;;  %v6549_v59 = vor.u32 %v6548_v24, %v6545_v2  ;;  %v6920_v63 = vrot.slane %v14896_v8, 5  ;;  %v6567_v8 = vshrl.u32 %v6408_v21, 16 }
 0x5a4   : > { %v6570_v2 = vshll.u32 %v6408_v21, 16  ;;  %v10477_v24 = vrot.slane %v6833_v60, 9 }
 0x5a5   : > { %v6559_v61 = vor.u32 %v6558_v17, %v6554_v26  ;;  %v6550_v4 = vrot.slane %v6549_v59, 4  ;;  %v15801_v59 = vld [vmem:[#allocation6_spill] sm:$0xff] }
 0x5a6   : > { %v6918_v19 = vsel %vm11777_vm5, %v10477_v24, %v6917_v50  ;;  %v6586_v50 = vshll.u32 %v14952_v36, 16 }
 0x5a7   : > { %v6560_v56 = vrot.slane %v6559_v61, 4  ;;  %v6555_v17 = vsel %vm11592_vm2, %v6550_v4, %v6554_v26  ;;  %v15802_v61 = vld [vmem:[#allocation17_spill] sm:$0xff]  ;;  %v7572_v60 = vunpack.c.l.b16 %v6918_v19 }
 0x5a8   : > { %v8622_v0 = vpop.f32.mrf.mxu2  ;;  %v8541_v25 = vpop.f32.mrf.mxu1  ;;  %v7510_v1 = vunpack.c.l.b16 %v6555_v17  ;;  %v15804_v17 = vld [vmem:[#allocation24_spill] sm:$0xff]  ;;  %v6834_v19 = vld [vmem:[#allocation2 + $0x48] sm:$0xe] }
 0x5a9   : > { %v14927_v55 = vadd.f32 %v8622_v0, %v14880_v35  ;;  %v8542_v52 = vadd.f32 %v8541_v25, %v8453_v34  ;;  %v14938_v0 = vld [vmem:[#allocation2 + $0x58] sm:$0xf]  ;;  %v6565_v41 = vsel %vm11592_vm2, %v6560_v56, %v6564_v51  ;;  %v6921_v25 = vsel %vm11777_vm5, %v6919_v11, %v6920_v63 }
 0x5aa   : > { %v6580_v39 = vshrl.u32 %v14938_v0, 16  ;;  %v8458_v51 = vadd.f32 %v15802_v61, %v15801_v59  ;;  %v6572_v63 = vrot.slane %v6570_v2, 5  ;;  %v6588_v2 = vrot.slane %v6586_v50, 5  ;;  %v15805_v59 = vld [vmem:[#allocation18_spill] sm:$0xff] }
 0x5ab   : > { %15797 = vst [vmem:[#allocation34_spill] sm:$0xff] %v14927_v55  ;;  %8856 = vmatmul.bf16.gmra.mxu1 %v7537_v20  ;;  %v7511_v20 = vunpack.c.l.b16 %v6565_v41 }
 0x5ac   : > { %v6582_v4 = vrot.slane %v6580_v39, 4  ;;  %v6927_v39 = vrot.slane %v14924_v15, 5 }
 0x5ad   : > { %8940 = vmatmul.bf16.gmra.mxu2 %v7600_v10  ;;  %v7573_v10 = vunpack.c.l.b16 %v6921_v25  ;;  %v7538_v11 = vpack.c.b16 %v7511_v20, %v7510_v1 }
 0x5af   : > { %v7601_v41 = vpack.c.b16 %v7573_v10, %v7572_v60 }
 0x5b0   : > { %v8625_v35 = vpop.f32.mrf.mxu2  ;;  %v8543_v58 = vpop.f32.mrf.mxu1 }
 0x5b1   : > { %v14934_v16 = vadd.f32 %v8625_v35, %v8537_v38  ;;  %v14936_v34 = vadd.f32 %v8543_v58, %v8455_v54  ;;  %v6576_v38 = vshll.u32 %v14938_v0, 16  ;;  %v6569_v54 = vrot.slane %v6567_v8, 4 }
 0x5b2   : > { %v6924_v8 = vrot.slane %v14910_v46, 5 }
 0x5b3   : > { %15800 = vst [vmem:[#allocation29_spill] sm:$0xff] %v14934_v16  ;;  %v6578_v26 = vrot.slane %v6576_v38, 5  ;;  %v6573_v25 = vor.u32 %v6572_v63, %v6569_v54  ;;  %v8460_v38 = vadd.f32 %v15805_v59, %v15804_v17  ;;  %v6410_v63 = vld [vmem:[#allocation2 + $0x60] sm:$0xf]  ;;  %v15808_v17 = vld [vmem:[#allocation23_spill] sm:$0xff] }
 0x5b4   : > { %v6926_v54 = vrot.slane %v6924_v8, 4  ;;  %v6591_v60 = vshrl.u32 %v6410_v63, 16 }
 0x5b5   : > { %v6583_v24 = vor.u32 %v6582_v4, %v6578_v26 }
 0x5b6   : > { %v6928_v15 = vsel %vm11777_vm5, %v6926_v54, %v6927_v39 }
 0x5b7   : > { %v6584_v20 = vrot.slane %v6583_v24, 4  ;;  %v15807_v24 = vld [vmem:[#allocation22_spill] sm:$0xff]  ;;  %v7575_v59 = vunpack.c.l.b16 %v6928_v15 }
 0x5b8   : > { %v8627_v35 = vpop.f32.mrf.mxu2  ;;  %v8546_v58 = vpop.f32.mrf.mxu1 }
 0x5b9   : > { %v14955_v56 = vadd.f32 %v8627_v35, %v14908_v27  ;;  %v8547_v21 = vadd.f32 %v8546_v58, %v8458_v51  ;;  %v6574_v27 = vrot.slane %v6573_v25, 4  ;;  %v14966_v35 = vld [vmem:[#allocation2 + $0x64] sm:$0xf]  ;;  %v6589_v46 = vsel %vm11592_vm2, %v6584_v20, %v6588_v2 }
 0x5ba   : > { %v10478_v58 = vrot.slane %v6834_v19, 9  ;;  %v6604_v50 = vshrl.u32 %v14966_v35, 16  ;;  %v8463_v2 = vadd.f32 %v15808_v17, %v15807_v24  ;;  %v6931_v24 = vrot.slane %v14938_v0, 5 }
 0x5bb   : > { %15803 = vst [vmem:[#allocation32_spill] sm:$0xff] %v14955_v56  ;;  %8861 = vmatmul.bf16.gmra.mxu1 %v7538_v11  ;;  %v6579_v4 = vsel %vm11592_vm2, %v6574_v27, %v6578_v26  ;;  %v6594_v11 = vshll.u32 %v6410_v63, 16  ;;  %v6593_v26 = vrot.slane %v6591_v60, 4  ;;  %v15810_v60 = vld [vmem:[#allocation28_spill] sm:$0xff] }
 0x5bc   : > { %v6925_v25 = vsel %vm11777_vm5, %v10478_v58, %v6924_v8  ;;  %v6606_v20 = vrot.slane %v6604_v50, 4 }
 0x5bd   : > { %8945 = vmatmul.bf16.gmra.mxu2 %v7601_v41  ;;  %v7513_v41 = vunpack.c.l.b16 %v6589_v46  ;;  %v6596_v27 = vrot.slane %v6594_v11, 5  ;;  %v7574_v46 = vunpack.c.l.b16 %v6925_v25  ;;  %v8465_v11 = vadd.f32 %v15810_v60, %v14581_v40 }
 0x5bf   : > { %v7602_v58 = vpack.c.b16 %v7575_v59, %v7574_v46  ;;  %v6597_v15 = vor.u32 %v6596_v27, %v6593_v26 }
 0x5c0   : > { %v8630_v61 = vpop.f32.mrf.mxu2  ;;  %v8548_v51 = vpop.f32.mrf.mxu1 }
 0x5c1   : > { %v14962_v1 = vadd.f32 %v8630_v61, %v8542_v52  ;;  %v14964_v10 = vadd.f32 %v8548_v51, %v8460_v38  ;;  %v6600_v52 = vshll.u32 %v14966_v35, 16  ;;  %v7512_v38 = vunpack.c.l.b16 %v6579_v4  ;;  %v14980_v61 = vld [vmem:[#allocation2 + $0x68] sm:$0x1] }
 0x5c2   : > { %v6610_v8 = vshll.u32 %v14980_v61, 16 }
 0x5c3   : > { %15806 = vst [vmem:[#allocation30_spill] sm:$0xff] %v14962_v1  ;;  %v6602_v19 = vrot.slane %v6600_v52, 5  ;;  %v7539_v1 = vpack.c.b16 %v7513_v41, %v7512_v38  ;;  %v6934_v52 = vrot.slane %v14952_v36, 5  ;;  %v6412_v41 = vld [vmem:[#allocation2 + $0x6c] sm:$0xf] }
 0x5c4   : > { %v6612_v17 = vrot.slane %v6610_v8, 5  ;;  %v6615_v36 = vshrl.u32 %v6412_v41, 16  ;;  %v6618_v26 = vshll.u32 %v6412_v41, 16 }
 0x5c5   : > { %v6607_v4 = vor.u32 %v6606_v20, %v6602_v19 }
 0x5c7   : > { %v6608_v25 = vrot.slane %v6607_v4, 4  ;;  %v15812_v4 = vld [vmem:[#allocation27_spill] sm:$0xff] }
 0x5c8   : > { %v8632_v39 = vpop.f32.mrf.mxu2  ;;  %v8551_v51 = vpop.f32.mrf.mxu1 }
 0x5c9   : > { %v14983_v54 = vadd.f32 %v8632_v39, %v14936_v34  ;;  %v8552_v63 = vadd.f32 %v8551_v51, %v8463_v2  ;;  %v6598_v2 = vrot.slane %v6597_v15, 4  ;;  %v6933_v39 = vrot.slane %v6931_v24, 4  ;;  %v14994_v51 = vld [vmem:[#allocation2 + $0x70] sm:$0xf] }
 0x5ca   : > { %v6613_v0 = vsel %vm11592_vm2, %v6608_v25, %v6612_v17  ;;  %v6628_v46 = vshrl.u32 %v14994_v51, 16  ;;  %v15813_v17 = vld [vmem:[#allocation25_spill] sm:$0xff] }
 0x5cb   : > { %15809 = vst [vmem:[#allocation43_spill] sm:$0xff] %v14983_v54  ;;  %8866 = vmatmul.bf16.gmra.mxu1 %v7539_v1  ;;  %v6835_v1 = vld [vmem:[#allocation2 + $0x54] sm:$0xe]  ;;  %v6935_v40 = vsel %vm11777_vm5, %v6933_v39, %v6934_v52  ;;  %v6603_v20 = vsel %vm11592_vm2, %v6598_v2, %v6602_v19  ;;  %v7515_v8 = vunpack.c.l.b16 %v6613_v0  ;;  %v8468_v60 = vadd.f32 %v15813_v17, %v15812_v4  ;;  %v15008_v52 = vld [vmem:[#allocation2 + $0x74] sm:$0x1] }
 0x5cc   : > { %v10479_v27 = vrot.slane %v6835_v1, 9  ;;  %v7577_v15 = vunpack.c.l.b16 %v6935_v40  ;;  %v6630_v2 = vrot.slane %v6628_v46, 4  ;;  %v6634_v40 = vshll.u32 %v15008_v52, 16 }
 0x5cd   : > { %8950 = vmatmul.bf16.gmra.mxu2 %v7602_v58 }
 0x5ce   : > { %v6932_v58 = vsel %vm11777_vm5, %v10479_v27, %v6931_v24 }
 0x5cf   : > { %v7576_v0 = vunpack.c.l.b16 %v6932_v58  ;;  %v6836_v58 = vld [vmem:[#allocation2 + $0x60] sm:$0xe] }
 0x5d0   : > { %v8635_v34 = vpop.f32.mrf.mxu2  ;;  %v8553_v50 = vpop.f32.mrf.mxu1 }
 0x5d1   : > { %v14990_v38 = vadd.f32 %v8635_v34, %v8547_v21  ;;  %v14992_v59 = vadd.f32 %v8553_v50, %v8465_v11  ;;  %v6624_v21 = vshll.u32 %v14994_v51, 16  ;;  %v7514_v11 = vunpack.c.l.b16 %v6603_v20 }
 0x5d2   : > { %v6617_v34 = vrot.slane %v6615_v36, 4  ;;  %v6620_v50 = vrot.slane %v6618_v26, 5  ;;  %v7603_v27 = vpack.c.b16 %v7577_v15, %v7576_v0  ;;  %v6938_v36 = vrot.slane %v14966_v35, 5 }
 0x5d3   : > { %15811 = vst [vmem:[#allocation38_spill] sm:$0xff] %v14990_v38  ;;  %v6626_v19 = vrot.slane %v6624_v21, 5  ;;  %v7540_v24 = vpack.c.b16 %v7515_v8, %v7514_v11  ;;  %v6636_v26 = vrot.slane %v6634_v40, 5  ;;  %v15815_v21 = vld [vmem:[#allocation26_spill] sm:$0xff] }
 0x5d4   : > { %v6621_v20 = vor.u32 %v6620_v50, %v6617_v34  ;;  %v8470_v46 = vadd.f32 %v15815_v21, %v14611_v33  ;;  %v6940_v34 = vrot.slane %v6938_v36, 4  ;;  %v6414_v50 = vld [vmem:[#allocation2 + $0x78] sm:$0xf] }
 0x5d5   : > { %v6631_v4 = vor.u32 %v6630_v2, %v6626_v19  ;;  %v10480_v2 = vrot.slane %v6836_v58, 9  ;;  %v6639_v0 = vshrl.u32 %v6414_v50, 16 }
 0x5d6   : > { %v6622_v17 = vrot.slane %v6621_v20, 4 }
 0x5d7   : > { %v6632_v8 = vrot.slane %v6631_v4, 4  ;;  %v6939_v20 = vsel %vm11777_vm5, %v10480_v2, %v6938_v36  ;;  %v8473_v4 = vadd.f32 %v14615_v43, %v14621_v32 }
 0x5d8   : > { %v8637_v25 = vpop.f32.mrf.mxu2  ;;  %v8556_v41 = vpop.f32.mrf.mxu1 }
 0x5d9   : > { %v15011_v1 = vadd.f32 %v8637_v25, %v14964_v10  ;;  %v15013_v39 = vadd.f32 %v8556_v41, %v8468_v60  ;;  %v6941_v10 = vrot.slane %v14980_v61, 5  ;;  %v15024_v41 = vld [vmem:[#allocation2 + $0x7c] sm:$0xf]  ;;  %v6637_v35 = vsel %vm11592_vm2, %v6632_v8, %v6636_v26 }
 0x5da   : > { %v6627_v61 = vsel %vm11592_vm2, %v6622_v17, %v6626_v19  ;;  %v6652_v40 = vshrl.u32 %v15024_v41, 16  ;;  %v6641_v19 = vrot.slane %v6639_v0, 4  ;;  %v8475_v0 = vadd.f32 %v14631_v37, %v14641_v42 }
 0x5db   : > { %15814 = vst [vmem:[#allocation35_spill] sm:$0xff] %v15011_v1  ;;  %8871 = vmatmul.bf16.gmra.mxu1 %v7540_v24  ;;  %v6942_v33 = vsel %vm11777_vm5, %v6940_v34, %v6941_v10  ;;  %v6642_v24 = vshll.u32 %v6414_v50, 16  ;;  %v7516_v21 = vunpack.c.l.b16 %v6627_v61  ;;  %v7578_v50 = vunpack.c.l.b16 %v6939_v20 }
 0x5dc   : > { %v7579_v26 = vunpack.c.l.b16 %v6942_v33  ;;  %v6654_v58 = vrot.slane %v6652_v40, 4  ;;  %v6945_v33 = vrot.slane %v14994_v51, 5  ;;  %v6948_v40 = vrot.slane %v15008_v52, 5 }
 0x5dd   : > { %8955 = vmatmul.bf16.gmra.mxu2 %v7603_v27  ;;  %v7517_v27 = vunpack.c.l.b16 %v6637_v35  ;;  %v6644_v17 = vrot.slane %v6642_v24, 5  ;;  %v6837_v24 = vld [vmem:[#allocation2 + $0x6c] sm:$0xe] }
 0x5de   : > { %v7604_v43 = vpack.c.b16 %v7579_v26, %v7578_v50  ;;  %v6947_v51 = vrot.slane %v6945_v33, 4  ;;  %v10481_v37 = vrot.slane %v6837_v24, 9 }
 0x5df   : > { %v7541_v36 = vpack.c.b16 %v7517_v27, %v7516_v21  ;;  %v6645_v32 = vor.u32 %v6644_v17, %v6641_v19 }
 0x5e0   : > { %v8640_v60 = vpop.f32.mrf.mxu2  ;;  %v8558_v25 = vpop.f32.mrf.mxu1  ;;  %v6949_v52 = vsel %vm11777_vm5, %v6947_v51, %v6948_v40 }
 0x5e1   : > { %v15020_v11 = vadd.f32 %v8640_v60, %v8552_v63  ;;  %v15022_v15 = vadd.f32 %v8558_v25, %v8470_v46  ;;  %v6648_v63 = vshll.u32 %v15024_v41, 16  ;;  %v15038_v46 = vld [vmem:[#allocation2 + $0x80] sm:$0x1]  ;;  %v6646_v20 = vrot.slane %v6645_v32, 4  ;;  %v15067_v32 = vld [vmem:[#allocation2 + $0x8c] sm:$0x1] }
 0x5e2   : > { %v6658_v35 = vshll.u32 %v15038_v46, 16 }
 0x5e3   : > { %15816 = vst [vmem:[#allocation40_spill] sm:$0xff] %v15020_v11  ;;  %v6650_v25 = vrot.slane %v6648_v63, 5 }
 0x5e4   : > { %v6660_v61 = vrot.slane %v6658_v35, 5  ;;  %v7581_v35 = vunpack.c.l.b16 %v6949_v52 }
 0x5e5   : > { %v6655_v2 = vor.u32 %v6654_v58, %v6650_v25  ;;  %v6651_v17 = vsel %vm11592_vm2, %v6646_v20, %v6650_v25 }
 0x5e7   : > { %v6656_v27 = vrot.slane %v6655_v2, 4 }
 0x5e8   : > { %v8642_v10 = vpop.f32.mrf.mxu2  ;;  %v8561_v60 = vpop.f32.mrf.mxu1 }
 0x5e9   : > { %v15041_v8 = vadd.f32 %v8642_v10, %v14992_v59  ;;  %v15043_v34 = vadd.f32 %v8561_v60, %v8473_v4  ;;  %v6416_v4 = vld [vmem:[#allocation2 + $0x84] sm:$0xf]  ;;  %v15055_v10 = vld [vmem:[#allocation2 + $0x88] sm:$0xf]  ;;  %v6661_v60 = vsel %vm11592_vm2, %v6656_v27, %v6660_v61  ;;  %v6682_v27 = vshll.u32 %v15067_v32, 16 }
 0x5ea   : > { %v6663_v42 = vshrl.u32 %v6416_v4, 16  ;;  %v6666_v19 = vshll.u32 %v6416_v4, 16  ;;  %v6676_v58 = vshrl.u32 %v15055_v10, 16  ;;  %v7519_v50 = vunpack.c.l.b16 %v6661_v60 }
 0x5eb   : > { %15817 = vst [vmem:[#allocation33_spill] sm:$0xff] %v15041_v8  ;;  %8876 = vmatmul.bf16.gmra.mxu1 %v7541_v36  ;;  %v6946_v36 = vsel %vm11777_vm5, %v10481_v37, %v6945_v33  ;;  %v6952_v4 = vrot.slane %v15024_v41, 5  ;;  %v6955_v37 = vrot.slane %v15038_v46, 5 }
 0x5ec   : > { %v6665_v2 = vrot.slane %v6663_v42, 4  ;;  %v6668_v61 = vrot.slane %v6666_v19, 5  ;;  %v7580_v40 = vunpack.c.l.b16 %v6946_v36  ;;  %v6838_v42 = vld [vmem:[#allocation2 + $0x78] sm:$0xe]  ;;  %v6684_v19 = vrot.slane %v6682_v27, 5 }
 0x5ed   : > { %8960 = vmatmul.bf16.gmra.mxu2 %v7604_v43  ;;  %v7518_v43 = vunpack.c.l.b16 %v6651_v17  ;;  %v6954_v52 = vrot.slane %v6952_v4, 4 }
 0x5ee   : > { %v7605_v33 = vpack.c.b16 %v7581_v35, %v7580_v40  ;;  %v6669_v51 = vor.u32 %v6668_v61, %v6665_v2  ;;  %v6418_v35 = vld [vmem:[#allocation2 + $0x90] sm:$0xf] }
 0x5ef   : > { %v7542_v20 = vpack.c.b16 %v7519_v50, %v7518_v43  ;;  %v10482_v43 = vrot.slane %v6838_v42, 9  ;;  %v6956_v46 = vsel %vm11777_vm5, %v6954_v52, %v6955_v37  ;;  %v6687_v27 = vshrl.u32 %v6418_v35, 16 }
 0x5f0   : > { %v8645_v59 = vpop.f32.mrf.mxu2  ;;  %v8563_v63 = vpop.f32.mrf.mxu1  ;;  %v6670_v17 = vrot.slane %v6669_v51, 4  ;;  %v7583_v37 = vunpack.c.l.b16 %v6956_v46  ;;  %v10972_v46 = vld [vmem:[%s11565_s14 + $0x20] sm:$0x1] }
 0x5f1   : > { %v15051_v26 = vadd.f32 %v8645_v59, %v15013_v39  ;;  %v15053_v21 = vadd.f32 %v8563_v63, %v8475_v0  ;;  %v6672_v39 = vshll.u32 %v15055_v10, 16  ;;  %v6678_v63 = vrot.slane %v6676_v58, 4 }
 0x5f3   : > { %15818 = vst [vmem:[#allocation44_spill] sm:$0xff] %v15051_v26  ;;  %v6674_v59 = vrot.slane %v6672_v39, 5  ;;  %v15078_v39 = vld [vmem:[#allocation2 + $0x94] sm:$0xf] }
 0x5f5   : > { %v6679_v60 = vor.u32 %v6678_v63, %v6674_v59  ;;  %v6696_v63 = vshll.u32 %v15078_v39, 16  ;;  %v6675_v40 = vsel %vm11592_vm2, %v6670_v17, %v6674_v59 }
 0x5f7   : > { %v6680_v36 = vrot.slane %v6679_v60, 4  ;;  %v6953_v60 = vsel %vm11777_vm5, %v10482_v43, %v6952_v4  ;;  %v6698_v17 = vrot.slane %v6696_v63, 5  ;;  %v6962_v63 = vrot.slane %v15067_v32, 5 }
 0x5f8   : > { %v8647_v0 = vpop.f32.mrf.mxu2  ;;  %v15069_v24 = vpop.f32.mrf.mxu1  ;;  %v7582_v8 = vunpack.c.l.b16 %v6953_v60  ;;  %v6839_v60 = vld [vmem:[#allocation2 + $0x84] sm:$0xe] }
 0x5f9   : > { %v15072_v25 = vadd.f32 %v8647_v0, %v15022_v15  ;;  %v10970_v15 = vld [vmem:[%s11565_s14 + $0x18] sm:$0xf]  ;;  %v6685_v2 = vsel %vm11592_vm2, %v6680_v36, %v6684_v19  ;;  %v7520_v19 = vunpack.c.l.b16 %v6675_v40 }
 0x5fa   : > { %v9060_v61 = vshrl.u32 %v10970_v15, 16  ;;  %v9063_v0 = vshll.u32 %v10970_v15, 16  ;;  %v7521_v42 = vunpack.c.l.b16 %v6685_v2  ;;  %v15096_v36 = vld [vmem:[#allocation2 + $0x98] sm:$0x1]  ;;  %v6959_v2 = vrot.slane %v15055_v10, 5 }
 0x5fb   : > { %15819 = vst [vmem:[#allocation39_spill] sm:$0xff] %v15072_v25  ;;  %8881 = vmatmul.bf16.gmra.mxu1 %v7542_v20  ;;  %v10971_v20 = vld [vmem:[%s11565_s14 + $0x1c] sm:$0xf]  ;;  %v10483_v10 = vrot.slane %v6839_v60, 9 }
 0x5fc   : > { %v9073_v51 = vshrl.u32 %v10971_v20, 16  ;;  %v9062_v52 = vrot.slane %v9060_v61, 4  ;;  %v9065_v15 = vrot.slane %v9063_v0, 5  ;;  %v7543_v43 = vpack.c.b16 %v7521_v42, %v7520_v19  ;;  %v6420_v19 = vld [vmem:[#allocation2 + $0x9c] sm:$0xf] }
 0x5fd   : > { %8965 = vmatmul.bf16.gmra.mxu2 %v7605_v33  ;;  %v6690_v33 = vshll.u32 %v6418_v35, 16  ;;  %v6706_v61 = vshll.u32 %v15096_v36, 16 }
 0x5fe   : > { %v9075_v11 = vrot.slane %v9073_v51, 4  ;;  %v9066_v0 = vor.u32 %v9065_v15, %v9062_v52  ;;  %v9079_v51 = vshll.u32 %v10972_v46, 16 }
 0x5ff   : > { %v6692_v59 = vrot.slane %v6690_v33, 5  ;;  %v6708_v42 = vrot.slane %v6706_v61, 5  ;;  %v6960_v61 = vsel %vm11777_vm5, %v10483_v10, %v6959_v2 }
 0x600   : > { %v8650_v58 = vpop.f32.mrf.mxu2  ;;  %v15080_v50 = vpop.f32.mrf.mxu1 }
 0x601   : > { %v15083_v41 = vadd.f32 %v8650_v58, %v15043_v34  ;;  %v6700_v34 = vshrl.u32 %v15078_v39, 16  ;;  %v9069_v58 = vshll.u32 %v10971_v20, 16  ;;  %v7606_v20 = vpack.c.b16 %v7583_v37, %v7582_v8  ;;  %v10973_v37 = vld [vmem:[%s11565_s14 + $0x24] sm:$0xf] }
 0x603   : > { %15820 = vst [vmem:[#allocation37_spill] sm:$0xff] %v15083_v41  ;;  %v6689_v41 = vrot.slane %v6687_v27, 4  ;;  %v6702_v25 = vrot.slane %v6700_v34, 4  ;;  %v9071_v40 = vrot.slane %v9069_v58, 5 }
 0x605   : > { %v6693_v27 = vor.u32 %v6692_v59, %v6689_v41  ;;  %v6703_v33 = vor.u32 %v6702_v25, %v6698_v17  ;;  %v9076_v34 = vor.u32 %v9075_v11, %v9071_v40  ;;  %v9081_v11 = vrot.slane %v9079_v51, 5  ;;  %v15112_v41 = vld [vmem:[#allocation2 + $0xa0] sm:$0xf] }
 0x606   : > { %v6711_v59 = vshrl.u32 %v6420_v19, 16 }
 0x607   : > { %v6694_v15 = vrot.slane %v6693_v27, 4  ;;  %v6704_v8 = vrot.slane %v6703_v33, 4  ;;  %v9077_v25 = vrot.slane %v9076_v34, 4  ;;  %v9084_v33 = vshrl.u32 %v10973_v37, 16 }
 0x608   : > { %v8652_v35 = vpop.f32.mrf.mxu2  ;;  %v15098_v26 = vpop.f32.mrf.mxu1  ;;  %v9087_v34 = vshll.u32 %v10973_v37, 16 }
 0x609   : > { %v15101_v4 = vadd.f32 %v8652_v35, %v15053_v21  ;;  %v6961_v21 = vrot.slane %v6959_v2, 4  ;;  %v9067_v35 = vrot.slane %v9066_v0, 4  ;;  %v6709_v0 = vsel %vm11592_vm2, %v6704_v8, %v6708_v42 }
 0x60a   : > { %v6699_v60 = vsel %vm11592_vm2, %v6694_v15, %v6698_v17  ;;  %v6724_v2 = vshrl.u32 %v15112_v41, 16  ;;  %v9082_v42 = vsel %vm11592_vm2, %v9077_v25, %v9081_v11  ;;  %v6713_v8 = vrot.slane %v6711_v59, 4 }
 0x60b   : > { %15821 = vst [vmem:[#allocation36_spill] sm:$0xff] %v15101_v4  ;;  %8886 = vmatmul.bf16.gmra.mxu1 %v7543_v43  ;;  %v6963_v52 = vsel %vm11777_vm5, %v6961_v21, %v6962_v63  ;;  %v15822_v43 = vld [vmem:[#allocation3_spill] sm:$0xff]  ;;  %v9072_v63 = vsel %vm11592_vm2, %v9067_v35, %v9071_v40  ;;  %v10974_v21 = vld [vmem:[%s11565_s14 + $0x28] sm:$0xf]  ;;  %v9089_v17 = vrot.slane %v9087_v34, 5  ;;  %v9476_v38 = vunpack.c.l.bf16 %v9082_v42 }
 0x60c   : > { %v8754_v46 = vadd.f32 %v15822_v43, %v14655_v62  ;;  %v7585_v27 = vunpack.c.l.b16 %v6963_v52  ;;  %v6720_v62 = vshll.u32 %v15112_v41, 16  ;;  %v9097_v10 = vshrl.u32 %v10974_v21, 16  ;;  %v15823_v40 = vld [vmem:[#allocation31_spill] sm:$0xff]  ;;  %v15132_v4 = vld [vmem:[#allocation2 + $0xa4] sm:$0x1] }
 0x60d   : > { %8970 = vmatmul.bf16.gmra.mxu2 %v7606_v20  ;;  %v6714_v20 = vshll.u32 %v6420_v19, 16  ;;  %v7523_v19 = vunpack.c.l.b16 %v6709_v0  ;;  %v8756_v35 = vadd.f32 %v15823_v40, %v14671_v22  ;;  %v9475_v37 = vunpack.c.l.bf16 %v9072_v63  ;;  %v15139_v63 = vpop.f32.mrf.mxu3 }
 0x60e   : > { %v8843_v51 = vadd.f32 %v15069_v24, %v8754_v46  ;;  %v7522_v43 = vunpack.c.l.b16 %v6699_v60  ;;  %v9086_v46 = vrot.slane %v9084_v33, 4  ;;  %v9093_v15 = vshll.u32 %v10974_v21, 16 }
 0x60f   : > { %v6716_v24 = vrot.slane %v6714_v20, 5  ;;  %v8845_v1 = vadd.f32 %v15080_v50, %v8756_v35  ;;  %v15135_v25 = vrot.slane %v6720_v62, 5  ;;  %v6726_v11 = vrot.slane %v6724_v2, 4  ;;  %v6840_v35 = vld [vmem:[#allocation2 + $0x90] sm:$0xe] }
 0x610   : > { %v8931_v58 = vpop.f32.mrf.mxu2  ;;  %v15110_v32 = vpop.f32.mrf.mxu1  ;;  %v7584_v22 = vunpack.c.l.b16 %v6960_v61  ;;  %v9099_v20 = vrot.slane %v9097_v10, 4  ;;  %v6730_v21 = vshll.u32 %v15132_v4, 16  ;;  %v9090_v50 = vor.u32 %v9089_v17, %v9086_v46  ;;  %v15154_v46 = vld [vmem:[#allocation2 + $0xac] sm:$0xf] }
 0x611   : > { %v8932_v52 = vadd.f32 %v8931_v58, %v8843_v51  ;;  %v7544_v58 = vpack.c.b16 %v7523_v19, %v7522_v43  ;;  %v10975_v51 = vld [vmem:[%s11565_s14 + $0x2c] sm:$0x1]  ;;  %v6717_v60 = vor.u32 %v6716_v24, %v6713_v8  ;;  %v9095_v42 = vrot.slane %v9093_v15, 5  ;;  %v10976_v15 = vld [vmem:[%s11565_s14 + $0x30] sm:$0xf] }
 0x612   : > { %v6966_v62 = vrot.slane %v15078_v39, 5  ;;  %v7607_v40 = vpack.c.b16 %v7585_v27, %v7584_v22  ;;  %v6727_v61 = vor.u32 %v6726_v11, %v15135_v25  ;;  %v9103_v10 = vshll.u32 %v10975_v51, 16  ;;  %v15824_v51 = vld [vmem:[#allocation16_spill] sm:$0xff] }
 0x613   : > { %v9507_v33 = vadd.f32 %v9475_v37, %v8932_v52  ;;  %v9100_v19 = vor.u32 %v9099_v20, %v9095_v42  ;;  %v15147_v52 = vpop.f32.mrf.mxu0  ;;  %v6718_v24 = vrot.slane %v6717_v60, 4  ;;  %v6732_v43 = vrot.slane %v6730_v21, 5 }
 0x614   : > { %v10484_v39 = vrot.slane %v6840_v35, 9  ;;  %v6968_v27 = vrot.slane %v6966_v62, 4  ;;  %v8759_v60 = vadd.f32 %v15824_v51, %v14680_v13  ;;  %v9111_v35 = vshll.u32 %v10976_v15, 16 }
 0x615   : > { %v9539_v8 = vmax.f32 %v9507_v33, 0.0  ;;  %v9101_v22 = vrot.slane %v9100_v19, 4  ;;  %v6723_v21 = vsel %vm11592_vm2, %v6718_v24, %v15135_v25  ;;  %v15175_v19 = vpop.f32.mrf.mxu3 }
 0x616   : > { %v6967_v20 = vsel %vm11777_vm5, %v10484_v39, %v6966_v62  ;;  %v8848_v13 = vadd.f32 %v15098_v26, %v8759_v60  ;;  %v7524_v24 = vunpack.c.l.b16 %v6723_v21  ;;  %v9113_v51 = vrot.slane %v9111_v35, 5 }
 0x618   : > { %v8933_v59 = vpop.f32.mrf.mxu2  ;;  %v15137_v0 = vpop.f32.mrf.mxu1 }
 0x619   : > { %v8934_v34 = vadd.f32 %v8933_v59, %v8845_v1  ;;  %v6969_v1 = vrot.slane %v15096_v36, 5  ;;  %v6728_v36 = vrot.slane %v6727_v61, 4  ;;  %v6748_v61 = vshrl.u32 %v15154_v46, 16 }
 0x61b   : > { %v9508_v2 = vadd.f32 %v9476_v38, %v8934_v34  ;;  %8891 = vmatmul.bf16.gmra.mxu1 %v7544_v58  ;;  %v9091_v38 = vrot.slane %v9090_v50, 4  ;;  %v9105_v58 = vrot.slane %v9103_v10, 5  ;;  %v6970_v33 = vsel %vm11777_vm5, %v6968_v27, %v6969_v1  ;;  %v6422_v34 = vld [vmem:[#allocation2 + $0xa8] sm:$0xf]  ;;  %v10977_v1 = vld [vmem:[%s11565_s14 + $0x34] sm:$0xf]  ;;  %v15187_v60 = vpop.f32.mrf.mxu0 }
 0x61c   : > { %v6733_v50 = vsel %vm11592_vm2, %v6728_v36, %v6732_v43  ;;  %v7587_v10 = vunpack.c.l.b16 %v6970_v33  ;;  %v6738_v25 = vshll.u32 %v6422_v34, 16  ;;  %v9121_v39 = vshrl.u32 %v10977_v1, 16  ;;  %v15185_v33 = vld [vmem:[#allocation2 + $0xb0] sm:$0x1] }
 0x61d   : > { %v9540_v37 = vmax.f32 %v9508_v2, 0.0  ;;  %8975 = vmatmul.bf16.gmra.mxu2 %v7607_v40  ;;  %v6744_v2 = vshll.u32 %v15154_v46, 16  ;;  %v9096_v62 = vsel %vm11592_vm2, %v9091_v38, %v9095_v42  ;;  %v9108_v40 = vshrl.u32 %v10976_v15, 16  ;;  %v15825_v42 = vld [vmem:[#allocation4_spill] sm:$0xff] }
 0x61e   : > { %v7525_v43 = vunpack.c.l.b16 %v6733_v50  ;;  %v8761_v38 = vadd.f32 %v15825_v42, %v14693_v31  ;;  %v9117_v26 = vshll.u32 %v10977_v1, 16  ;;  %v6740_v50 = vrot.slane %v6738_v25, 5  ;;  %v10978_v1 = vld [vmem:[%s11565_s14 + $0x38] sm:$0x1] }
 0x61f   : > { %v11270_v17 = vpack.c.bf16 %v9540_v37, %v9539_v8  ;;  %v6735_v8 = vshrl.u32 %v6422_v34, 16  ;;  %v9106_v37 = vsel %vm11592_vm2, %v9101_v22, %v9105_v58  ;;  %v15183_v36 = vrot.slane %v6744_v2, 5 }
 0x620   : > { %v8936_v11 = vpop.f32.mrf.mxu2  ;;  %v15157_v59 = vpop.f32.mrf.mxu1  ;;  %v9110_v15 = vrot.slane %v9108_v40, 4  ;;  %v6750_v34 = vrot.slane %v6748_v61, 4  ;;  %v8850_v22 = vadd.f32 %v15110_v32, %v8761_v38  ;;  %v9478_v58 = vunpack.c.l.bf16 %v9106_v37 }
 0x621   : > { %11271 = vst [vmem:[%s15152_s27] sm:$0xff] %v11270_v17   ;;  %v8937_v27 = vadd.f32 %v8936_v11, %v8848_v13  ;;  %v9477_v17 = vunpack.c.l.bf16 %v9096_v62  ;;  %v6737_v21 = vrot.slane %v6735_v8, 4  ;;  %v7586_v11 = vunpack.c.l.b16 %v6967_v20  ;;  %v6841_v8 = vld [vmem:[#allocation2 + $0x9c] sm:$0xe]  ;;  %v15197_v38 = vpop.f32.mrf.mxu3 }
 0x622   : > { %v9123_v2 = vrot.slane %v9121_v39, 4  ;;  %v6973_v62 = vrot.slane %v15112_v41, 5  ;;  %v7545_v13 = vpack.c.b16 %v7525_v43, %v7524_v24  ;;  %v6754_v61 = vshll.u32 %v15185_v33, 16 }
 0x623   : > { %v9509_v40 = vadd.f32 %v9477_v17, %v8937_v27  ;;  %v7608_v42 = vpack.c.b16 %v7587_v10, %v7586_v11  ;;  %v9114_v56 = vor.u32 %v9113_v51, %v9110_v15  ;;  %v9119_v16 = vrot.slane %v9117_v26, 5  ;;  %v10979_v15 = vld [vmem:[%s11565_s14 + $0x3c] sm:$0xf] }
 0x624   : > { %v6976_v25 = vrot.slane %v15132_v4, 5  ;;  %v6741_v37 = vor.u32 %v6740_v50, %v6737_v21  ;;  %v6751_v20 = vor.u32 %v6750_v34, %v15183_v36  ;;  %v9127_v41 = vshll.u32 %v10978_v1, 16  ;;  %v15202_v34 = vld [vmem:[#allocation2 + $0xb8] sm:$0xf] }
 0x625   : > { %v9124_v39 = vor.u32 %v9123_v2, %v9119_v16  ;;  %v6975_v43 = vrot.slane %v6973_v62, 4  ;;  %v6756_v10 = vrot.slane %v6754_v61, 5  ;;  %v9115_v27 = vrot.slane %v9114_v56, 4  ;;  %v6424_v2 = vld [vmem:[#allocation2 + $0xb4] sm:$0xf] }
 0x626   : > { %v10485_v17 = vrot.slane %v6841_v8, 9  ;;  %v6742_v26 = vrot.slane %v6741_v37, 4  ;;  %v9129_v11 = vrot.slane %v9127_v41, 5  ;;  %v9132_v61 = vshrl.u32 %v10979_v15, 16 }
 0x627   : > { %v6977_v4 = vsel %vm11777_vm5, %v6975_v43, %v6976_v25  ;;  %v9125_v50 = vrot.slane %v9124_v39, 4  ;;  %v6768_v25 = vshll.u32 %v15202_v34, 16  ;;  %v6759_v39 = vshrl.u32 %v6424_v2, 16 }
 0x628   : > { %v8938_v54 = vpop.f32.mrf.mxu2  ;;  %v15190_v31 = vpop.f32.mrf.mxu1  ;;  %v6974_v56 = vsel %vm11777_vm5, %v10485_v17, %v6973_v62  ;;  %v7589_v8 = vunpack.c.l.b16 %v6977_v4  ;;  %v6772_v62 = vshrl.u32 %v15202_v34, 16  ;;  %v6762_v41 = vshll.u32 %v6424_v2, 16 }
 0x629   : > { %v8939_v35 = vadd.f32 %v8938_v54, %v8850_v22  ;;  %v9541_v54 = vmax.f32 %v9509_v40, 0.0  ;;  %v6752_v22 = vrot.slane %v6751_v20, 4  ;;  %v15208_v40 = vpop.f32.mrf.mxu0  ;;  %v10980_v20 = vld [vmem:[%s11565_s14 + $0x40] sm:$0xf]  ;;  %v15232_v2 = vpop.f32.mrf.mxu3 }
 0x62b   : > { %v9510_v32 = vadd.f32 %v9478_v58, %v8939_v35  ;;  %8896 = vmatmul.bf16.gmra.mxu1 %v7545_v13  ;;  %v15826_v35 = vld [vmem:[#allocation19_spill] sm:$0xff]  ;;  %v6757_v1 = vsel %vm11592_vm2, %v6752_v22, %v6756_v10  ;;  %v9145_v10 = vshrl.u32 %v10980_v20, 16  ;;  %v9141_v22 = vshll.u32 %v10980_v20, 16  ;;  %v10981_v20 = vld [vmem:[%s11565_s14 + $0x44] sm:$0x1] }
 0x62c   : > { %v8764_v13 = vadd.f32 %v15826_v35, %v14705_v48  ;;  %v6747_v48 = vsel %vm11592_vm2, %v6742_v26, %v15183_v36  ;;  %v7527_v43 = vunpack.c.l.b16 %v6757_v1  ;;  %v15230_v36 = vrot.slane %v6768_v25, 5 }
 0x62d   : > { %v9542_v24 = vmax.f32 %v9510_v32, 0.0  ;;  %8980 = vmatmul.bf16.gmra.mxu2 %v7608_v42  ;;  %v9135_v42 = vshll.u32 %v10979_v15, 16  ;;  %v9120_v32 = vsel %vm11592_vm2, %v9115_v27, %v9119_v16  ;;  %v9130_v16 = vsel %vm11592_vm2, %v9125_v50, %v9129_v11 }
 0x62e   : > { %v8853_v37 = vadd.f32 %v15137_v0, %v8764_v13  ;;  %v9479_v17 = vunpack.c.l.bf16 %v9120_v32  ;;  %v9134_v15 = vrot.slane %v9132_v61, 4  ;;  %v15228_v0 = vld [vmem:[#allocation2 + $0xbc] sm:$0x1]  ;;  %v7526_v4 = vunpack.c.l.b16 %v6747_v48 }
 0x62f   : > { %v11275_v51 = vpack.c.bf16 %v9542_v24, %v9541_v54  ;;  %v15827_v54 = vld [vmem:[#allocation21_spill] sm:$0xff]  ;;  %v6774_v26 = vrot.slane %v6772_v62, 4  ;;  %v9480_v35 = vunpack.c.l.bf16 %v9130_v16  ;;  %v6761_v50 = vrot.slane %v6759_v39, 4 }
 0x630   : > { %v8941_v58 = vpop.f32.mrf.mxu2  ;;  %v15204_v21 = vpop.f32.mrf.mxu1  ;;  %v8766_v24 = vadd.f32 %v15827_v54, %v14721_v57  ;;  %v6764_v11 = vrot.slane %v6762_v41, 5  ;;  %v7588_v1 = vunpack.c.l.b16 %v6974_v56  ;;  %v9147_v61 = vrot.slane %v9145_v10, 4  ;;  %v6842_v56 = vld [vmem:[#allocation2 + $0xa8] sm:$0xe] }
 0x631   : > { %11347 = vst [vmem:[%s15152_s27 + $0x8] sm:$0xff] %v11275_v51   ;;  %v8942_v27 = vadd.f32 %v8941_v58, %v8853_v37  ;;  %v9137_v51 = vrot.slane %v9135_v42, 5  ;;  %v6980_v42 = vrot.slane %v15154_v46, 5  ;;  %v6778_v32 = vshll.u32 %v15228_v0, 16 }
 0x632   : > { %v8855_v57 = vadd.f32 %v15157_v59, %v8766_v24  ;;  %v7546_v62 = vpack.c.b16 %v7527_v43, %v7526_v4  ;;  %v9143_v54 = vrot.slane %v9141_v22, 5  ;;  %v6775_v59 = vor.u32 %v6774_v26, %v15230_v36  ;;  %v15241_v24 = vpop.f32.mrf.mxu0  ;;  %v10982_v26 = vld [vmem:[%s11565_s14 + $0x48] sm:$0xf] }
 0x633   : > { %v9511_v25 = vadd.f32 %v9479_v17, %v8942_v27  ;;  %v9138_v48 = vor.u32 %v9137_v51, %v9134_v15  ;;  %v7609_v41 = vpack.c.b16 %v7589_v8, %v7588_v1  ;;  %v6983_v16 = vrot.slane %v15185_v33, 5  ;;  %v6426_v33 = vld [vmem:[#allocation2 + $0xc0] sm:$0xf] }
 0x634   : > { %v6765_v46 = vor.u32 %v6764_v11, %v6761_v50  ;;  %v9148_v10 = vor.u32 %v9147_v61, %v9143_v54  ;;  %v9151_v55 = vshll.u32 %v10981_v20, 16  ;;  %v6780_v27 = vrot.slane %v6778_v32, 5  ;;  %v15247_v50 = vld [vmem:[#allocation2 + $0xc4] sm:$0xf] }
 0x635   : > { %v9543_v17 = vmax.f32 %v9511_v25, 0.0  ;;  %v9139_v15 = vrot.slane %v9138_v48, 4  ;;  %v6982_v51 = vrot.slane %v6980_v42, 4  ;;  %v10486_v4 = vrot.slane %v6842_v56, 9 }
 0x636   : > { %v6776_v22 = vrot.slane %v6775_v59, 4  ;;  %v9149_v1 = vrot.slane %v9148_v10, 4  ;;  %v9153_v61 = vrot.slane %v9151_v55, 5  ;;  %v9156_v20 = vshrl.u32 %v10982_v26, 16 }
 0x637   : > { %v6984_v8 = vsel %vm11777_vm5, %v6982_v51, %v6983_v16  ;;  %v6981_v32 = vsel %vm11777_vm5, %v10486_v4, %v6980_v42  ;;  %v9144_v48 = vsel %vm11592_vm2, %v9139_v15, %v9143_v54  ;;  %v9159_v59 = vshll.u32 %v10982_v26, 16 }
 0x638   : > { %v8943_v13 = vpop.f32.mrf.mxu2  ;;  %v15235_v58 = vpop.f32.mrf.mxu1  ;;  %v6781_v25 = vsel %vm11592_vm2, %v6776_v22, %v6780_v27  ;;  %v6783_v55 = vshrl.u32 %v6426_v33, 16  ;;  %v6792_v56 = vshll.u32 %v15247_v50, 16  ;;  %v6796_v42 = vshrl.u32 %v15247_v50, 16  ;;  %v15275_v22 = vld [vmem:[#allocation2 + $0xc8] sm:$0x1] }
 0x639   : > { %v8944_v37 = vadd.f32 %v8943_v13, %v8855_v57  ;;  %v8771_v54 = vadd.f32 %v14800_v28, %v14743_v9  ;;  %v9481_v10 = vunpack.c.l.bf16 %v9144_v48  ;;  %v9154_v27 = vsel %vm11592_vm2, %v9149_v1, %v9153_v61 }
 0x63a   : > { %v9158_v51 = vrot.slane %v9156_v20, 4  ;;  %v6785_v26 = vrot.slane %v6783_v55, 4  ;;  %v9482_v28 = vunpack.c.l.bf16 %v9154_v27  ;;  %v6802_v48 = vshll.u32 %v15275_v22, 16 }
 0x63b   : > { %v9512_v39 = vadd.f32 %v9480_v35, %v8944_v37  ;;  %8901 = vmatmul.bf16.gmra.mxu1 %v7546_v62  ;;  %v6766_v35 = vrot.slane %v6765_v46, 4  ;;  %v15255_v37 = vpop.f32.mrf.mxu3  ;;  %v8769_v62 = vadd.f32 %v14773_v45, %v14730_v3  ;;  %v6786_v45 = vshll.u32 %v6426_v33, 16 }
 0x63c   : > { %v8860_v9 = vadd.f32 %v15204_v21, %v8771_v54  ;;  %v8685_v54 = vadd.f32 %v15139_v63, %v14751_v30  ;;  %v6990_v27 = vrot.slane %v15228_v0, 5  ;;  %v8687_v30 = vadd.f32 %v15175_v19, %v14769_v5  ;;  %v15306_v5 = vld [vmem:[#allocation2 + $0xd0] sm:$0xf]  ;;  %v10986_v19 = vld [vmem:[%s11565_s14 + $0x58] sm:$0xf] }
 0x63d   : > { %v9544_v43 = vmax.f32 %v9512_v39, 0.0  ;;  %8985 = vmatmul.bf16.gmra.mxu2 %v7609_v41  ;;  %v7591_v39 = vunpack.c.l.b16 %v6984_v8  ;;  %v10983_v41 = vld [vmem:[%s11565_s14 + $0x4c] sm:$0xf]  ;;  %v8858_v16 = vadd.f32 %v15190_v31, %v8769_v62  ;;  %v6771_v46 = vsel %vm11592_vm2, %v6766_v35, %v15230_v36  ;;  %v10984_v62 = vld [vmem:[%s11565_s14 + $0x50] sm:$0x1] }
 0x63e   : > { %v9169_v3 = vshrl.u32 %v10983_v41, 16  ;;  %v9161_v31 = vrot.slane %v9159_v59, 5  ;;  %v9165_v4 = vshll.u32 %v10983_v41, 16  ;;  %v7528_v36 = vunpack.c.l.b16 %v6771_v46 }
 0x63f   : > { %v11280_v57 = vpack.c.bf16 %v9544_v43, %v9543_v17  ;;  %v7529_v17 = vunpack.c.l.b16 %v6781_v25  ;;  %v15273_v43 = vpop.f32.mrf.mxu0  ;;  %v6798_v8 = vrot.slane %v6796_v42, 4  ;;  %v6788_v33 = vrot.slane %v6786_v45, 5 }
 0x640   : > { %v8946_v11 = vpop.f32.mrf.mxu2  ;;  %v15249_v13 = vpop.f32.mrf.mxu1  ;;  %v9171_v35 = vrot.slane %v9169_v3, 4  ;;  %v9162_v41 = vor.u32 %v9161_v31, %v9158_v51  ;;  %v9167_v55 = vrot.slane %v9165_v4, 5  ;;  %v6987_v42 = vrot.slane %v15202_v34, 5  ;;  %v10985_v51 = vld [vmem:[%s11565_s14 + $0x54] sm:$0xf] }
 0x641   : > { %11348 = vst [vmem:[%s15152_s27 + $0x10] sm:$0xff] %v11280_v57   ;;  %v8947_v15 = vadd.f32 %v8946_v11, %v8858_v16  ;;  %v15277_v57 = vrot.slane %v6792_v56, 5  ;;  %v7590_v11 = vunpack.c.l.b16 %v6981_v32  ;;  %v7547_v25 = vpack.c.b16 %v7529_v17, %v7528_v36 }
 0x642   : > { %v9172_v3 = vor.u32 %v9171_v35, %v9167_v55  ;;  %v9175_v32 = vshll.u32 %v10984_v62, 16  ;;  %v6789_v45 = vor.u32 %v6788_v33, %v6785_v26  ;;  %v9163_v34 = vrot.slane %v9162_v41, 4 }
 0x643   : > { %v9513_v20 = vadd.f32 %v9481_v10, %v8947_v15  ;;  %v7610_v56 = vpack.c.b16 %v7591_v39, %v7590_v11  ;;  %v6799_v21 = vor.u32 %v6798_v8, %v15277_v57  ;;  %v15286_v16 = vpop.f32.mrf.mxu3  ;;  %v6843_v10 = vld [vmem:[#allocation2 + $0xb4] sm:$0xe]  ;;  %v6804_v15 = vrot.slane %v6802_v48, 5 }
 0x644   : > { %v6989_v31 = vrot.slane %v6987_v42, 4  ;;  %v9177_v26 = vrot.slane %v9175_v32, 5  ;;  %v10487_v35 = vrot.slane %v6843_v10, 9  ;;  %v8774_v11 = vadd.f32 %v15147_v52, %v8685_v54 }
 0x645   : > { %v9545_v17 = vmax.f32 %v9513_v20, 0.0  ;;  %v6800_v4 = vrot.slane %v6799_v21, 4  ;;  %v9183_v48 = vshll.u32 %v10985_v51, 16  ;;  %v6428_v20 = vld [vmem:[#allocation2 + $0xcc] sm:$0xf]  ;;  %v6820_v21 = vshrl.u32 %v15306_v5, 16 }
 0x646   : > { %v6991_v33 = vsel %vm11777_vm5, %v6989_v31, %v6990_v27  ;;  %v6810_v41 = vshll.u32 %v6428_v20, 16  ;;  %v8863_v52 = vadd.f32 %v15235_v58, %v8774_v11 }
 0x647   : > { %v15292_v36 = vpop.f32.mrf.mxu0  ;;  %v6805_v62 = vsel %vm11592_vm2, %v6800_v4, %v6804_v15  ;;  %v6822_v10 = vrot.slane %v6820_v21, 4  ;;  %v15322_v15 = vld [vmem:[#allocation2 + $0xd4] sm:$0x1]  ;;  %v9185_v31 = vrot.slane %v9183_v48, 5  ;;  %v9189_v4 = vshll.u32 %v10986_v19, 16 }
 0x648   : > { %v8948_v1 = vpop.f32.mrf.mxu2  ;;  %v15280_v61 = vpop.f32.mrf.mxu1 }
 0x649   : > { %v8949_v59 = vadd.f32 %v8948_v1, %v8860_v9  ;;  %v9173_v9 = vrot.slane %v9172_v3, 4  ;;  %v9180_v1 = vshrl.u32 %v10985_v51, 16  ;;  %v9193_v3 = vshrl.u32 %v10986_v19, 16 }
 0x64a   : > { %v6988_v51 = vsel %vm11777_vm5, %v10487_v35, %v6987_v42 }
 0x64b   : > { %v9514_v46 = vadd.f32 %v9482_v28, %v8949_v59  ;;  %8906 = vmatmul.bf16.gmra.mxu1 %v7547_v25  ;;  %v6790_v28 = vrot.slane %v6789_v45, 4  ;;  %v9168_v25 = vsel %vm11592_vm2, %v9163_v34, %v9167_v55  ;;  %v6807_v59 = vshrl.u32 %v6428_v20, 16  ;;  %v15319_v27 = vpop.f32.mrf.mxu3 }
 0x64c   : > { %v6812_v45 = vrot.slane %v6810_v41, 5  ;;  %v9483_v58 = vunpack.c.l.bf16 %v9168_v25  ;;  %v7531_v34 = vunpack.c.l.b16 %v6805_v62  ;;  %v6826_v62 = vshll.u32 %v15322_v15, 16 }
 0x64d   : > { %v9546_v39 = vmax.f32 %v9514_v46, 0.0  ;;  %8990 = vmatmul.bf16.gmra.mxu2 %v7610_v56  ;;  %v6816_v56 = vshll.u32 %v15306_v5, 16  ;;  %v9178_v46 = vsel %vm11592_vm2, %v9173_v9, %v9177_v26  ;;  %v6795_v55 = vsel %vm11592_vm2, %v6790_v28, %v15277_v57 }
 0x64e   : > { %v6809_v32 = vrot.slane %v6807_v59, 4  ;;  %v9182_v57 = vrot.slane %v9180_v1, 4  ;;  %v9484_v9 = vunpack.c.l.bf16 %v9178_v46  ;;  %v7593_v26 = vunpack.c.l.b16 %v6991_v33 }
 0x64f   : > { %v11285_v8 = vpack.c.bf16 %v9546_v39, %v9545_v17  ;;  %v15317_v54 = vrot.slane %v6816_v56, 5  ;;  %v8776_v17 = vadd.f32 %v15187_v60, %v8687_v30  ;;  %v7530_v28 = vunpack.c.l.b16 %v6795_v55  ;;  %v10987_v60 = vld [vmem:[%s11565_s14 + $0x5c] sm:$0x1]  ;;  %v15332_v59 = vpop.f32.mrf.mxu0 }
 0x650   : > { %v8951_v63 = vpop.f32.mrf.mxu2  ;;  %v15296_v0 = vpop.f32.mrf.mxu1  ;;  %v9195_v30 = vrot.slane %v9193_v3, 4  ;;  %v7592_v1 = vunpack.c.l.b16 %v6988_v51  ;;  %v9191_v33 = vrot.slane %v9189_v4, 5  ;;  %v9199_v56 = vshll.u32 %v10987_v60, 16 }
 0x651   : > { %11349 = vst [vmem:[%s15152_s27 + $0x18] sm:$0xff] %v11285_v8   ;;  %v8952_v39 = vadd.f32 %v8951_v63, %v8863_v52  ;;  %v8865_v8 = vadd.f32 %v15249_v13, %v8776_v17  ;;  %v6813_v63 = vor.u32 %v6812_v45, %v6809_v32  ;;  %v6823_v25 = vor.u32 %v6822_v10, %v15317_v54 }
 0x652   : > { %v7548_v48 = vpack.c.b16 %v7531_v34, %v7530_v28  ;;  %v9186_v13 = vor.u32 %v9185_v31, %v9182_v57  ;;  %v7611_v41 = vpack.c.b16 %v7593_v26, %v7592_v1  ;;  %v9196_v21 = vor.u32 %v9195_v30, %v9191_v33 }
 0x653   : > { %v9515_v42 = vadd.f32 %v9483_v58, %v8952_v39  ;;  %v6814_v52 = vrot.slane %v6813_v63, 4  ;;  %v6824_v46 = vrot.slane %v6823_v25, 4  ;;  %v6828_v55 = vrot.slane %v6826_v62, 5  ;;  %v10988_v39 = vld [vmem:[%s11565_s14 + $0x60] sm:$0xf]  ;;  %v15340_v34 = vpop.f32.mrf.mxu3 }
 0x654   : > { %v8690_v3 = vadd.f32 %v15197_v38, %v14778_v53  ;;  %v9187_v10 = vrot.slane %v9186_v13, 4  ;;  %v6994_v17 = vrot.slane %v15247_v50, 5  ;;  %v8692_v58 = vadd.f32 %v15232_v2, %v14805_v18 }
 0x655   : > { %v9547_v32 = vmax.f32 %v9515_v42, 0.0  ;;  %v6997_v57 = vrot.slane %v15275_v22, 5  ;;  %v9197_v53 = vrot.slane %v9196_v21, 4  ;;  %v9201_v38 = vrot.slane %v9199_v56, 5 }
 0x656   : > { %v6819_v50 = vsel %vm11592_vm2, %v6814_v52, %v15317_v54  ;;  %v8779_v18 = vadd.f32 %v15208_v40, %v8690_v3  ;;  %v9204_v2 = vshrl.u32 %v10988_v39, 16  ;;  %v9207_v26 = vshll.u32 %v10988_v39, 16  ;;  %v10989_v54 = vld [vmem:[%s11565_s14 + $0x64] sm:$0xf] }
 0x657   : > { %v9192_v22 = vsel %vm11592_vm2, %v9187_v10, %v9191_v33  ;;  %v6996_v28 = vrot.slane %v6994_v17, 4  ;;  %v7532_v63 = vunpack.c.l.b16 %v6819_v50  ;;  %v8781_v62 = vadd.f32 %v15241_v24, %v8692_v58  ;;  %v10990_v58 = vld [vmem:[%s11565_s14 + $0x68] sm:$0x1] }
 0x658   : > { %v8953_v11 = vpop.f32.mrf.mxu2  ;;  %v15327_v20 = vpop.f32.mrf.mxu1  ;;  %v8868_v60 = vadd.f32 %v15280_v61, %v8779_v18  ;;  %v9202_v40 = vsel %vm11592_vm2, %v9197_v53, %v9201_v38  ;;  %v9206_v13 = vrot.slane %v9204_v2, 4  ;;  %v9209_v33 = vrot.slane %v9207_v26, 5 }
 0x659   : > { %v8954_v35 = vadd.f32 %v8953_v11, %v8865_v8  ;;  %v6844_v8 = vld [vmem:[#allocation2 + $0xc0] sm:$0xe]  ;;  %v15354_v11 = vpop.f32.mrf.mxu0  ;;  %v6998_v42 = vsel %vm11777_vm5, %v6996_v28, %v6997_v57  ;;  %v9486_v56 = vunpack.c.l.bf16 %v9202_v40  ;;  %v9223_v38 = vshll.u32 %v10990_v58, 16  ;;  %v10993_v58 = vld [vmem:[%s11565_s14 + $0x74] sm:$0x1] }
 0x65a   : > { %v10488_v30 = vrot.slane %v6844_v8, 9  ;;  %v7595_v24 = vunpack.c.l.b16 %v6998_v42  ;;  %v9210_v39 = vor.u32 %v9209_v33, %v9206_v13  ;;  %v8695_v50 = vadd.f32 %v15255_v37, %v14814_v49 }
 0x65b   : > { %v9516_v19 = vadd.f32 %v9484_v9, %v8954_v35  ;;  %8911 = vmatmul.bf16.gmra.mxu1 %v7548_v48  ;;  %v6829_v9 = vsel %vm11592_vm2, %v6824_v46, %v6828_v55  ;;  %v9217_v35 = vshrl.u32 %v10989_v54, 16  ;;  %v9485_v48 = vunpack.c.l.bf16 %v9192_v22  ;;  %v15368_v3 = vpop.f32.mrf.mxu3 }
 0x65c   : > { %v7533_v25 = vunpack.c.l.b16 %v6829_v9  ;;  %v6995_v61 = vsel %vm11777_vm5, %v10488_v30, %v6994_v17  ;;  %v7001_v17 = vrot.slane %v15306_v5, 5  ;;  %v9211_v2 = vrot.slane %v9210_v39, 4 }
 0x65d   : > { %v9548_v45 = vmax.f32 %v9516_v19, 0.0  ;;  %8995 = vmatmul.bf16.gmra.mxu2 %v7611_v41  ;;  %v9213_v19 = vshll.u32 %v10989_v54, 16  ;;  %v8870_v41 = vadd.f32 %v15296_v0, %v8781_v62  ;;  %v9219_v55 = vrot.slane %v9217_v35, 4 }
 0x65e   : > { %v7549_v21 = vpack.c.b16 %v7533_v25, %v7532_v63  ;;  %v7594_v10 = vunpack.c.l.b16 %v6995_v61  ;;  %v7003_v22 = vrot.slane %v7001_v17, 4  ;;  %v7004_v5 = vrot.slane %v15322_v15, 5 }
 0x65f   : > { %v11290_v51 = vpack.c.bf16 %v9548_v45, %v9547_v32  ;;  %v8697_v30 = vadd.f32 %v15286_v16, %v14839_v14  ;;  %v9225_v49 = vrot.slane %v9223_v38, 5  ;;  %v8784_v37 = vadd.f32 %v15273_v43, %v8695_v50 }
 0x660   : > { %v8956_v31 = vpop.f32.mrf.mxu2  ;;  %v15343_v4 = vpop.f32.mrf.mxu1  ;;  %v7612_v0 = vpack.c.b16 %v7595_v24, %v7594_v10  ;;  %v7005_v40 = vsel %vm11777_vm5, %v7003_v22, %v7004_v5 }
 0x661   : > { %11350 = vst [vmem:[%s15152_s27 + $0x20] sm:$0xff] %v11290_v51   ;;  %v8957_v1 = vadd.f32 %v8956_v31, %v8868_v60  ;;  %v9215_v51 = vrot.slane %v9213_v19, 5  ;;  %v6845_v31 = vld [vmem:[#allocation2 + $0xcc] sm:$0xe]  ;;  %v15372_v8 = vpop.f32.mrf.mxu0  ;;  %v8873_v16 = vadd.f32 %v15327_v20, %v8784_v37  ;;  %v10995_v37 = vld [vmem:[%s11565_s14 + $0x7c] sm:$0xf] }
 0x662   : > { %v10489_v26 = vrot.slane %v6845_v31, 9  ;;  %v10991_v60 = vld [vmem:[%s11565_s14 + $0x6c] sm:$0xf]  ;;  %v9247_v31 = vshll.u32 %v10993_v58, 16 }
 0x663   : > { %v9517_v32 = vadd.f32 %v9485_v48, %v8957_v1  ;;  %v9220_v53 = vor.u32 %v9219_v55, %v9215_v51  ;;  %v9216_v62 = vsel %vm11592_vm2, %v9211_v2, %v9215_v51  ;;  %v9228_v42 = vshrl.u32 %v10991_v60, 16  ;;  %v15390_v14 = vpop.f32.mrf.mxu3  ;;  %v10992_v1 = vld [vmem:[%s11565_s14 + $0x70] sm:$0xf]  ;;  %v10994_v2 = vld [vmem:[%s11565_s14 + $0x78] sm:$0xf] }
 0x664   : > { %v7002_v15 = vsel %vm11777_vm5, %v10489_v26, %v7001_v17  ;;  %v9231_v35 = vshll.u32 %v10991_v60, 16  ;;  %v8786_v48 = vadd.f32 %v15292_v36, %v8697_v30  ;;  %v9241_v13 = vshrl.u32 %v10992_v1, 16 }
 0x665   : > { %v9549_v9 = vmax.f32 %v9517_v32, 0.0  ;;  %v9221_v54 = vrot.slane %v9220_v53, 4  ;;  %v9487_v61 = vunpack.c.l.bf16 %v9216_v62  ;;  %v7596_v19 = vunpack.c.l.b16 %v7002_v15 }
 0x666   : > { %v9230_v7 = vrot.slane %v9228_v42, 4  ;;  %v9237_v24 = vshll.u32 %v10992_v1, 16  ;;  %v9243_v36 = vrot.slane %v9241_v13, 4  ;;  %v8700_v53 = vadd.f32 %v15319_v27, %v14849_v47 }
 0x667   : > { %v9226_v43 = vsel %vm11592_vm2, %v9221_v54, %v9225_v49  ;;  %v8702_v30 = vadd.f32 %v15340_v34, %v14870_v23  ;;  %v9255_v54 = vshll.u32 %v10994_v2, 16  ;;  %v9265_v15 = vshrl.u32 %v10995_v37, 16 }
 0x668   : > { %v8958_v52 = vpop.f32.mrf.mxu2  ;;  %v15366_v46 = vpop.f32.mrf.mxu1  ;;  %v9488_v20 = vunpack.c.l.bf16 %v9226_v43  ;;  %v9239_v17 = vrot.slane %v9237_v24, 5  ;;  %v8789_v47 = vadd.f32 %v15332_v59, %v8700_v53 }
 0x669   : > { %v8959_v45 = vadd.f32 %v8958_v52, %v8870_v41  ;;  %v7597_v41 = vunpack.c.l.b16 %v7005_v40  ;;  %v8875_v52 = vadd.f32 %v15343_v4, %v8786_v48  ;;  %v8791_v40 = vadd.f32 %v15354_v11, %v8702_v30 }
 0x66a   : > { %v8878_v49 = vadd.f32 %v15366_v46, %v8789_v47  ;;  %v9257_v59 = vrot.slane %v9255_v54, 5  ;;  %v9267_v13 = vrot.slane %v9265_v15, 4 }
 0x66b   : > { %v9518_v57 = vadd.f32 %v9486_v56, %v8959_v45  ;;  %8916 = vmatmul.bf16.gmra.mxu1 %v7549_v21  ;;  %v9233_v56 = vrot.slane %v9231_v35, 5  ;;  %v15397_v21 = vpop.f32.mrf.mxu0  ;;  %v7613_v39 = vpack.c.b16 %v7597_v41, %v7596_v19  ;;  %v15405_v4 = vpop.f32.mrf.mxu3  ;;  %v9261_v35 = vshll.u32 %v10995_v37, 16  ;;  %v10996_v19 = vld [vmem:[%s11565_s14 + $0x80] sm:$0x1]  ;;  %v10999_v37 = vld [vmem:[%s11565_s14 + $0x8c] sm:$0x1] }
 0x66d   : > { %v9550_v18 = vmax.f32 %v9518_v57, 0.0  ;;  %9000 = vmatmul.bf16.gmra.mxu2 %v7612_v0  ;;  %v9234_v51 = vor.u32 %v9233_v56, %v9230_v7  ;;  %v9244_v0 = vor.u32 %v9243_v36, %v9239_v17  ;;  %v9263_v11 = vrot.slane %v9261_v35, 5 }
 0x66f   : > { %v11295_v28 = vpack.c.bf16 %v9550_v18, %v9549_v9  ;;  %v9235_v9 = vrot.slane %v9234_v51, 4  ;;  %v9245_v5 = vrot.slane %v9244_v0, 4  ;;  %v9268_v24 = vor.u32 %v9267_v13, %v9263_v11 }
 0x670   : > { %v8961_v63 = vpop.f32.mrf.mxu2  ;;  %v15380_v25 = vpop.f32.mrf.mxu1 }
 0x671   : > { %11351 = vst [vmem:[%s15152_s27 + $0x28] sm:$0xff] %v11295_v28   ;;  %v8962_v33 = vadd.f32 %v8961_v63, %v8873_v16  ;;  %v9249_v28 = vrot.slane %v9247_v31, 5  ;;  %v9240_v27 = vsel %vm11592_vm2, %v9235_v9, %v9239_v17  ;;  %v9252_v63 = vshrl.u32 %v10994_v2, 16 }
 0x672   : > { %v9489_v23 = vunpack.c.l.bf16 %v9240_v27  ;;  %v8880_v1 = vadd.f32 %v15380_v25, %v8791_v40  ;;  %v8705_v25 = vadd.f32 %v15368_v3, %v14878_v12  ;;  %v9269_v51 = vrot.slane %v9268_v24, 4 }
 0x673   : > { %v9519_v45 = vadd.f32 %v9487_v61, %v8962_v33  ;;  %v15410_v60 = vpop.f32.mrf.mxu0  ;;  %v9250_v62 = vsel %vm11592_vm2, %v9245_v5, %v9249_v28  ;;  %v9254_v34 = vrot.slane %v9252_v63, 4  ;;  %v15423_v16 = vpop.f32.mrf.mxu3 }
 0x674   : > { %v9490_v48 = vunpack.c.l.bf16 %v9250_v62  ;;  %v8794_v0 = vadd.f32 %v15372_v8, %v8705_v25  ;;  %v11001_v25 = vld [vmem:[%s11565_s14 + $0x94] sm:$0xf] }
 0x675   : > { %v9551_v38 = vmax.f32 %v9519_v45, 0.0  ;;  %v9258_v41 = vor.u32 %v9257_v59, %v9254_v34  ;;  %v8710_v34 = vadd.f32 %v15405_v4, %v14906_v6 }
 0x677   : > { %v9259_v36 = vrot.slane %v9258_v41, 4  ;;  %v15828_v41 = vld [vmem:[#allocation34_spill] sm:$0xff] }
 0x678   : > { %v8963_v55 = vpop.f32.mrf.mxu2  ;;  %v15400_v32 = vpop.f32.mrf.mxu1 }
 0x679   : > { %v8964_v10 = vadd.f32 %v8963_v55, %v8875_v52  ;;  %v9271_v52 = vshll.u32 %v10996_v19, 16  ;;  %v9264_v12 = vsel %vm11592_vm2, %v9259_v36, %v9263_v11  ;;  %v8712_v11 = vadd.f32 %v15423_v16, %v15828_v41 }
 0x67b   : > { %v9520_v57 = vadd.f32 %v9488_v20, %v8964_v10  ;;  %v15429_v7 = vpop.f32.mrf.mxu0  ;;  %v10997_v10 = vld [vmem:[%s11565_s14 + $0x84] sm:$0xf]  ;;  %v9273_v17 = vrot.slane %v9271_v52, 5  ;;  %v15440_v31 = vpop.f32.mrf.mxu3 }
 0x67c   : > { %v9276_v3 = vshrl.u32 %v10997_v10, 16  ;;  %v9279_v53 = vshll.u32 %v10997_v10, 16  ;;  %v8801_v36 = vadd.f32 %v15429_v7, %v8712_v11 }
 0x67d   : > { %v9552_v50 = vmax.f32 %v9520_v57, 0.0  ;;  %9005 = vmatmul.bf16.gmra.mxu2 %v7613_v39  ;;  %v8707_v57 = vadd.f32 %v15390_v14, %v14899_v29  ;;  %v9274_v9 = vsel %vm11592_vm2, %v9269_v51, %v9273_v17  ;;  %v9491_v14 = vunpack.c.l.bf16 %v9264_v12 }
 0x67e   : > { %v9281_v5 = vrot.slane %v9279_v53, 5  ;;  %v9492_v47 = vunpack.c.l.bf16 %v9274_v9  ;;  %v9309_v51 = vshll.u32 %v11001_v25, 16 }
 0x67f   : > { %v11300_v18 = vpack.c.bf16 %v9552_v50, %v9551_v38  ;;  %v8883_v38 = vadd.f32 %v15400_v32, %v8794_v0  ;;  %v10998_v50 = vld [vmem:[%s11565_s14 + $0x88] sm:$0xf]  ;;  %v8796_v29 = vadd.f32 %v15397_v21, %v8707_v57 }
 0x680   : > { %v8966_v26 = vpop.f32.mrf.mxu2  ;;  %v15408_v22 = vpop.f32.mrf.mxu1  ;;  %v9285_v28 = vshll.u32 %v10998_v50, 16  ;;  %v9311_v9 = vrot.slane %v9309_v51, 5 }
 0x681   : > { %11352 = vst [vmem:[%s15152_s27 + $0x30] sm:$0xff] %v11300_v18   ;;  %v8967_v42 = vadd.f32 %v8966_v26, %v8878_v49  ;;  %v9289_v18 = vshrl.u32 %v10998_v50, 16  ;;  %v9278_v26 = vrot.slane %v9276_v3, 4  ;;  %v8885_v30 = vadd.f32 %v15408_v22, %v8796_v29 }
 0x682   : > { %v9287_v15 = vrot.slane %v9285_v28, 5 }
 0x683   : > { %v9521_v33 = vadd.f32 %v9489_v23, %v8967_v42  ;;  %v15448_v2 = vpop.f32.mrf.mxu0  ;;  %v9291_v63 = vrot.slane %v9289_v18, 4  ;;  %v9282_v62 = vor.u32 %v9281_v5, %v9278_v26  ;;  %v8716_v21 = vpop.f32.mrf.mxu3  ;;  %v9295_v23 = vshll.u32 %v10999_v37, 16  ;;  %v15830_v37 = vld [vmem:[#allocation32_spill] sm:$0xff] }
 0x685   : > { %v9553_v20 = vmax.f32 %v9521_v33, 0.0  ;;  %v9292_v42 = vor.u32 %v9291_v63, %v9287_v15  ;;  %v9283_v35 = vrot.slane %v9282_v62, 4  ;;  %v9297_v19 = vrot.slane %v9295_v23, 5 }
 0x686   : > { %v8717_v62 = vadd.f32 %v8716_v21, %v15830_v37 }
 0x687   : > { %v9288_v6 = vsel %vm11592_vm2, %v9283_v35, %v9287_v15 }
 0x688   : > { %v8968_v43 = vpop.f32.mrf.mxu2  ;;  %v15426_v46 = vpop.f32.mrf.mxu1  ;;  %v9493_v16 = vunpack.c.l.bf16 %v9288_v6 }
 0x689   : > { %v8969_v61 = vadd.f32 %v8968_v43, %v8880_v1  ;;  %v11000_v43 = vld [vmem:[%s11565_s14 + $0x90] sm:$0xf] }
 0x68a   : > { %v9300_v4 = vshrl.u32 %v11000_v43, 16  ;;  %v9303_v24 = vshll.u32 %v11000_v43, 16 }
 0x68b   : > { %v9522_v56 = vadd.f32 %v9490_v48, %v8969_v61  ;;  %v8805_v1 = vpop.f32.mrf.mxu0  ;;  %v9293_v61 = vrot.slane %v9292_v42, 4  ;;  %v8719_v10 = vpop.f32.mrf.mxu3 }
 0x68c   : > { %v8806_v43 = vadd.f32 %v8805_v1, %v8717_v62 }
 0x68d   : > { %v9554_v55 = vmax.f32 %v9522_v56, 0.0  ;;  %v8799_v56 = vadd.f32 %v15410_v60, %v8710_v34  ;;  %v9302_v60 = vrot.slane %v9300_v4, 4 }
 0x68f   : > { %v11305_v45 = vpack.c.bf16 %v9554_v55, %v9553_v20  ;;  %v8888_v52 = vadd.f32 %v15426_v46, %v8799_v56  ;;  %v9298_v20 = vsel %vm11592_vm2, %v9293_v61, %v9297_v19  ;;  %v9313_v55 = vshrl.u32 %v11001_v25, 16 }
 0x690   : > { %v8971_v39 = vpop.f32.mrf.mxu2  ;;  %v15434_v58 = vpop.f32.mrf.mxu1  ;;  %v9494_v57 = vunpack.c.l.bf16 %v9298_v20 }
 0x691   : > { %11353 = vst [vmem:[%s15152_s27 + $0x38] sm:$0xff] %v11305_v45   ;;  %v8972_v8 = vadd.f32 %v8971_v39, %v8883_v38  ;;  %v9305_v39 = vrot.slane %v9303_v24, 5  ;;  %v8890_v17 = vadd.f32 %v15434_v58, %v8801_v36  ;;  %v9315_v12 = vrot.slane %v9313_v55, 4  ;;  %v11002_v38 = vld [vmem:[%s11565_s14 + $0x98] sm:$0x1] }
 0x692   : > { %v11005_v24 = vld [vmem:[%s11565_s14 + $0xa4] sm:$0x1] }
 0x693   : > { %v9523_v54 = vadd.f32 %v9491_v14, %v8972_v8  ;;  %v15470_v46 = vpop.f32.mrf.mxu0  ;;  %v9306_v7 = vor.u32 %v9305_v39, %v9302_v60  ;;  %v9316_v29 = vor.u32 %v9315_v12, %v9311_v9  ;;  %v9319_v8 = vshll.u32 %v11002_v38, 16  ;;  %v15829_v14 = vld [vmem:[#allocation29_spill] sm:$0xff]  ;;  %v15832_v38 = vld [vmem:[#allocation43_spill] sm:$0xff] }
 0x694   : > { %v8715_v58 = vadd.f32 %v15440_v31, %v15829_v14  ;;  %v9343_v1 = vshll.u32 %v11005_v24, 16  ;;  %v11007_v14 = vld [vmem:[%s11565_s14 + $0xac] sm:$0xf] }
 0x695   : > { %v9555_v22 = vmax.f32 %v9523_v54, 0.0  ;;  %v9307_v28 = vrot.slane %v9306_v7, 4  ;;  %v9317_v54 = vrot.slane %v9316_v29, 4 }
 0x696   : > { %v8804_v15 = vadd.f32 %v15448_v2, %v8715_v58 }
 0x698   : > { %v8973_v27 = vpop.f32.mrf.mxu2  ;;  %v15452_v32 = vpop.f32.mrf.mxu1 }
 0x699   : > { %v8974_v49 = vadd.f32 %v8973_v27, %v8885_v30  ;;  %v8721_v27 = vpop.f32.mrf.mxu3  ;;  %v8893_v34 = vadd.f32 %v15452_v32, %v8804_v15 }
 0x69a   : > { %v8722_v7 = vadd.f32 %v8721_v27, %v15832_v38 }
 0x69b   : > { %v9524_v40 = vadd.f32 %v9492_v47, %v8974_v49  ;;  %v11003_v47 = vld [vmem:[%s11565_s14 + $0x9c] sm:$0xf]  ;;  %v9321_v49 = vrot.slane %v9319_v8, 5  ;;  %v8810_v23 = vpop.f32.mrf.mxu0 }
 0x69c   : > { %v9324_v42 = vshrl.u32 %v11003_v47, 16  ;;  %v9327_v31 = vshll.u32 %v11003_v47, 16 }
 0x69d   : > { %v9556_v59 = vmax.f32 %v9524_v40, 0.0  ;;  %v9312_v40 = vsel %vm11592_vm2, %v9307_v28, %v9311_v9  ;;  %v9322_v35 = vsel %vm11592_vm2, %v9317_v54, %v9321_v49  ;;  %v8811_v28 = vadd.f32 %v8810_v23, %v8722_v7 }
 0x69e   : > { %v9326_v2 = vrot.slane %v9324_v42, 4  ;;  %v9329_v61 = vrot.slane %v9327_v31, 5  ;;  %v9496_v11 = vunpack.c.l.bf16 %v9322_v35  ;;  %v11008_v31 = vld [vmem:[%s11565_s14 + $0xb0] sm:$0x1] }
 0x69f   : > { %v11310_v48 = vpack.c.bf16 %v9556_v59, %v9555_v22  ;;  %v11004_v22 = vld [vmem:[%s11565_s14 + $0xa0] sm:$0xf] }
 0x6a0   : > { %v8976_v13 = vpop.f32.mrf.mxu2  ;;  %v8894_v33 = vpop.f32.mrf.mxu1  ;;  %v9333_v19 = vshll.u32 %v11004_v22, 16  ;;  %v9330_v25 = vor.u32 %v9329_v61, %v9326_v2 }
 0x6a1   : > { %11354 = vst [vmem:[%s15152_s27 + $0x40] sm:$0xff] %v11310_v48   ;;  %v8977_v45 = vadd.f32 %v8976_v13, %v8888_v52  ;;  %v9337_v48 = vshrl.u32 %v11004_v22, 16  ;;  %v9495_v13 = vunpack.c.l.bf16 %v9312_v40  ;;  %v8895_v41 = vadd.f32 %v8894_v33, %v8806_v43  ;;  %v8724_v52 = vpop.f32.mrf.mxu3  ;;  %v15833_v43 = vld [vmem:[#allocation38_spill] sm:$0xff] }
 0x6a2   : > { %v9335_v20 = vrot.slane %v9333_v19, 5 }
 0x6a3   : > { %v9525_v3 = vadd.f32 %v9493_v16, %v8977_v45  ;;  %v9339_v6 = vrot.slane %v9337_v48, 4  ;;  %v8813_v45 = vpop.f32.mrf.mxu0  ;;  %v15831_v16 = vld [vmem:[#allocation30_spill] sm:$0xff]  ;;  %v9367_v48 = vshll.u32 %v11008_v31, 16 }
 0x6a4   : > { %v8720_v60 = vadd.f32 %v8719_v10, %v15831_v16  ;;  %v11010_v16 = vld [vmem:[%s11565_s14 + $0xb8] sm:$0xf] }
 0x6a5   : > { %v9557_v26 = vmax.f32 %v9525_v3, 0.0  ;;  %v9340_v36 = vor.u32 %v9339_v6, %v9335_v20  ;;  %v9369_v6 = vrot.slane %v9367_v48, 5  ;;  %v11013_v48 = vld [vmem:[%s11565_s14 + $0xc4] sm:$0xf] }
 0x6a6   : > { %v8809_v9 = vadd.f32 %v15470_v46, %v8720_v60 }
 0x6a7   : > { %v9341_v3 = vrot.slane %v9340_v36, 4 }
 0x6a8   : > { %v8978_v0 = vpop.f32.mrf.mxu2  ;;  %v15473_v50 = vpop.f32.mrf.mxu1 }
 0x6a9   : > { %v8979_v53 = vadd.f32 %v8978_v0, %v8890_v17  ;;  %v9331_v17 = vrot.slane %v9330_v25, 4  ;;  %v11006_v0 = vld [vmem:[%s11565_s14 + $0xa8] sm:$0xf]  ;;  %v8898_v8 = vadd.f32 %v15473_v50, %v8809_v9  ;;  %v8726_v58 = vpop.f32.mrf.mxu3 }
 0x6aa   : > { %v9348_v29 = vshrl.u32 %v11006_v0, 16  ;;  %v9351_v10 = vshll.u32 %v11006_v0, 16 }
 0x6ab   : > { %v9526_v18 = vadd.f32 %v9494_v57, %v8979_v53  ;;  %v9345_v53 = vrot.slane %v9343_v1, 5  ;;  %v8815_v54 = vpop.f32.mrf.mxu0 }
 0x6ac   : > { %v9350_v27 = vrot.slane %v9348_v29, 4  ;;  %v9353_v46 = vrot.slane %v9351_v10, 5  ;;  %v11011_v29 = vld [vmem:[%s11565_s14 + $0xbc] sm:$0x1] }
 0x6ad   : > { %v9558_v5 = vmax.f32 %v9526_v18, 0.0  ;;  %v9336_v18 = vsel %vm11592_vm2, %v9331_v17, %v9335_v20 }
 0x6ae   : > { %v9497_v47 = vunpack.c.l.bf16 %v9336_v18 }
 0x6af   : > { %v11315_v30 = vpack.c.bf16 %v9558_v5, %v9557_v26  ;;  %v9346_v26 = vsel %vm11592_vm2, %v9341_v3, %v9345_v53  ;;  %v9361_v5 = vshrl.u32 %v11007_v14, 16 }
 0x6b0   : > { %v8981_v63 = vpop.f32.mrf.mxu2  ;;  %v8899_v59 = vpop.f32.mrf.mxu1  ;;  %v9498_v37 = vunpack.c.l.bf16 %v9346_v26 }
 0x6b1   : > { %11355 = vst [vmem:[%s15152_s27 + $0x48] sm:$0xff] %v11315_v30   ;;  %v8982_v21 = vadd.f32 %v8981_v63, %v8893_v34  ;;  %v9357_v63 = vshll.u32 %v11007_v14, 16  ;;  %v8900_v49 = vadd.f32 %v8899_v59, %v8811_v28  ;;  %v9363_v50 = vrot.slane %v9361_v5, 4  ;;  %v8729_v61 = vpop.f32.mrf.mxu3 }
 0x6b2   : > { %v9354_v34 = vor.u32 %v9353_v46, %v9350_v27  ;;  %v9391_v28 = vshll.u32 %v11011_v29, 16 }
 0x6b3   : > { %v9527_v4 = vadd.f32 %v9495_v13, %v8982_v21  ;;  %v9359_v22 = vrot.slane %v9357_v63, 5  ;;  %v8725_v21 = vadd.f32 %v8724_v52, %v15833_v43 }
 0x6b4   : > { %v9355_v59 = vrot.slane %v9354_v34, 4 }
 0x6b5   : > { %v9559_v39 = vmax.f32 %v9527_v4, 0.0  ;;  %v9364_v23 = vor.u32 %v9363_v50, %v9359_v22  ;;  %v8818_v4 = vpop.f32.mrf.mxu0  ;;  %v8814_v25 = vadd.f32 %v8813_v45, %v8725_v21  ;;  %v9381_v45 = vshll.u32 %v11010_v16, 16  ;;  %v15836_v50 = vld [vmem:[#allocation33_spill] sm:$0xff] }
 0x6b6   : > { %v9409_v21 = vshrl.u32 %v11013_v48, 16 }
 0x6b8   : > { %v8983_v56 = vpop.f32.mrf.mxu2  ;;  %v8902_v51 = vpop.f32.mrf.mxu1 }
 0x6b9   : > { %v8984_v32 = vadd.f32 %v8983_v56, %v8895_v41  ;;  %v11009_v41 = vld [vmem:[%s11565_s14 + $0xb4] sm:$0xf]  ;;  %v9365_v56 = vrot.slane %v9364_v23, 4  ;;  %v8903_v1 = vadd.f32 %v8902_v51, %v8814_v25  ;;  %v8731_v38 = vpop.f32.mrf.mxu3 }
 0x6ba   : > { %v9372_v52 = vshrl.u32 %v11009_v41, 16  ;;  %v9375_v36 = vshll.u32 %v11009_v41, 16 }
 0x6bb   : > { %v9528_v55 = vadd.f32 %v9496_v11, %v8984_v32  ;;  %v15834_v32 = vld [vmem:[#allocation35_spill] sm:$0xff]  ;;  %v9370_v60 = vsel %vm11592_vm2, %v9365_v56, %v9369_v6  ;;  %v9405_v56 = vshll.u32 %v11013_v48, 16 }
 0x6bc   : > { %v8727_v24 = vadd.f32 %v8726_v58, %v15834_v32  ;;  %v9374_v0 = vrot.slane %v9372_v52, 4  ;;  %v9500_v53 = vunpack.c.l.bf16 %v9370_v60 }
 0x6bd   : > { %v9560_v33 = vmax.f32 %v9528_v55, 0.0  ;;  %v9360_v55 = vsel %vm11592_vm2, %v9355_v59, %v9359_v22  ;;  %v8820_v14 = vpop.f32.mrf.mxu0 }
 0x6bf   : > { %v11320_v57 = vpack.c.bf16 %v9560_v33, %v9559_v39  ;;  %v9385_v39 = vshrl.u32 %v11010_v16, 16  ;;  %v8816_v33 = vadd.f32 %v8815_v54, %v8727_v24  ;;  %v9411_v24 = vrot.slane %v9409_v21, 4 }
 0x6c0   : > { %v8986_v12 = vpop.f32.mrf.mxu2  ;;  %v8904_v62 = vpop.f32.mrf.mxu1 }
 0x6c1   : > { %11356 = vst [vmem:[%s15152_s27 + $0x50] sm:$0xff] %v11320_v57   ;;  %v8987_v30 = vadd.f32 %v8986_v12, %v8898_v8  ;;  %v9499_v57 = vunpack.c.l.bf16 %v9360_v55  ;;  %v9377_v12 = vrot.slane %v9375_v36, 5  ;;  %v8905_v3 = vadd.f32 %v8904_v62, %v8816_v33  ;;  %v8734_v31 = vpop.f32.mrf.mxu3  ;;  %v11014_v55 = vld [vmem:[%s11565_s14 + $0xc8] sm:$0x1]  ;;  %v15837_v33 = vld [vmem:[#allocation44_spill] sm:$0xff] }
 0x6c2   : > { %v9387_v9 = vrot.slane %v9385_v39, 4  ;;  %v9383_v8 = vrot.slane %v9381_v45, 5  ;;  %v9407_v36 = vrot.slane %v9405_v56, 5  ;;  %v9415_v39 = vshll.u32 %v11014_v55, 16 }
 0x6c3   : > { %v9529_v40 = vadd.f32 %v9497_v47, %v8987_v30  ;;  %v9378_v10 = vor.u32 %v9377_v12, %v9374_v0  ;;  %v15835_v30 = vld [vmem:[#allocation40_spill] sm:$0xff] }
 0x6c4   : > { %v9388_v5 = vor.u32 %v9387_v9, %v9383_v8  ;;  %v8730_v47 = vadd.f32 %v8729_v61, %v15835_v30  ;;  %v9412_v60 = vor.u32 %v9411_v24, %v9407_v36 }
 0x6c5   : > { %v9561_v13 = vmax.f32 %v9529_v40, 0.0  ;;  %v9379_v63 = vrot.slane %v9378_v10, 4  ;;  %v8732_v40 = vadd.f32 %v8731_v38, %v15836_v50 }
 0x6c6   : > { %v9389_v62 = vrot.slane %v9388_v5, 4  ;;  %v9413_v9 = vrot.slane %v9412_v60, 4  ;;  %v11016_v5 = vld [vmem:[%s11565_s14 + $0xd0] sm:$0xf] }
 0x6c7   : > { %v9384_v34 = vsel %vm11592_vm2, %v9379_v63, %v9383_v8  ;;  %v9433_v30 = vshrl.u32 %v11016_v5, 16 }
 0x6c8   : > { %v8988_v15 = vpop.f32.mrf.mxu2  ;;  %v8907_v20 = vpop.f32.mrf.mxu1  ;;  %v9501_v59 = vunpack.c.l.bf16 %v9384_v34 }
 0x6c9   : > { %v8989_v42 = vadd.f32 %v8988_v15, %v8900_v49  ;;  %v11012_v49 = vld [vmem:[%s11565_s14 + $0xc0] sm:$0xf]  ;;  %v9393_v15 = vrot.slane %v9391_v28, 5  ;;  %v8736_v16 = vpop.f32.mrf.mxu3 }
 0x6ca   : > { %v9396_v22 = vshrl.u32 %v11012_v49, 16 }
 0x6cb   : > { %v9530_v35 = vadd.f32 %v9498_v37, %v8989_v42  ;;  %v8819_v42 = vadd.f32 %v8818_v4, %v8730_v47  ;;  %v9394_v43 = vsel %vm11592_vm2, %v9389_v62, %v9393_v15 }
 0x6cc   : > { %v9398_v41 = vrot.slane %v9396_v22, 4  ;;  %v9502_v4 = vunpack.c.l.bf16 %v9394_v43  ;;  %v11017_v22 = vld [vmem:[%s11565_s14 + $0xd4] sm:$0x1] }
 0x6cd   : > { %v9562_v2 = vmax.f32 %v9530_v35, 0.0  ;;  %v9399_v35 = vshll.u32 %v11012_v49, 16  ;;  %v8908_v23 = vadd.f32 %v8907_v20, %v8819_v42  ;;  %v9435_v42 = vrot.slane %v9433_v30, 4 }
 0x6cf   : > { %v11325_v19 = vpack.c.bf16 %v9562_v2, %v9561_v13  ;;  %v8823_v13 = vpop.f32.mrf.mxu0  ;;  %v8821_v2 = vadd.f32 %v8820_v14, %v8732_v40 }
 0x6d0   : > { %v8991_v11 = vpop.f32.mrf.mxu2  ;;  %v8909_v26 = vpop.f32.mrf.mxu1 }
 0x6d1   : > { %11357 = vst [vmem:[%s15152_s27 + $0x58] sm:$0xff] %v11325_v19   ;;  %v8992_v17 = vadd.f32 %v8991_v11, %v8903_v1  ;;  %v9401_v11 = vrot.slane %v9399_v35, 5  ;;  %v8910_v6 = vadd.f32 %v8909_v26, %v8821_v2  ;;  %v8739_v63 = vpop.f32.mrf.mxu3  ;;  %v15839_v2 = vld [vmem:[#allocation37_spill] sm:$0xff] }
 0x6d3   : > { %v9531_v18 = vadd.f32 %v9499_v57, %v8992_v17  ;;  %v9402_v52 = vor.u32 %v9401_v11, %v9398_v41  ;;  %v8735_v17 = vadd.f32 %v8734_v31, %v15837_v33 }
 0x6d5   : > { %v9563_v27 = vmax.f32 %v9531_v18, 0.0  ;;  %v9403_v12 = vrot.slane %v9402_v52, 4  ;;  %v9417_v18 = vrot.slane %v9415_v39, 5  ;;  %v8824_v10 = vadd.f32 %v8823_v13, %v8735_v17 }
 0x6d6   : > { %v9439_v13 = vshll.u32 %v11017_v22, 16 }
 0x6d7   : > { %v8825_v45 = vpop.f32.mrf.mxu0  ;;  %v9408_v8 = vsel %vm11592_vm2, %v9403_v12, %v9407_v36  ;;  %v9418_v28 = vsel %vm11592_vm2, %v9413_v9, %v9417_v18 }
 0x6d8   : > { %v8993_v7 = vpop.f32.mrf.mxu2  ;;  %v8912_v19 = vpop.f32.mrf.mxu1  ;;  %v9504_v15 = vunpack.c.l.bf16 %v9418_v28 }
 0x6d9   : > { %v8994_v51 = vadd.f32 %v8993_v7, %v8905_v3  ;;  %v8913_v26 = vadd.f32 %v8912_v19, %v8824_v10  ;;  %v8741_v56 = vpop.f32.mrf.mxu3 }
 0x6db   : > { %v9532_v58 = vadd.f32 %v9500_v53, %v8994_v51  ;;  %v11015_v53 = vld [vmem:[%s11565_s14 + $0xcc] sm:$0xf]  ;;  %v15838_v51 = vld [vmem:[#allocation39_spill] sm:$0xff] }
 0x6dc   : > { %v8737_v29 = vadd.f32 %v8736_v16, %v15838_v51  ;;  %v9420_v14 = vshrl.u32 %v11015_v53, 16 }
 0x6dd   : > { %v9564_v46 = vmax.f32 %v9532_v58, 0.0  ;;  %v9423_v58 = vshll.u32 %v11015_v53, 16 }
 0x6de   : > { %v8826_v47 = vadd.f32 %v8825_v45, %v8737_v29 }
 0x6df   : > { %v11330_v54 = vpack.c.bf16 %v9564_v46, %v9563_v27  ;;  %v9503_v46 = vunpack.c.l.bf16 %v9408_v8  ;;  %v9425_v49 = vrot.slane %v9423_v58, 5  ;;  %v8828_v50 = vpop.f32.mrf.mxu0 }
 0x6e0   : > { %v8996_v37 = vpop.f32.mrf.mxu2  ;;  %v8914_v38 = vpop.f32.mrf.mxu1 }
 0x6e1   : > { %11358 = vst [vmem:[%s15152_s27 + $0x60] sm:$0xff] %v11330_v54   ;;  %v8997_v61 = vadd.f32 %v8996_v37, %v8908_v23  ;;  %v9422_v54 = vrot.slane %v9420_v14, 4  ;;  %v9429_v37 = vshll.u32 %v11016_v5, 16  ;;  %v8915_v62 = vadd.f32 %v8914_v38, %v8826_v47 }
 0x6e3   : > { %v9533_v25 = vadd.f32 %v9501_v59, %v8997_v61  ;;  %v9426_v23 = vor.u32 %v9425_v49, %v9422_v54  ;;  %v9431_v48 = vrot.slane %v9429_v37, 5  ;;  %v8740_v61 = vadd.f32 %v8739_v63, %v15839_v2 }
 0x6e5   : > { %v9565_v57 = vmax.f32 %v9533_v25, 0.0  ;;  %v9436_v21 = vor.u32 %v9435_v42, %v9431_v48  ;;  %v9427_v41 = vrot.slane %v9426_v23, 4  ;;  %v8829_v24 = vadd.f32 %v8828_v50, %v8740_v61  ;;  %v15840_v25 = vld [vmem:[#allocation36_spill] sm:$0xff] }
 0x6e7   : > { %v8830_v55 = vpop.f32.mrf.mxu0  ;;  %v9432_v52 = vsel %vm11592_vm2, %v9427_v41, %v9431_v48 }
 0x6e8   : > { %v8998_v32 = vpop.f32.mrf.mxu2  ;;  %v8917_v35 = vpop.f32.mrf.mxu1  ;;  %v9505_v33 = vunpack.c.l.bf16 %v9432_v52 }
 0x6e9   : > { %v8999_v20 = vadd.f32 %v8998_v32, %v8910_v6  ;;  %v9441_v32 = vrot.slane %v9439_v13, 5  ;;  %v8918_v36 = vadd.f32 %v8917_v35, %v8829_v24 }
 0x6eb   : > { %v9534_v1 = vadd.f32 %v9502_v4, %v8999_v20  ;;  %v9437_v4 = vrot.slane %v9436_v21, 4  ;;  %v8742_v20 = vadd.f32 %v8741_v56, %v15840_v25 }
 0x6ed   : > { %v9566_v0 = vmax.f32 %v9534_v1, 0.0  ;;  %v9442_v16 = vsel %vm11592_vm2, %v9437_v4, %v9441_v32  ;;  %v8831_v60 = vadd.f32 %v8830_v55, %v8742_v20 }
 0x6ef   : > { %v11335_v3 = vpack.c.bf16 %v9566_v0, %v9565_v57  ;;  %v9506_v57 = vunpack.c.l.bf16 %v9442_v16 }
 0x6f0   : > { %v9001_v7 = vpop.f32.mrf.mxu2  ;;  %v8919_v1 = vpop.f32.mrf.mxu1 }
 0x6f1   : > { %11359 = vst [vmem:[%s15152_s27 + $0x68] sm:$0xff] %v11335_v3   ;;  %v9002_v27 = vadd.f32 %v9001_v7, %v8913_v26  ;;  %v8920_v17 = vadd.f32 %v8919_v1, %v8831_v60 }
 0x6f3   : > { %v9535_v31 = vadd.f32 %v9503_v46, %v9002_v27 }
 0x6f5   : > { %v9567_v59 = vmax.f32 %v9535_v31, 0.0 }
 0x6f8   : > { %v9003_v40 = vpop.f32.mrf.mxu2 }
 0x6f9   : > { %v9004_v34 = vadd.f32 %v9003_v40, %v8915_v62 }
 0x6fb   : > { %v9536_v43 = vadd.f32 %v9504_v15, %v9004_v34 }
 0x6fd   : > { %v9568_v19 = vmax.f32 %v9536_v43, 0.0 }
 0x6ff   : > { %v11340_v11 = vpack.c.bf16 %v9568_v19, %v9567_v59 }
 0x700   : > { %v9006_v6 = vpop.f32.mrf.mxu2 }
 0x701   : > { %11360 = vst [vmem:[%s15152_s27 + $0x70] sm:$0xff] %v11340_v11   ;;  %v9007_v39 = vadd.f32 %v9006_v6, %v8918_v36 }
 0x703   : > { %v9537_v12 = vadd.f32 %v9505_v33, %v9007_v39 }
 0x705   : > { %v9569_v53 = vmax.f32 %v9537_v12, 0.0 }
 0x708   : > { %v9008_v0 = vpop.f32.mrf.mxu2 }
 0x709   : > { %v9009_v45 = vadd.f32 %v9008_v0, %v8920_v17 }
 0x70b   : > { %v9538_v3 = vadd.f32 %v9506_v57, %v9009_v45 }
 0x70d   : > { %v9570_v38 = vmax.f32 %v9538_v3, 0.0 }
 0x70f   : > { %v11345_v7 = vpack.c.bf16 %v9570_v38, %v9569_v53 }
 0x711   : > { %11361 = vst [vmem:[%s15152_s27 + $0x78] sm:$0xff] %v11345_v7  }
 0x712 PF: > { %s15_s20 = sadd.s32 1, %s11485_s20   ;;  %s15841_s18 = smov %s11481_s19 }
 0x713   : > { %p12_p5 = scmp.ge.s32.totalorder %s15_s20, 4   ;;  %s15842_s19 = smov %s15844_s21 }
 0x715   :  { %14 = sbr.rel (!%p12_p5) target bundleno = 2 (0x2), region = 80 }

</bundles_post_ra>
